<compile_context>
chip_gen: v7x
topology: tpu7x:2x2x1
jax: 0.10.0
libtpu: 0.0.40
codegen_flags: <defaults>
</compile_context>

<pallas_src>
import jax
import jax.numpy as jnp
from jax.experimental import pallas as pl
from jax.experimental.pallas import tpu as pltpu


# ------------------------------ static geometry ------------------------------
_PAD_IN = 128                     # l2_ contraction dim, 100 -> 128
_H4 = 2816                        # padded l4 width (2700 -> 2816)
_CONV_W = 896                     # 7*128 lanes; covers every valid flat pixel (< 840)
# pats row j <-> conv tap (c, kh, kw); shift into the per-sample flat (c,i,j) vector.
_SHIFTS = tuple(c * 900 + kh * 30 + kw
                for c in range(3) for kh in range(3) for kw in range(3)) + (0,) * 5
_NVALID_PER_SAMPLE = 28 * 28


def _vmem_limit_bytes():
    # Stay within physical VMEM on every generation (v7x: 64 MiB/TC, v5e/v6e: 128).
    try:
        cap = pltpu.get_tpu_info().vmem_capacity_bytes
    except Exception:
        cap = 64 << 20
    return int(min(96 << 20, (cap * 3) // 4))


_VMEM = pl.BlockSpec(memory_space=pltpu.MemorySpace.VMEM)


# ------------------------------- fused kernel --------------------------------

def _net1_fused_kernel(x_ref, w2_ref, b2_ref, w3_ref, b3_ref, w4_ref, b4_ref,
                       wc4_ref, gam_ref, bet_ref, wc5_ref, mask_ref,
                       o_ref, pats_ref, conv_ref):
    B = x_ref.shape[0]
    f32 = jnp.float32

    # --- MLP trunk: 3 x (matmul + bias + ReLU); native bf16 MXU path, f32 accum ---
    h = jnp.dot(x_ref[...].astype(jnp.bfloat16), w2_ref[...],
                preferred_element_type=f32) + b2_ref[...]
    h = jnp.maximum(h, 0.0)                                  # l2_: 100 -> 252 (+pad)
    h = jnp.dot(h.astype(jnp.bfloat16), w3_ref[...],
                preferred_element_type=f32) + b3_ref[...]
    h = jnp.maximum(h, 0.0)                                  # l3 : 252 -> 600 (+pad)
    h = jnp.dot(h.astype(jnp.bfloat16), w4_ref[...],
                preferred_element_type=f32) + b4_ref[...]
    h4 = jnp.maximum(h, 0.0)                                 # l4 : (B, 2816); cols>=2700 == 0

    # --- im2col in VMEM: pats[b, j, g] = h4[b, g + shift_j], g = oi*30 + oj ---
    # (rows 27..31 are alignment padding; their conv weights are zero)
    for j, s in enumerate(_SHIFTS):                          # 32 static slices
        pats_ref[:, j, :] = h4[:, s:s + _CONV_W]

    # --- c4: 3x3 conv (no bias) as a per-sample (32,32)x(32,896) matmul ---
    for b in range(B):                                       # static; small-B fused path
        conv_ref[b, :, :] = jnp.dot(wc4_ref[...], pats_ref[b, :, :],
                                    preferred_element_type=f32)

    conv = conv_ref[...]                                     # (B, 32, 896)

    # --- bn28_2: training-mode batch stats over the 784 valid pixels/sample ---
    m = mask_ref[...]                                        # (1, 1, 896) validity mask
    cm = conv * m
    n = f32(B * _NVALID_PER_SAMPLE)
    s1 = jnp.sum(cm, axis=(0, 2), keepdims=True)             # (1, 32, 1)
    s2 = jnp.sum(cm * cm, axis=(0, 2), keepdims=True)        # one-pass stats
    mean = s1 / n
    var = jnp.maximum(s2 / n - mean * mean, 0.0)             # biased var, f32, clamped
    scale = gam_ref[...] * jax.lax.rsqrt(var + 1e-5)
    shift = bet_ref[...] - mean * scale
    y = jnp.maximum(conv * scale + shift, 0.0)               # BN + ReLU

    # --- c5: 1x1 conv (no bias) + ReLU -> lane-aligned (B, 896) output ---
    z = jnp.sum(y * wc5_ref[...], axis=1)
    o_ref[...] = jnp.maximum(z, 0.0)
    # TODO(synk): PyTorch training-mode BN also updates running_mean/running_var;
    # that stateful side effect is not reproduced here.


# --------------------------------- wrapper -----------------------------------

def net1_forward(x, params):
    B = x.shape[0]
    p = params
    xp = jnp.pad(x, ((0, 0), (0, _PAD_IN - x.shape[1])))     # 100 -> 128 K dim

    # TODO(synk): for large B, split the batch over a grid with two-pass BN
    # (accumulate per-channel sum/sum-sq across batch tiles) and mark the axis
    # "parallel" so v7x's two TensorCores both work; this single-call path keeps
    # the whole batch resident (~4 MB at B=2) and targets small/moderate B.
    out = pl.pallas_call(
        _net1_fused_kernel,
        out_shape=jax.ShapeDtypeStruct((B, _CONV_W), jnp.float32),
        in_specs=[_VMEM] * 12,
        out_specs=_VMEM,
        scratch_shapes=[pltpu.VMEM((B, 32, _CONV_W), jnp.float32),   # pats (im2col)
                        pltpu.VMEM((B, 32, _CONV_W), jnp.float32)],  # conv output
        compiler_params=pltpu.CompilerParams(vmem_limit_bytes=_vmem_limit_bytes()),
    )(xp, p["w2"], p["b2"], p["w3"], p["b3"], p["w4"], p["b4"],
      p["wc4"], p["gamma"], p["beta"], p["wc5"], p["mask"])

    # crop g = oi*30 + oj back to the 28x28 valid window -> NCHW (B, 1, 28, 28)
    return out[:, :840].reshape(B, 28, 30)[:, :, :28].reshape(B, 1, 28, 28)


# --------------------------- deterministic params ----------------------------

def init_params(key):
    ks = jax.random.split(key, 5)

    def linear(k, fan_in, fan_out, pad_in, pad_out):
        # PyTorch Linear default init, stored (in, out) so x @ W == x @ weight.T,
        # zero-padded to MXU/lane-friendly shapes; weights kept in bf16.
        bound = 1.0 / (fan_in ** 0.5)
        kw, kb = jax.random.split(k)
        w = jax.random.uniform(kw, (fan_in, fan_out), jnp.float32, -bound, bound)
        b = jax.random.uniform(kb, (fan_out,), jnp.float32, -bound, bound)
        wp = jnp.zeros((pad_in, pad_out), jnp.float32).at[:fan_in, :fan_out].set(w)
        bp = jnp.zeros((1, pad_out), jnp.float32).at[0, :fan_out].set(b)
        return wp.astype(jnp.bfloat16), bp

    w2, b2 = linear(ks[0], 100, 28 * 3 * 3, _PAD_IN, 256)    # l2_: 100 -> 252 (pad 128x256)
    w3, b3 = linear(ks[1], 28 * 3 * 3, 600, 256, 640)        # l3 : 252 -> 600 (pad 256x640)
    w4, b4 = linear(ks[2], 600, 2700, 640, _H4)              # l4 : 600 -> 2700 (pad 640x2816)

    # c4: Conv2d(3, 28, 3, bias=False); c5: Conv2d(28, 1, 1, bias=False)
    b_c4 = 1.0 / ((3 * 3 * 3) ** 0.5)
    wc4 = jax.random.uniform(ks[3], (28, 3, 3, 3), jnp.float32, -b_c4, b_c4)
    b_c5 = 1.0 / (28.0 ** 0.5)
    wc5 = jax.random.uniform(ks[4], (1, 28, 1, 1), jnp.float32, -b_c5, b_c5)

    # Kernel-ready, (8,128)-aligned layouts (hoisted to init, not per forward).
    wc4_mat = jnp.zeros((32, 32), jnp.float32).at[:28, :27].set(wc4.reshape(28, 27))
    wc5_col = jnp.zeros((1, 32, 1), jnp.float32).at[0, :28, 0].set(wc5.reshape(28))
    gamma = jnp.ones((1, 32, 1), jnp.float32)    # BatchNorm2d default affine init
    beta = jnp.zeros((1, 32, 1), jnp.float32)

    # validity mask over the 896-wide flattened (oi, oj) window: oi < 28, oj < 28
    g = jnp.arange(_CONV_W)
    mask = (((g < 28 * 30) & ((g % 30) < 28)).astype(jnp.float32)).reshape(1, 1, _CONV_W)

    return dict(w2=w2, b2=b2, w3=w3, b3=b3, w4=w4, b4=b4,
                wc4=wc4_mat, wc5=wc5_col, gamma=gamma, beta=beta, mask=mask)


# ----------------------------------- main -------------------------------------

if __name__ == "__main__":
    key = jax.random.PRNGKey(0)
    pkey, xkey = jax.random.split(key)
    params = init_params(pkey)

    # Net1 consumes a (B, 100) latent vector.
    x = jax.random.normal(xkey, (2, 100), dtype=jnp.float32)

    out = net1_forward(x, params)
    out = jax.block_until_ready(out)

    assert out.shape == (2, 1, 28, 28), out.shape
    assert bool(jnp.all(jnp.isfinite(out)))
    assert bool(jnp.all(out >= 0.0))  # final ReLU
    print("KERNEL_OK")
</pallas_src>

<mosaic_0001>
module attributes {stable_mosaic.version = 11 : i64} {
  func.func @_net1_fused_kernel(%arg0: memref<2x128xf32, #tpu.memory_space<vmem>>, %arg1: memref<128x256xbf16, #tpu.memory_space<vmem>>, %arg2: memref<1x256xf32, #tpu.memory_space<vmem>>, %arg3: memref<256x640xbf16, #tpu.memory_space<vmem>>, %arg4: memref<1x640xf32, #tpu.memory_space<vmem>>, %arg5: memref<640x2816xbf16, #tpu.memory_space<vmem>>, %arg6: memref<1x2816xf32, #tpu.memory_space<vmem>>, %arg7: memref<32x32xf32, #tpu.memory_space<vmem>>, %arg8: memref<1x32x1xf32, #tpu.memory_space<vmem>>, %arg9: memref<1x32x1xf32, #tpu.memory_space<vmem>>, %arg10: memref<1x32x1xf32, #tpu.memory_space<vmem>>, %arg11: memref<1x1x896xf32, #tpu.memory_space<vmem>>, %arg12: memref<2x896xf32, #tpu.memory_space<vmem>>, %arg13: memref<2x32x896xf32, #tpu.memory_space<vmem>>, %arg14: memref<2x32x896xf32, #tpu.memory_space<vmem>>) attributes {dimension_semantics = [], scalar_prefetch = 0 : i64, scratch_operands = 2 : i64, tpu.core_type = #tpu.core_type<tc>} {
    %c0 = arith.constant 0 : index
    %c0_0 = arith.constant 0 : index
    %0 = vector.load %arg0[%c0, %c0_0] : memref<2x128xf32, #tpu.memory_space<vmem>>, vector<2x128xf32>
    %1 = arith.truncf %0 : vector<2x128xf32> to vector<2x128xbf16>
    %c0_1 = arith.constant 0 : index
    %c0_2 = arith.constant 0 : index
    %2 = vector.load %arg1[%c0_1, %c0_2] : memref<128x256xbf16, #tpu.memory_space<vmem>>, vector<128x256xbf16>
    %cst = arith.constant dense<0.000000e+00> : vector<2x256xf32>
    %3 = tpu.matmul %1, %2, %cst {dimension_numbers = #tpu.dot_dimension_numbers<[1], [0], [0], [1], [0, 0, 1, 1], [], []>} : vector<2x128xbf16>, vector<128x256xbf16>, vector<2x256xf32> -> vector<2x256xf32>
    %c0_3 = arith.constant 0 : index
    %c0_4 = arith.constant 0 : index
    %4 = vector.load %arg2[%c0_3, %c0_4] : memref<1x256xf32, #tpu.memory_space<vmem>>, vector<1x256xf32>
    %5 = vector.broadcast %4 : vector<1x256xf32> to vector<2x256xf32>
    %6 = arith.addf %3, %5 : vector<2x256xf32>
    %cst_5 = arith.constant 0.000000e+00 : f32
    %7 = vector.broadcast %cst_5 : f32 to vector<2x256xf32>
    %8 = arith.maximumf %6, %7 : vector<2x256xf32>
    %9 = arith.truncf %8 : vector<2x256xf32> to vector<2x256xbf16>
    %c0_6 = arith.constant 0 : index
    %c0_7 = arith.constant 0 : index
    %10 = vector.load %arg3[%c0_6, %c0_7] : memref<256x640xbf16, #tpu.memory_space<vmem>>, vector<256x640xbf16>
    %cst_8 = arith.constant dense<0.000000e+00> : vector<2x640xf32>
    %11 = tpu.matmul %9, %10, %cst_8 {dimension_numbers = #tpu.dot_dimension_numbers<[1], [0], [0], [1], [0, 0, 1, 1], [], []>} : vector<2x256xbf16>, vector<256x640xbf16>, vector<2x640xf32> -> vector<2x640xf32>
    %c0_9 = arith.constant 0 : index
    %c0_10 = arith.constant 0 : index
    %12 = vector.load %arg4[%c0_9, %c0_10] : memref<1x640xf32, #tpu.memory_space<vmem>>, vector<1x640xf32>
    %13 = vector.broadcast %12 : vector<1x640xf32> to vector<2x640xf32>
    %14 = arith.addf %11, %13 : vector<2x640xf32>
    %cst_11 = arith.constant 0.000000e+00 : f32
    %15 = vector.broadcast %cst_11 : f32 to vector<2x640xf32>
    %16 = arith.maximumf %14, %15 : vector<2x640xf32>
    %17 = arith.truncf %16 : vector<2x640xf32> to vector<2x640xbf16>
    %c0_12 = arith.constant 0 : index
    %c0_13 = arith.constant 0 : index
    %18 = vector.load %arg5[%c0_12, %c0_13] : memref<640x2816xbf16, #tpu.memory_space<vmem>>, vector<640x2816xbf16>
    %cst_14 = arith.constant dense<0.000000e+00> : vector<2x2816xf32>
    %19 = tpu.matmul %17, %18, %cst_14 {dimension_numbers = #tpu.dot_dimension_numbers<[1], [0], [0], [1], [0, 0, 1, 1], [], []>} : vector<2x640xbf16>, vector<640x2816xbf16>, vector<2x2816xf32> -> vector<2x2816xf32>
    %c0_15 = arith.constant 0 : index
    %c0_16 = arith.constant 0 : index
    %20 = vector.load %arg6[%c0_15, %c0_16] : memref<1x2816xf32, #tpu.memory_space<vmem>>, vector<1x2816xf32>
    %21 = vector.broadcast %20 : vector<1x2816xf32> to vector<2x2816xf32>
    %22 = arith.addf %19, %21 : vector<2x2816xf32>
    %cst_17 = arith.constant 0.000000e+00 : f32
    %23 = vector.broadcast %cst_17 : f32 to vector<2x2816xf32>
    %24 = arith.maximumf %22, %23 : vector<2x2816xf32>
    %25 = vector.extract_strided_slice %24 {offsets = [0, 0], sizes = [2, 896], strides = [1, 1]} : vector<2x2816xf32> to vector<2x896xf32>
    %c0_18 = arith.constant 0 : index
    %c0_19 = arith.constant 0 : index
    %c0_20 = arith.constant 0 : index
    %26 = vector.load %arg13[%c0_18, %c0_19, %c0_20] : memref<2x32x896xf32, #tpu.memory_space<vmem>>, vector<2x1x896xf32>
    %27 = vector.shape_cast %26 : vector<2x1x896xf32> to vector<2x896xf32>
    %28 = vector.shape_cast %25 : vector<2x896xf32> to vector<2x1x896xf32>
    tpu.vector_store %arg13[%c0_18, %c0_19, %c0_20], %28 {strides = array<i32>} : memref<2x32x896xf32, #tpu.memory_space<vmem>>, vector<2x1x896xf32>,
    %29 = vector.extract_strided_slice %24 {offsets = [0, 1], sizes = [2, 896], strides = [1, 1]} : vector<2x2816xf32> to vector<2x896xf32>
    %c0_21 = arith.constant 0 : index
    %c1 = arith.constant 1 : index
    %c0_22 = arith.constant 0 : index
    %30 = vector.load %arg13[%c0_21, %c1, %c0_22] : memref<2x32x896xf32, #tpu.memory_space<vmem>>, vector<2x1x896xf32>
    %31 = vector.shape_cast %30 : vector<2x1x896xf32> to vector<2x896xf32>
    %32 = vector.shape_cast %29 : vector<2x896xf32> to vector<2x1x896xf32>
    tpu.vector_store %arg13[%c0_21, %c1, %c0_22], %32 {strides = array<i32>} : memref<2x32x896xf32, #tpu.memory_space<vmem>>, vector<2x1x896xf32>,
    %33 = vector.extract_strided_slice %24 {offsets = [0, 2], sizes = [2, 896], strides = [1, 1]} : vector<2x2816xf32> to vector<2x896xf32>
    %c0_23 = arith.constant 0 : index
    %c2 = arith.constant 2 : index
    %c0_24 = arith.constant 0 : index
    %34 = vector.load %arg13[%c0_23, %c2, %c0_24] : memref<2x32x896xf32, #tpu.memory_space<vmem>>, vector<2x1x896xf32>
    %35 = vector.shape_cast %34 : vector<2x1x896xf32> to vector<2x896xf32>
    %36 = vector.shape_cast %33 : vector<2x896xf32> to vector<2x1x896xf32>
    tpu.vector_store %arg13[%c0_23, %c2, %c0_24], %36 {strides = array<i32>} : memref<2x32x896xf32, #tpu.memory_space<vmem>>, vector<2x1x896xf32>,
    %37 = vector.extract_strided_slice %24 {offsets = [0, 30], sizes = [2, 896], strides = [1, 1]} : vector<2x2816xf32> to vector<2x896xf32>
    %c0_25 = arith.constant 0 : index
    %c3 = arith.constant 3 : index
    %c0_26 = arith.constant 0 : index
    %38 = vector.load %arg13[%c0_25, %c3, %c0_26] : memref<2x32x896xf32, #tpu.memory_space<vmem>>, vector<2x1x896xf32>
    %39 = vector.shape_cast %38 : vector<2x1x896xf32> to vector<2x896xf32>
    %40 = vector.shape_cast %37 : vector<2x896xf32> to vector<2x1x896xf32>
    tpu.vector_store %arg13[%c0_25, %c3, %c0_26], %40 {strides = array<i32>} : memref<2x32x896xf32, #tpu.memory_space<vmem>>, vector<2x1x896xf32>,
    %41 = vector.extract_strided_slice %24 {offsets = [0, 31], sizes = [2, 896], strides = [1, 1]} : vector<2x2816xf32> to vector<2x896xf32>
    %c0_27 = arith.constant 0 : index
    %c4 = arith.constant 4 : index
    %c0_28 = arith.constant 0 : index
    %42 = vector.load %arg13[%c0_27, %c4, %c0_28] : memref<2x32x896xf32, #tpu.memory_space<vmem>>, vector<2x1x896xf32>
    %43 = vector.shape_cast %42 : vector<2x1x896xf32> to vector<2x896xf32>
    %44 = vector.shape_cast %41 : vector<2x896xf32> to vector<2x1x896xf32>
    tpu.vector_store %arg13[%c0_27, %c4, %c0_28], %44 {strides = array<i32>} : memref<2x32x896xf32, #tpu.memory_space<vmem>>, vector<2x1x896xf32>,
    %45 = vector.extract_strided_slice %24 {offsets = [0, 32], sizes = [2, 896], strides = [1, 1]} : vector<2x2816xf32> to vector<2x896xf32>
    %c0_29 = arith.constant 0 : index
    %c5 = arith.constant 5 : index
    %c0_30 = arith.constant 0 : index
    %46 = vector.load %arg13[%c0_29, %c5, %c0_30] : memref<2x32x896xf32, #tpu.memory_space<vmem>>, vector<2x1x896xf32>
    %47 = vector.shape_cast %46 : vector<2x1x896xf32> to vector<2x896xf32>
    %48 = vector.shape_cast %45 : vector<2x896xf32> to vector<2x1x896xf32>
    tpu.vector_store %arg13[%c0_29, %c5, %c0_30], %48 {strides = array<i32>} : memref<2x32x896xf32, #tpu.memory_space<vmem>>, vector<2x1x896xf32>,
    %49 = vector.extract_strided_slice %24 {offsets = [0, 60], sizes = [2, 896], strides = [1, 1]} : vector<2x2816xf32> to vector<2x896xf32>
    %c0_31 = arith.constant 0 : index
    %c6 = arith.constant 6 : index
    %c0_32 = arith.constant 0 : index
    %50 = vector.load %arg13[%c0_31, %c6, %c0_32] : memref<2x32x896xf32, #tpu.memory_space<vmem>>, vector<2x1x896xf32>
    %51 = vector.shape_cast %50 : vector<2x1x896xf32> to vector<2x896xf32>
    %52 = vector.shape_cast %49 : vector<2x896xf32> to vector<2x1x896xf32>
    tpu.vector_store %arg13[%c0_31, %c6, %c0_32], %52 {strides = array<i32>} : memref<2x32x896xf32, #tpu.memory_space<vmem>>, vector<2x1x896xf32>,
    %53 = vector.extract_strided_slice %24 {offsets = [0, 61], sizes = [2, 896], strides = [1, 1]} : vector<2x2816xf32> to vector<2x896xf32>
    %c0_33 = arith.constant 0 : index
    %c7 = arith.constant 7 : index
    %c0_34 = arith.constant 0 : index
    %54 = vector.load %arg13[%c0_33, %c7, %c0_34] : memref<2x32x896xf32, #tpu.memory_space<vmem>>, vector<2x1x896xf32>
    %55 = vector.shape_cast %54 : vector<2x1x896xf32> to vector<2x896xf32>
    %56 = vector.shape_cast %53 : vector<2x896xf32> to vector<2x1x896xf32>
    tpu.vector_store %arg13[%c0_33, %c7, %c0_34], %56 {strides = array<i32>} : memref<2x32x896xf32, #tpu.memory_space<vmem>>, vector<2x1x896xf32>,
    %57 = vector.extract_strided_slice %24 {offsets = [0, 62], sizes = [2, 896], strides = [1, 1]} : vector<2x2816xf32> to vector<2x896xf32>
    %c0_35 = arith.constant 0 : index
    %c8 = arith.constant 8 : index
    %c0_36 = arith.constant 0 : index
    %58 = vector.load %arg13[%c0_35, %c8, %c0_36] : memref<2x32x896xf32, #tpu.memory_space<vmem>>, vector<2x1x896xf32>
    %59 = vector.shape_cast %58 : vector<2x1x896xf32> to vector<2x896xf32>
    %60 = vector.shape_cast %57 : vector<2x896xf32> to vector<2x1x896xf32>
    tpu.vector_store %arg13[%c0_35, %c8, %c0_36], %60 {strides = array<i32>} : memref<2x32x896xf32, #tpu.memory_space<vmem>>, vector<2x1x896xf32>,
    %61 = vector.extract_strided_slice %24 {offsets = [0, 900], sizes = [2, 896], strides = [1, 1]} : vector<2x2816xf32> to vector<2x896xf32>
    %c0_37 = arith.constant 0 : index
    %c9 = arith.constant 9 : index
    %c0_38 = arith.constant 0 : index
    %62 = vector.load %arg13[%c0_37, %c9, %c0_38] : memref<2x32x896xf32, #tpu.memory_space<vmem>>, vector<2x1x896xf32>
    %63 = vector.shape_cast %62 : vector<2x1x896xf32> to vector<2x896xf32>
    %64 = vector.shape_cast %61 : vector<2x896xf32> to vector<2x1x896xf32>
    tpu.vector_store %arg13[%c0_37, %c9, %c0_38], %64 {strides = array<i32>} : memref<2x32x896xf32, #tpu.memory_space<vmem>>, vector<2x1x896xf32>,
    %65 = vector.extract_strided_slice %24 {offsets = [0, 901], sizes = [2, 896], strides = [1, 1]} : vector<2x2816xf32> to vector<2x896xf32>
    %c0_39 = arith.constant 0 : index
    %c10 = arith.constant 10 : index
    %c0_40 = arith.constant 0 : index
    %66 = vector.load %arg13[%c0_39, %c10, %c0_40] : memref<2x32x896xf32, #tpu.memory_space<vmem>>, vector<2x1x896xf32>
    %67 = vector.shape_cast %66 : vector<2x1x896xf32> to vector<2x896xf32>
    %68 = vector.shape_cast %65 : vector<2x896xf32> to vector<2x1x896xf32>
    tpu.vector_store %arg13[%c0_39, %c10, %c0_40], %68 {strides = array<i32>} : memref<2x32x896xf32, #tpu.memory_space<vmem>>, vector<2x1x896xf32>,
    %69 = vector.extract_strided_slice %24 {offsets = [0, 902], sizes = [2, 896], strides = [1, 1]} : vector<2x2816xf32> to vector<2x896xf32>
    %c0_41 = arith.constant 0 : index
    %c11 = arith.constant 11 : index
    %c0_42 = arith.constant 0 : index
    %70 = vector.load %arg13[%c0_41, %c11, %c0_42] : memref<2x32x896xf32, #tpu.memory_space<vmem>>, vector<2x1x896xf32>
    %71 = vector.shape_cast %70 : vector<2x1x896xf32> to vector<2x896xf32>
    %72 = vector.shape_cast %69 : vector<2x896xf32> to vector<2x1x896xf32>
    tpu.vector_store %arg13[%c0_41, %c11, %c0_42], %72 {strides = array<i32>} : memref<2x32x896xf32, #tpu.memory_space<vmem>>, vector<2x1x896xf32>,
    %73 = vector.extract_strided_slice %24 {offsets = [0, 930], sizes = [2, 896], strides = [1, 1]} : vector<2x2816xf32> to vector<2x896xf32>
    %c0_43 = arith.constant 0 : index
    %c12 = arith.constant 12 : index
    %c0_44 = arith.constant 0 : index
    %74 = vector.load %arg13[%c0_43, %c12, %c0_44] : memref<2x32x896xf32, #tpu.memory_space<vmem>>, vector<2x1x896xf32>
    %75 = vector.shape_cast %74 : vector<2x1x896xf32> to vector<2x896xf32>
    %76 = vector.shape_cast %73 : vector<2x896xf32> to vector<2x1x896xf32>
    tpu.vector_store %arg13[%c0_43, %c12, %c0_44], %76 {strides = array<i32>} : memref<2x32x896xf32, #tpu.memory_space<vmem>>, vector<2x1x896xf32>,
    %77 = vector.extract_strided_slice %24 {offsets = [0, 931], sizes = [2, 896], strides = [1, 1]} : vector<2x2816xf32> to vector<2x896xf32>
    %c0_45 = arith.constant 0 : index
    %c13 = arith.constant 13 : index
    %c0_46 = arith.constant 0 : index
    %78 = vector.load %arg13[%c0_45, %c13, %c0_46] : memref<2x32x896xf32, #tpu.memory_space<vmem>>, vector<2x1x896xf32>
    %79 = vector.shape_cast %78 : vector<2x1x896xf32> to vector<2x896xf32>
    %80 = vector.shape_cast %77 : vector<2x896xf32> to vector<2x1x896xf32>
    tpu.vector_store %arg13[%c0_45, %c13, %c0_46], %80 {strides = array<i32>} : memref<2x32x896xf32, #tpu.memory_space<vmem>>, vector<2x1x896xf32>,
    %81 = vector.extract_strided_slice %24 {offsets = [0, 932], sizes = [2, 896], strides = [1, 1]} : vector<2x2816xf32> to vector<2x896xf32>
    %c0_47 = arith.constant 0 : index
    %c14 = arith.constant 14 : index
    %c0_48 = arith.constant 0 : index
    %82 = vector.load %arg13[%c0_47, %c14, %c0_48] : memref<2x32x896xf32, #tpu.memory_space<vmem>>, vector<2x1x896xf32>
    %83 = vector.shape_cast %82 : vector<2x1x896xf32> to vector<2x896xf32>
    %84 = vector.shape_cast %81 : vector<2x896xf32> to vector<2x1x896xf32>
    tpu.vector_store %arg13[%c0_47, %c14, %c0_48], %84 {strides = array<i32>} : memref<2x32x896xf32, #tpu.memory_space<vmem>>, vector<2x1x896xf32>,
    %85 = vector.extract_strided_slice %24 {offsets = [0, 960], sizes = [2, 896], strides = [1, 1]} : vector<2x2816xf32> to vector<2x896xf32>
    %c0_49 = arith.constant 0 : index
    %c15 = arith.constant 15 : index
    %c0_50 = arith.constant 0 : index
    %86 = vector.load %arg13[%c0_49, %c15, %c0_50] : memref<2x32x896xf32, #tpu.memory_space<vmem>>, vector<2x1x896xf32>
    %87 = vector.shape_cast %86 : vector<2x1x896xf32> to vector<2x896xf32>
    %88 = vector.shape_cast %85 : vector<2x896xf32> to vector<2x1x896xf32>
    tpu.vector_store %arg13[%c0_49, %c15, %c0_50], %88 {strides = array<i32>} : memref<2x32x896xf32, #tpu.memory_space<vmem>>, vector<2x1x896xf32>,
    %89 = vector.extract_strided_slice %24 {offsets = [0, 961], sizes = [2, 896], strides = [1, 1]} : vector<2x2816xf32> to vector<2x896xf32>
    %c0_51 = arith.constant 0 : index
    %c16 = arith.constant 16 : index
    %c0_52 = arith.constant 0 : index
    %90 = vector.load %arg13[%c0_51, %c16, %c0_52] : memref<2x32x896xf32, #tpu.memory_space<vmem>>, vector<2x1x896xf32>
    %91 = vector.shape_cast %90 : vector<2x1x896xf32> to vector<2x896xf32>
    %92 = vector.shape_cast %89 : vector<2x896xf32> to vector<2x1x896xf32>
    tpu.vector_store %arg13[%c0_51, %c16, %c0_52], %92 {strides = array<i32>} : memref<2x32x896xf32, #tpu.memory_space<vmem>>, vector<2x1x896xf32>,
    %93 = vector.extract_strided_slice %24 {offsets = [0, 962], sizes = [2, 896], strides = [1, 1]} : vector<2x2816xf32> to vector<2x896xf32>
    %c0_53 = arith.constant 0 : index
    %c17 = arith.constant 17 : index
    %c0_54 = arith.constant 0 : index
    %94 = vector.load %arg13[%c0_53, %c17, %c0_54] : memref<2x32x896xf32, #tpu.memory_space<vmem>>, vector<2x1x896xf32>
    %95 = vector.shape_cast %94 : vector<2x1x896xf32> to vector<2x896xf32>
    %96 = vector.shape_cast %93 : vector<2x896xf32> to vector<2x1x896xf32>
    tpu.vector_store %arg13[%c0_53, %c17, %c0_54], %96 {strides = array<i32>} : memref<2x32x896xf32, #tpu.memory_space<vmem>>, vector<2x1x896xf32>,
    %97 = vector.extract_strided_slice %24 {offsets = [0, 1800], sizes = [2, 896], strides = [1, 1]} : vector<2x2816xf32> to vector<2x896xf32>
    %c0_55 = arith.constant 0 : index
    %c18 = arith.constant 18 : index
    %c0_56 = arith.constant 0 : index
    %98 = vector.load %arg13[%c0_55, %c18, %c0_56] : memref<2x32x896xf32, #tpu.memory_space<vmem>>, vector<2x1x896xf32>
    %99 = vector.shape_cast %98 : vector<2x1x896xf32> to vector<2x896xf32>
    %100 = vector.shape_cast %97 : vector<2x896xf32> to vector<2x1x896xf32>
    tpu.vector_store %arg13[%c0_55, %c18, %c0_56], %100 {strides = array<i32>} : memref<2x32x896xf32, #tpu.memory_space<vmem>>, vector<2x1x896xf32>,
    %101 = vector.extract_strided_slice %24 {offsets = [0, 1801], sizes = [2, 896], strides = [1, 1]} : vector<2x2816xf32> to vector<2x896xf32>
    %c0_57 = arith.constant 0 : index
    %c19 = arith.constant 19 : index
    %c0_58 = arith.constant 0 : index
    %102 = vector.load %arg13[%c0_57, %c19, %c0_58] : memref<2x32x896xf32, #tpu.memory_space<vmem>>, vector<2x1x896xf32>
    %103 = vector.shape_cast %102 : vector<2x1x896xf32> to vector<2x896xf32>
    %104 = vector.shape_cast %101 : vector<2x896xf32> to vector<2x1x896xf32>
    tpu.vector_store %arg13[%c0_57, %c19, %c0_58], %104 {strides = array<i32>} : memref<2x32x896xf32, #tpu.memory_space<vmem>>, vector<2x1x896xf32>,
    %105 = vector.extract_strided_slice %24 {offsets = [0, 1802], sizes = [2, 896], strides = [1, 1]} : vector<2x2816xf32> to vector<2x896xf32>
    %c0_59 = arith.constant 0 : index
    %c20 = arith.constant 20 : index
    %c0_60 = arith.constant 0 : index
    %106 = vector.load %arg13[%c0_59, %c20, %c0_60] : memref<2x32x896xf32, #tpu.memory_space<vmem>>, vector<2x1x896xf32>
    %107 = vector.shape_cast %106 : vector<2x1x896xf32> to vector<2x896xf32>
    %108 = vector.shape_cast %105 : vector<2x896xf32> to vector<2x1x896xf32>
    tpu.vector_store %arg13[%c0_59, %c20, %c0_60], %108 {strides = array<i32>} : memref<2x32x896xf32, #tpu.memory_space<vmem>>, vector<2x1x896xf32>,
    %109 = vector.extract_strided_slice %24 {offsets = [0, 1830], sizes = [2, 896], strides = [1, 1]} : vector<2x2816xf32> to vector<2x896xf32>
    %c0_61 = arith.constant 0 : index
    %c21 = arith.constant 21 : index
    %c0_62 = arith.constant 0 : index
    %110 = vector.load %arg13[%c0_61, %c21, %c0_62] : memref<2x32x896xf32, #tpu.memory_space<vmem>>, vector<2x1x896xf32>
    %111 = vector.shape_cast %110 : vector<2x1x896xf32> to vector<2x896xf32>
    %112 = vector.shape_cast %109 : vector<2x896xf32> to vector<2x1x896xf32>
    tpu.vector_store %arg13[%c0_61, %c21, %c0_62], %112 {strides = array<i32>} : memref<2x32x896xf32, #tpu.memory_space<vmem>>, vector<2x1x896xf32>,
    %113 = vector.extract_strided_slice %24 {offsets = [0, 1831], sizes = [2, 896], strides = [1, 1]} : vector<2x2816xf32> to vector<2x896xf32>
    %c0_63 = arith.constant 0 : index
    %c22 = arith.constant 22 : index
    %c0_64 = arith.constant 0 : index
    %114 = vector.load %arg13[%c0_63, %c22, %c0_64] : memref<2x32x896xf32, #tpu.memory_space<vmem>>, vector<2x1x896xf32>
    %115 = vector.shape_cast %114 : vector<2x1x896xf32> to vector<2x896xf32>
    %116 = vector.shape_cast %113 : vector<2x896xf32> to vector<2x1x896xf32>
    tpu.vector_store %arg13[%c0_63, %c22, %c0_64], %116 {strides = array<i32>} : memref<2x32x896xf32, #tpu.memory_space<vmem>>, vector<2x1x896xf32>,
    %117 = vector.extract_strided_slice %24 {offsets = [0, 1832], sizes = [2, 896], strides = [1, 1]} : vector<2x2816xf32> to vector<2x896xf32>
    %c0_65 = arith.constant 0 : index
    %c23 = arith.constant 23 : index
    %c0_66 = arith.constant 0 : index
    %118 = vector.load %arg13[%c0_65, %c23, %c0_66] : memref<2x32x896xf32, #tpu.memory_space<vmem>>, vector<2x1x896xf32>
    %119 = vector.shape_cast %118 : vector<2x1x896xf32> to vector<2x896xf32>
    %120 = vector.shape_cast %117 : vector<2x896xf32> to vector<2x1x896xf32>
    tpu.vector_store %arg13[%c0_65, %c23, %c0_66], %120 {strides = array<i32>} : memref<2x32x896xf32, #tpu.memory_space<vmem>>, vector<2x1x896xf32>,
    %121 = vector.extract_strided_slice %24 {offsets = [0, 1860], sizes = [2, 896], strides = [1, 1]} : vector<2x2816xf32> to vector<2x896xf32>
    %c0_67 = arith.constant 0 : index
    %c24 = arith.constant 24 : index
    %c0_68 = arith.constant 0 : index
    %122 = vector.load %arg13[%c0_67, %c24, %c0_68] : memref<2x32x896xf32, #tpu.memory_space<vmem>>, vector<2x1x896xf32>
    %123 = vector.shape_cast %122 : vector<2x1x896xf32> to vector<2x896xf32>
    %124 = vector.shape_cast %121 : vector<2x896xf32> to vector<2x1x896xf32>
    tpu.vector_store %arg13[%c0_67, %c24, %c0_68], %124 {strides = array<i32>} : memref<2x32x896xf32, #tpu.memory_space<vmem>>, vector<2x1x896xf32>,
    %125 = vector.extract_strided_slice %24 {offsets = [0, 1861], sizes = [2, 896], strides = [1, 1]} : vector<2x2816xf32> to vector<2x896xf32>
    %c0_69 = arith.constant 0 : index
    %c25 = arith.constant 25 : index
    %c0_70 = arith.constant 0 : index
    %126 = vector.load %arg13[%c0_69, %c25, %c0_70] : memref<2x32x896xf32, #tpu.memory_space<vmem>>, vector<2x1x896xf32>
    %127 = vector.shape_cast %126 : vector<2x1x896xf32> to vector<2x896xf32>
    %128 = vector.shape_cast %125 : vector<2x896xf32> to vector<2x1x896xf32>
    tpu.vector_store %arg13[%c0_69, %c25, %c0_70], %128 {strides = array<i32>} : memref<2x32x896xf32, #tpu.memory_space<vmem>>, vector<2x1x896xf32>,
    %129 = vector.extract_strided_slice %24 {offsets = [0, 1862], sizes = [2, 896], strides = [1, 1]} : vector<2x2816xf32> to vector<2x896xf32>
    %c0_71 = arith.constant 0 : index
    %c26 = arith.constant 26 : index
    %c0_72 = arith.constant 0 : index
    %130 = vector.load %arg13[%c0_71, %c26, %c0_72] : memref<2x32x896xf32, #tpu.memory_space<vmem>>, vector<2x1x896xf32>
    %131 = vector.shape_cast %130 : vector<2x1x896xf32> to vector<2x896xf32>
    %132 = vector.shape_cast %129 : vector<2x896xf32> to vector<2x1x896xf32>
    tpu.vector_store %arg13[%c0_71, %c26, %c0_72], %132 {strides = array<i32>} : memref<2x32x896xf32, #tpu.memory_space<vmem>>, vector<2x1x896xf32>,
    %133 = vector.extract_strided_slice %24 {offsets = [0, 0], sizes = [2, 896], strides = [1, 1]} : vector<2x2816xf32> to vector<2x896xf32>
    %c0_73 = arith.constant 0 : index
    %c27 = arith.constant 27 : index
    %c0_74 = arith.constant 0 : index
    %134 = vector.load %arg13[%c0_73, %c27, %c0_74] : memref<2x32x896xf32, #tpu.memory_space<vmem>>, vector<2x1x896xf32>
    %135 = vector.shape_cast %134 : vector<2x1x896xf32> to vector<2x896xf32>
    %136 = vector.shape_cast %133 : vector<2x896xf32> to vector<2x1x896xf32>
    tpu.vector_store %arg13[%c0_73, %c27, %c0_74], %136 {strides = array<i32>} : memref<2x32x896xf32, #tpu.memory_space<vmem>>, vector<2x1x896xf32>,
    %137 = vector.extract_strided_slice %24 {offsets = [0, 0], sizes = [2, 896], strides = [1, 1]} : vector<2x2816xf32> to vector<2x896xf32>
    %c0_75 = arith.constant 0 : index
    %c28 = arith.constant 28 : index
    %c0_76 = arith.constant 0 : index
    %138 = vector.load %arg13[%c0_75, %c28, %c0_76] : memref<2x32x896xf32, #tpu.memory_space<vmem>>, vector<2x1x896xf32>
    %139 = vector.shape_cast %138 : vector<2x1x896xf32> to vector<2x896xf32>
    %140 = vector.shape_cast %137 : vector<2x896xf32> to vector<2x1x896xf32>
    tpu.vector_store %arg13[%c0_75, %c28, %c0_76], %140 {strides = array<i32>} : memref<2x32x896xf32, #tpu.memory_space<vmem>>, vector<2x1x896xf32>,
    %141 = vector.extract_strided_slice %24 {offsets = [0, 0], sizes = [2, 896], strides = [1, 1]} : vector<2x2816xf32> to vector<2x896xf32>
    %c0_77 = arith.constant 0 : index
    %c29 = arith.constant 29 : index
    %c0_78 = arith.constant 0 : index
    %142 = vector.load %arg13[%c0_77, %c29, %c0_78] : memref<2x32x896xf32, #tpu.memory_space<vmem>>, vector<2x1x896xf32>
    %143 = vector.shape_cast %142 : vector<2x1x896xf32> to vector<2x896xf32>
    %144 = vector.shape_cast %141 : vector<2x896xf32> to vector<2x1x896xf32>
    tpu.vector_store %arg13[%c0_77, %c29, %c0_78], %144 {strides = array<i32>} : memref<2x32x896xf32, #tpu.memory_space<vmem>>, vector<2x1x896xf32>,
    %145 = vector.extract_strided_slice %24 {offsets = [0, 0], sizes = [2, 896], strides = [1, 1]} : vector<2x2816xf32> to vector<2x896xf32>
    %c0_79 = arith.constant 0 : index
    %c30 = arith.constant 30 : index
    %c0_80 = arith.constant 0 : index
    %146 = vector.load %arg13[%c0_79, %c30, %c0_80] : memref<2x32x896xf32, #tpu.memory_space<vmem>>, vector<2x1x896xf32>
    %147 = vector.shape_cast %146 : vector<2x1x896xf32> to vector<2x896xf32>
    %148 = vector.shape_cast %145 : vector<2x896xf32> to vector<2x1x896xf32>
    tpu.vector_store %arg13[%c0_79, %c30, %c0_80], %148 {strides = array<i32>} : memref<2x32x896xf32, #tpu.memory_space<vmem>>, vector<2x1x896xf32>,
    %149 = vector.extract_strided_slice %24 {offsets = [0, 0], sizes = [2, 896], strides = [1, 1]} : vector<2x2816xf32> to vector<2x896xf32>
    %c0_81 = arith.constant 0 : index
    %c31 = arith.constant 31 : index
    %c0_82 = arith.constant 0 : index
    %150 = vector.load %arg13[%c0_81, %c31, %c0_82] : memref<2x32x896xf32, #tpu.memory_space<vmem>>, vector<2x1x896xf32>
    %151 = vector.shape_cast %150 : vector<2x1x896xf32> to vector<2x896xf32>
    %152 = vector.shape_cast %149 : vector<2x896xf32> to vector<2x1x896xf32>
    tpu.vector_store %arg13[%c0_81, %c31, %c0_82], %152 {strides = array<i32>} : memref<2x32x896xf32, #tpu.memory_space<vmem>>, vector<2x1x896xf32>,
    %c0_83 = arith.constant 0 : index
    %c0_84 = arith.constant 0 : index
    %153 = vector.load %arg7[%c0_83, %c0_84] : memref<32x32xf32, #tpu.memory_space<vmem>>, vector<32x32xf32>
    %c0_85 = arith.constant 0 : index
    %c0_86 = arith.constant 0 : index
    %c0_87 = arith.constant 0 : index
    %154 = vector.load %arg13[%c0_85, %c0_86, %c0_87] : memref<2x32x896xf32, #tpu.memory_space<vmem>>, vector<1x32x896xf32>
    %155 = vector.shape_cast %154 : vector<1x32x896xf32> to vector<32x896xf32>
    %cst_88 = arith.constant dense<0.000000e+00> : vector<32x896xf32>
    %156 = tpu.matmul %153, %155, %cst_88 {dimension_numbers = #tpu.dot_dimension_numbers<[1], [0], [0], [1], [0, 0, 1, 1], [], []>} : vector<32x32xf32>, vector<32x896xf32>, vector<32x896xf32> -> vector<32x896xf32>
    %c0_89 = arith.constant 0 : index
    %c0_90 = arith.constant 0 : index
    %c0_91 = arith.constant 0 : index
    %157 = vector.load %arg14[%c0_89, %c0_90, %c0_91] : memref<2x32x896xf32, #tpu.memory_space<vmem>>, vector<1x32x896xf32>
    %158 = vector.shape_cast %157 : vector<1x32x896xf32> to vector<32x896xf32>
    %159 = vector.shape_cast %156 : vector<32x896xf32> to vector<1x32x896xf32>
    tpu.vector_store %arg14[%c0_89, %c0_90, %c0_91], %159 {strides = array<i32>} : memref<2x32x896xf32, #tpu.memory_space<vmem>>, vector<1x32x896xf32>,
    %c0_92 = arith.constant 0 : index
    %c0_93 = arith.constant 0 : index
    %160 = vector.load %arg7[%c0_92, %c0_93] : memref<32x32xf32, #tpu.memory_space<vmem>>, vector<32x32xf32>
    %c1_94 = arith.constant 1 : index
    %c0_95 = arith.constant 0 : index
    %c0_96 = arith.constant 0 : index
    %161 = vector.load %arg13[%c1_94, %c0_95, %c0_96] : memref<2x32x896xf32, #tpu.memory_space<vmem>>, vector<1x32x896xf32>
    %162 = vector.shape_cast %161 : vector<1x32x896xf32> to vector<32x896xf32>
    %cst_97 = arith.constant dense<0.000000e+00> : vector<32x896xf32>
    %163 = tpu.matmul %160, %162, %cst_97 {dimension_numbers = #tpu.dot_dimension_numbers<[1], [0], [0], [1], [0, 0, 1, 1], [], []>} : vector<32x32xf32>, vector<32x896xf32>, vector<32x896xf32> -> vector<32x896xf32>
    %c1_98 = arith.constant 1 : index
    %c0_99 = arith.constant 0 : index
    %c0_100 = arith.constant 0 : index
    %164 = vector.load %arg14[%c1_98, %c0_99, %c0_100] : memref<2x32x896xf32, #tpu.memory_space<vmem>>, vector<1x32x896xf32>
    %165 = vector.shape_cast %164 : vector<1x32x896xf32> to vector<32x896xf32>
    %166 = vector.shape_cast %163 : vector<32x896xf32> to vector<1x32x896xf32>
    tpu.vector_store %arg14[%c1_98, %c0_99, %c0_100], %166 {strides = array<i32>} : memref<2x32x896xf32, #tpu.memory_space<vmem>>, vector<1x32x896xf32>,
    %c0_101 = arith.constant 0 : index
    %c0_102 = arith.constant 0 : index
    %c0_103 = arith.constant 0 : index
    %167 = vector.load %arg14[%c0_101, %c0_102, %c0_103] : memref<2x32x896xf32, #tpu.memory_space<vmem>>, vector<2x32x896xf32>
    %c0_104 = arith.constant 0 : index
    %c0_105 = arith.constant 0 : index
    %c0_106 = arith.constant 0 : index
    %168 = vector.load %arg11[%c0_104, %c0_105, %c0_106] : memref<1x1x896xf32, #tpu.memory_space<vmem>>, vector<1x1x896xf32>
    %169 = vector.broadcast %168 : vector<1x1x896xf32> to vector<2x32x896xf32>
    %170 = arith.mulf %167, %169 : vector<2x32x896xf32>
    %cst_107 = arith.constant dense<0.000000e+00> : vector<32xf32>
    %171 = vector.multi_reduction <add>, %170, %cst_107 [0, 2] : vector<2x32x896xf32> to vector<32xf32>
    %172 = vector.shape_cast %171 : vector<32xf32> to vector<1x32x1xf32>
    %173 = arith.mulf %170, %170 : vector<2x32x896xf32>
    %cst_108 = arith.constant dense<0.000000e+00> : vector<32xf32>
    %174 = vector.multi_reduction <add>, %173, %cst_108 [0, 2] : vector<2x32x896xf32> to vector<32xf32>
    %175 = vector.shape_cast %174 : vector<32xf32> to vector<1x32x1xf32>
    %cst_109 = arith.constant 1.568000e+03 : f32
    %176 = vector.broadcast %cst_109 : f32 to vector<1x32x1xf32>
    %177 = arith.divf %172, %176 : vector<1x32x1xf32>
    %cst_110 = arith.constant 1.568000e+03 : f32
    %178 = vector.broadcast %cst_110 : f32 to vector<1x32x1xf32>
    %179 = arith.divf %175, %178 : vector<1x32x1xf32>
    %180 = arith.mulf %177, %177 : vector<1x32x1xf32>
    %181 = arith.subf %179, %180 : vector<1x32x1xf32>
    %cst_111 = arith.constant 0.000000e+00 : f32
    %182 = vector.broadcast %cst_111 : f32 to vector<1x32x1xf32>
    %183 = arith.maximumf %181, %182 : vector<1x32x1xf32>
    %c0_112 = arith.constant 0 : index
    %c0_113 = arith.constant 0 : index
    %c0_114 = arith.constant 0 : index
    %184 = vector.load %arg8[%c0_112, %c0_113, %c0_114] : memref<1x32x1xf32, #tpu.memory_space<vmem>>, vector<1x32x1xf32>
    %cst_115 = arith.constant 9.99999974E-6 : f32
    %185 = vector.broadcast %cst_115 : f32 to vector<1x32x1xf32>
    %186 = arith.addf %183, %185 : vector<1x32x1xf32>
    %187 = math.rsqrt %186 : vector<1x32x1xf32>
    %188 = arith.mulf %184, %187 : vector<1x32x1xf32>
    %c0_116 = arith.constant 0 : index
    %c0_117 = arith.constant 0 : index
    %c0_118 = arith.constant 0 : index
    %189 = vector.load %arg9[%c0_116, %c0_117, %c0_118] : memref<1x32x1xf32, #tpu.memory_space<vmem>>, vector<1x32x1xf32>
    %190 = arith.mulf %177, %188 : vector<1x32x1xf32>
    %191 = arith.subf %189, %190 : vector<1x32x1xf32>
    %192 = vector.broadcast %188 : vector<1x32x1xf32> to vector<2x32x896xf32>
    %193 = arith.mulf %167, %192 : vector<2x32x896xf32>
    %194 = vector.broadcast %191 : vector<1x32x1xf32> to vector<2x32x896xf32>
    %195 = arith.addf %193, %194 : vector<2x32x896xf32>
    %cst_119 = arith.constant 0.000000e+00 : f32
    %196 = vector.broadcast %cst_119 : f32 to vector<2x32x896xf32>
    %197 = arith.maximumf %195, %196 : vector<2x32x896xf32>
    %c0_120 = arith.constant 0 : index
    %c0_121 = arith.constant 0 : index
    %c0_122 = arith.constant 0 : index
    %198 = vector.load %arg10[%c0_120, %c0_121, %c0_122] : memref<1x32x1xf32, #tpu.memory_space<vmem>>, vector<1x32x1xf32>
    %199 = vector.broadcast %198 : vector<1x32x1xf32> to vector<2x32x896xf32>
    %200 = arith.mulf %197, %199 : vector<2x32x896xf32>
    %cst_123 = arith.constant dense<0.000000e+00> : vector<2x896xf32>
    %201 = vector.multi_reduction <add>, %200, %cst_123 [1] : vector<2x32x896xf32> to vector<2x896xf32>
    %cst_124 = arith.constant 0.000000e+00 : f32
    %202 = vector.broadcast %cst_124 : f32 to vector<2x896xf32>
    %203 = arith.maximumf %201, %202 : vector<2x896xf32>
    %c0_125 = arith.constant 0 : index
    %c0_126 = arith.constant 0 : index
    %204 = vector.load %arg12[%c0_125, %c0_126] : memref<2x896xf32, #tpu.memory_space<vmem>>, vector<2x896xf32>
    tpu.vector_store %arg12[%c0_125, %c0_126], %203 {strides = array<i32>} : memref<2x896xf32, #tpu.memory_space<vmem>>, vector<2x896xf32>,
    return
  }
}

</mosaic_0001>

<bundles_post_ra>
// kernel: tpu_custom_call.1
= control target key start
LH: loop header
LB: loop body
LE: loop exit
PB: predicated region body
PF: predicated region fallthrough
CT: control target
= control target key end

     0   :  { %17 = vsyncpa [#allocation5], 0  ;;  %s14913_s0 = inlined_call_operand.hbm [shape: f32[2,128], index: 0, kind: input, shape index: {}]   ;;  %s14914_s1 = inlined_call_operand.hbm [shape: bf16[128,256], index: 1, kind: input, shape index: {}]   ;;  %s14915_s2 = inlined_call_operand.hbm [shape: f32[1,256], index: 2, kind: input, shape index: {}]   ;;  %s14916_s3 = inlined_call_operand.hbm [shape: bf16[256,640], index: 3, kind: input, shape index: {}]   ;;  %s14917_s4 = inlined_call_operand.hbm [shape: f32[1,640], index: 4, kind: input, shape index: {}]   ;;  %s14918_s5 = inlined_call_operand.hbm [shape: bf16[640,2816], index: 5, kind: input, shape index: {}]   ;;  %s14919_s6 = inlined_call_operand.hbm [shape: f32[1,2816], index: 6, kind: input, shape index: {}]   ;;  %s14920_s7 = inlined_call_operand.hbm [shape: f32[32,32], index: 7, kind: input, shape index: {}]   ;;  %s14921_s8 = inlined_call_operand.vmem [shape: f32[1,32,1], index: 8, kind: input, shape index: {}]   ;;  %s14922_s9 = inlined_call_operand.vmem [shape: f32[1,32,1], index: 9, kind: input, shape index: {}]   ;;  %s14923_s10 = inlined_call_operand.vmem [shape: f32[1,32,1], index: 10, kind: input, shape index: {}]   ;;  %s14924_s11 = inlined_call_operand.hbm [shape: f32[1,1,896], index: 11, kind: input, shape index: {}]   ;;  %s14925_s12 = inlined_call_operand.hbm [shape: f32[2,896], index: 12, kind: output, shape index: {}]  }
   0x1   :  { %18 = vsyncpa [#allocation8], 0 }
   0x2   :  { %19 = vsyncpa [#allocation11], 0 }
   0x3   :  { %20 = vsyncpa [#allocation14], 0 }
   0x4   :  { %21 = vsyncpa [#allocation17], 0 }
   0x5   :  { %22 = vsyncpa [#allocation6], 0  ;;  %s13251_s21 = smov [#allocation7]   ;;  %s13019_s25 = scalar_lea.hbm %s14914_s1, 2048 }
   0x6   :  { %s38_s22 = sshll.u32 %s13251_s21, 4  ;;  %p13020_p0 = scmp.ne.s32.totalorder %s14914_s1, %s13019_s25  ;;  %s39_s22 = int_to_ptr.vmem [resolvable:$true] %s38_s22 }
   0x7   :  { %p13023_p1 = scmp.lt.u32.totalorder %s13019_s25, %s14914_s1 }
   0x9   :  { %p13025_p2 = pnand %p13023_p1, %p13020_p0 }
   0xb   :  { %13028 = shalt.err (!%p13025_p2)
}
   0xc   :  { %s13029_s30 = scalar_lea.vmem %s39_s22, 2048  ;;  %p13034_p4 = scmp.lt.s32.totalorder %s39_s22, %s39_s22 }
   0xd   :  { %p13030_p3 = scmp.ne.s32.totalorder %s39_s22, %s13029_s30  ;;  %p13035_p5 = scmp.lt.s32.totalorder %s13029_s30, %s13029_s30 }
   0xf   :  { %p13036_p6 = por %p13035_p5, %p13034_p4 }
  0x11   :  { %p13037_p7 = pnand %p13036_p6, %p13030_p3 }
  0x13   :  { %13040 = shalt.err (!%p13037_p7)
}
  0x14   :  { %s13252_s13 = smov 128   ;;  %s13253_s14 = smov 8  }
  0x15   :  { %44 = dma.hbm_to_vmem [thread:$0]  %s14914_s1, 2048, %s39_s22, [#allocation8], %s13252_s13, %s13252_s13, %s13253_s14  }
  0x16   :  { %s13254_s17 = smov [#allocation10]   ;;  %s13041_s21 = scalar_lea.hbm %s14916_s3, 10240 }
  0x17   :  { %s60_s18 = sshll.u32 %s13254_s17, 4  ;;  %p13042_p8 = scmp.ne.s32.totalorder %s14916_s3, %s13041_s21  ;;  %s61_s18 = int_to_ptr.vmem [resolvable:$true] %s60_s18 }
  0x18   :  { %p13045_p9 = scmp.lt.u32.totalorder %s13041_s21, %s14916_s3 }
  0x1a   :  { %p13047_p10 = pnand %p13045_p9, %p13042_p8 }
  0x1c   :  { %13050 = shalt.err (!%p13047_p10)
}
  0x1d   :  { %s13051_s27 = scalar_lea.vmem %s61_s18, 10240  ;;  %p13056_p12 = scmp.lt.s32.totalorder %s61_s18, %s61_s18 }
  0x1e   :  { %p13052_p11 = scmp.ne.s32.totalorder %s61_s18, %s13051_s27  ;;  %p13057_p13 = scmp.lt.s32.totalorder %s13051_s27, %s13051_s27 }
  0x20   :  { %p13058_p0 = por %p13057_p13, %p13056_p12 }
  0x22   :  { %p13059_p1 = pnand %p13058_p0, %p13052_p11 }
  0x24   :  { %13062 = shalt.err (!%p13059_p1)
}
  0x25   :  { %s13255_s1 = smov 320   ;;  %s13256_s22 = smov 20  }
  0x26   :  { %66 = dma.hbm_to_vmem [thread:$0]  %s14916_s3, 10240, %s61_s18, [#allocation11], %s13255_s1, %s13255_s1, %s13256_s22  }
  0x27   :  { %s13257_s30 = smov [#allocation13]   ;;  %s13063_s19 = scalar_lea.hbm %s14918_s5, 112640 }
  0x28   :  { %s82_s15 = sshll.u32 %s13257_s30, 4  ;;  %p13064_p2 = scmp.ne.s32.totalorder %s14918_s5, %s13063_s19  ;;  %s83_s15 = int_to_ptr.vmem [resolvable:$true] %s82_s15 }
  0x29   :  { %p13067_p3 = scmp.lt.u32.totalorder %s13063_s19, %s14918_s5 }
  0x2b   :  { %p13069_p4 = pnand %p13067_p3, %p13064_p2 }
  0x2d   :  { %13072 = shalt.err (!%p13069_p4)
}
  0x2e   :  { %s13073_s25 = scalar_lea.vmem %s83_s15, 112640  ;;  %p13078_p6 = scmp.lt.s32.totalorder %s83_s15, %s83_s15 }
  0x2f   :  { %p13074_p5 = scmp.ne.s32.totalorder %s83_s15, %s13073_s25  ;;  %p13079_p7 = scmp.lt.s32.totalorder %s13073_s25, %s13073_s25 }
  0x31   :  { %p13080_p8 = por %p13079_p7, %p13078_p6 }
  0x33   :  { %p13081_p9 = pnand %p13080_p8, %p13074_p5 }
  0x35   :  { %13084 = shalt.err (!%p13081_p9)
}
  0x36   :  { %s13258_s3 = smov 1408   ;;  %s13259_s18 = smov 88  }
  0x37   :  { %88 = dma.hbm_to_vmem [thread:$0]  %s14918_s5, 112640, %s83_s15, [#allocation14], %s13258_s3, %s13258_s3, %s13259_s18  }
  0x38   :  { %s13260_s1 = smov [#allocation16]   ;;  %s13261_s28 = smov [#allocation4]  }
  0x39   :  { %s104_s22 = sshll.u32 %s13260_s1, 4  ;;  %s29_s29 = sshll.u32 %s13261_s28, 4  ;;  %s105_s22 = int_to_ptr.vmem [resolvable:$true] %s104_s22  ;;  %s30_s29 = int_to_ptr.vmem [resolvable:$true] %s29_s29 }
  0x3a   :  { %s13085_s17 = scalar_lea.hbm %s14920_s7, 512 }
  0x3b   :  { %p13086_p10 = scmp.ne.s32.totalorder %s14920_s7, %s13085_s17  ;;  %p13089_p11 = scmp.lt.u32.totalorder %s13085_s17, %s14920_s7 }
  0x3d   :  { %p13091_p12 = pnand %p13089_p11, %p13086_p10 }
  0x3f   :  { %13094 = shalt.err (!%p13091_p12)
}
  0x40   :  { %s13095_s5 = scalar_lea.vmem %s105_s22, 512  ;;  %p13100_p0 = scmp.lt.s32.totalorder %s105_s22, %s105_s22 }
  0x41   :  { %p13096_p13 = scmp.ne.s32.totalorder %s105_s22, %s13095_s5  ;;  %p13101_p1 = scmp.lt.s32.totalorder %s13095_s5, %s13095_s5 }
  0x43   :  { %p13102_p2 = por %p13101_p1, %p13100_p0 }
  0x45   :  { %p13103_p3 = pnand %p13102_p2, %p13096_p13 }
  0x47   :  { %13106 = shalt.err (!%p13103_p3)
}
  0x48   :  { %110 = dma.hbm_to_vmem [thread:$0]  %s14920_s7, 512, %s105_s22, [#allocation17], %s13252_s13, %s13252_s13, %s13253_s14  }
  0x49   :  { %s13107_s26 = scalar_lea.hbm %s14913_s0, 32 }
  0x4a   :  { %p13108_p4 = scmp.ne.s32.totalorder %s14913_s0, %s13107_s26  ;;  %p13111_p5 = scmp.lt.u32.totalorder %s13107_s26, %s14913_s0 }
  0x4c   :  { %p13113_p6 = pnand %p13111_p5, %p13108_p4 }
  0x4e   :  { %13116 = shalt.err (!%p13113_p6)
}
  0x4f   :  { %s13117_s16 = scalar_lea.vmem %s30_s29, 32  ;;  %p13122_p8 = scmp.lt.s32.totalorder %s30_s29, %s30_s29 }
  0x50   :  { %p13118_p7 = scmp.ne.s32.totalorder %s30_s29, %s13117_s16  ;;  %p13123_p9 = scmp.lt.s32.totalorder %s13117_s16, %s13117_s16 }
  0x52   :  { %p13124_p10 = por %p13123_p9, %p13122_p8 }
  0x54   :  { %p13125_p11 = pnand %p13124_p10, %p13118_p7 }
  0x56   :  { %13128 = shalt.err (!%p13125_p11)
}
  0x57   :  { %32 = dma.hbm_to_vmem [thread:$0]  %s14913_s0, 32, %s30_s29, [#allocation5]  }
  0x58   :  { %s13262_s14 = smov [#allocation9]   ;;  %s13263_s17 = smov [#allocation12]  }
  0x59   :  { %s51_s22 = sshll.u32 %s13262_s14, 4  ;;  %s73_s19 = sshll.u32 %s13263_s17, 4  ;;  %s52_s22 = int_to_ptr.vmem [resolvable:$true] %s51_s22  ;;  %s74_s19 = int_to_ptr.vmem [resolvable:$true] %s73_s19 }
  0x5a   :  { %s13129_s23 = scalar_lea.hbm %s14915_s2, 32 }
  0x5b   :  { %p13130_p12 = scmp.ne.s32.totalorder %s14915_s2, %s13129_s23  ;;  %p13133_p13 = scmp.lt.u32.totalorder %s13129_s23, %s14915_s2 }
  0x5d   :  { %p13135_p0 = pnand %p13133_p13, %p13130_p12 }
  0x5f   :  { %13138 = shalt.err (!%p13135_p0)
}
  0x60   :  { %s13139_s0 = scalar_lea.vmem %s52_s22, 32  ;;  %p13144_p2 = scmp.lt.s32.totalorder %s52_s22, %s52_s22 }
  0x61   :  { %p13140_p1 = scmp.ne.s32.totalorder %s52_s22, %s13139_s0  ;;  %p13145_p3 = scmp.lt.s32.totalorder %s13139_s0, %s13139_s0 }
  0x63   :  { %p13146_p4 = por %p13145_p3, %p13144_p2 }
  0x65   :  { %p13147_p5 = pnand %p13146_p4, %p13140_p1 }
  0x67   :  { %13150 = shalt.err (!%p13147_p5)
}
  0x68   :  { %54 = dma.hbm_to_vmem [thread:$0]  %s14915_s2, 32, %s52_s22, [#allocation8]  }
  0x69   :  { %s13151_s1 = scalar_lea.hbm %s14917_s4, 80 }
  0x6a   :  { %p13152_p6 = scmp.ne.s32.totalorder %s14917_s4, %s13151_s1  ;;  %p13155_p7 = scmp.lt.u32.totalorder %s13151_s1, %s14917_s4 }
  0x6c   :  { %p13157_p8 = pnand %p13155_p7, %p13152_p6 }
  0x6e   :  { %13160 = shalt.err (!%p13157_p8)
}
  0x6f   :  { %s13161_s13 = scalar_lea.vmem %s74_s19, 80  ;;  %s13165_s14 = scalar_lea.vmem %s74_s19, 96 }
  0x70   :  { %p13162_p9 = scmp.ne.s32.totalorder %s74_s19, %s13161_s13  ;;  %p13166_p10 = scmp.lt.s32.totalorder %s74_s19, %s74_s19 }
  0x71   :  { %p13167_p11 = scmp.lt.s32.totalorder %s13165_s14, %s13161_s13 }
  0x73   :  { %p13168_p12 = por %p13167_p11, %p13166_p10 }
  0x75   :  { %p13169_p13 = pnand %p13168_p12, %p13162_p9 }
  0x77   :  { %13172 = shalt.err (!%p13169_p13)
}
  0x78   :  { %76 = dma.hbm_to_vmem [thread:$0]  %s14917_s4, 80, %s74_s19, [#allocation11]  }
  0x79   :  { %s13264_s17 = smov [#allocation15]   ;;  %s13265_s21 = smov [#allocation18]  }
  0x7a   :  { %s95_s20 = sshll.u32 %s13264_s17, 4  ;;  %s123_s23 = sshll.u32 %s13265_s21, 4  ;;  %s96_s20 = int_to_ptr.vmem [resolvable:$true] %s95_s20  ;;  %s124_s23 = int_to_ptr.vmem [resolvable:$true] %s123_s23 }
  0x7b   :  { %s13173_s24 = scalar_lea.hbm %s14919_s6, 352 }
  0x7c   :  { %p13174_p0 = scmp.ne.s32.totalorder %s14919_s6, %s13173_s24  ;;  %p13177_p1 = scmp.lt.u32.totalorder %s13173_s24, %s14919_s6 }
  0x7e   :  { %p13179_p2 = pnand %p13177_p1, %p13174_p0 }
  0x80   :  { %13182 = shalt.err (!%p13179_p2)
}
  0x81   :  { %s13183_s4 = scalar_lea.vmem %s96_s20, 352  ;;  %p13188_p4 = scmp.lt.s32.totalorder %s96_s20, %s96_s20 }
  0x82   :  { %p13184_p3 = scmp.ne.s32.totalorder %s96_s20, %s13183_s4  ;;  %p13189_p5 = scmp.lt.s32.totalorder %s13183_s4, %s13183_s4 }
  0x84   :  { %p13190_p6 = por %p13189_p5, %p13188_p4 }
  0x86   :  { %p13191_p7 = pnand %p13190_p6, %p13184_p3 }
  0x88   :  { %13194 = shalt.err (!%p13191_p7)
}
  0x89   :  { %98 = dma.hbm_to_vmem [thread:$0]  %s14919_s6, 352, %s96_s20, [#allocation14]  }
  0x8a   :  { %s13195_s28 = scalar_lea.hbm %s14924_s11, 112 }
  0x8b   :  { %p13196_p8 = scmp.ne.s32.totalorder %s14924_s11, %s13195_s28  ;;  %p13199_p9 = scmp.lt.u32.totalorder %s13195_s28, %s14924_s11 }
  0x8d   :  { %p13201_p10 = pnand %p13199_p9, %p13196_p8 }
  0x8f   :  { %13204 = shalt.err (!%p13201_p10)
}
  0x90   :  { %s13205_s14 = scalar_lea.vmem %s124_s23, 112  ;;  %s13209_s2 = scalar_lea.vmem %s124_s23, 128 }
  0x91   :  { %p13206_p11 = scmp.ne.s32.totalorder %s124_s23, %s13205_s14  ;;  %p13210_p12 = scmp.lt.s32.totalorder %s124_s23, %s124_s23 }
  0x92   :  { %p13211_p13 = scmp.lt.s32.totalorder %s13209_s2, %s13205_s14 }
  0x94   :  { %p13212_p0 = por %p13211_p13, %p13210_p12 }
  0x96   :  { %p13213_p1 = pnand %p13212_p0, %p13206_p11 }
  0x98   :  { %13216 = shalt.err (!%p13213_p1)
}
  0x99   :  { %126 = dma.hbm_to_vmem [thread:$0]  %s14924_s11, 112, %s124_s23, [#allocation17]  }
  0x9a   :  { %13239 = dma.done.wait [#allocation5], 32  }
  0x9b   :  { %13240 = vsyncadd [#allocation5], 4294967264 }
  0x9c   :  { %13241 = dma.done.wait [#allocation8], 2080  }
  0x9d   :  { %13242 = vsyncadd [#allocation8], 4294965216 }
  0x9e   :  { %13243 = dma.done.wait [#allocation11], 10320  }
  0x9f   :  { %13244 = vsyncadd [#allocation11], 4294956976 }
  0xa0   :  { %13245 = dma.done.wait [#allocation14], 112992  }
  0xa1   :  { %13246 = vsyncadd [#allocation14], 4294854304 }
  0xa2   :  { %13247 = dma.done.wait [#allocation17], 624  }
  0xa3   :  { %13248 = vsyncadd [#allocation17], 4294966672  ;;  %v13266_v0 = vmov 0   ;;  %v11555_v1 = vld [vmem:[#allocation7 + $0x4] ss:$8 sps:$4 sm:$0xff]   ;;  %s13268_s11 = smov 98  }
  0xa4   :  { %297 = vmatprep.mubr.bf16.mxu1 %v13266_v0  ;;  %11554 = vset.pattern.permute.xlu1 %v13266_v0  ;;  %v11557_v2 = vld [vmem:[#allocation7] ss:$8 sps:$4 sm:$0xff]   ;;  %v11558_v3 = vld [vmem:[#allocation7 + $0x14] ss:$8 sps:$4 sm:$0xff]   ;;  %v11560_v4 = vld [vmem:[#allocation7 + $0x10] ss:$8 sps:$4 sm:$0xff]  }
  0xa5   :  { %11553 = vset.pattern.permute.xlu0 %v13266_v0  ;;  %265 = vmatprep.subr.bf16.mxu1 %v11555_v1  ;;  %v11561_v5 = vld [vmem:[#allocation7 + $0x24] ss:$8 sps:$4 sm:$0xff]   ;;  %v11563_v6 = vld [vmem:[#allocation7 + $0x20] ss:$8 sps:$4 sm:$0xff]   ;;  %v11564_v7 = vld [vmem:[#allocation7 + $0x34] ss:$8 sps:$4 sm:$0xff]  }
  0xa6   :  { %266 = vmatpush1.bf16.msra.mxu1 %v11557_v2  ;;  %v11566_v8 = vld [vmem:[#allocation7 + $0x30] ss:$8 sps:$4 sm:$0xff]   ;;  %v11567_v9 = vld [vmem:[#allocation7 + $0x44] ss:$8 sps:$4 sm:$0xff]   ;;  %v11569_v12 = vld [vmem:[#allocation7 + $0x40] ss:$8 sps:$4 sm:$0xff]  }
  0xa7   :  { %267 = vmatprep.subr.bf16.mxu1 %v11558_v3  ;;  %v11582_v10 = vld [vmem:[#allocation10 + $0xc] ss:$20 sps:$4 sm:$0xff]   ;;  %v11584_v11 = vld [vmem:[#allocation10 + $0x8] ss:$20 sps:$4 sm:$0xff]   ;;  %v11590_v15 = vld [vmem:[#allocation10 + $0x30] ss:$20 sps:$4 sm:$0xff]  }
  0xa8   :  { %v11570_v13 = vld [vmem:[#allocation7 + $0x54] ss:$8 sps:$4 sm:$0xff]   ;;  %890 = vmatprep.subr.bf16.mxu0 %v11582_v10  ;;  %v11572_v16 = vld [vmem:[#allocation7 + $0x50] ss:$8 sps:$4 sm:$0xff]   ;;  %v11573_v18 = vld [vmem:[#allocation7 + $0x64] ss:$8 sps:$4 sm:$0xff]  }
  0xa9   :  { %v11588_v14 = vld [vmem:[#allocation10 + $0x34] ss:$20 sps:$4 sm:$0xff]   ;;  %891 = vmatpush1.bf16.msra.mxu0 %v11584_v11  ;;  %v11594_v17 = vld [vmem:[#allocation10 + $0x5c] ss:$20 sps:$4 sm:$0xff]   ;;  %v11596_v19 = vld [vmem:[#allocation10 + $0x58] ss:$20 sps:$4 sm:$0xff]  }
  0xaa   :  { %268 = vmatpush1.bf16.msra.mxu1 %v11560_v4  ;;  %892 = vmatprep.subr.bf16.mxu0 %v11588_v14  ;;  %v11600_v20 = vld [vmem:[#allocation10 + $0x84] ss:$20 sps:$4 sm:$0xff]   ;;  %v11602_v23 = vld [vmem:[#allocation10 + $0x80] ss:$20 sps:$4 sm:$0xff]   ;;  %v155_v26 = vld [vmem:[#allocation4] sm:$0x3] }
  0xab   :  { %269 = vmatprep.subr.bf16.mxu1 %v11561_v5  ;;  %v11575_v21 = vld [vmem:[#allocation7 + $0x60] ss:$8 sps:$4 sm:$0xff]   ;;  %v11576_v22 = vld [vmem:[#allocation7 + $0x74] ss:$8 sps:$4 sm:$0xff]   ;;  %v11578_v25 = vld [vmem:[#allocation7 + $0x70] ss:$8 sps:$4 sm:$0xff]   ;;  %v156_v30 = vpack.c.bf16 %v155_v26, %v155_v26 }
  0xac   :  { %v11606_v24 = vld [vmem:[#allocation10 + $0xac] ss:$20 sps:$4 sm:$0xff]   ;;  %v11581_v27 = vld [vmem:[#allocation10 + $0x4] ss:$20 sps:$4 sm:$0xff]   ;;  %v11608_v28 = vld [vmem:[#allocation10 + $0xa8] ss:$20 sps:$4 sm:$0xff]  }
  0xad   :  { %893 = vmatpush1.bf16.msra.mxu0 %v11590_v15  ;;  %v11612_v29 = vld [vmem:[#allocation10 + $0xd4] ss:$20 sps:$4 sm:$0xff]   ;;  %v11587_v32 = vld [vmem:[#allocation10 + $0x2c] ss:$20 sps:$4 sm:$0xff]   ;;  %v11614_v33 = vld [vmem:[#allocation10 + $0xd0] ss:$20 sps:$4 sm:$0xff]  }
  0xae   :  { %270 = vmatpush1.bf16.msra.mxu1 %v11563_v6  ;;  %894 = vmatprep.subr.bf16.mxu0 %v11594_v17  ;;  %v11579_v31 = vld [vmem:[#allocation10] ss:$20 sps:$4 sm:$0xff]   ;;  %v11618_v34 = vld [vmem:[#allocation10 + $0xfc] ss:$20 sps:$4 sm:$0xff]   ;;  %v11620_v37 = vld [vmem:[#allocation10 + $0xf8] ss:$20 sps:$4 sm:$0xff]  }
  0xaf   :  { %271 = vmatprep.subr.bf16.mxu1 %v11564_v7  ;;  %v11585_v35 = vld [vmem:[#allocation10 + $0x28] ss:$20 sps:$4 sm:$0xff]   ;;  %v11624_v38 = vld [vmem:[#allocation10 + $0x124] ss:$20 sps:$4 sm:$0xff]   ;;  %v11626_v41 = vld [vmem:[#allocation10 + $0x120] ss:$20 sps:$4 sm:$0xff]  }
  0xb0   :  { %v11593_v36 = vld [vmem:[#allocation10 + $0x54] ss:$20 sps:$4 sm:$0xff]   ;;  %v11591_v39 = vld [vmem:[#allocation10 + $0x50] ss:$20 sps:$4 sm:$0xff]   ;;  %v11630_v42 = vld [vmem:[#allocation10 + $0x14c] ss:$20 sps:$4 sm:$0xff]  }
  0xb1   :  { %895 = vmatpush1.bf16.msra.mxu0 %v11596_v19  ;;  %v11599_v40 = vld [vmem:[#allocation10 + $0x7c] ss:$20 sps:$4 sm:$0xff]   ;;  %v11597_v43 = vld [vmem:[#allocation10 + $0x78] ss:$20 sps:$4 sm:$0xff]   ;;  %v11636_v46 = vld [vmem:[#allocation10 + $0x174] ss:$20 sps:$4 sm:$0xff]  }
  0xb2   :  { %272 = vmatpush1.bf16.msra.mxu1 %v11566_v8  ;;  %896 = vmatprep.subr.bf16.mxu0 %v11600_v20  ;;  %v11605_v44 = vld [vmem:[#allocation10 + $0xa4] ss:$20 sps:$4 sm:$0xff]   ;;  %v11632_v45 = vld [vmem:[#allocation10 + $0x148] ss:$20 sps:$4 sm:$0xff]   ;;  %v11603_v47 = vld [vmem:[#allocation10 + $0xa0] ss:$20 sps:$4 sm:$0xff]  }
  0xb3   :  { %273 = vmatprep.subr.bf16.mxu1 %v11567_v9  ;;  %v11611_v48 = vld [vmem:[#allocation10 + $0xcc] ss:$20 sps:$4 sm:$0xff]   ;;  %v11638_v49 = vld [vmem:[#allocation10 + $0x170] ss:$20 sps:$4 sm:$0xff]   ;;  %v11609_v51 = vld [vmem:[#allocation10 + $0xc8] ss:$20 sps:$4 sm:$0xff]  }
  0xb4   :  { %v11642_v50 = vld [vmem:[#allocation10 + $0x19c] ss:$20 sps:$4 sm:$0xff]   ;;  %v11617_v52 = vld [vmem:[#allocation10 + $0xf4] ss:$20 sps:$4 sm:$0xff]   ;;  %v11644_v53 = vld [vmem:[#allocation10 + $0x198] ss:$20 sps:$4 sm:$0xff]  }
  0xb5   :  { %897 = vmatpush1.bf16.msra.mxu0 %v11602_v23  ;;  %v11648_v54 = vld [vmem:[#allocation10 + $0x1c4] ss:$20 sps:$4 sm:$0xff]   ;;  %v11623_v56 = vld [vmem:[#allocation10 + $0x11c] ss:$20 sps:$4 sm:$0xff]   ;;  %v11650_v57 = vld [vmem:[#allocation10 + $0x1c0] ss:$20 sps:$4 sm:$0xff]  }
  0xb6   :  { %274 = vmatpush1.bf16.msra.mxu1 %v11569_v12  ;;  %898 = vmatprep.subr.bf16.mxu0 %v11606_v24  ;;  %v11615_v55 = vld [vmem:[#allocation10 + $0xf0] ss:$20 sps:$4 sm:$0xff]   ;;  %v11654_v58 = vld [vmem:[#allocation10 + $0x1ec] ss:$20 sps:$4 sm:$0xff]   ;;  %v11656_v61 = vld [vmem:[#allocation10 + $0x1e8] ss:$20 sps:$4 sm:$0xff]  }
  0xb7   :  { %275 = vmatprep.subr.bf16.mxu1 %v11570_v13  ;;  %v11621_v59 = vld [vmem:[#allocation10 + $0x118] ss:$20 sps:$4 sm:$0xff]   ;;  %v11660_v62 = vld [vmem:[#allocation10 + $0x214] ss:$20 sps:$4 sm:$0xff]   ;;  %v11662_v2 = vld [vmem:[#allocation10 + $0x210] ss:$20 sps:$4 sm:$0xff]  }
  0xb8   :  { %v11629_v60 = vld [vmem:[#allocation10 + $0x144] ss:$20 sps:$4 sm:$0xff]   ;;  %v11627_v63 = vld [vmem:[#allocation10 + $0x140] ss:$20 sps:$4 sm:$0xff]   ;;  %v11633_v3 = vld [vmem:[#allocation10 + $0x168] ss:$20 sps:$4 sm:$0xff]  }
  0xb9   :  { %899 = vmatpush1.bf16.msra.mxu0 %v11608_v28  ;;  %v11635_v1 = vld [vmem:[#allocation10 + $0x16c] ss:$20 sps:$4 sm:$0xff]   ;;  %v11641_v4 = vld [vmem:[#allocation10 + $0x194] ss:$20 sps:$4 sm:$0xff]   ;;  %v11639_v5 = vld [vmem:[#allocation10 + $0x190] ss:$20 sps:$4 sm:$0xff]  }
  0xba   :  { %276 = vmatpush1.bf16.msra.mxu1 %v11572_v16  ;;  %900 = vmatprep.subr.bf16.mxu0 %v11612_v29  ;;  %v11647_v6 = vld [vmem:[#allocation10 + $0x1bc] ss:$20 sps:$4 sm:$0xff]   ;;  %v11645_v7 = vld [vmem:[#allocation10 + $0x1b8] ss:$20 sps:$4 sm:$0xff]   ;;  %v11651_v9 = vld [vmem:[#allocation10 + $0x1e0] ss:$20 sps:$4 sm:$0xff]  }
  0xbb   :  { %277 = vmatprep.subr.bf16.mxu1 %v11573_v18  ;;  %v11653_v8 = vld [vmem:[#allocation10 + $0x1e4] ss:$20 sps:$4 sm:$0xff]   ;;  %v11659_v10 = vld [vmem:[#allocation10 + $0x20c] ss:$20 sps:$4 sm:$0xff]   ;;  %v11657_v11 = vld [vmem:[#allocation10 + $0x208] ss:$20 sps:$4 sm:$0xff]  }
  0xbc   :  { %v11665_v12 = vld [vmem:[#allocation10 + $0x234] ss:$20 sps:$4 sm:$0xff]   ;;  %v11663_v13 = vld [vmem:[#allocation10 + $0x230] ss:$20 sps:$4 sm:$0xff]   ;;  %v11668_v15 = vld [vmem:[#allocation10 + $0x238] ss:$20 sps:$4 sm:$0xff]  }
  0xbd   :  { %901 = vmatpush1.bf16.msra.mxu0 %v11614_v33  ;;  %v11666_v14 = vld [vmem:[#allocation10 + $0x23c] ss:$20 sps:$4 sm:$0xff]   ;;  %v11669_v17 = vld [vmem:[#allocation10 + $0x258] ss:$20 sps:$4 sm:$0xff]   ;;  %v11674_v19 = vld [vmem:[#allocation10 + $0x260] ss:$20 sps:$4 sm:$0xff]  }
  0xbe   :  { %278 = vmatpush1.bf16.msra.mxu1 %v11575_v21  ;;  %902 = vmatprep.subr.bf16.mxu0 %v11618_v34  ;;  %v11671_v16 = vld [vmem:[#allocation10 + $0x25c] ss:$20 sps:$4 sm:$0xff]   ;;  %v11672_v18 = vld [vmem:[#allocation10 + $0x264] ss:$20 sps:$4 sm:$0xff]   ;;  %s13269_s17 = smov 127   ;;  %s13270_s20 = smov 97  }
  0xbf   :  { %279 = vmatprep.subr.bf16.mxu1 %v11576_v22  ;;  %v11675_v20 = vld [vmem:[#allocation10 + $0x150] ss:$20 sps:$4 sm:$0xff]   ;;  %v175_v22 = vlaneseq  ;;  %v173_v24 = vld [vmem:[#allocation9] sm:$0x3]  ;;  %s13271_s21 = smov 126   ;;  %s13272_s23 = smov 68  }
  0xc0   :  { %v11693_v21 = vld [vmem:[#allocation13 + $0x4] ss:$88 sps:$4 sm:$0xff]   ;;  %s13273_s5 = smov 96   ;;  %s13274_s15 = smov 66   ;;  %vm7902_vm1 = vcmask 801792   ;;  %vm7868_vm2 = vcmask 1039360  }
  0xc1   :  { %903 = vmatpush1.bf16.msra.mxu0 %v11620_v37  ;;  %v13480_v23 = vshrl.u32 %v175_v22, 7  ;;  %v11676_v37 = vld [vmem:[#allocation10 + $0x10] ss:$20 sps:$4 sm:$0xff]   ;;  %vm13628_vm0 = vcmp.lt.s32.totalorder %v175_v22, 896  ;;  %s13275_s24 = smov 67   ;;  %vm7919_vm3 = vcmask 793600  }
  0xc2   :  { %280 = vmatpush1.bf16.msra.mxu1 %v11578_v25  ;;  %904 = vmatprep.subr.bf16.mxu0 %v11624_v38  ;;  %v11677_v38 = vld [vmem:[#allocation10 + $0x178] ss:$20 sps:$4 sm:$0xff]   ;;  %vm7885_vm4 = vcmask 1031168   ;;  %vm7953_vm5 = vcmask 556032   ;;  %vm7936_vm6 = vcmask 785408   ;;  %vm7987_vm7 = vcmask 539648  }
  0xc3   :  { %849 = vmatprep.subr.bf16.mxu1 %v11581_v27  ;;  %v13483_v25 = vsub.s32 0, %v13480_v23  ;;  %v13486_v26 = vsub.s32 1, %v13480_v23  ;;  %v12516_v22 = vld [vmem:[#allocation13 + $0xbe8] ss:$88 sps:$4 sm:$0xff]   ;;  %vm7970_vm8 = vcmask 547840   ;;  %s13276_s25 = smov 123  }
  0xc4   :  { %s13277_s0 = smov 124   ;;  %s13278_s29 = smov 94   ;;  %vm8094_vm9 = vcmask 1006592   ;;  %vm8077_vm10 = vcmask 1014784   ;;  %vm8128_vm11 = vcmask 769024   ;;  %vm8111_vm12 = vcmask 998400  }
  0xc5   :  { %298 = vmatmul.mubr.bf16.vlgmr.msra.gmra.mrb[0].mxu1 %v156_v30  ;;  %905 = vmatpush1.bf16.msra.mxu0 %v11626_v41  ;;  %v178_v27 = vrot.slane %v173_v24, %v13483_v25  ;;  %v182_v28 = vrot.slane %v173_v24, %v13486_v26  ;;  %v11699_v41 = vld [vmem:[#allocation13 + $0xb4] ss:$88 sps:$4 sm:$0xff]   ;;  %v11757_v24 = vld [vmem:[#allocation13 + $0x790] ss:$88 sps:$4 sm:$0xff]   ;;  %s13279_s3 = smov 122   ;;  %s13280_s4 = smov 92  }
  0xc6   :  { %850 = vmatpush1.bf16.msra.mxu1 %v11579_v31  ;;  %906 = vmatprep.subr.bf16.mxu0 %v11630_v42  ;;  %s13281_s19 = smov 93   ;;  %s13282_s26 = smov 63   ;;  %vm14929_vm13 = vcmask 752640   ;;  %vm8145_vm14 = vcmask 760832   ;;  %vm14927_vm15 = vcmask 515072  }
  0xc7   :  { %851 = vmatprep.subr.bf16.mxu1 %v11587_v32  ;;  %s13283_s27 = smov 64   ;;  %s13284_s1 = smov 62  }
  0xc8   :  { %s13285_s28 = smov 120   ;;  %s13286_s30 = smov 119  }
  0xc9   :  { %907 = vmatpush1.bf16.msra.mxu0 %v11632_v45  ;;  %v11697_v45 = vld [vmem:[#allocation13 + $0xb0] ss:$88 sps:$4 sm:$0xff]   ;;  %s13287_s16 = smov 118   ;;  %s13288_s7 = smov 90  }
  0xca   :  { %852 = vmatpush1.bf16.msra.mxu1 %v11585_v35  ;;  %908 = vmatprep.subr.bf16.mxu0 %v11636_v46  ;;  %v11705_v46 = vld [vmem:[#allocation13 + $0x164] ss:$88 sps:$4 sm:$0xff]   ;;  %s13289_s13 = smov 89   ;;  %s13290_s14 = smov 60  }
  0xcb   :  { %853 = vmatprep.subr.bf16.mxu1 %v11593_v36  ;;  %s13291_s2 = smov 59   ;;  %s13292_s6 = smov 58  }
  0xcd   :  { %909 = vmatpush1.bf16.msra.mxu0 %v11638_v49  ;;  %v11703_v49 = vld [vmem:[#allocation13 + $0x160] ss:$88 sps:$4 sm:$0xff]  }
  0xce   :  { %854 = vmatpush1.bf16.msra.mxu1 %v11591_v39  ;;  %910 = vmatprep.subr.bf16.mxu0 %v11642_v50  ;;  %v11691_v39 = vld [vmem:[#allocation13] ss:$88 sps:$4 sm:$0xff]   ;;  %v11711_v50 = vld [vmem:[#allocation13 + $0x214] ss:$88 sps:$4 sm:$0xff]  }
  0xcf   :  { %855 = vmatprep.subr.bf16.mxu1 %v11599_v40 }
  0xd1   :  { %911 = vmatpush1.bf16.msra.mxu0 %v11644_v53  ;;  %v11709_v53 = vld [vmem:[#allocation13 + $0x210] ss:$88 sps:$4 sm:$0xff]  }
  0xd2   :  { %856 = vmatpush1.bf16.msra.mxu1 %v11597_v43  ;;  %912 = vmatprep.subr.bf16.mxu0 %v11648_v54  ;;  %v11678_v43 = vld [vmem:[#allocation10 + $0x38] ss:$20 sps:$4 sm:$0xff]  }
  0xd3   :  { %857 = vmatprep.subr.bf16.mxu1 %v11605_v44  ;;  %v11679_v44 = vld [vmem:[#allocation10 + $0x1a0] ss:$20 sps:$4 sm:$0xff]  }
  0xd4   :  { %v11717_v54 = vld [vmem:[#allocation13 + $0x2c4] ss:$88 sps:$4 sm:$0xff]  }
  0xd5   :  { %913 = vmatpush1.bf16.msra.mxu0 %v11650_v57  ;;  %v11715_v57 = vld [vmem:[#allocation13 + $0x2c0] ss:$88 sps:$4 sm:$0xff]  }
  0xd6   :  { %858 = vmatpush1.bf16.msra.mxu1 %v11603_v47  ;;  %914 = vmatprep.subr.bf16.mxu0 %v11654_v58  ;;  %v11680_v47 = vld [vmem:[#allocation10 + $0x60] ss:$20 sps:$4 sm:$0xff]  }
  0xd7   :  { %859 = vmatprep.subr.bf16.mxu1 %v11611_v48  ;;  %v11681_v48 = vld [vmem:[#allocation10 + $0x1c8] ss:$20 sps:$4 sm:$0xff]  }
  0xd8   :  { %v11723_v58 = vld [vmem:[#allocation13 + $0x374] ss:$88 sps:$4 sm:$0xff]  }
  0xd9   :  { %915 = vmatpush1.bf16.msra.mxu0 %v11656_v61  ;;  %v11721_v61 = vld [vmem:[#allocation13 + $0x370] ss:$88 sps:$4 sm:$0xff]  }
  0xda   :  { %860 = vmatpush1.bf16.msra.mxu1 %v11609_v51  ;;  %916 = vmatprep.subr.bf16.mxu0 %v11660_v62  ;;  %v11682_v51 = vld [vmem:[#allocation10 + $0x88] ss:$20 sps:$4 sm:$0xff]  }
  0xdb   :  { %861 = vmatprep.subr.bf16.mxu1 %v11617_v52  ;;  %v11683_v52 = vld [vmem:[#allocation10 + $0x1f0] ss:$20 sps:$4 sm:$0xff]  }
  0xdc   :  { %v11729_v62 = vld [vmem:[#allocation13 + $0x424] ss:$88 sps:$4 sm:$0xff]  }
  0xdd   :  { %917 = vmatpush1.bf16.msra.mxu0 %v11662_v2  ;;  %v11727_v2 = vld [vmem:[#allocation13 + $0x420] ss:$88 sps:$4 sm:$0xff]  }
  0xde   :  { %862 = vmatpush1.bf16.msra.mxu1 %v11615_v55  ;;  %918 = vmatprep.subr.bf16.mxu0 %v11666_v14  ;;  %v11684_v55 = vld [vmem:[#allocation10 + $0xb0] ss:$20 sps:$4 sm:$0xff]  }
  0xdf   :  { %863 = vmatprep.subr.bf16.mxu1 %v11623_v56  ;;  %v11685_v56 = vld [vmem:[#allocation10 + $0x218] ss:$20 sps:$4 sm:$0xff]  }
  0xe0   :  { %v11745_v14 = vld [vmem:[#allocation13 + $0x630] ss:$88 sps:$4 sm:$0xff]  }
  0xe1   :  { %919 = vmatpush1.bf16.msra.mxu0 %v11668_v15  ;;  %v11753_v15 = vld [vmem:[#allocation13 + $0x6e4] ss:$88 sps:$4 sm:$0xff]  }
  0xe2   :  { %864 = vmatpush1.bf16.msra.mxu1 %v11621_v59  ;;  %920 = vmatprep.subr.bf16.mxu0 %v11672_v18  ;;  %v11686_v59 = vld [vmem:[#allocation10 + $0xd8] ss:$20 sps:$4 sm:$0xff]   ;;  %v11751_v18 = vld [vmem:[#allocation13 + $0x6e0] ss:$88 sps:$4 sm:$0xff]  }
  0xe3   :  { %865 = vmatprep.subr.bf16.mxu1 %v11629_v60  ;;  %v11687_v60 = vld [vmem:[#allocation10 + $0x240] ss:$20 sps:$4 sm:$0xff]  }
  0xe5   :  { %921 = vmatpush1.bf16.msra.mxu0 %v11674_v19  ;;  %v11759_v19 = vld [vmem:[#allocation13 + $0x794] ss:$88 sps:$4 sm:$0xff]  }
  0xe6   :  { %866 = vmatpush1.bf16.msra.mxu1 %v11627_v63  ;;  %6377 = vmatprep.subr.bf16.mxu0 %v11693_v21  ;;  %v11688_v63 = vld [vmem:[#allocation10 + $0x100] ss:$20 sps:$4 sm:$0xff]  }
  0xe7   :  { %867 = vmatprep.subr.bf16.mxu1 %v11635_v1  ;;  %v11689_v1 = vld [vmem:[#allocation10 + $0x268] ss:$20 sps:$4 sm:$0xff]  }
  0xe8   :  { %v11720_v21 = vld [vmem:[#allocation13 + $0x2cc] ss:$88 sps:$4 sm:$0xff]  }
  0xea   :  { %868 = vmatpush1.bf16.msra.mxu1 %v11633_v3  ;;  %v11735_v3 = vld [vmem:[#allocation13 + $0x4d4] ss:$88 sps:$4 sm:$0xff]  }
  0xeb   :  { %869 = vmatprep.subr.bf16.mxu1 %v11641_v4  ;;  %v11690_v4 = vld [vmem:[#allocation10 + $0x128] ss:$20 sps:$4 sm:$0xff]  }
  0xee   :  { %870 = vmatpush1.bf16.msra.mxu1 %v11639_v5  ;;  %v11696_v5 = vld [vmem:[#allocation13 + $0xc] ss:$88 sps:$4 sm:$0xff]  }
  0xef   :  { %871 = vmatprep.subr.bf16.mxu1 %v11647_v6  ;;  %v11733_v6 = vld [vmem:[#allocation13 + $0x4d0] ss:$88 sps:$4 sm:$0xff]  }
  0xf2   :  { %872 = vmatpush1.bf16.msra.mxu1 %v11645_v7  ;;  %v11741_v7 = vld [vmem:[#allocation13 + $0x584] ss:$88 sps:$4 sm:$0xff]  }
  0xf3   :  { %873 = vmatprep.subr.bf16.mxu1 %v11653_v8  ;;  %v11694_v8 = vld [vmem:[#allocation13 + $0x8] ss:$88 sps:$4 sm:$0xff]  }
  0xf6   :  { %874 = vmatpush1.bf16.msra.mxu1 %v11651_v9  ;;  %v11702_v9 = vld [vmem:[#allocation13 + $0xbc] ss:$88 sps:$4 sm:$0xff]  }
  0xf7   :  { %875 = vmatprep.subr.bf16.mxu1 %v11659_v10  ;;  %v11739_v10 = vld [vmem:[#allocation13 + $0x580] ss:$88 sps:$4 sm:$0xff]  }
  0xfa   :  { %876 = vmatpush1.bf16.msra.mxu1 %v11657_v11  ;;  %v11747_v11 = vld [vmem:[#allocation13 + $0x634] ss:$88 sps:$4 sm:$0xff]  }
  0xfb   :  { %877 = vmatprep.subr.bf16.mxu1 %v11665_v12  ;;  %v11700_v12 = vld [vmem:[#allocation13 + $0xb8] ss:$88 sps:$4 sm:$0xff]  }
  0xfe   :  { %878 = vmatpush1.bf16.msra.mxu1 %v11663_v13  ;;  %v11708_v13 = vld [vmem:[#allocation13 + $0x16c] ss:$88 sps:$4 sm:$0xff]  }
  0xff   :  { %879 = vmatprep.subr.bf16.mxu1 %v11671_v16  ;;  %v11706_v16 = vld [vmem:[#allocation13 + $0x168] ss:$88 sps:$4 sm:$0xff]  }
 0x102   :  { %880 = vmatpush1.bf16.msra.mxu1 %v11669_v17  ;;  %v11714_v17 = vld [vmem:[#allocation13 + $0x21c] ss:$88 sps:$4 sm:$0xff]  }
 0x103   :  { %11264 = vmatprep.subr.bf16.mxu1 %v11675_v20  ;;  %v11712_v20 = vld [vmem:[#allocation13 + $0x218] ss:$88 sps:$4 sm:$0xff]  }
 0x198   :  { %v299_v29 = vpop.f32.mrb[0].mxu1 }
 0x199   :  { %v300_v30 = vadd.f32 %v299_v29, %v178_v27  ;;  %v301_v31 = vpop.f32.mrb[1].mxu1  ;;  %v11765_v27 = vld [vmem:[#allocation13 + $0x844] ss:$88 sps:$4 sm:$0xff]  }
 0x19a   :  { %v302_v32 = vadd.f32 %v301_v31, %v182_v28  ;;  %v303_v33 = vpop.f32.mrb[2].mxu1  ;;  %v11718_v28 = vld [vmem:[#allocation13 + $0x2c8] ss:$88 sps:$4 sm:$0xff]   ;;  %v11726_v29 = vld [vmem:[#allocation13 + $0x37c] ss:$88 sps:$4 sm:$0xff]  }
 0x19b   :  { %v306_v34 = vmax.f32 %v300_v30, 0.0  ;;  %v304_v35 = vpop.f32.mrb[3].mxu1  ;;  %v11763_v30 = vld [vmem:[#allocation13 + $0x840] ss:$88 sps:$4 sm:$0xff]   ;;  %v11771_v31 = vld [vmem:[#allocation13 + $0x8f4] ss:$88 sps:$4 sm:$0xff]  }
 0x19c   :  { %v307_v36 = vmax.f32 %v302_v32, 0.0  ;;  %v11724_v32 = vld [vmem:[#allocation13 + $0x378] ss:$88 sps:$4 sm:$0xff]   ;;  %v11732_v33 = vld [vmem:[#allocation13 + $0x42c] ss:$88 sps:$4 sm:$0xff]  }
 0x19d   :  { %v13490_v42 = vpack.c.bf16 %v306_v34, %v306_v34  ;;  %v11769_v34 = vld [vmem:[#allocation13 + $0x8f0] ss:$88 sps:$4 sm:$0xff]  }
 0x19e   :  { %v309_v40 = vpack.c.bf16 %v307_v36, %v307_v36  ;;  %v11730_v35 = vld [vmem:[#allocation13 + $0x428] ss:$88 sps:$4 sm:$0xff]   ;;  %v11738_v36 = vld [vmem:[#allocation13 + $0x4dc] ss:$88 sps:$4 sm:$0xff]  }
 0x1a0   :  { %881 = vmatprep.mubr.bf16.mxu1 %v309_v40  ;;  %922 = vmatprep.mubr.bf16.mxu0 %v309_v40 }
 0x1a1   :  { %882 = vmatmul.mubr.bf16.vlgmr.msra.gmra.mrb[4].mxu1 %v13490_v42  ;;  %923 = vmatmul.mubr.bf16.vlgmr.msra.gmra.mrb[0].mxu0 %v13490_v42 }
 0x1a2   :  { %11265 = vmatpush3.bf16.msra.mxu1 %v11676_v37  ;;  %963 = vmatprep.mubr.bf16.mxu1 %v309_v40  ;;  %v11736_v37 = vld [vmem:[#allocation13 + $0x4d8] ss:$88 sps:$4 sm:$0xff]   ;;  %v11750_v40 = vld [vmem:[#allocation13 + $0x63c] ss:$88 sps:$4 sm:$0xff]  }
 0x1a3   :  { %11266 = vmatprep.subr.bf16.mxu1 %v11677_v38  ;;  %6378 = vmatpush1.bf16.msra.mxu0 %v11691_v39  ;;  %v11744_v38 = vld [vmem:[#allocation13 + $0x58c] ss:$88 sps:$4 sm:$0xff]   ;;  %v11742_v39 = vld [vmem:[#allocation13 + $0x588] ss:$88 sps:$4 sm:$0xff]  }
 0x1a4   :  { %6379 = vmatprep.subr.bf16.mxu0 %v11699_v41  ;;  %v11748_v41 = vld [vmem:[#allocation13 + $0x638] ss:$88 sps:$4 sm:$0xff]  }
 0x1a6   :  { %11267 = vmatpush3.bf16.msra.mxu1 %v11678_v43  ;;  %v11754_v43 = vld [vmem:[#allocation13 + $0x6e8] ss:$88 sps:$4 sm:$0xff]  }
 0x1a7   :  { %11268 = vmatprep.subr.bf16.mxu1 %v11679_v44  ;;  %6380 = vmatpush1.bf16.msra.mxu0 %v11697_v45  ;;  %v11762_v44 = vld [vmem:[#allocation13 + $0x79c] ss:$88 sps:$4 sm:$0xff]   ;;  %v11760_v45 = vld [vmem:[#allocation13 + $0x798] ss:$88 sps:$4 sm:$0xff]  }
 0x1a8   :  { %6381 = vmatprep.subr.bf16.mxu0 %v11705_v46  ;;  %v11768_v46 = vld [vmem:[#allocation13 + $0x84c] ss:$88 sps:$4 sm:$0xff]  }
 0x1aa   :  { %11269 = vmatpush3.bf16.msra.mxu1 %v11680_v47  ;;  %v11766_v47 = vld [vmem:[#allocation13 + $0x848] ss:$88 sps:$4 sm:$0xff]  }
 0x1ab   :  { %11270 = vmatprep.subr.bf16.mxu1 %v11681_v48  ;;  %6382 = vmatpush1.bf16.msra.mxu0 %v11703_v49  ;;  %v11774_v48 = vld [vmem:[#allocation13 + $0x8fc] ss:$88 sps:$4 sm:$0xff]   ;;  %v11772_v49 = vld [vmem:[#allocation13 + $0x8f8] ss:$88 sps:$4 sm:$0xff]  }
 0x1ac   :  { %6383 = vmatprep.subr.bf16.mxu0 %v11711_v50  ;;  %v11777_v50 = vld [vmem:[#allocation13 + $0x9a4] ss:$88 sps:$4 sm:$0xff]  }
 0x1ae   :  { %11271 = vmatpush3.bf16.msra.mxu1 %v11682_v51  ;;  %v11780_v51 = vld [vmem:[#allocation13 + $0x9ac] ss:$88 sps:$4 sm:$0xff]  }
 0x1af   :  { %11272 = vmatprep.subr.bf16.mxu1 %v11683_v52  ;;  %6384 = vmatpush1.bf16.msra.mxu0 %v11709_v53  ;;  %v11775_v52 = vld [vmem:[#allocation13 + $0x9a0] ss:$88 sps:$4 sm:$0xff]  }
 0x1b0   :  { %6385 = vmatprep.subr.bf16.mxu0 %v11717_v54  ;;  %v11778_v53 = vld [vmem:[#allocation13 + $0x9a8] ss:$88 sps:$4 sm:$0xff]   ;;  %v11783_v54 = vld [vmem:[#allocation13 + $0xa54] ss:$88 sps:$4 sm:$0xff]  }
 0x1b2   :  { %11273 = vmatpush3.bf16.msra.mxu1 %v11684_v55  ;;  %v11786_v55 = vld [vmem:[#allocation13 + $0xa5c] ss:$88 sps:$4 sm:$0xff]  }
 0x1b3   :  { %11274 = vmatprep.subr.bf16.mxu1 %v11685_v56  ;;  %6386 = vmatpush1.bf16.msra.mxu0 %v11715_v57  ;;  %v11781_v56 = vld [vmem:[#allocation13 + $0xa50] ss:$88 sps:$4 sm:$0xff]  }
 0x1b4   :  { %6387 = vmatprep.subr.bf16.mxu0 %v11723_v58  ;;  %v11784_v57 = vld [vmem:[#allocation13 + $0xa58] ss:$88 sps:$4 sm:$0xff]   ;;  %v11789_v58 = vld [vmem:[#allocation13 + $0xb04] ss:$88 sps:$4 sm:$0xff]  }
 0x1b6   :  { %11275 = vmatpush3.bf16.msra.mxu1 %v11686_v59  ;;  %v11792_v59 = vld [vmem:[#allocation13 + $0xb0c] ss:$88 sps:$4 sm:$0xff]  }
 0x1b7   :  { %11276 = vmatprep.subr.bf16.mxu1 %v11687_v60  ;;  %6388 = vmatpush1.bf16.msra.mxu0 %v11721_v61  ;;  %v13495_v60 = vld [vmem:[#allocation12] sm:$0x1f]  ;;  %v13498_v61 = vsub.s32 3, %v13480_v23 }
 0x1b8   :  { %6389 = vmatprep.subr.bf16.mxu0 %v11729_v62  ;;  %v411_v62 = vrot.slane %v13495_v60, %v13483_v25 }
 0x1ba   :  { %11277 = vmatpush3.bf16.msra.mxu1 %v11688_v63  ;;  %v415_v63 = vrot.slane %v13495_v60, %v13486_v26 }
 0x1bb   :  { %11278 = vmatprep.subr.bf16.mxu1 %v11689_v1  ;;  %6390 = vmatpush1.bf16.msra.mxu0 %v11727_v2  ;;  %v423_v1 = vrot.slane %v13495_v60, %v13498_v61 }
 0x1bc   :  { %6391 = vmatprep.subr.bf16.mxu0 %v11735_v3 }
 0x1be   :  { %11279 = vmatpush3.bf16.msra.mxu1 %v11690_v4 }
 0x1bf   :  { %6500 = vmatprep.subr.bf16.mxu1 %v11696_v5  ;;  %6392 = vmatpush1.bf16.msra.mxu0 %v11733_v6 }
 0x1c0   :  { %6393 = vmatprep.subr.bf16.mxu0 %v11741_v7 }
 0x1c1   :  { %964 = vmatmul.mubr.bf16.vlgmr.msra.gmra.mrb[8].mxu1 %v13490_v42  ;;  %v11756_v42 = vld [vmem:[#allocation13 + $0x6ec] ss:$88 sps:$4 sm:$0xff]  }
 0x1c2   :  { %6501 = vmatpush1.bf16.msra.mxu1 %v11694_v8 }
 0x1c3   :  { %6502 = vmatprep.subr.bf16.mxu1 %v11702_v9  ;;  %6394 = vmatpush1.bf16.msra.mxu0 %v11739_v10 }
 0x1c4   :  { %6395 = vmatprep.subr.bf16.mxu0 %v11747_v11 }
 0x1c6   :  { %6503 = vmatpush1.bf16.msra.mxu1 %v11700_v12 }
 0x1c7   :  { %6504 = vmatprep.subr.bf16.mxu1 %v11708_v13  ;;  %6396 = vmatpush1.bf16.msra.mxu0 %v11745_v14 }
 0x1c8   :  { %6397 = vmatprep.subr.bf16.mxu0 %v11753_v15 }
 0x1ca   :  { %6505 = vmatpush1.bf16.msra.mxu1 %v11706_v16 }
 0x1cb   :  { %6506 = vmatprep.subr.bf16.mxu1 %v11714_v17  ;;  %6398 = vmatpush1.bf16.msra.mxu0 %v11751_v18  ;;  %v11787_v17 = vld [vmem:[#allocation13 + $0xb00] ss:$88 sps:$4 sm:$0xff]  }
 0x1cc   :  { %6399 = vmatprep.subr.bf16.mxu0 %v11759_v19  ;;  %v11790_v18 = vld [vmem:[#allocation13 + $0xb08] ss:$88 sps:$4 sm:$0xff]  }
 0x1ce   :  { %6507 = vmatpush1.bf16.msra.mxu1 %v11712_v20  ;;  %v11795_v20 = vld [vmem:[#allocation13 + $0xbb4] ss:$88 sps:$4 sm:$0xff]  }
 0x1cf   :  { %6508 = vmatprep.subr.bf16.mxu1 %v11720_v21  ;;  %6400 = vmatpush1.bf16.msra.mxu0 %v11757_v24  ;;  %v11798_v21 = vld [vmem:[#allocation13 + $0xbbc] ss:$88 sps:$4 sm:$0xff]  }
 0x1d0   :  { %6401 = vmatprep.subr.bf16.mxu0 %v11765_v27  ;;  %v11793_v27 = vld [vmem:[#allocation13 + $0xbb0] ss:$88 sps:$4 sm:$0xff]  }
 0x1d2   :  { %6509 = vmatpush1.bf16.msra.mxu1 %v11718_v28  ;;  %v11796_v28 = vld [vmem:[#allocation13 + $0xbb8] ss:$88 sps:$4 sm:$0xff]  }
 0x1d3   :  { %6510 = vmatprep.subr.bf16.mxu1 %v11726_v29  ;;  %6402 = vmatpush1.bf16.msra.mxu0 %v11763_v30  ;;  %v11801_v29 = vld [vmem:[#allocation13 + $0xc64] ss:$88 sps:$4 sm:$0xff]  }
 0x1d4   :  { %6403 = vmatprep.subr.bf16.mxu0 %v11771_v31  ;;  %v11804_v30 = vld [vmem:[#allocation13 + $0xc6c] ss:$88 sps:$4 sm:$0xff]   ;;  %v11799_v31 = vld [vmem:[#allocation13 + $0xc60] ss:$88 sps:$4 sm:$0xff]  }
 0x1d6   :  { %6511 = vmatpush1.bf16.msra.mxu1 %v11724_v32  ;;  %v11802_v32 = vld [vmem:[#allocation13 + $0xc68] ss:$88 sps:$4 sm:$0xff]  }
 0x1d7   :  { %6512 = vmatprep.subr.bf16.mxu1 %v11732_v33  ;;  %6404 = vmatpush1.bf16.msra.mxu0 %v11769_v34  ;;  %v11807_v33 = vld [vmem:[#allocation13 + $0xd14] ss:$88 sps:$4 sm:$0xff]  }
 0x1d8   :  { %6405 = vmatprep.subr.bf16.mxu0 %v11777_v50  ;;  %v11810_v34 = vld [vmem:[#allocation13 + $0xd1c] ss:$88 sps:$4 sm:$0xff]  }
 0x1d9   :  { %v11834_v50 = vld [vmem:[#allocation13 + $0xfdc] ss:$88 sps:$4 sm:$0xff]  }
 0x1da   :  { %6513 = vmatpush1.bf16.msra.mxu1 %v11730_v35  ;;  %v11805_v35 = vld [vmem:[#allocation13 + $0xd10] ss:$88 sps:$4 sm:$0xff]  }
 0x1db   :  { %6514 = vmatprep.subr.bf16.mxu1 %v11738_v36  ;;  %6406 = vmatpush1.bf16.msra.mxu0 %v11775_v52  ;;  %v11808_v36 = vld [vmem:[#allocation13 + $0xd18] ss:$88 sps:$4 sm:$0xff]  }
 0x1dc   :  { %6407 = vmatprep.subr.bf16.mxu0 %v11783_v54 }
 0x1de   :  { %6515 = vmatpush1.bf16.msra.mxu1 %v11736_v37  ;;  %v11813_v37 = vld [vmem:[#allocation13 + $0xdc4] ss:$88 sps:$4 sm:$0xff]  }
 0x1df   :  { %6516 = vmatprep.subr.bf16.mxu1 %v11744_v38  ;;  %6408 = vmatpush1.bf16.msra.mxu0 %v11781_v56  ;;  %v11816_v38 = vld [vmem:[#allocation13 + $0xdcc] ss:$88 sps:$4 sm:$0xff]   ;;  %v11832_v56 = vld [vmem:[#allocation13 + $0xfd8] ss:$88 sps:$4 sm:$0xff]  }
 0x1e0   :  { %6418 = vmatprep.subr.bf16.mxu0 %v11789_v58  ;;  %v11837_v58 = vld [vmem:[#allocation13 + $0x1084] ss:$88 sps:$4 sm:$0xff]  }
 0x1e2   :  { %6517 = vmatpush1.bf16.msra.mxu1 %v11742_v39  ;;  %v11811_v39 = vld [vmem:[#allocation13 + $0xdc0] ss:$88 sps:$4 sm:$0xff]  }
 0x1e3   :  { %6518 = vmatprep.subr.bf16.mxu1 %v11750_v40  ;;  %v11814_v40 = vld [vmem:[#allocation13 + $0xdc8] ss:$88 sps:$4 sm:$0xff]  }
 0x1e6   :  { %6519 = vmatpush1.bf16.msra.mxu1 %v11748_v41  ;;  %v11819_v41 = vld [vmem:[#allocation13 + $0xe74] ss:$88 sps:$4 sm:$0xff]  }
 0x1e7   :  { %6520 = vmatprep.subr.bf16.mxu1 %v11756_v42  ;;  %v11822_v42 = vld [vmem:[#allocation13 + $0xe7c] ss:$88 sps:$4 sm:$0xff]  }
 0x1ea   :  { %6521 = vmatpush1.bf16.msra.mxu1 %v11754_v43  ;;  %v11817_v43 = vld [vmem:[#allocation13 + $0xe70] ss:$88 sps:$4 sm:$0xff]  }
 0x1eb   :  { %6522 = vmatprep.subr.bf16.mxu1 %v11762_v44  ;;  %v11820_v44 = vld [vmem:[#allocation13 + $0xe78] ss:$88 sps:$4 sm:$0xff]  }
 0x1ee   :  { %6523 = vmatpush1.bf16.msra.mxu1 %v11760_v45  ;;  %v11825_v45 = vld [vmem:[#allocation13 + $0xf24] ss:$88 sps:$4 sm:$0xff]  }
 0x1ef   :  { %6524 = vmatprep.subr.bf16.mxu1 %v11768_v46  ;;  %v11828_v46 = vld [vmem:[#allocation13 + $0xf2c] ss:$88 sps:$4 sm:$0xff]  }
 0x1f2   :  { %6525 = vmatpush1.bf16.msra.mxu1 %v11766_v47  ;;  %v11823_v47 = vld [vmem:[#allocation13 + $0xf20] ss:$88 sps:$4 sm:$0xff]  }
 0x1f3   :  { %6526 = vmatprep.subr.bf16.mxu1 %v11774_v48  ;;  %v11826_v48 = vld [vmem:[#allocation13 + $0xf28] ss:$88 sps:$4 sm:$0xff]  }
 0x1f6   :  { %6527 = vmatpush1.bf16.msra.mxu1 %v11772_v49  ;;  %v11831_v49 = vld [vmem:[#allocation13 + $0xfd4] ss:$88 sps:$4 sm:$0xff]  }
 0x1f7   :  { %6528 = vmatprep.subr.bf16.mxu1 %v11780_v51 }
 0x1fa   :  { %6529 = vmatpush1.bf16.msra.mxu1 %v11778_v53 }
 0x1fb   :  { %6530 = vmatprep.subr.bf16.mxu1 %v11786_v55  ;;  %v11829_v55 = vld [vmem:[#allocation13 + $0xfd0] ss:$88 sps:$4 sm:$0xff]  }
 0x1fe   :  { %6531 = vmatpush1.bf16.msra.mxu1 %v11784_v57 }
 0x1ff   :  { %6541 = vmatprep.subr.bf16.mxu1 %v11792_v59  ;;  %v11840_v59 = vld [vmem:[#allocation13 + $0x108c] ss:$88 sps:$4 sm:$0xff]  }
 0x274   :  { %v883_v2 = vpop.f32.mrb[4].mxu1  ;;  %v13506_v3 = vpop.f32.mrb[0].mxu0 }
 0x275   :  { %v884_v4 = vadd.f32 %v883_v2, %v411_v62  ;;  %v885_v5 = vpop.f32.mrb[5].mxu1  ;;  %v926_v6 = vpop.f32.mrb[1].mxu0  ;;  %v11835_v62 = vld [vmem:[#allocation13 + $0x1080] ss:$88 sps:$4 sm:$0xff]   ;;  %v11846_v2 = vld [vmem:[#allocation13 + $0x113c] ss:$88 sps:$4 sm:$0xff]  }
 0x276   :  { %v886_v7 = vadd.f32 %v885_v5, %v415_v63  ;;  %v927_v8 = vadd.f32 %v926_v6, %v423_v1  ;;  %v887_v9 = vpop.f32.mrb[6].mxu1  ;;  %v928_v10 = vpop.f32.mrb[2].mxu0  ;;  %v11838_v63 = vld [vmem:[#allocation13 + $0x1088] ss:$88 sps:$4 sm:$0xff]   ;;  %v11843_v1 = vld [vmem:[#allocation13 + $0x1134] ss:$88 sps:$4 sm:$0xff]  }
 0x277   :  { %v971_v11 = vmax.f32 %v884_v4, 0.0  ;;  %v888_v12 = vpop.f32.mrb[7].mxu1  ;;  %v929_v13 = vpop.f32.mrb[3].mxu0  ;;  %v11841_v4 = vld [vmem:[#allocation13 + $0x1130] ss:$88 sps:$4 sm:$0xff]  }
 0x278   :  { %v972_v14 = vmax.f32 %v886_v7, 0.0  ;;  %v974_v15 = vmax.f32 %v927_v8, 0.0  ;;  %v11844_v5 = vld [vmem:[#allocation13 + $0x1138] ss:$88 sps:$4 sm:$0xff]   ;;  %v11849_v6 = vld [vmem:[#allocation13 + $0x11e4] ss:$88 sps:$4 sm:$0xff]  }
 0x279   :  { %v13510_v19 = vpack.c.bf16 %v971_v11, %v971_v11  ;;  %v11852_v7 = vld [vmem:[#allocation13 + $0x11ec] ss:$88 sps:$4 sm:$0xff]   ;;  %v11847_v8 = vld [vmem:[#allocation13 + $0x11e0] ss:$88 sps:$4 sm:$0xff]   ;;  %v11858_v11 = vld [vmem:[#allocation13 + $0x129c] ss:$88 sps:$4 sm:$0xff]  }
 0x27a   :  { %v13508_v16 = vpack.c.bf16 %v972_v14, %v972_v14  ;;  %v13514_v24 = vpack.c.bf16 %v974_v15, %v974_v15  ;;  %v11850_v9 = vld [vmem:[#allocation13 + $0x11e8] ss:$88 sps:$4 sm:$0xff]   ;;  %v11855_v10 = vld [vmem:[#allocation13 + $0x1294] ss:$88 sps:$4 sm:$0xff]   ;;  %v11856_v13 = vld [vmem:[#allocation13 + $0x1298] ss:$88 sps:$4 sm:$0xff]  }
 0x27b   :  { %v11853_v12 = vld [vmem:[#allocation13 + $0x1290] ss:$88 sps:$4 sm:$0xff]   ;;  %v11861_v14 = vld [vmem:[#allocation13 + $0x1344] ss:$88 sps:$4 sm:$0xff]  }
 0x27c   :  { %6409 = vmatprep.mubr.bf16.mxu0 %v13508_v16  ;;  %6532 = vmatprep.mubr.bf16.mxu1 %v13508_v16  ;;  %v11864_v15 = vld [vmem:[#allocation13 + $0x134c] ss:$88 sps:$4 sm:$0xff]  }
 0x27d   :  { %6410 = vmatmul.mubr.bf16.vlgmr.msra.gmra.mrb[4].mxu0 %v13510_v19  ;;  %6533 = vmatmul.mubr.bf16.vlgmr.msra.gmra.mrb[12].mxu1 %v13510_v19 }
 0x27e   :  { %6419 = vmatpush1.bf16.msra.mxu0 %v11787_v17  ;;  %6542 = vmatpush1.bf16.msra.mxu1 %v11790_v18  ;;  %v11859_v17 = vld [vmem:[#allocation13 + $0x1340] ss:$88 sps:$4 sm:$0xff]  }
 0x27f   :  { %6450 = vmatprep.mubr.bf16.mxu0 %v13514_v24  ;;  %6573 = vmatprep.mubr.bf16.mxu1 %v13514_v24  ;;  %v11862_v18 = vld [vmem:[#allocation13 + $0x1348] ss:$88 sps:$4 sm:$0xff]  }
 0x280   :  { %6420 = vmatprep.subr.bf16.mxu0 %v11795_v20  ;;  %6543 = vmatprep.subr.bf16.mxu1 %v11798_v21  ;;  %v13523_v20 = vsub.s32 2, %v13480_v23  ;;  %v11867_v21 = vld [vmem:[#allocation13 + $0x13f4] ss:$88 sps:$4 sm:$0xff]  }
 0x282   :  { %6421 = vmatpush1.bf16.msra.mxu0 %v11793_v27  ;;  %6544 = vmatpush1.bf16.msra.mxu1 %v11796_v28  ;;  %v11870_v27 = vld [vmem:[#allocation13 + $0x13fc] ss:$88 sps:$4 sm:$0xff]   ;;  %v11865_v28 = vld [vmem:[#allocation13 + $0x13f0] ss:$88 sps:$4 sm:$0xff]  }
 0x283   :  { %6422 = vmatprep.subr.bf16.mxu0 %v11801_v29  ;;  %6545 = vmatprep.subr.bf16.mxu1 %v11804_v30  ;;  %v11868_v29 = vld [vmem:[#allocation13 + $0x13f8] ss:$88 sps:$4 sm:$0xff]   ;;  %v419_v30 = vrot.slane %v13495_v60, %v13523_v20 }
 0x286   :  { %6423 = vmatpush1.bf16.msra.mxu0 %v11799_v31  ;;  %6546 = vmatpush1.bf16.msra.mxu1 %v11802_v32  ;;  %v11873_v31 = vld [vmem:[#allocation13 + $0x14a4] ss:$88 sps:$4 sm:$0xff]  }
 0x287   :  { %6424 = vmatprep.subr.bf16.mxu0 %v11807_v33  ;;  %6547 = vmatprep.subr.bf16.mxu1 %v11810_v34  ;;  %v11876_v32 = vld [vmem:[#allocation13 + $0x14ac] ss:$88 sps:$4 sm:$0xff]   ;;  %v11871_v33 = vld [vmem:[#allocation13 + $0x14a0] ss:$88 sps:$4 sm:$0xff]  }
 0x288   :  { %v11874_v34 = vld [vmem:[#allocation13 + $0x14a8] ss:$88 sps:$4 sm:$0xff]  }
 0x28a   :  { %6425 = vmatpush1.bf16.msra.mxu0 %v11805_v35  ;;  %6548 = vmatpush1.bf16.msra.mxu1 %v11808_v36  ;;  %v925_v35 = vadd.f32 %v13506_v3, %v419_v30  ;;  %v11879_v36 = vld [vmem:[#allocation13 + $0x1554] ss:$88 sps:$4 sm:$0xff]  }
 0x28b   :  { %6426 = vmatprep.subr.bf16.mxu0 %v11813_v37  ;;  %6549 = vmatprep.subr.bf16.mxu1 %v11816_v38  ;;  %v11882_v37 = vld [vmem:[#allocation13 + $0x155c] ss:$88 sps:$4 sm:$0xff]   ;;  %v11877_v38 = vld [vmem:[#allocation13 + $0x1550] ss:$88 sps:$4 sm:$0xff]   ;;  %v11942_v30 = vld [vmem:[#allocation13 + $0xcc] ss:$88 sps:$4 sm:$0xff]  }
 0x28c   :  { %v11891_v3 = vld [vmem:[#allocation13 + $0x16b4] ss:$88 sps:$4 sm:$0xff]  }
 0x28e   :  { %6427 = vmatpush1.bf16.msra.mxu0 %v11811_v39  ;;  %6550 = vmatpush1.bf16.msra.mxu1 %v11814_v40  ;;  %v11880_v39 = vld [vmem:[#allocation13 + $0x1558] ss:$88 sps:$4 sm:$0xff]   ;;  %v973_v40 = vmax.f32 %v925_v35, 0.0 }
 0x28f   :  { %6428 = vmatprep.subr.bf16.mxu0 %v11819_v41  ;;  %6551 = vmatprep.subr.bf16.mxu1 %v11822_v42  ;;  %v11885_v41 = vld [vmem:[#allocation13 + $0x1604] ss:$88 sps:$4 sm:$0xff]   ;;  %v11943_v35 = vld [vmem:[#allocation13 + $0x170] ss:$88 sps:$4 sm:$0xff]  }
 0x290   :  { %v11888_v42 = vld [vmem:[#allocation13 + $0x160c] ss:$88 sps:$4 sm:$0xff]  }
 0x292   :  { %6429 = vmatpush1.bf16.msra.mxu0 %v11817_v43  ;;  %6552 = vmatpush1.bf16.msra.mxu1 %v11820_v44  ;;  %v11883_v43 = vld [vmem:[#allocation13 + $0x1600] ss:$88 sps:$4 sm:$0xff]  }
 0x293   :  { %6430 = vmatprep.subr.bf16.mxu0 %v11825_v45  ;;  %6553 = vmatprep.subr.bf16.mxu1 %v11828_v46  ;;  %v11886_v44 = vld [vmem:[#allocation13 + $0x1608] ss:$88 sps:$4 sm:$0xff]   ;;  %v13528_v45 = vpack.c.bf16 %v973_v40, %v973_v40  ;;  %v11894_v46 = vld [vmem:[#allocation13 + $0x16bc] ss:$88 sps:$4 sm:$0xff]  }
 0x294   :  { %v11280_v51 = vpop.f32.mrb[8].mxu1  ;;  %v11952_v40 = vld [vmem:[#allocation13 + $0x228] ss:$88 sps:$4 sm:$0xff]  }
 0x295   :  { %v11281_v52 = vpop.f32.mrb[9].mxu1 }
 0x296   :  { %v13520_v53 = vadd.f32 %v11281_v52, %v11280_v51  ;;  %v11283_v54 = vpop.f32.mrb[10].mxu1  ;;  %6431 = vmatpush1.bf16.msra.mxu0 %v11823_v47  ;;  %6554 = vmatpush1.bf16.msra.mxu1 %v11826_v48  ;;  %v11889_v47 = vld [vmem:[#allocation13 + $0x16b0] ss:$88 sps:$4 sm:$0xff]   ;;  %v11895_v51 = vld [vmem:[#allocation13 + $0x1760] ss:$88 sps:$4 sm:$0xff]  }
 0x297   :  { %v11284_v57 = vpop.f32.mrb[11].mxu1  ;;  %6432 = vmatprep.subr.bf16.mxu0 %v11831_v49  ;;  %6555 = vmatprep.subr.bf16.mxu1 %v11834_v50  ;;  %v11892_v48 = vld [vmem:[#allocation13 + $0x16b8] ss:$88 sps:$4 sm:$0xff]   ;;  %v11897_v49 = vld [vmem:[#allocation13 + $0x1764] ss:$88 sps:$4 sm:$0xff]  }
 0x298   :  { %v11900_v50 = vld [vmem:[#allocation13 + $0x176c] ss:$88 sps:$4 sm:$0xff]   ;;  %v11898_v52 = vld [vmem:[#allocation13 + $0x1768] ss:$88 sps:$4 sm:$0xff]   ;;  %v11904_v57 = vld [vmem:[#allocation13 + $0x1818] ss:$88 sps:$4 sm:$0xff]  }
 0x299   :  { %v11903_v54 = vld [vmem:[#allocation13 + $0x1814] ss:$88 sps:$4 sm:$0xff]  }
 0x29a   :  { %6433 = vmatpush1.bf16.msra.mxu0 %v11829_v55  ;;  %6556 = vmatpush1.bf16.msra.mxu1 %v11832_v56  ;;  %v11906_v55 = vld [vmem:[#allocation13 + $0x181c] ss:$88 sps:$4 sm:$0xff]   ;;  %v11901_v56 = vld [vmem:[#allocation13 + $0x1810] ss:$88 sps:$4 sm:$0xff]  }
 0x29b   :  { %6434 = vmatprep.subr.bf16.mxu0 %v11837_v58  ;;  %6557 = vmatprep.subr.bf16.mxu1 %v11840_v59  ;;  %v11909_v58 = vld [vmem:[#allocation13 + $0x18c4] ss:$88 sps:$4 sm:$0xff]  }
 0x29c   :  { %v11912_v59 = vld [vmem:[#allocation13 + $0x18cc] ss:$88 sps:$4 sm:$0xff]  }
 0x29e   :  { %6435 = vmatpush1.bf16.msra.mxu0 %v11835_v62  ;;  %6558 = vmatpush1.bf16.msra.mxu1 %v11838_v63  ;;  %v11907_v62 = vld [vmem:[#allocation13 + $0x18c0] ss:$88 sps:$4 sm:$0xff]  }
 0x29f   :  { %6436 = vmatprep.subr.bf16.mxu0 %v11843_v1  ;;  %6559 = vmatprep.subr.bf16.mxu1 %v11846_v2  ;;  %v11910_v63 = vld [vmem:[#allocation13 + $0x18c8] ss:$88 sps:$4 sm:$0xff]   ;;  %v13535_v1 = vsub.s32 4, %v13480_v23  ;;  %v11915_v2 = vld [vmem:[#allocation13 + $0x1974] ss:$88 sps:$4 sm:$0xff]  }
 0x2a2   :  { %6437 = vmatpush1.bf16.msra.mxu0 %v11841_v4  ;;  %6560 = vmatpush1.bf16.msra.mxu1 %v11844_v5  ;;  %v11918_v4 = vld [vmem:[#allocation13 + $0x197c] ss:$88 sps:$4 sm:$0xff]   ;;  %v11913_v5 = vld [vmem:[#allocation13 + $0x1970] ss:$88 sps:$4 sm:$0xff]  }
 0x2a3   :  { %6438 = vmatprep.subr.bf16.mxu0 %v11849_v6  ;;  %6561 = vmatprep.subr.bf16.mxu1 %v11852_v7  ;;  %v11916_v6 = vld [vmem:[#allocation13 + $0x1978] ss:$88 sps:$4 sm:$0xff]   ;;  %v427_v7 = vrot.slane %v13495_v60, %v13535_v1  ;;  %v11933_v60 = vld [vmem:[#allocation13 + $0x14] ss:$88 sps:$4 sm:$0xff]  }
 0x2a6   :  { %6439 = vmatpush1.bf16.msra.mxu0 %v11847_v8  ;;  %6562 = vmatpush1.bf16.msra.mxu1 %v11850_v9  ;;  %v11921_v8 = vld [vmem:[#allocation13 + $0x1a24] ss:$88 sps:$4 sm:$0xff]  }
 0x2a7   :  { %6440 = vmatprep.subr.bf16.mxu0 %v11855_v10  ;;  %6563 = vmatprep.subr.bf16.mxu1 %v11858_v11  ;;  %v11924_v9 = vld [vmem:[#allocation13 + $0x1a2c] ss:$88 sps:$4 sm:$0xff]   ;;  %v11919_v10 = vld [vmem:[#allocation13 + $0x1a20] ss:$88 sps:$4 sm:$0xff]  }
 0x2a8   :  { %v11922_v11 = vld [vmem:[#allocation13 + $0x1a28] ss:$88 sps:$4 sm:$0xff]  }
 0x2aa   :  { %6441 = vmatpush1.bf16.msra.mxu0 %v11853_v12  ;;  %6564 = vmatpush1.bf16.msra.mxu1 %v11856_v13  ;;  %v966_v12 = vadd.f32 %v13520_v53, %v427_v7  ;;  %v11927_v13 = vld [vmem:[#allocation13 + $0x1ad4] ss:$88 sps:$4 sm:$0xff]   ;;  %v11934_v53 = vld [vmem:[#allocation13 + $0x18] ss:$88 sps:$4 sm:$0xff]  }
 0x2ab   :  { %6442 = vmatprep.subr.bf16.mxu0 %v11861_v14  ;;  %6565 = vmatprep.subr.bf16.mxu1 %v11864_v15  ;;  %v11930_v14 = vld [vmem:[#allocation13 + $0x1adc] ss:$88 sps:$4 sm:$0xff]   ;;  %v11925_v15 = vld [vmem:[#allocation13 + $0x1ad0] ss:$88 sps:$4 sm:$0xff]  }
 0x2ac   :  { %v11993_v7 = vld [vmem:[#allocation13 + $0x6f4] ss:$88 sps:$4 sm:$0xff]  }
 0x2ae   :  { %6443 = vmatpush1.bf16.msra.mxu0 %v11859_v17  ;;  %6566 = vmatpush1.bf16.msra.mxu1 %v11862_v18  ;;  %v11928_v17 = vld [vmem:[#allocation13 + $0x1ad8] ss:$88 sps:$4 sm:$0xff]   ;;  %v975_v18 = vmax.f32 %v966_v12, 0.0  ;;  %v12002_v12 = vld [vmem:[#allocation13 + $0x7ac] ss:$88 sps:$4 sm:$0xff]  }
 0x2af   :  { %6444 = vmatprep.subr.bf16.mxu0 %v11867_v21  ;;  %6567 = vmatprep.subr.bf16.mxu1 %v11870_v27  ;;  %v11936_v21 = vld [vmem:[#allocation13 + $0x1c] ss:$88 sps:$4 sm:$0xff]   ;;  %v11931_v27 = vld [vmem:[#allocation13 + $0x10] ss:$88 sps:$4 sm:$0xff]  }
 0x2b2   :  { %6445 = vmatpush1.bf16.msra.mxu0 %v11865_v28  ;;  %6568 = vmatpush1.bf16.msra.mxu1 %v11868_v29  ;;  %v13540_v28 = vpack.c.bf16 %v975_v18, %v975_v18  ;;  %v11939_v29 = vld [vmem:[#allocation13 + $0xc4] ss:$88 sps:$4 sm:$0xff]   ;;  %v12003_v18 = vld [vmem:[#allocation13 + $0x850] ss:$88 sps:$4 sm:$0xff]  }
 0x2b3   :  { %6446 = vmatprep.subr.bf16.mxu0 %v11873_v31  ;;  %6569 = vmatprep.subr.bf16.mxu1 %v11876_v32  ;;  %v11937_v31 = vld [vmem:[#allocation13 + $0xc0] ss:$88 sps:$4 sm:$0xff]  }
 0x2b4   :  { %v11940_v32 = vld [vmem:[#allocation13 + $0xc8] ss:$88 sps:$4 sm:$0xff]  }
 0x2b6   :  { %6447 = vmatpush1.bf16.msra.mxu0 %v11871_v33  ;;  %6570 = vmatpush1.bf16.msra.mxu1 %v11874_v34  ;;  %v11945_v33 = vld [vmem:[#allocation13 + $0x174] ss:$88 sps:$4 sm:$0xff]  }
 0x2b7   :  { %6448 = vmatprep.subr.bf16.mxu0 %v11879_v36  ;;  %6571 = vmatprep.subr.bf16.mxu1 %v11882_v37  ;;  %v11948_v34 = vld [vmem:[#allocation13 + $0x17c] ss:$88 sps:$4 sm:$0xff]   ;;  %v11946_v36 = vld [vmem:[#allocation13 + $0x178] ss:$88 sps:$4 sm:$0xff]  }
 0x2b8   :  { %v11951_v37 = vld [vmem:[#allocation13 + $0x224] ss:$88 sps:$4 sm:$0xff]  }
 0x2ba   :  { %6449 = vmatpush1.bf16.msra.mxu0 %v11877_v38  ;;  %6572 = vmatpush1.bf16.msra.mxu1 %v11880_v39  ;;  %v11954_v38 = vld [vmem:[#allocation13 + $0x22c] ss:$88 sps:$4 sm:$0xff]   ;;  %v11949_v39 = vld [vmem:[#allocation13 + $0x220] ss:$88 sps:$4 sm:$0xff]  }
 0x2bb   :  { %6459 = vmatprep.subr.bf16.mxu0 %v11885_v41  ;;  %6582 = vmatprep.subr.bf16.mxu1 %v11888_v42  ;;  %v11957_v41 = vld [vmem:[#allocation13 + $0x2d4] ss:$88 sps:$4 sm:$0xff]  }
 0x2bc   :  { %v11960_v42 = vld [vmem:[#allocation13 + $0x2dc] ss:$88 sps:$4 sm:$0xff]  }
 0x2bd   :  { %6451 = vmatmul.mubr.bf16.vlgmr.msra.gmra.mrb[4].mxu0 %v13528_v45  ;;  %6574 = vmatmul.mubr.bf16.vlgmr.msra.gmra.mrb[12].mxu1 %v13528_v45 }
 0x2be   :  { %6460 = vmatpush1.bf16.msra.mxu0 %v11883_v43  ;;  %6583 = vmatpush1.bf16.msra.mxu1 %v11886_v44  ;;  %v11955_v43 = vld [vmem:[#allocation13 + $0x2d0] ss:$88 sps:$4 sm:$0xff]  }
 0x2bf   :  { %6461 = vmatprep.subr.bf16.mxu0 %v11891_v3  ;;  %6584 = vmatprep.subr.bf16.mxu1 %v11894_v46  ;;  %v11958_v44 = vld [vmem:[#allocation13 + $0x2d8] ss:$88 sps:$4 sm:$0xff]   ;;  %v11963_v3 = vld [vmem:[#allocation13 + $0x384] ss:$88 sps:$4 sm:$0xff]  }
 0x2c0   :  { %6491 = vmatprep.mubr.bf16.mxu0 %v13266_v0  ;;  %6614 = vmatprep.mubr.bf16.mxu1 %v13266_v0  ;;  %v11966_v46 = vld [vmem:[#allocation13 + $0x38c] ss:$88 sps:$4 sm:$0xff]  }
 0x2c2   :  { %6462 = vmatpush1.bf16.msra.mxu0 %v11889_v47  ;;  %6585 = vmatpush1.bf16.msra.mxu1 %v11892_v48  ;;  %v11961_v47 = vld [vmem:[#allocation13 + $0x380] ss:$88 sps:$4 sm:$0xff]  }
 0x2c3   :  { %6463 = vmatprep.subr.bf16.mxu0 %v11897_v49  ;;  %6586 = vmatprep.subr.bf16.mxu1 %v11900_v50  ;;  %v11964_v48 = vld [vmem:[#allocation13 + $0x388] ss:$88 sps:$4 sm:$0xff]   ;;  %v11969_v49 = vld [vmem:[#allocation13 + $0x434] ss:$88 sps:$4 sm:$0xff]  }
 0x2c4   :  { %v11972_v50 = vld [vmem:[#allocation13 + $0x43c] ss:$88 sps:$4 sm:$0xff]  }
 0x2c6   :  { %6464 = vmatpush1.bf16.msra.mxu0 %v11895_v51  ;;  %6587 = vmatpush1.bf16.msra.mxu1 %v11898_v52  ;;  %v11967_v51 = vld [vmem:[#allocation13 + $0x430] ss:$88 sps:$4 sm:$0xff]  }
 0x2c7   :  { %6465 = vmatprep.subr.bf16.mxu0 %v11903_v54  ;;  %6588 = vmatprep.subr.bf16.mxu1 %v11906_v55  ;;  %v11970_v52 = vld [vmem:[#allocation13 + $0x438] ss:$88 sps:$4 sm:$0xff]   ;;  %v11975_v54 = vld [vmem:[#allocation13 + $0x4e4] ss:$88 sps:$4 sm:$0xff]  }
 0x2c8   :  { %v11978_v55 = vld [vmem:[#allocation13 + $0x4ec] ss:$88 sps:$4 sm:$0xff]  }
 0x2ca   :  { %6466 = vmatpush1.bf16.msra.mxu0 %v11901_v56  ;;  %6589 = vmatpush1.bf16.msra.mxu1 %v11904_v57  ;;  %v11973_v56 = vld [vmem:[#allocation13 + $0x4e0] ss:$88 sps:$4 sm:$0xff]  }
 0x2cb   :  { %6467 = vmatprep.subr.bf16.mxu0 %v11909_v58  ;;  %6590 = vmatprep.subr.bf16.mxu1 %v11912_v59  ;;  %v11976_v57 = vld [vmem:[#allocation13 + $0x4e8] ss:$88 sps:$4 sm:$0xff]   ;;  %v11981_v58 = vld [vmem:[#allocation13 + $0x594] ss:$88 sps:$4 sm:$0xff]  }
 0x2cc   :  { %v11984_v59 = vld [vmem:[#allocation13 + $0x59c] ss:$88 sps:$4 sm:$0xff]  }
 0x2ce   :  { %6468 = vmatpush1.bf16.msra.mxu0 %v11907_v62  ;;  %6591 = vmatpush1.bf16.msra.mxu1 %v11910_v63  ;;  %v11979_v62 = vld [vmem:[#allocation13 + $0x590] ss:$88 sps:$4 sm:$0xff]  }
 0x2cf   :  { %6469 = vmatprep.subr.bf16.mxu0 %v11915_v2  ;;  %6592 = vmatprep.subr.bf16.mxu1 %v11918_v4  ;;  %v11982_v63 = vld [vmem:[#allocation13 + $0x598] ss:$88 sps:$4 sm:$0xff]   ;;  %v11987_v2 = vld [vmem:[#allocation13 + $0x644] ss:$88 sps:$4 sm:$0xff]  }
 0x2d0   :  { %v11990_v4 = vld [vmem:[#allocation13 + $0x64c] ss:$88 sps:$4 sm:$0xff]  }
 0x2d2   :  { %6470 = vmatpush1.bf16.msra.mxu0 %v11913_v5  ;;  %6593 = vmatpush1.bf16.msra.mxu1 %v11916_v6  ;;  %v11985_v5 = vld [vmem:[#allocation13 + $0x640] ss:$88 sps:$4 sm:$0xff]  }
 0x2d3   :  { %6471 = vmatprep.subr.bf16.mxu0 %v11921_v8  ;;  %6594 = vmatprep.subr.bf16.mxu1 %v11924_v9  ;;  %v11988_v6 = vld [vmem:[#allocation13 + $0x648] ss:$88 sps:$4 sm:$0xff]   ;;  %v11996_v8 = vld [vmem:[#allocation13 + $0x6fc] ss:$88 sps:$4 sm:$0xff]  }
 0x2d4   :  { %v11991_v9 = vld [vmem:[#allocation13 + $0x6f0] ss:$88 sps:$4 sm:$0xff]  }
 0x2d6   :  { %6472 = vmatpush1.bf16.msra.mxu0 %v11919_v10  ;;  %6595 = vmatpush1.bf16.msra.mxu1 %v11922_v11  ;;  %v11994_v10 = vld [vmem:[#allocation13 + $0x6f8] ss:$88 sps:$4 sm:$0xff]   ;;  %v11999_v11 = vld [vmem:[#allocation13 + $0x7a4] ss:$88 sps:$4 sm:$0xff]  }
 0x2d7   :  { %6473 = vmatprep.subr.bf16.mxu0 %v11927_v13  ;;  %6596 = vmatprep.subr.bf16.mxu1 %v11930_v14  ;;  %v11997_v13 = vld [vmem:[#allocation13 + $0x7a0] ss:$88 sps:$4 sm:$0xff]  }
 0x2d8   :  { %v12000_v14 = vld [vmem:[#allocation13 + $0x7a8] ss:$88 sps:$4 sm:$0xff]  }
 0x2da   :  { %6474 = vmatpush1.bf16.msra.mxu0 %v11925_v15  ;;  %6597 = vmatpush1.bf16.msra.mxu1 %v11928_v17  ;;  %v12005_v15 = vld [vmem:[#allocation13 + $0x854] ss:$88 sps:$4 sm:$0xff]  }
 0x2db   :  { %6623 = vmatprep.subr.bf16.mxu0 %v11933_v60  ;;  %6746 = vmatprep.subr.bf16.mxu1 %v11936_v21  ;;  %v12008_v17 = vld [vmem:[#allocation13 + $0x85c] ss:$88 sps:$4 sm:$0xff]   ;;  %v12006_v60 = vld [vmem:[#allocation13 + $0x858] ss:$88 sps:$4 sm:$0xff]  }
 0x2dc   :  { %v12011_v21 = vld [vmem:[#allocation13 + $0x904] ss:$88 sps:$4 sm:$0xff]  }
 0x2dd   :  { %6492 = vmatmul.mubr.bf16.vlgmr.msra.gmra.mrb[4].mxu0 %v13540_v28  ;;  %6615 = vmatmul.mubr.bf16.vlgmr.msra.gmra.mrb[12].mxu1 %v13540_v28 }
 0x2de   :  { %6624 = vmatpush1.bf16.msra.mxu0 %v11931_v27  ;;  %6655 = vmatprep.mubr.bf16.mxu0 %v13508_v16  ;;  %v12014_v27 = vld [vmem:[#allocation13 + $0x90c] ss:$88 sps:$4 sm:$0xff]  }
 0x2df   :  { %6747 = vmatpush1.bf16.msra.mxu1 %v11934_v53  ;;  %6778 = vmatprep.mubr.bf16.mxu1 %v13508_v16  ;;  %v12009_v53 = vld [vmem:[#allocation13 + $0x900] ss:$88 sps:$4 sm:$0xff]  }
 0x2e0   :  { %6625 = vmatprep.subr.bf16.mxu0 %v11939_v29  ;;  %6748 = vmatprep.subr.bf16.mxu1 %v11942_v30  ;;  %v12012_v29 = vld [vmem:[#allocation13 + $0x908] ss:$88 sps:$4 sm:$0xff]   ;;  %v12017_v30 = vld [vmem:[#allocation13 + $0x9b4] ss:$88 sps:$4 sm:$0xff]  }
 0x2e2   :  { %6626 = vmatpush1.bf16.msra.mxu0 %v11937_v31  ;;  %v12020_v31 = vld [vmem:[#allocation13 + $0x9bc] ss:$88 sps:$4 sm:$0xff]  }
 0x2e3   :  { %6749 = vmatpush1.bf16.msra.mxu1 %v11940_v32  ;;  %6627 = vmatprep.subr.bf16.mxu0 %v11945_v33  ;;  %v12015_v32 = vld [vmem:[#allocation13 + $0x9b0] ss:$88 sps:$4 sm:$0xff]  }
 0x2e4   :  { %6750 = vmatprep.subr.bf16.mxu1 %v11948_v34  ;;  %v12018_v33 = vld [vmem:[#allocation13 + $0x9b8] ss:$88 sps:$4 sm:$0xff]   ;;  %v12023_v34 = vld [vmem:[#allocation13 + $0xa64] ss:$88 sps:$4 sm:$0xff]  }
 0x2e6   :  { %6628 = vmatpush1.bf16.msra.mxu0 %v11943_v35  ;;  %v12026_v35 = vld [vmem:[#allocation13 + $0xa6c] ss:$88 sps:$4 sm:$0xff]  }
 0x2e7   :  { %6751 = vmatpush1.bf16.msra.mxu1 %v11946_v36  ;;  %6629 = vmatprep.subr.bf16.mxu0 %v11951_v37  ;;  %v12021_v36 = vld [vmem:[#allocation13 + $0xa60] ss:$88 sps:$4 sm:$0xff]  }
 0x2e8   :  { %6752 = vmatprep.subr.bf16.mxu1 %v11954_v38  ;;  %v12024_v37 = vld [vmem:[#allocation13 + $0xa68] ss:$88 sps:$4 sm:$0xff]   ;;  %v12029_v38 = vld [vmem:[#allocation13 + $0xb14] ss:$88 sps:$4 sm:$0xff]  }
 0x2ea   :  { %6630 = vmatpush1.bf16.msra.mxu0 %v11949_v39  ;;  %v12032_v39 = vld [vmem:[#allocation13 + $0xb1c] ss:$88 sps:$4 sm:$0xff]  }
 0x2eb   :  { %6753 = vmatpush1.bf16.msra.mxu1 %v11952_v40  ;;  %6631 = vmatprep.subr.bf16.mxu0 %v11957_v41  ;;  %v12027_v40 = vld [vmem:[#allocation13 + $0xb10] ss:$88 sps:$4 sm:$0xff]  }
 0x2ec   :  { %6754 = vmatprep.subr.bf16.mxu1 %v11960_v42  ;;  %v12030_v41 = vld [vmem:[#allocation13 + $0xb18] ss:$88 sps:$4 sm:$0xff]   ;;  %v12035_v42 = vld [vmem:[#allocation13 + $0xbc4] ss:$88 sps:$4 sm:$0xff]  }
 0x2ee   :  { %6632 = vmatpush1.bf16.msra.mxu0 %v11955_v43  ;;  %v12038_v43 = vld [vmem:[#allocation13 + $0xbcc] ss:$88 sps:$4 sm:$0xff]  }
 0x2ef   :  { %6755 = vmatpush1.bf16.msra.mxu1 %v11958_v44  ;;  %6633 = vmatprep.subr.bf16.mxu0 %v11963_v3  ;;  %v12033_v44 = vld [vmem:[#allocation13 + $0xbc0] ss:$88 sps:$4 sm:$0xff]  }
 0x2f0   :  { %6756 = vmatprep.subr.bf16.mxu1 %v11966_v46  ;;  %v12036_v3 = vld [vmem:[#allocation13 + $0xbc8] ss:$88 sps:$4 sm:$0xff]   ;;  %v12041_v46 = vld [vmem:[#allocation13 + $0xc74] ss:$88 sps:$4 sm:$0xff]  }
 0x2f2   :  { %6634 = vmatpush1.bf16.msra.mxu0 %v11961_v47  ;;  %v12044_v47 = vld [vmem:[#allocation13 + $0xc7c] ss:$88 sps:$4 sm:$0xff]  }
 0x2f3   :  { %6757 = vmatpush1.bf16.msra.mxu1 %v11964_v48  ;;  %6635 = vmatprep.subr.bf16.mxu0 %v11969_v49  ;;  %v12039_v48 = vld [vmem:[#allocation13 + $0xc70] ss:$88 sps:$4 sm:$0xff]  }
 0x2f4   :  { %6758 = vmatprep.subr.bf16.mxu1 %v11972_v50  ;;  %v12042_v49 = vld [vmem:[#allocation13 + $0xc78] ss:$88 sps:$4 sm:$0xff]   ;;  %v12047_v50 = vld [vmem:[#allocation13 + $0xd24] ss:$88 sps:$4 sm:$0xff]  }
 0x2f6   :  { %6636 = vmatpush1.bf16.msra.mxu0 %v11967_v51  ;;  %v12050_v51 = vld [vmem:[#allocation13 + $0xd2c] ss:$88 sps:$4 sm:$0xff]  }
 0x2f7   :  { %6759 = vmatpush1.bf16.msra.mxu1 %v11970_v52  ;;  %6637 = vmatprep.subr.bf16.mxu0 %v11975_v54  ;;  %v12045_v52 = vld [vmem:[#allocation13 + $0xd20] ss:$88 sps:$4 sm:$0xff]  }
 0x2f8   :  { %6760 = vmatprep.subr.bf16.mxu1 %v11978_v55  ;;  %v12048_v54 = vld [vmem:[#allocation13 + $0xd28] ss:$88 sps:$4 sm:$0xff]   ;;  %v12053_v55 = vld [vmem:[#allocation13 + $0xdd4] ss:$88 sps:$4 sm:$0xff]  }
 0x2fa   :  { %6638 = vmatpush1.bf16.msra.mxu0 %v11973_v56  ;;  %v12056_v56 = vld [vmem:[#allocation13 + $0xddc] ss:$88 sps:$4 sm:$0xff]  }
 0x2fb   :  { %6761 = vmatpush1.bf16.msra.mxu1 %v11976_v57  ;;  %6639 = vmatprep.subr.bf16.mxu0 %v11981_v58  ;;  %v12051_v57 = vld [vmem:[#allocation13 + $0xdd0] ss:$88 sps:$4 sm:$0xff]  }
 0x2fc   :  { %6762 = vmatprep.subr.bf16.mxu1 %v11984_v59  ;;  %v12054_v58 = vld [vmem:[#allocation13 + $0xdd8] ss:$88 sps:$4 sm:$0xff]   ;;  %v12059_v59 = vld [vmem:[#allocation13 + $0xe84] ss:$88 sps:$4 sm:$0xff]  }
 0x2fe   :  { %6640 = vmatpush1.bf16.msra.mxu0 %v11979_v62  ;;  %v12062_v62 = vld [vmem:[#allocation13 + $0xe8c] ss:$88 sps:$4 sm:$0xff]  }
 0x2ff   :  { %6763 = vmatpush1.bf16.msra.mxu1 %v11982_v63  ;;  %6641 = vmatprep.subr.bf16.mxu0 %v11987_v2  ;;  %v12057_v63 = vld [vmem:[#allocation13 + $0xe80] ss:$88 sps:$4 sm:$0xff]  }
 0x300   :  { %6764 = vmatprep.subr.bf16.mxu1 %v11990_v4  ;;  %v12060_v2 = vld [vmem:[#allocation13 + $0xe88] ss:$88 sps:$4 sm:$0xff]   ;;  %v12065_v4 = vld [vmem:[#allocation13 + $0xf34] ss:$88 sps:$4 sm:$0xff]  }
 0x302   :  { %6642 = vmatpush1.bf16.msra.mxu0 %v11985_v5  ;;  %v12068_v5 = vld [vmem:[#allocation13 + $0xf3c] ss:$88 sps:$4 sm:$0xff]  }
 0x303   :  { %6765 = vmatpush1.bf16.msra.mxu1 %v11988_v6  ;;  %6643 = vmatprep.subr.bf16.mxu0 %v11993_v7  ;;  %v12063_v6 = vld [vmem:[#allocation13 + $0xf30] ss:$88 sps:$4 sm:$0xff]  }
 0x304   :  { %6766 = vmatprep.subr.bf16.mxu1 %v11996_v8  ;;  %v12066_v7 = vld [vmem:[#allocation13 + $0xf38] ss:$88 sps:$4 sm:$0xff]   ;;  %v12071_v8 = vld [vmem:[#allocation13 + $0xfe4] ss:$88 sps:$4 sm:$0xff]  }
 0x306   :  { %6644 = vmatpush1.bf16.msra.mxu0 %v11991_v9  ;;  %v12074_v9 = vld [vmem:[#allocation13 + $0xfec] ss:$88 sps:$4 sm:$0xff]  }
 0x307   :  { %6767 = vmatpush1.bf16.msra.mxu1 %v11994_v10  ;;  %6645 = vmatprep.subr.bf16.mxu0 %v11999_v11  ;;  %v12069_v10 = vld [vmem:[#allocation13 + $0xfe0] ss:$88 sps:$4 sm:$0xff]  }
 0x308   :  { %6768 = vmatprep.subr.bf16.mxu1 %v12002_v12  ;;  %v12072_v11 = vld [vmem:[#allocation13 + $0xfe8] ss:$88 sps:$4 sm:$0xff]   ;;  %v12077_v12 = vld [vmem:[#allocation13 + $0x1094] ss:$88 sps:$4 sm:$0xff]  }
 0x30a   :  { %6646 = vmatpush1.bf16.msra.mxu0 %v11997_v13  ;;  %v12080_v13 = vld [vmem:[#allocation13 + $0x109c] ss:$88 sps:$4 sm:$0xff]  }
 0x30b   :  { %6769 = vmatpush1.bf16.msra.mxu1 %v12000_v14  ;;  %6647 = vmatprep.subr.bf16.mxu0 %v12005_v15  ;;  %v12075_v14 = vld [vmem:[#allocation13 + $0x1090] ss:$88 sps:$4 sm:$0xff]  }
 0x30c   :  { %6770 = vmatprep.subr.bf16.mxu1 %v12008_v17  ;;  %v12078_v15 = vld [vmem:[#allocation13 + $0x1098] ss:$88 sps:$4 sm:$0xff]   ;;  %v12083_v17 = vld [vmem:[#allocation13 + $0x1144] ss:$88 sps:$4 sm:$0xff]  }
 0x30e   :  { %6648 = vmatpush1.bf16.msra.mxu0 %v12003_v18  ;;  %v12086_v18 = vld [vmem:[#allocation13 + $0x114c] ss:$88 sps:$4 sm:$0xff]  }
 0x30f   :  { %6771 = vmatpush1.bf16.msra.mxu1 %v12006_v60  ;;  %6649 = vmatprep.subr.bf16.mxu0 %v12011_v21  ;;  %v12081_v60 = vld [vmem:[#allocation13 + $0x1140] ss:$88 sps:$4 sm:$0xff]  }
 0x310   :  { %6772 = vmatprep.subr.bf16.mxu1 %v12014_v27  ;;  %v12084_v21 = vld [vmem:[#allocation13 + $0x1148] ss:$88 sps:$4 sm:$0xff]   ;;  %v12089_v27 = vld [vmem:[#allocation13 + $0x11f4] ss:$88 sps:$4 sm:$0xff]  }
 0x312   :  { %6650 = vmatpush1.bf16.msra.mxu0 %v12009_v53  ;;  %v12092_v53 = vld [vmem:[#allocation13 + $0x11fc] ss:$88 sps:$4 sm:$0xff]  }
 0x313   :  { %6773 = vmatpush1.bf16.msra.mxu1 %v12012_v29  ;;  %6651 = vmatprep.subr.bf16.mxu0 %v12017_v30  ;;  %v12087_v29 = vld [vmem:[#allocation13 + $0x11f0] ss:$88 sps:$4 sm:$0xff]  }
 0x314   :  { %6774 = vmatprep.subr.bf16.mxu1 %v12020_v31  ;;  %v12090_v30 = vld [vmem:[#allocation13 + $0x11f8] ss:$88 sps:$4 sm:$0xff]   ;;  %v12095_v31 = vld [vmem:[#allocation13 + $0x12a4] ss:$88 sps:$4 sm:$0xff]  }
 0x316   :  { %6652 = vmatpush1.bf16.msra.mxu0 %v12015_v32  ;;  %v12098_v32 = vld [vmem:[#allocation13 + $0x12ac] ss:$88 sps:$4 sm:$0xff]  }
 0x317   :  { %6775 = vmatpush1.bf16.msra.mxu1 %v12018_v33  ;;  %6653 = vmatprep.subr.bf16.mxu0 %v12023_v34  ;;  %v12093_v33 = vld [vmem:[#allocation13 + $0x12a0] ss:$88 sps:$4 sm:$0xff]  }
 0x318   :  { %6776 = vmatprep.subr.bf16.mxu1 %v12026_v35  ;;  %v12096_v34 = vld [vmem:[#allocation13 + $0x12a8] ss:$88 sps:$4 sm:$0xff]   ;;  %v12101_v35 = vld [vmem:[#allocation13 + $0x1354] ss:$88 sps:$4 sm:$0xff]  }
 0x31a   :  { %6654 = vmatpush1.bf16.msra.mxu0 %v12021_v36  ;;  %v12104_v36 = vld [vmem:[#allocation13 + $0x135c] ss:$88 sps:$4 sm:$0xff]  }
 0x31b   :  { %6777 = vmatpush1.bf16.msra.mxu1 %v12024_v37  ;;  %6664 = vmatprep.subr.bf16.mxu0 %v12029_v38  ;;  %v12099_v37 = vld [vmem:[#allocation13 + $0x1350] ss:$88 sps:$4 sm:$0xff]  }
 0x31c   :  { %6787 = vmatprep.subr.bf16.mxu1 %v12032_v39  ;;  %v12102_v38 = vld [vmem:[#allocation13 + $0x1358] ss:$88 sps:$4 sm:$0xff]   ;;  %v12107_v39 = vld [vmem:[#allocation13 + $0x1404] ss:$88 sps:$4 sm:$0xff]  }
 0x31d   :  { %6656 = vmatmul.mubr.bf16.vlgmr.msra.gmra.mrb[8].mxu0 %v13510_v19 }
 0x31e   :  { %6779 = vmatmul.mubr.bf16.vlgmr.msra.gmra.mrb[16].mxu1 %v13510_v19  ;;  %6665 = vmatpush1.bf16.msra.mxu0 %v12027_v40  ;;  %v12110_v40 = vld [vmem:[#allocation13 + $0x140c] ss:$88 sps:$4 sm:$0xff]  }
 0x31f   :  { %6696 = vmatprep.mubr.bf16.mxu0 %v13514_v24  ;;  %6788 = vmatpush1.bf16.msra.mxu1 %v12030_v41  ;;  %v12105_v41 = vld [vmem:[#allocation13 + $0x1400] ss:$88 sps:$4 sm:$0xff]  }
 0x320   :  { %6819 = vmatprep.mubr.bf16.mxu1 %v13514_v24  ;;  %6666 = vmatprep.subr.bf16.mxu0 %v12035_v42  ;;  %v12108_v42 = vld [vmem:[#allocation13 + $0x1408] ss:$88 sps:$4 sm:$0xff]  }
 0x321   :  { %6789 = vmatprep.subr.bf16.mxu1 %v12038_v43  ;;  %v12113_v43 = vld [vmem:[#allocation13 + $0x14b4] ss:$88 sps:$4 sm:$0xff]  }
 0x322   :  { %6667 = vmatpush1.bf16.msra.mxu0 %v12033_v44  ;;  %v12116_v44 = vld [vmem:[#allocation13 + $0x14bc] ss:$88 sps:$4 sm:$0xff]  }
 0x323   :  { %6790 = vmatpush1.bf16.msra.mxu1 %v12036_v3  ;;  %6668 = vmatprep.subr.bf16.mxu0 %v12041_v46  ;;  %v12111_v3 = vld [vmem:[#allocation13 + $0x14b0] ss:$88 sps:$4 sm:$0xff]  }
 0x324   :  { %6791 = vmatprep.subr.bf16.mxu1 %v12044_v47  ;;  %v12114_v46 = vld [vmem:[#allocation13 + $0x14b8] ss:$88 sps:$4 sm:$0xff]   ;;  %v12119_v47 = vld [vmem:[#allocation13 + $0x1564] ss:$88 sps:$4 sm:$0xff]  }
 0x326   :  { %6669 = vmatpush1.bf16.msra.mxu0 %v12039_v48  ;;  %v12122_v48 = vld [vmem:[#allocation13 + $0x156c] ss:$88 sps:$4 sm:$0xff]  }
 0x327   :  { %6792 = vmatpush1.bf16.msra.mxu1 %v12042_v49  ;;  %6670 = vmatprep.subr.bf16.mxu0 %v12047_v50  ;;  %v12117_v49 = vld [vmem:[#allocation13 + $0x1560] ss:$88 sps:$4 sm:$0xff]  }
 0x328   :  { %6793 = vmatprep.subr.bf16.mxu1 %v12050_v51  ;;  %v12120_v50 = vld [vmem:[#allocation13 + $0x1568] ss:$88 sps:$4 sm:$0xff]   ;;  %v12125_v51 = vld [vmem:[#allocation13 + $0x1614] ss:$88 sps:$4 sm:$0xff]  }
 0x32a   :  { %6671 = vmatpush1.bf16.msra.mxu0 %v12045_v52  ;;  %v12128_v52 = vld [vmem:[#allocation13 + $0x161c] ss:$88 sps:$4 sm:$0xff]  }
 0x32b   :  { %6794 = vmatpush1.bf16.msra.mxu1 %v12048_v54  ;;  %6672 = vmatprep.subr.bf16.mxu0 %v12053_v55  ;;  %v12123_v54 = vld [vmem:[#allocation13 + $0x1610] ss:$88 sps:$4 sm:$0xff]  }
 0x32c   :  { %6795 = vmatprep.subr.bf16.mxu1 %v12056_v56  ;;  %v12126_v55 = vld [vmem:[#allocation13 + $0x1618] ss:$88 sps:$4 sm:$0xff]   ;;  %v12131_v56 = vld [vmem:[#allocation13 + $0x16c4] ss:$88 sps:$4 sm:$0xff]  }
 0x32e   :  { %6673 = vmatpush1.bf16.msra.mxu0 %v12051_v57  ;;  %v12134_v57 = vld [vmem:[#allocation13 + $0x16cc] ss:$88 sps:$4 sm:$0xff]  }
 0x32f   :  { %6796 = vmatpush1.bf16.msra.mxu1 %v12054_v58  ;;  %6674 = vmatprep.subr.bf16.mxu0 %v12059_v59  ;;  %v12129_v58 = vld [vmem:[#allocation13 + $0x16c0] ss:$88 sps:$4 sm:$0xff]  }
 0x330   :  { %6797 = vmatprep.subr.bf16.mxu1 %v12062_v62  ;;  %v12132_v59 = vld [vmem:[#allocation13 + $0x16c8] ss:$88 sps:$4 sm:$0xff]   ;;  %v12137_v62 = vld [vmem:[#allocation13 + $0x1774] ss:$88 sps:$4 sm:$0xff]  }
 0x332   :  { %6675 = vmatpush1.bf16.msra.mxu0 %v12057_v63  ;;  %v12140_v63 = vld [vmem:[#allocation13 + $0x177c] ss:$88 sps:$4 sm:$0xff]  }
 0x333   :  { %6798 = vmatpush1.bf16.msra.mxu1 %v12060_v2  ;;  %6676 = vmatprep.subr.bf16.mxu0 %v12065_v4  ;;  %v12135_v2 = vld [vmem:[#allocation13 + $0x1770] ss:$88 sps:$4 sm:$0xff]  }
 0x334   :  { %6799 = vmatprep.subr.bf16.mxu1 %v12068_v5  ;;  %v12138_v4 = vld [vmem:[#allocation13 + $0x1778] ss:$88 sps:$4 sm:$0xff]   ;;  %v12143_v5 = vld [vmem:[#allocation13 + $0x1824] ss:$88 sps:$4 sm:$0xff]  }
 0x336   :  { %6677 = vmatpush1.bf16.msra.mxu0 %v12063_v6  ;;  %v12146_v6 = vld [vmem:[#allocation13 + $0x182c] ss:$88 sps:$4 sm:$0xff]  }
 0x337   :  { %6800 = vmatpush1.bf16.msra.mxu1 %v12066_v7  ;;  %6678 = vmatprep.subr.bf16.mxu0 %v12071_v8  ;;  %v12141_v7 = vld [vmem:[#allocation13 + $0x1820] ss:$88 sps:$4 sm:$0xff]  }
 0x338   :  { %6801 = vmatprep.subr.bf16.mxu1 %v12074_v9  ;;  %v12144_v8 = vld [vmem:[#allocation13 + $0x1828] ss:$88 sps:$4 sm:$0xff]   ;;  %v12149_v9 = vld [vmem:[#allocation13 + $0x18d4] ss:$88 sps:$4 sm:$0xff]  }
 0x33a   :  { %6679 = vmatpush1.bf16.msra.mxu0 %v12069_v10  ;;  %v12152_v10 = vld [vmem:[#allocation13 + $0x18dc] ss:$88 sps:$4 sm:$0xff]  }
 0x33b   :  { %6802 = vmatpush1.bf16.msra.mxu1 %v12072_v11  ;;  %6680 = vmatprep.subr.bf16.mxu0 %v12077_v12  ;;  %v12147_v11 = vld [vmem:[#allocation13 + $0x18d0] ss:$88 sps:$4 sm:$0xff]  }
 0x33c   :  { %6803 = vmatprep.subr.bf16.mxu1 %v12080_v13  ;;  %v12150_v12 = vld [vmem:[#allocation13 + $0x18d8] ss:$88 sps:$4 sm:$0xff]   ;;  %v12155_v13 = vld [vmem:[#allocation13 + $0x1984] ss:$88 sps:$4 sm:$0xff]  }
 0x33e   :  { %6681 = vmatpush1.bf16.msra.mxu0 %v12075_v14  ;;  %v12158_v14 = vld [vmem:[#allocation13 + $0x198c] ss:$88 sps:$4 sm:$0xff]  }
 0x33f   :  { %6804 = vmatpush1.bf16.msra.mxu1 %v12078_v15  ;;  %6682 = vmatprep.subr.bf16.mxu0 %v12083_v17  ;;  %v12153_v15 = vld [vmem:[#allocation13 + $0x1980] ss:$88 sps:$4 sm:$0xff]  }
 0x340   :  { %6805 = vmatprep.subr.bf16.mxu1 %v12086_v18  ;;  %v12156_v17 = vld [vmem:[#allocation13 + $0x1988] ss:$88 sps:$4 sm:$0xff]   ;;  %v12161_v18 = vld [vmem:[#allocation13 + $0x1a34] ss:$88 sps:$4 sm:$0xff]  }
 0x342   :  { %6683 = vmatpush1.bf16.msra.mxu0 %v12081_v60  ;;  %v12164_v60 = vld [vmem:[#allocation13 + $0x1a3c] ss:$88 sps:$4 sm:$0xff]  }
 0x343   :  { %6806 = vmatpush1.bf16.msra.mxu1 %v12084_v21  ;;  %6684 = vmatprep.subr.bf16.mxu0 %v12089_v27  ;;  %v12159_v21 = vld [vmem:[#allocation13 + $0x1a30] ss:$88 sps:$4 sm:$0xff]  }
 0x344   :  { %6807 = vmatprep.subr.bf16.mxu1 %v12092_v53  ;;  %v12162_v27 = vld [vmem:[#allocation13 + $0x1a38] ss:$88 sps:$4 sm:$0xff]   ;;  %v12167_v53 = vld [vmem:[#allocation13 + $0x1ae4] ss:$88 sps:$4 sm:$0xff]  }
 0x346   :  { %6685 = vmatpush1.bf16.msra.mxu0 %v12087_v29  ;;  %v12170_v29 = vld [vmem:[#allocation13 + $0x1aec] ss:$88 sps:$4 sm:$0xff]  }
 0x347   :  { %6808 = vmatpush1.bf16.msra.mxu1 %v12090_v30  ;;  %6686 = vmatprep.subr.bf16.mxu0 %v12095_v31  ;;  %v12165_v30 = vld [vmem:[#allocation13 + $0x1ae0] ss:$88 sps:$4 sm:$0xff]  }
 0x348   :  { %6809 = vmatprep.subr.bf16.mxu1 %v12098_v32  ;;  %v12168_v31 = vld [vmem:[#allocation13 + $0x1ae8] ss:$88 sps:$4 sm:$0xff]   ;;  %v12173_v32 = vld [vmem:[#allocation13 + $0x24] ss:$88 sps:$4 sm:$0xff]  }
 0x34a   :  { %6687 = vmatpush1.bf16.msra.mxu0 %v12093_v33  ;;  %v12176_v33 = vld [vmem:[#allocation13 + $0x2c] ss:$88 sps:$4 sm:$0xff]  }
 0x34b   :  { %6810 = vmatpush1.bf16.msra.mxu1 %v12096_v34  ;;  %6688 = vmatprep.subr.bf16.mxu0 %v12101_v35  ;;  %v12171_v34 = vld [vmem:[#allocation13 + $0x20] ss:$88 sps:$4 sm:$0xff]  }
 0x34c   :  { %6811 = vmatprep.subr.bf16.mxu1 %v12104_v36  ;;  %v12174_v35 = vld [vmem:[#allocation13 + $0x28] ss:$88 sps:$4 sm:$0xff]   ;;  %v12179_v36 = vld [vmem:[#allocation13 + $0xd4] ss:$88 sps:$4 sm:$0xff]  }
 0x34e   :  { %6689 = vmatpush1.bf16.msra.mxu0 %v12099_v37  ;;  %v12182_v37 = vld [vmem:[#allocation13 + $0xdc] ss:$88 sps:$4 sm:$0xff]  }
 0x34f   :  { %6812 = vmatpush1.bf16.msra.mxu1 %v12102_v38  ;;  %6690 = vmatprep.subr.bf16.mxu0 %v12107_v39  ;;  %v12177_v38 = vld [vmem:[#allocation13 + $0xd0] ss:$88 sps:$4 sm:$0xff]  }
 0x350   :  { %6813 = vmatprep.subr.bf16.mxu1 %v12110_v40  ;;  %v12180_v39 = vld [vmem:[#allocation13 + $0xd8] ss:$88 sps:$4 sm:$0xff]   ;;  %v12185_v40 = vld [vmem:[#allocation13 + $0x184] ss:$88 sps:$4 sm:$0xff]  }
 0x352   :  { %6691 = vmatpush1.bf16.msra.mxu0 %v12105_v41  ;;  %v12188_v41 = vld [vmem:[#allocation13 + $0x18c] ss:$88 sps:$4 sm:$0xff]  }
 0x353   :  { %6814 = vmatpush1.bf16.msra.mxu1 %v12108_v42  ;;  %6692 = vmatprep.subr.bf16.mxu0 %v12113_v43  ;;  %v12183_v42 = vld [vmem:[#allocation13 + $0x180] ss:$88 sps:$4 sm:$0xff]  }
 0x354   :  { %6815 = vmatprep.subr.bf16.mxu1 %v12116_v44  ;;  %v12186_v43 = vld [vmem:[#allocation13 + $0x188] ss:$88 sps:$4 sm:$0xff]   ;;  %v12191_v44 = vld [vmem:[#allocation13 + $0x234] ss:$88 sps:$4 sm:$0xff]  }
 0x356   :  { %6693 = vmatpush1.bf16.msra.mxu0 %v12111_v3  ;;  %v12194_v3 = vld [vmem:[#allocation13 + $0x23c] ss:$88 sps:$4 sm:$0xff]  }
 0x357   :  { %6816 = vmatpush1.bf16.msra.mxu1 %v12114_v46  ;;  %6694 = vmatprep.subr.bf16.mxu0 %v12119_v47  ;;  %v12189_v46 = vld [vmem:[#allocation13 + $0x230] ss:$88 sps:$4 sm:$0xff]  }
 0x358   :  { %6817 = vmatprep.subr.bf16.mxu1 %v12122_v48  ;;  %v12192_v47 = vld [vmem:[#allocation13 + $0x238] ss:$88 sps:$4 sm:$0xff]   ;;  %v12197_v48 = vld [vmem:[#allocation13 + $0x2e4] ss:$88 sps:$4 sm:$0xff]  }
 0x35a   :  { %6695 = vmatpush1.bf16.msra.mxu0 %v12117_v49  ;;  %v12200_v49 = vld [vmem:[#allocation13 + $0x2ec] ss:$88 sps:$4 sm:$0xff]  }
 0x35b   :  { %6818 = vmatpush1.bf16.msra.mxu1 %v12120_v50  ;;  %6705 = vmatprep.subr.bf16.mxu0 %v12125_v51  ;;  %v12195_v50 = vld [vmem:[#allocation13 + $0x2e0] ss:$88 sps:$4 sm:$0xff]  }
 0x35c   :  { %6828 = vmatprep.subr.bf16.mxu1 %v12128_v52  ;;  %v12198_v51 = vld [vmem:[#allocation13 + $0x2e8] ss:$88 sps:$4 sm:$0xff]   ;;  %v12203_v52 = vld [vmem:[#allocation13 + $0x394] ss:$88 sps:$4 sm:$0xff]  }
 0x35d   :  { %6697 = vmatmul.mubr.bf16.vlgmr.msra.gmra.mrb[8].mxu0 %v13528_v45 }
 0x35e   :  { %6820 = vmatmul.mubr.bf16.vlgmr.msra.gmra.mrb[16].mxu1 %v13528_v45  ;;  %6706 = vmatpush1.bf16.msra.mxu0 %v12123_v54  ;;  %v12206_v54 = vld [vmem:[#allocation13 + $0x39c] ss:$88 sps:$4 sm:$0xff]  }
 0x35f   :  { %6829 = vmatpush1.bf16.msra.mxu1 %v12126_v55  ;;  %6707 = vmatprep.subr.bf16.mxu0 %v12131_v56  ;;  %v12201_v55 = vld [vmem:[#allocation13 + $0x390] ss:$88 sps:$4 sm:$0xff]  }
 0x360   :  { %6830 = vmatprep.subr.bf16.mxu1 %v12134_v57  ;;  %6737 = vmatprep.mubr.bf16.mxu0 %v13266_v0  ;;  %v12204_v56 = vld [vmem:[#allocation13 + $0x398] ss:$88 sps:$4 sm:$0xff]   ;;  %v12209_v57 = vld [vmem:[#allocation13 + $0x444] ss:$88 sps:$4 sm:$0xff]  }
 0x361   :  { %6860 = vmatprep.mubr.bf16.mxu1 %v13266_v0 }
 0x362   :  { %6708 = vmatpush1.bf16.msra.mxu0 %v12129_v58  ;;  %v12212_v58 = vld [vmem:[#allocation13 + $0x44c] ss:$88 sps:$4 sm:$0xff]  }
 0x363   :  { %6831 = vmatpush1.bf16.msra.mxu1 %v12132_v59  ;;  %6709 = vmatprep.subr.bf16.mxu0 %v12137_v62  ;;  %v12207_v59 = vld [vmem:[#allocation13 + $0x440] ss:$88 sps:$4 sm:$0xff]  }
 0x364   :  { %6832 = vmatprep.subr.bf16.mxu1 %v12140_v63  ;;  %v12210_v62 = vld [vmem:[#allocation13 + $0x448] ss:$88 sps:$4 sm:$0xff]   ;;  %v12215_v63 = vld [vmem:[#allocation13 + $0x4f4] ss:$88 sps:$4 sm:$0xff]  }
 0x366   :  { %6710 = vmatpush1.bf16.msra.mxu0 %v12135_v2  ;;  %v12218_v2 = vld [vmem:[#allocation13 + $0x4fc] ss:$88 sps:$4 sm:$0xff]  }
 0x367   :  { %6833 = vmatpush1.bf16.msra.mxu1 %v12138_v4  ;;  %6711 = vmatprep.subr.bf16.mxu0 %v12143_v5  ;;  %v12213_v4 = vld [vmem:[#allocation13 + $0x4f0] ss:$88 sps:$4 sm:$0xff]  }
 0x368   :  { %6834 = vmatprep.subr.bf16.mxu1 %v12146_v6  ;;  %v12216_v5 = vld [vmem:[#allocation13 + $0x4f8] ss:$88 sps:$4 sm:$0xff]   ;;  %v12221_v6 = vld [vmem:[#allocation13 + $0x5a4] ss:$88 sps:$4 sm:$0xff]  }
 0x36a   :  { %6712 = vmatpush1.bf16.msra.mxu0 %v12141_v7  ;;  %v12224_v7 = vld [vmem:[#allocation13 + $0x5ac] ss:$88 sps:$4 sm:$0xff]  }
 0x36b   :  { %6835 = vmatpush1.bf16.msra.mxu1 %v12144_v8  ;;  %6713 = vmatprep.subr.bf16.mxu0 %v12149_v9  ;;  %v12219_v8 = vld [vmem:[#allocation13 + $0x5a0] ss:$88 sps:$4 sm:$0xff]  }
 0x36c   :  { %6836 = vmatprep.subr.bf16.mxu1 %v12152_v10  ;;  %v12222_v9 = vld [vmem:[#allocation13 + $0x5a8] ss:$88 sps:$4 sm:$0xff]   ;;  %v12227_v10 = vld [vmem:[#allocation13 + $0x654] ss:$88 sps:$4 sm:$0xff]  }
 0x36e   :  { %6714 = vmatpush1.bf16.msra.mxu0 %v12147_v11  ;;  %v12230_v11 = vld [vmem:[#allocation13 + $0x65c] ss:$88 sps:$4 sm:$0xff]  }
 0x36f   :  { %6837 = vmatpush1.bf16.msra.mxu1 %v12150_v12  ;;  %6715 = vmatprep.subr.bf16.mxu0 %v12155_v13  ;;  %v12225_v12 = vld [vmem:[#allocation13 + $0x650] ss:$88 sps:$4 sm:$0xff]  }
 0x370   :  { %6838 = vmatprep.subr.bf16.mxu1 %v12158_v14  ;;  %v12228_v13 = vld [vmem:[#allocation13 + $0x658] ss:$88 sps:$4 sm:$0xff]   ;;  %v12233_v14 = vld [vmem:[#allocation13 + $0x704] ss:$88 sps:$4 sm:$0xff]  }
 0x372   :  { %6716 = vmatpush1.bf16.msra.mxu0 %v12153_v15  ;;  %v12236_v15 = vld [vmem:[#allocation13 + $0x70c] ss:$88 sps:$4 sm:$0xff]  }
 0x373   :  { %6839 = vmatpush1.bf16.msra.mxu1 %v12156_v17  ;;  %6717 = vmatprep.subr.bf16.mxu0 %v12161_v18  ;;  %v12231_v17 = vld [vmem:[#allocation13 + $0x700] ss:$88 sps:$4 sm:$0xff]  }
 0x374   :  { %6840 = vmatprep.subr.bf16.mxu1 %v12164_v60  ;;  %v12234_v18 = vld [vmem:[#allocation13 + $0x708] ss:$88 sps:$4 sm:$0xff]   ;;  %v12239_v60 = vld [vmem:[#allocation13 + $0x7b4] ss:$88 sps:$4 sm:$0xff]  }
 0x376   :  { %6718 = vmatpush1.bf16.msra.mxu0 %v12159_v21  ;;  %v12242_v21 = vld [vmem:[#allocation13 + $0x7bc] ss:$88 sps:$4 sm:$0xff]  }
 0x377   :  { %6841 = vmatpush1.bf16.msra.mxu1 %v12162_v27  ;;  %6719 = vmatprep.subr.bf16.mxu0 %v12167_v53  ;;  %v12237_v27 = vld [vmem:[#allocation13 + $0x7b0] ss:$88 sps:$4 sm:$0xff]  }
 0x378   :  { %6842 = vmatprep.subr.bf16.mxu1 %v12170_v29  ;;  %v12240_v53 = vld [vmem:[#allocation13 + $0x7b8] ss:$88 sps:$4 sm:$0xff]   ;;  %v12245_v29 = vld [vmem:[#allocation13 + $0x864] ss:$88 sps:$4 sm:$0xff]  }
 0x37a   :  { %6720 = vmatpush1.bf16.msra.mxu0 %v12165_v30  ;;  %v12248_v30 = vld [vmem:[#allocation13 + $0x86c] ss:$88 sps:$4 sm:$0xff]  }
 0x37b   :  { %6843 = vmatpush1.bf16.msra.mxu1 %v12168_v31  ;;  %6869 = vmatprep.subr.bf16.mxu0 %v12173_v32  ;;  %v12243_v31 = vld [vmem:[#allocation13 + $0x860] ss:$88 sps:$4 sm:$0xff]  }
 0x37c   :  { %6992 = vmatprep.subr.bf16.mxu1 %v12176_v33  ;;  %v13558_v32 = vld [vmem:[#allocation15] sm:$0xff] }
 0x37d   :  { %6738 = vmatmul.mubr.bf16.vlgmr.msra.gmra.mrb[8].mxu0 %v13540_v28  ;;  %v12246_v33 = vld [vmem:[#allocation13 + $0x868] ss:$88 sps:$4 sm:$0xff]  }
 0x37e   :  { %6861 = vmatmul.mubr.bf16.vlgmr.msra.gmra.mrb[16].mxu1 %v13540_v28  ;;  %6870 = vmatpush1.bf16.msra.mxu0 %v12171_v34  ;;  %v12251_v34 = vld [vmem:[#allocation13 + $0x914] ss:$88 sps:$4 sm:$0xff]  }
 0x37f   :  { %6901 = vmatprep.mubr.bf16.mxu0 %v13508_v16  ;;  %6993 = vmatpush1.bf16.msra.mxu1 %v12174_v35  ;;  %v13267_v35 = vmov 1966171168  }
 0x380   :  { %7024 = vmatprep.mubr.bf16.mxu1 %v13508_v16  ;;  %6871 = vmatprep.subr.bf16.mxu0 %v12179_v36  ;;  %v7763_v36 = vunpack.c.l.s4 %v13267_v35  ;;  %v12284_v35 = vld [vmem:[#allocation13 + $0xc8c] ss:$88 sps:$4 sm:$0xff]  }
 0x381   :  { %6994 = vmatprep.subr.bf16.mxu1 %v12182_v37  ;;  %v12254_v37 = vld [vmem:[#allocation13 + $0x91c] ss:$88 sps:$4 sm:$0xff]  }
 0x382   :  { %6872 = vmatpush1.bf16.msra.mxu0 %v12177_v38  ;;  %v1870_v38 = vrot.slane %v13558_v32, %v13483_v25 }
 0x383   :  { %6995 = vmatpush1.bf16.msra.mxu1 %v12180_v39  ;;  %6873 = vmatprep.subr.bf16.mxu0 %v12185_v40  ;;  %v1878_v39 = vrot.slane %v13558_v32, %v13523_v20  ;;  %v1874_v40 = vrot.slane %v13558_v32, %v13486_v26 }
 0x384   :  { %6996 = vmatprep.subr.bf16.mxu1 %v12188_v41  ;;  %v1882_v41 = vrot.slane %v13558_v32, %v13498_v61 }
 0x386   :  { %6874 = vmatpush1.bf16.msra.mxu0 %v12183_v42  ;;  %v12249_v42 = vld [vmem:[#allocation13 + $0x910] ss:$88 sps:$4 sm:$0xff]  }
 0x387   :  { %6997 = vmatpush1.bf16.msra.mxu1 %v12186_v43  ;;  %6875 = vmatprep.subr.bf16.mxu0 %v12191_v44  ;;  %v12252_v43 = vld [vmem:[#allocation13 + $0x918] ss:$88 sps:$4 sm:$0xff]   ;;  %v12257_v44 = vld [vmem:[#allocation13 + $0x9c4] ss:$88 sps:$4 sm:$0xff]  }
 0x388   :  { %6998 = vmatprep.subr.bf16.mxu1 %v12194_v3  ;;  %v7764_v3 = vunpack.c.0.s8 %v7763_v36  ;;  %v12279_v36 = vld [vmem:[#allocation13 + $0xc80] ss:$88 sps:$4 sm:$0xff]  }
 0x38a   :  { %6876 = vmatpush1.bf16.msra.mxu0 %v12189_v46 }
 0x38b   :  { %6999 = vmatpush1.bf16.msra.mxu1 %v12192_v47  ;;  %6877 = vmatprep.subr.bf16.mxu0 %v12197_v48  ;;  %v12260_v48 = vld [vmem:[#allocation13 + $0x9cc] ss:$88 sps:$4 sm:$0xff]  }
 0x38c   :  { %7000 = vmatprep.subr.bf16.mxu1 %v12200_v49 }
 0x38e   :  { %6878 = vmatpush1.bf16.msra.mxu0 %v12195_v50 }
 0x38f   :  { %7001 = vmatpush1.bf16.msra.mxu1 %v12198_v51  ;;  %6879 = vmatprep.subr.bf16.mxu0 %v12203_v52 }
 0x390   :  { %7002 = vmatprep.subr.bf16.mxu1 %v12206_v54 }
 0x392   :  { %6880 = vmatpush1.bf16.msra.mxu0 %v12201_v55 }
 0x393   :  { %7003 = vmatpush1.bf16.msra.mxu1 %v12204_v56  ;;  %6881 = vmatprep.subr.bf16.mxu0 %v12209_v57 }
 0x394   :  { %7004 = vmatprep.subr.bf16.mxu1 %v12212_v58  ;;  %v12255_v58 = vld [vmem:[#allocation13 + $0x9c0] ss:$88 sps:$4 sm:$0xff]  }
 0x396   :  { %6882 = vmatpush1.bf16.msra.mxu0 %v12207_v59  ;;  %v12258_v59 = vld [vmem:[#allocation13 + $0x9c8] ss:$88 sps:$4 sm:$0xff]  }
 0x397   :  { %7005 = vmatpush1.bf16.msra.mxu1 %v12210_v62  ;;  %6883 = vmatprep.subr.bf16.mxu0 %v12215_v63 }
 0x398   :  { %7006 = vmatprep.subr.bf16.mxu1 %v12218_v2 }
 0x39a   :  { %6884 = vmatpush1.bf16.msra.mxu0 %v12213_v4 }
 0x39b   :  { %7007 = vmatpush1.bf16.msra.mxu1 %v12216_v5  ;;  %6885 = vmatprep.subr.bf16.mxu0 %v12221_v6  ;;  %v12263_v5 = vld [vmem:[#allocation13 + $0xa74] ss:$88 sps:$4 sm:$0xff]   ;;  %v13569_v6 = vsub.s32 %v7764_v3, %v13480_v23  ;;  %v12294_v3 = vld [vmem:[#allocation13 + $0xde8] ss:$88 sps:$4 sm:$0xff]  }
 0x39c   :  { %7008 = vmatprep.subr.bf16.mxu1 %v12224_v7 }
 0x39e   :  { %6886 = vmatpush1.bf16.msra.mxu0 %v12219_v8 }
 0x39f   :  { %7009 = vmatpush1.bf16.msra.mxu1 %v12222_v9  ;;  %6887 = vmatprep.subr.bf16.mxu0 %v12227_v10  ;;  %v12266_v9 = vld [vmem:[#allocation13 + $0xa7c] ss:$88 sps:$4 sm:$0xff]  }
 0x3a0   :  { %7010 = vmatprep.subr.bf16.mxu1 %v12230_v11 }
 0x3a2   :  { %6888 = vmatpush1.bf16.msra.mxu0 %v12225_v12  ;;  %v12261_v12 = vld [vmem:[#allocation13 + $0xa70] ss:$88 sps:$4 sm:$0xff]  }
 0x3a3   :  { %7011 = vmatpush1.bf16.msra.mxu1 %v12228_v13  ;;  %6889 = vmatprep.subr.bf16.mxu0 %v12233_v14  ;;  %v12264_v13 = vld [vmem:[#allocation13 + $0xa78] ss:$88 sps:$4 sm:$0xff]   ;;  %v12269_v14 = vld [vmem:[#allocation13 + $0xb24] ss:$88 sps:$4 sm:$0xff]  }
 0x3a4   :  { %7012 = vmatprep.subr.bf16.mxu1 %v12236_v15 }
 0x3a6   :  { %6890 = vmatpush1.bf16.msra.mxu0 %v12231_v17 }
 0x3a7   :  { %7013 = vmatpush1.bf16.msra.mxu1 %v12234_v18  ;;  %6891 = vmatprep.subr.bf16.mxu0 %v12239_v60  ;;  %v12272_v18 = vld [vmem:[#allocation13 + $0xb2c] ss:$88 sps:$4 sm:$0xff]  }
 0x3a8   :  { %7014 = vmatprep.subr.bf16.mxu1 %v12242_v21 }
 0x3aa   :  { %6892 = vmatpush1.bf16.msra.mxu0 %v12237_v27  ;;  %v12267_v27 = vld [vmem:[#allocation13 + $0xb20] ss:$88 sps:$4 sm:$0xff]  }
 0x3ab   :  { %7015 = vmatpush1.bf16.msra.mxu1 %v12240_v53  ;;  %6893 = vmatprep.subr.bf16.mxu0 %v12245_v29  ;;  %v12270_v53 = vld [vmem:[#allocation13 + $0xb28] ss:$88 sps:$4 sm:$0xff]   ;;  %v12275_v29 = vld [vmem:[#allocation13 + $0xbd4] ss:$88 sps:$4 sm:$0xff]  }
 0x3ac   :  { %7016 = vmatprep.subr.bf16.mxu1 %v12248_v30  ;;  %v12278_v30 = vld [vmem:[#allocation13 + $0xbdc] ss:$88 sps:$4 sm:$0xff]  }
 0x3ae   :  { %6894 = vmatpush1.bf16.msra.mxu0 %v12243_v31  ;;  %v12273_v31 = vld [vmem:[#allocation13 + $0xbd0] ss:$88 sps:$4 sm:$0xff]  }
 0x3af   :  { %7017 = vmatpush1.bf16.msra.mxu1 %v12246_v33  ;;  %6895 = vmatprep.subr.bf16.mxu0 %v12251_v34  ;;  %v12276_v33 = vld [vmem:[#allocation13 + $0xbd8] ss:$88 sps:$4 sm:$0xff]   ;;  %v12281_v34 = vld [vmem:[#allocation13 + $0xc84] ss:$88 sps:$4 sm:$0xff]  }
 0x3b0   :  { %v6493_v46 = vpop.f32.mrb[4].mxu0  ;;  %v6616_v47 = vpop.f32.mrb[12].mxu1  ;;  %7018 = vmatprep.subr.bf16.mxu1 %v12254_v37  ;;  %v12282_v37 = vld [vmem:[#allocation13 + $0xc88] ss:$88 sps:$4 sm:$0xff]  }
 0x3b1   :  { %v11398_v49 = vadd.f32 %v6493_v46, %v1870_v38  ;;  %v11400_v50 = vadd.f32 %v6616_v47, %v1878_v39  ;;  %v6495_v51 = vpop.f32.mrb[5].mxu0  ;;  %v6618_v52 = vpop.f32.mrb[13].mxu1  ;;  %v12287_v38 = vld [vmem:[#allocation13 + $0xd34] ss:$88 sps:$4 sm:$0xff]  }
 0x3b2   :  { %v11399_v54 = vadd.f32 %v6495_v51, %v1874_v40  ;;  %v11401_v55 = vadd.f32 %v6618_v52, %v1882_v41  ;;  %v6497_v56 = vpop.f32.mrb[6].mxu0  ;;  %v6620_v57 = vpop.f32.mrb[14].mxu1  ;;  %6896 = vmatpush1.bf16.msra.mxu0 %v12249_v42  ;;  %v12290_v39 = vld [vmem:[#allocation13 + $0xd3c] ss:$88 sps:$4 sm:$0xff]   ;;  %v12285_v40 = vld [vmem:[#allocation13 + $0xd30] ss:$88 sps:$4 sm:$0xff]  }
 0x3b3   :  { %v7730_v62 = vmax.f32 %v11398_v49, 0.0  ;;  %v7732_v63 = vmax.f32 %v11400_v50, 0.0  ;;  %7019 = vmatpush1.bf16.msra.mxu1 %v12252_v43  ;;  %v6498_v2 = vpop.f32.mrb[7].mxu0  ;;  %v6621_v4 = vpop.f32.mrb[15].mxu1  ;;  %6897 = vmatprep.subr.bf16.mxu0 %v12257_v44  ;;  %v12288_v41 = vld [vmem:[#allocation13 + $0xd38] ss:$88 sps:$4 sm:$0xff]  }
 0x3b4   :  { %v7731_v7 = vmax.f32 %v11399_v54, 0.0  ;;  %v7733_v8 = vmax.f32 %v11401_v55, 0.0  ;;  %7020 = vmatprep.subr.bf16.mxu1 %v12260_v48  ;;  %v12293_v42 = vld [vmem:[#allocation13 + $0xde4] ss:$88 sps:$4 sm:$0xff]   ;;  %v12291_v44 = vld [vmem:[#allocation13 + $0xde0] ss:$88 sps:$4 sm:$0xff]  }
 0x3b5   :  { %v12296_v43 = vld [vmem:[#allocation13 + $0xdec] ss:$88 sps:$4 sm:$0xff]   ;;  %v12302_v47 = vld [vmem:[#allocation13 + $0xe9c] ss:$88 sps:$4 sm:$0xff]   ;;  %v12297_v48 = vld [vmem:[#allocation13 + $0xe90] ss:$88 sps:$4 sm:$0xff]  }
 0x3b6   :  { %v7759_v10 = vcombine.low %v7730_v62, %v7731_v7  ;;  %v7760_v11 = vcombine.low %v7732_v63, %v7733_v8  ;;  %6898 = vmatpush1.bf16.msra.mxu0 %v12255_v58  ;;  %v12299_v46 = vld [vmem:[#allocation13 + $0xe94] ss:$88 sps:$4 sm:$0xff]   ;;  %v12300_v49 = vld [vmem:[#allocation13 + $0xe98] ss:$88 sps:$4 sm:$0xff]   ;;  %v12305_v50 = vld [vmem:[#allocation13 + $0xf44] ss:$88 sps:$4 sm:$0xff]  }
 0x3b7   :  { %7021 = vmatpush1.bf16.msra.mxu1 %v12258_v59  ;;  %6899 = vmatprep.subr.bf16.mxu0 %v12263_v5  ;;  %v12308_v51 = vld [vmem:[#allocation13 + $0xf4c] ss:$88 sps:$4 sm:$0xff]   ;;  %v12303_v52 = vld [vmem:[#allocation13 + $0xf40] ss:$88 sps:$4 sm:$0xff]   ;;  %v12314_v56 = vld [vmem:[#allocation13 + $0xffc] ss:$88 sps:$4 sm:$0xff]  }
 0x3b8   :  { %v13572_v15 = vrot.slane %v7759_v10, %v13569_v6  ;;  %v13575_v17 = vrot.slane %v7760_v11, %v13569_v6  ;;  %7022 = vmatprep.subr.bf16.mxu1 %v12266_v9  ;;  %v12306_v54 = vld [vmem:[#allocation13 + $0xf48] ss:$88 sps:$4 sm:$0xff]   ;;  %v12311_v55 = vld [vmem:[#allocation13 + $0xff4] ss:$88 sps:$4 sm:$0xff]   ;;  %v12312_v58 = vld [vmem:[#allocation13 + $0xff8] ss:$88 sps:$4 sm:$0xff]  }
 0x3b9   :  { %v12309_v57 = vld [vmem:[#allocation13 + $0xff0] ss:$88 sps:$4 sm:$0xff]   ;;  %v12317_v59 = vld [vmem:[#allocation13 + $0x10a4] ss:$88 sps:$4 sm:$0xff]   ;;  %v12315_v63 = vld [vmem:[#allocation13 + $0x10a0] ss:$88 sps:$4 sm:$0xff]  }
 0x3ba   :  { %v7790_v60 = vcombine.low %v13572_v15, %v13575_v17  ;;  %v7791_v21 = vcombine.high %v13572_v15, %v13575_v17  ;;  %6900 = vmatpush1.bf16.msra.mxu0 %v12261_v12  ;;  %v12320_v62 = vld [vmem:[#allocation13 + $0x10ac] ss:$88 sps:$4 sm:$0xff]   ;;  %v12318_v2 = vld [vmem:[#allocation13 + $0x10a8] ss:$88 sps:$4 sm:$0xff]   ;;  %v12326_v5 = vld [vmem:[#allocation13 + $0x115c] ss:$88 sps:$4 sm:$0xff]  }
 0x3bb   :  { %7023 = vmatpush1.bf16.msra.mxu1 %v12264_v13  ;;  %6910 = vmatprep.subr.bf16.mxu0 %v12269_v14  ;;  %v12323_v4 = vld [vmem:[#allocation13 + $0x1154] ss:$88 sps:$4 sm:$0xff]   ;;  %v12321_v7 = vld [vmem:[#allocation13 + $0x1150] ss:$88 sps:$4 sm:$0xff]   ;;  %v12329_v9 = vld [vmem:[#allocation13 + $0x1204] ss:$88 sps:$4 sm:$0xff]  }
 0x3bc   :  { %7033 = vmatprep.subr.bf16.mxu1 %v12272_v18  ;;  %v12324_v8 = vld [vmem:[#allocation13 + $0x1158] ss:$88 sps:$4 sm:$0xff]   ;;  %v12332_v10 = vld [vmem:[#allocation13 + $0x120c] ss:$88 sps:$4 sm:$0xff]   ;;  %v12330_v12 = vld [vmem:[#allocation13 + $0x1208] ss:$88 sps:$4 sm:$0xff]  }
 0x3bd   :  { %6902 = vmatmul.mubr.bf16.vlgmr.msra.gmra.mrb[12].mxu0 %v13510_v19  ;;  %v12327_v11 = vld [vmem:[#allocation13 + $0x1200] ss:$88 sps:$4 sm:$0xff]   ;;  %v12335_v13 = vld [vmem:[#allocation13 + $0x12b4] ss:$88 sps:$4 sm:$0xff]   ;;  %v12333_v18 = vld [vmem:[#allocation13 + $0x12b0] ss:$88 sps:$4 sm:$0xff]  }
 0x3be   :  { %7025 = vmatmul.mubr.bf16.vlgmr.msra.gmra.mrb[20].mxu1 %v13510_v19  ;;  %6911 = vmatpush1.bf16.msra.mxu0 %v12267_v27  ;;  %v12338_v14 = vld [vmem:[#allocation13 + $0x12bc] ss:$88 sps:$4 sm:$0xff]   ;;  %v12336_v27 = vld [vmem:[#allocation13 + $0x12b8] ss:$88 sps:$4 sm:$0xff]  }
 0x3bf   :  { %6942 = vmatprep.mubr.bf16.mxu0 %v13514_v24  ;;  %7034 = vmatpush1.bf16.msra.mxu1 %v12270_v53  ;;  %v12341_v53 = vld [vmem:[#allocation13 + $0x1364] ss:$88 sps:$4 sm:$0xff]   ;;  %v12513_v17 = vld [vmem:[#allocation13 + $0xbe0] ss:$88 sps:$4 sm:$0xff]  }
 0x3c0   :  { %7065 = vmatprep.mubr.bf16.mxu1 %v13514_v24  ;;  %6912 = vmatprep.subr.bf16.mxu0 %v12275_v29  ;;  %v12344_v29 = vld [vmem:[#allocation13 + $0x136c] ss:$88 sps:$4 sm:$0xff]  }
 0x3c1   :  { %7035 = vmatprep.subr.bf16.mxu1 %v12278_v30  ;;  %v12339_v30 = vld [vmem:[#allocation13 + $0x1360] ss:$88 sps:$4 sm:$0xff]  }
 0x3c2   :  { %6913 = vmatpush1.bf16.msra.mxu0 %v12273_v31  ;;  %v12342_v31 = vld [vmem:[#allocation13 + $0x1368] ss:$88 sps:$4 sm:$0xff]  }
 0x3c3   :  { %7036 = vmatpush1.bf16.msra.mxu1 %v12276_v33  ;;  %6914 = vmatprep.subr.bf16.mxu0 %v12281_v34  ;;  %v12347_v33 = vld [vmem:[#allocation13 + $0x1414] ss:$88 sps:$4 sm:$0xff]  }
 0x3c4   :  { %7037 = vmatprep.subr.bf16.mxu1 %v12284_v35  ;;  %v12350_v34 = vld [vmem:[#allocation13 + $0x141c] ss:$88 sps:$4 sm:$0xff]   ;;  %v12345_v35 = vld [vmem:[#allocation13 + $0x1410] ss:$88 sps:$4 sm:$0xff]  }
 0x3c6   :  { %6915 = vmatpush1.bf16.msra.mxu0 %v12279_v36  ;;  %v12348_v36 = vld [vmem:[#allocation13 + $0x1418] ss:$88 sps:$4 sm:$0xff]  }
 0x3c7   :  { %7038 = vmatpush1.bf16.msra.mxu1 %v12282_v37  ;;  %6916 = vmatprep.subr.bf16.mxu0 %v12287_v38  ;;  %v12353_v37 = vld [vmem:[#allocation13 + $0x14c4] ss:$88 sps:$4 sm:$0xff]  }
 0x3c8   :  { %7039 = vmatprep.subr.bf16.mxu1 %v12290_v39  ;;  %v12356_v38 = vld [vmem:[#allocation13 + $0x14cc] ss:$88 sps:$4 sm:$0xff]   ;;  %v12351_v39 = vld [vmem:[#allocation13 + $0x14c0] ss:$88 sps:$4 sm:$0xff]  }
 0x3ca   :  { %6917 = vmatpush1.bf16.msra.mxu0 %v12285_v40  ;;  %v12354_v40 = vld [vmem:[#allocation13 + $0x14c8] ss:$88 sps:$4 sm:$0xff]  }
 0x3cb   :  { %7040 = vmatpush1.bf16.msra.mxu1 %v12288_v41  ;;  %6918 = vmatprep.subr.bf16.mxu0 %v12293_v42  ;;  %v12359_v41 = vld [vmem:[#allocation13 + $0x1574] ss:$88 sps:$4 sm:$0xff]  }
 0x3cc   :  { %7041 = vmatprep.subr.bf16.mxu1 %v12296_v43  ;;  %v12362_v42 = vld [vmem:[#allocation13 + $0x157c] ss:$88 sps:$4 sm:$0xff]   ;;  %v12357_v43 = vld [vmem:[#allocation13 + $0x1570] ss:$88 sps:$4 sm:$0xff]  }
 0x3ce   :  { %6919 = vmatpush1.bf16.msra.mxu0 %v12291_v44  ;;  %v12360_v44 = vld [vmem:[#allocation13 + $0x1578] ss:$88 sps:$4 sm:$0xff]  }
 0x3cf   :  { %7042 = vmatpush1.bf16.msra.mxu1 %v12294_v3  ;;  %6920 = vmatprep.subr.bf16.mxu0 %v12299_v46  ;;  %v12365_v3 = vld [vmem:[#allocation13 + $0x1624] ss:$88 sps:$4 sm:$0xff]  }
 0x3d0   :  { %7043 = vmatprep.subr.bf16.mxu1 %v12302_v47  ;;  %v12368_v46 = vld [vmem:[#allocation13 + $0x162c] ss:$88 sps:$4 sm:$0xff]   ;;  %v12363_v47 = vld [vmem:[#allocation13 + $0x1620] ss:$88 sps:$4 sm:$0xff]  }
 0x3d2   :  { %6921 = vmatpush1.bf16.msra.mxu0 %v12297_v48  ;;  %v12366_v48 = vld [vmem:[#allocation13 + $0x1628] ss:$88 sps:$4 sm:$0xff]  }
 0x3d3   :  { %7044 = vmatpush1.bf16.msra.mxu1 %v12300_v49  ;;  %6922 = vmatprep.subr.bf16.mxu0 %v12305_v50  ;;  %v12371_v49 = vld [vmem:[#allocation13 + $0x16d4] ss:$88 sps:$4 sm:$0xff]  }
 0x3d4   :  { %7045 = vmatprep.subr.bf16.mxu1 %v12308_v51  ;;  %v12374_v50 = vld [vmem:[#allocation13 + $0x16dc] ss:$88 sps:$4 sm:$0xff]   ;;  %v12369_v51 = vld [vmem:[#allocation13 + $0x16d0] ss:$88 sps:$4 sm:$0xff]  }
 0x3d6   :  { %6923 = vmatpush1.bf16.msra.mxu0 %v12303_v52  ;;  %v12372_v52 = vld [vmem:[#allocation13 + $0x16d8] ss:$88 sps:$4 sm:$0xff]  }
 0x3d7   :  { %7046 = vmatpush1.bf16.msra.mxu1 %v12306_v54  ;;  %6924 = vmatprep.subr.bf16.mxu0 %v12311_v55  ;;  %v12377_v54 = vld [vmem:[#allocation13 + $0x1784] ss:$88 sps:$4 sm:$0xff]  }
 0x3d8   :  { %7047 = vmatprep.subr.bf16.mxu1 %v12314_v56  ;;  %v12380_v55 = vld [vmem:[#allocation13 + $0x178c] ss:$88 sps:$4 sm:$0xff]   ;;  %v12375_v56 = vld [vmem:[#allocation13 + $0x1780] ss:$88 sps:$4 sm:$0xff]  }
 0x3da   :  { %6925 = vmatpush1.bf16.msra.mxu0 %v12309_v57  ;;  %v12378_v57 = vld [vmem:[#allocation13 + $0x1788] ss:$88 sps:$4 sm:$0xff]  }
 0x3db   :  { %7048 = vmatpush1.bf16.msra.mxu1 %v12312_v58  ;;  %6926 = vmatprep.subr.bf16.mxu0 %v12317_v59  ;;  %v12383_v58 = vld [vmem:[#allocation13 + $0x1834] ss:$88 sps:$4 sm:$0xff]  }
 0x3dc   :  { %7049 = vmatprep.subr.bf16.mxu1 %v12320_v62  ;;  %v12386_v59 = vld [vmem:[#allocation13 + $0x183c] ss:$88 sps:$4 sm:$0xff]   ;;  %v12381_v62 = vld [vmem:[#allocation13 + $0x1830] ss:$88 sps:$4 sm:$0xff]  }
 0x3de   :  { %6927 = vmatpush1.bf16.msra.mxu0 %v12315_v63  ;;  %v12384_v63 = vld [vmem:[#allocation13 + $0x1838] ss:$88 sps:$4 sm:$0xff]  }
 0x3df   :  { %7050 = vmatpush1.bf16.msra.mxu1 %v12318_v2  ;;  %6928 = vmatprep.subr.bf16.mxu0 %v12323_v4  ;;  %v12389_v2 = vld [vmem:[#allocation13 + $0x18e4] ss:$88 sps:$4 sm:$0xff]  }
 0x3e0   :  { %7051 = vmatprep.subr.bf16.mxu1 %v12326_v5  ;;  %v12392_v4 = vld [vmem:[#allocation13 + $0x18ec] ss:$88 sps:$4 sm:$0xff]   ;;  %v12387_v5 = vld [vmem:[#allocation13 + $0x18e0] ss:$88 sps:$4 sm:$0xff]  }
 0x3e2   :  { %6929 = vmatpush1.bf16.msra.mxu0 %v12321_v7  ;;  %v12390_v7 = vld [vmem:[#allocation13 + $0x18e8] ss:$88 sps:$4 sm:$0xff]  }
 0x3e3   :  { %7052 = vmatpush1.bf16.msra.mxu1 %v12324_v8  ;;  %6930 = vmatprep.subr.bf16.mxu0 %v12329_v9  ;;  %v12395_v8 = vld [vmem:[#allocation13 + $0x1994] ss:$88 sps:$4 sm:$0xff]  }
 0x3e4   :  { %7053 = vmatprep.subr.bf16.mxu1 %v12332_v10  ;;  %v12398_v9 = vld [vmem:[#allocation13 + $0x199c] ss:$88 sps:$4 sm:$0xff]   ;;  %v12393_v10 = vld [vmem:[#allocation13 + $0x1990] ss:$88 sps:$4 sm:$0xff]  }
 0x3e6   :  { %6931 = vmatpush1.bf16.msra.mxu0 %v12327_v11  ;;  %v12396_v11 = vld [vmem:[#allocation13 + $0x1998] ss:$88 sps:$4 sm:$0xff]  }
 0x3e7   :  { %7054 = vmatpush1.bf16.msra.mxu1 %v12330_v12  ;;  %6932 = vmatprep.subr.bf16.mxu0 %v12335_v13  ;;  %v12401_v12 = vld [vmem:[#allocation13 + $0x1a44] ss:$88 sps:$4 sm:$0xff]  }
 0x3e8   :  { %7055 = vmatprep.subr.bf16.mxu1 %v12338_v14  ;;  %v12404_v13 = vld [vmem:[#allocation13 + $0x1a4c] ss:$88 sps:$4 sm:$0xff]   ;;  %v12399_v14 = vld [vmem:[#allocation13 + $0x1a40] ss:$88 sps:$4 sm:$0xff]  }
 0x3ea   :  { %6933 = vmatpush1.bf16.msra.mxu0 %v12333_v18  ;;  %v12402_v18 = vld [vmem:[#allocation13 + $0x1a48] ss:$88 sps:$4 sm:$0xff]  }
 0x3eb   :  { %7056 = vmatpush1.bf16.msra.mxu1 %v12336_v27  ;;  %6934 = vmatprep.subr.bf16.mxu0 %v12341_v53  ;;  %v12407_v27 = vld [vmem:[#allocation13 + $0x1af4] ss:$88 sps:$4 sm:$0xff]  }
 0x3ec   :  { %7057 = vmatprep.subr.bf16.mxu1 %v12344_v29  ;;  %v12410_v53 = vld [vmem:[#allocation13 + $0x1afc] ss:$88 sps:$4 sm:$0xff]   ;;  %v12405_v29 = vld [vmem:[#allocation13 + $0x1af0] ss:$88 sps:$4 sm:$0xff]  }
 0x3ee   :  { %6935 = vmatpush1.bf16.msra.mxu0 %v12339_v30  ;;  %v12408_v30 = vld [vmem:[#allocation13 + $0x1af8] ss:$88 sps:$4 sm:$0xff]  }
 0x3ef   :  { %7058 = vmatpush1.bf16.msra.mxu1 %v12342_v31  ;;  %6936 = vmatprep.subr.bf16.mxu0 %v12347_v33  ;;  %v12413_v31 = vld [vmem:[#allocation13 + $0x34] ss:$88 sps:$4 sm:$0xff]  }
 0x3f0   :  { %7059 = vmatprep.subr.bf16.mxu1 %v12350_v34  ;;  %v12416_v33 = vld [vmem:[#allocation13 + $0x3c] ss:$88 sps:$4 sm:$0xff]   ;;  %v12411_v34 = vld [vmem:[#allocation13 + $0x30] ss:$88 sps:$4 sm:$0xff]  }
 0x3f2   :  { %6937 = vmatpush1.bf16.msra.mxu0 %v12345_v35  ;;  %v12414_v35 = vld [vmem:[#allocation13 + $0x38] ss:$88 sps:$4 sm:$0xff]  }
 0x3f3   :  { %7060 = vmatpush1.bf16.msra.mxu1 %v12348_v36  ;;  %6938 = vmatprep.subr.bf16.mxu0 %v12353_v37  ;;  %v12419_v36 = vld [vmem:[#allocation13 + $0xe4] ss:$88 sps:$4 sm:$0xff]  }
 0x3f4   :  { %7061 = vmatprep.subr.bf16.mxu1 %v12356_v38  ;;  %v12422_v37 = vld [vmem:[#allocation13 + $0xec] ss:$88 sps:$4 sm:$0xff]   ;;  %v12417_v38 = vld [vmem:[#allocation13 + $0xe0] ss:$88 sps:$4 sm:$0xff]  }
 0x3f6   :  { %6939 = vmatpush1.bf16.msra.mxu0 %v12351_v39  ;;  %v12420_v39 = vld [vmem:[#allocation13 + $0xe8] ss:$88 sps:$4 sm:$0xff]  }
 0x3f7   :  { %7062 = vmatpush1.bf16.msra.mxu1 %v12354_v40  ;;  %6940 = vmatprep.subr.bf16.mxu0 %v12359_v41  ;;  %v12425_v40 = vld [vmem:[#allocation13 + $0x194] ss:$88 sps:$4 sm:$0xff]  }
 0x3f8   :  { %7063 = vmatprep.subr.bf16.mxu1 %v12362_v42  ;;  %v12428_v41 = vld [vmem:[#allocation13 + $0x19c] ss:$88 sps:$4 sm:$0xff]   ;;  %v12423_v42 = vld [vmem:[#allocation13 + $0x190] ss:$88 sps:$4 sm:$0xff]  }
 0x3fa   :  { %6941 = vmatpush1.bf16.msra.mxu0 %v12357_v43  ;;  %v12426_v43 = vld [vmem:[#allocation13 + $0x198] ss:$88 sps:$4 sm:$0xff]  }
 0x3fb   :  { %7064 = vmatpush1.bf16.msra.mxu1 %v12360_v44  ;;  %6951 = vmatprep.subr.bf16.mxu0 %v12365_v3  ;;  %v12431_v44 = vld [vmem:[#allocation13 + $0x244] ss:$88 sps:$4 sm:$0xff]  }
 0x3fc   :  { %7074 = vmatprep.subr.bf16.mxu1 %v12368_v46  ;;  %v12434_v3 = vld [vmem:[#allocation13 + $0x24c] ss:$88 sps:$4 sm:$0xff]   ;;  %v12429_v46 = vld [vmem:[#allocation13 + $0x240] ss:$88 sps:$4 sm:$0xff]  }
 0x3fd   :  { %6943 = vmatmul.mubr.bf16.vlgmr.msra.gmra.mrb[12].mxu0 %v13528_v45 }
 0x3fe   :  { %7066 = vmatmul.mubr.bf16.vlgmr.msra.gmra.mrb[20].mxu1 %v13528_v45  ;;  %6952 = vmatpush1.bf16.msra.mxu0 %v12363_v47  ;;  %v12432_v47 = vld [vmem:[#allocation13 + $0x248] ss:$88 sps:$4 sm:$0xff]  }
 0x3ff   :  { %7075 = vmatpush1.bf16.msra.mxu1 %v12366_v48  ;;  %6953 = vmatprep.subr.bf16.mxu0 %v12371_v49  ;;  %v12437_v48 = vld [vmem:[#allocation13 + $0x2f4] ss:$88 sps:$4 sm:$0xff]  }
 0x400   :  { %7076 = vmatprep.subr.bf16.mxu1 %v12374_v50  ;;  %6983 = vmatprep.mubr.bf16.mxu0 %v13266_v0  ;;  %v12440_v49 = vld [vmem:[#allocation13 + $0x2fc] ss:$88 sps:$4 sm:$0xff]   ;;  %v12435_v50 = vld [vmem:[#allocation13 + $0x2f0] ss:$88 sps:$4 sm:$0xff]  }
 0x401   :  { %7106 = vmatprep.mubr.bf16.mxu1 %v13266_v0 }
 0x402   :  { %6954 = vmatpush1.bf16.msra.mxu0 %v12369_v51  ;;  %v12438_v51 = vld [vmem:[#allocation13 + $0x2f8] ss:$88 sps:$4 sm:$0xff]  }
 0x403   :  { %7077 = vmatpush1.bf16.msra.mxu1 %v12372_v52  ;;  %6955 = vmatprep.subr.bf16.mxu0 %v12377_v54  ;;  %v12443_v52 = vld [vmem:[#allocation13 + $0x3a4] ss:$88 sps:$4 sm:$0xff]  }
 0x404   :  { %7078 = vmatprep.subr.bf16.mxu1 %v12380_v55  ;;  %v12446_v54 = vld [vmem:[#allocation13 + $0x3ac] ss:$88 sps:$4 sm:$0xff]   ;;  %v12441_v55 = vld [vmem:[#allocation13 + $0x3a0] ss:$88 sps:$4 sm:$0xff]  }
 0x406   :  { %6956 = vmatpush1.bf16.msra.mxu0 %v12375_v56  ;;  %v12444_v56 = vld [vmem:[#allocation13 + $0x3a8] ss:$88 sps:$4 sm:$0xff]  }
 0x407   :  { %7079 = vmatpush1.bf16.msra.mxu1 %v12378_v57  ;;  %6957 = vmatprep.subr.bf16.mxu0 %v12383_v58  ;;  %v12449_v57 = vld [vmem:[#allocation13 + $0x454] ss:$88 sps:$4 sm:$0xff]  }
 0x408   :  { %7080 = vmatprep.subr.bf16.mxu1 %v12386_v59  ;;  %v12452_v58 = vld [vmem:[#allocation13 + $0x45c] ss:$88 sps:$4 sm:$0xff]   ;;  %v12447_v59 = vld [vmem:[#allocation13 + $0x450] ss:$88 sps:$4 sm:$0xff]  }
 0x40a   :  { %6958 = vmatpush1.bf16.msra.mxu0 %v12381_v62  ;;  %v12450_v62 = vld [vmem:[#allocation13 + $0x458] ss:$88 sps:$4 sm:$0xff]  }
 0x40b   :  { %7081 = vmatpush1.bf16.msra.mxu1 %v12384_v63  ;;  %6959 = vmatprep.subr.bf16.mxu0 %v12389_v2  ;;  %v12455_v63 = vld [vmem:[#allocation13 + $0x504] ss:$88 sps:$4 sm:$0xff]  }
 0x40c   :  { %7082 = vmatprep.subr.bf16.mxu1 %v12392_v4  ;;  %v12458_v2 = vld [vmem:[#allocation13 + $0x50c] ss:$88 sps:$4 sm:$0xff]   ;;  %v12453_v4 = vld [vmem:[#allocation13 + $0x500] ss:$88 sps:$4 sm:$0xff]  }
 0x40e   :  { %6960 = vmatpush1.bf16.msra.mxu0 %v12387_v5  ;;  %v12456_v5 = vld [vmem:[#allocation13 + $0x508] ss:$88 sps:$4 sm:$0xff]  }
 0x40f   :  { %7083 = vmatpush1.bf16.msra.mxu1 %v12390_v7  ;;  %6961 = vmatprep.subr.bf16.mxu0 %v12395_v8  ;;  %v12461_v7 = vld [vmem:[#allocation13 + $0x5b4] ss:$88 sps:$4 sm:$0xff]  }
 0x410   :  { %7084 = vmatprep.subr.bf16.mxu1 %v12398_v9  ;;  %v12464_v8 = vld [vmem:[#allocation13 + $0x5bc] ss:$88 sps:$4 sm:$0xff]   ;;  %v12459_v9 = vld [vmem:[#allocation13 + $0x5b0] ss:$88 sps:$4 sm:$0xff]  }
 0x412   :  { %6962 = vmatpush1.bf16.msra.mxu0 %v12393_v10  ;;  %v12462_v10 = vld [vmem:[#allocation13 + $0x5b8] ss:$88 sps:$4 sm:$0xff]  }
 0x413   :  { %7085 = vmatpush1.bf16.msra.mxu1 %v12396_v11  ;;  %6963 = vmatprep.subr.bf16.mxu0 %v12401_v12  ;;  %v12467_v11 = vld [vmem:[#allocation13 + $0x664] ss:$88 sps:$4 sm:$0xff]  }
 0x414   :  { %7086 = vmatprep.subr.bf16.mxu1 %v12404_v13  ;;  %v12470_v12 = vld [vmem:[#allocation13 + $0x66c] ss:$88 sps:$4 sm:$0xff]   ;;  %v12465_v13 = vld [vmem:[#allocation13 + $0x660] ss:$88 sps:$4 sm:$0xff]  }
 0x416   :  { %6964 = vmatpush1.bf16.msra.mxu0 %v12399_v14  ;;  %v12468_v14 = vld [vmem:[#allocation13 + $0x668] ss:$88 sps:$4 sm:$0xff]  }
 0x417   :  { %7087 = vmatpush1.bf16.msra.mxu1 %v12402_v18  ;;  %6965 = vmatprep.subr.bf16.mxu0 %v12407_v27  ;;  %v12473_v18 = vld [vmem:[#allocation13 + $0x714] ss:$88 sps:$4 sm:$0xff]  }
 0x418   :  { %7088 = vmatprep.subr.bf16.mxu1 %v12410_v53  ;;  %v12476_v27 = vld [vmem:[#allocation13 + $0x71c] ss:$88 sps:$4 sm:$0xff]   ;;  %v12471_v53 = vld [vmem:[#allocation13 + $0x710] ss:$88 sps:$4 sm:$0xff]  }
 0x41a   :  { %6966 = vmatpush1.bf16.msra.mxu0 %v12405_v29  ;;  %v12474_v29 = vld [vmem:[#allocation13 + $0x718] ss:$88 sps:$4 sm:$0xff]  }
 0x41b   :  { %7089 = vmatpush1.bf16.msra.mxu1 %v12408_v30  ;;  %7115 = vmatprep.subr.bf16.mxu0 %v12413_v31  ;;  %v12479_v30 = vld [vmem:[#allocation13 + $0x7c4] ss:$88 sps:$4 sm:$0xff]  }
 0x41c   :  { %7238 = vmatprep.subr.bf16.mxu1 %v12416_v33  ;;  %v12482_v31 = vld [vmem:[#allocation13 + $0x7cc] ss:$88 sps:$4 sm:$0xff]   ;;  %v12477_v33 = vld [vmem:[#allocation13 + $0x7c0] ss:$88 sps:$4 sm:$0xff]  }
 0x41d   :  { %6984 = vmatmul.mubr.bf16.vlgmr.msra.gmra.mrb[12].mxu0 %v13540_v28 }
 0x41e   :  { %7107 = vmatmul.mubr.bf16.vlgmr.msra.gmra.mrb[20].mxu1 %v13540_v28  ;;  %7116 = vmatpush1.bf16.msra.mxu0 %v12411_v34  ;;  %v12480_v34 = vld [vmem:[#allocation13 + $0x7c8] ss:$88 sps:$4 sm:$0xff]  }
 0x41f   :  { %7147 = vmatprep.mubr.bf16.mxu0 %v13508_v16  ;;  %7239 = vmatpush1.bf16.msra.mxu1 %v12414_v35  ;;  %v12485_v35 = vld [vmem:[#allocation13 + $0x874] ss:$88 sps:$4 sm:$0xff]  }
 0x420   :  { %7270 = vmatprep.mubr.bf16.mxu1 %v13508_v16  ;;  %7117 = vmatprep.subr.bf16.mxu0 %v12419_v36  ;;  %v12488_v36 = vld [vmem:[#allocation13 + $0x87c] ss:$88 sps:$4 sm:$0xff]  }
 0x421   :  { %7240 = vmatprep.subr.bf16.mxu1 %v12422_v37  ;;  %v12483_v37 = vld [vmem:[#allocation13 + $0x870] ss:$88 sps:$4 sm:$0xff]  }
 0x422   :  { %7118 = vmatpush1.bf16.msra.mxu0 %v12417_v38  ;;  %v13594_v38 = vsub.s32 6, %v13480_v23 }
 0x423   :  { %7241 = vmatpush1.bf16.msra.mxu1 %v12420_v39  ;;  %7119 = vmatprep.subr.bf16.mxu0 %v12425_v40  ;;  %v13597_v39 = vsub.s32 5, %v13480_v23  ;;  %v12486_v40 = vld [vmem:[#allocation13 + $0x878] ss:$88 sps:$4 sm:$0xff]  }
 0x424   :  { %7242 = vmatprep.subr.bf16.mxu1 %v12428_v41  ;;  %v1897_v41 = vsub.s32 7, %v13480_v23 }
 0x426   :  { %7120 = vmatpush1.bf16.msra.mxu0 %v12423_v42  ;;  %v12491_v42 = vld [vmem:[#allocation13 + $0x924] ss:$88 sps:$4 sm:$0xff]  }
 0x427   :  { %7243 = vmatpush1.bf16.msra.mxu1 %v12426_v43  ;;  %7121 = vmatprep.subr.bf16.mxu0 %v12431_v44  ;;  %v12494_v43 = vld [vmem:[#allocation13 + $0x92c] ss:$88 sps:$4 sm:$0xff]   ;;  %v1886_v44 = vrot.slane %v13558_v32, %v13535_v1 }
 0x428   :  { %7244 = vmatprep.subr.bf16.mxu1 %v12434_v3  ;;  %v1894_v3 = vrot.slane %v13558_v32, %v13594_v38 }
 0x42a   :  { %7122 = vmatpush1.bf16.msra.mxu0 %v12429_v46  ;;  %v1890_v46 = vrot.slane %v13558_v32, %v13597_v39 }
 0x42b   :  { %7245 = vmatpush1.bf16.msra.mxu1 %v12432_v47  ;;  %7123 = vmatprep.subr.bf16.mxu0 %v12437_v48  ;;  %v12489_v47 = vld [vmem:[#allocation13 + $0x920] ss:$88 sps:$4 sm:$0xff]   ;;  %v1898_v48 = vrot.slane %v13558_v32, %v1897_v41 }
 0x42c   :  { %7246 = vmatprep.subr.bf16.mxu1 %v12440_v49  ;;  %v12492_v49 = vld [vmem:[#allocation13 + $0x928] ss:$88 sps:$4 sm:$0xff]  }
 0x42e   :  { %7124 = vmatpush1.bf16.msra.mxu0 %v12435_v50  ;;  %v12497_v50 = vld [vmem:[#allocation13 + $0x9d4] ss:$88 sps:$4 sm:$0xff]  }
 0x42f   :  { %7247 = vmatpush1.bf16.msra.mxu1 %v12438_v51  ;;  %7125 = vmatprep.subr.bf16.mxu0 %v12443_v52  ;;  %v12500_v52 = vld [vmem:[#allocation13 + $0x9dc] ss:$88 sps:$4 sm:$0xff]  }
 0x430   :  { %7248 = vmatprep.subr.bf16.mxu1 %v12446_v54 }
 0x432   :  { %7126 = vmatpush1.bf16.msra.mxu0 %v12441_v55 }
 0x433   :  { %7249 = vmatpush1.bf16.msra.mxu1 %v12444_v56  ;;  %7127 = vmatprep.subr.bf16.mxu0 %v12449_v57 }
 0x434   :  { %7250 = vmatprep.subr.bf16.mxu1 %v12452_v58 }
 0x436   :  { %7128 = vmatpush1.bf16.msra.mxu0 %v12447_v59 }
 0x437   :  { %7251 = vmatpush1.bf16.msra.mxu1 %v12450_v62  ;;  %7129 = vmatprep.subr.bf16.mxu0 %v12455_v63  ;;  %v12495_v63 = vld [vmem:[#allocation13 + $0x9d0] ss:$88 sps:$4 sm:$0xff]  }
 0x438   :  { %7252 = vmatprep.subr.bf16.mxu1 %v12458_v2  ;;  %v12498_v2 = vld [vmem:[#allocation13 + $0x9d8] ss:$88 sps:$4 sm:$0xff]  }
 0x43a   :  { %7130 = vmatpush1.bf16.msra.mxu0 %v12453_v4 }
 0x43b   :  { %7253 = vmatpush1.bf16.msra.mxu1 %v12456_v5  ;;  %7131 = vmatprep.subr.bf16.mxu0 %v12461_v7 }
 0x43c   :  { %7254 = vmatprep.subr.bf16.mxu1 %v12464_v8  ;;  %v12503_v8 = vld [vmem:[#allocation13 + $0xa84] ss:$88 sps:$4 sm:$0xff]  }
 0x43e   :  { %7132 = vmatpush1.bf16.msra.mxu0 %v12459_v9 }
 0x43f   :  { %7255 = vmatpush1.bf16.msra.mxu1 %v12462_v10  ;;  %7133 = vmatprep.subr.bf16.mxu0 %v12467_v11 }
 0x440   :  { %7256 = vmatprep.subr.bf16.mxu1 %v12470_v12  ;;  %v12506_v12 = vld [vmem:[#allocation13 + $0xa8c] ss:$88 sps:$4 sm:$0xff]  }
 0x442   :  { %7134 = vmatpush1.bf16.msra.mxu0 %v12465_v13 }
 0x443   :  { %7257 = vmatpush1.bf16.msra.mxu1 %v12468_v14  ;;  %7135 = vmatprep.subr.bf16.mxu0 %v12473_v18  ;;  %v12501_v18 = vld [vmem:[#allocation13 + $0xa80] ss:$88 sps:$4 sm:$0xff]  }
 0x444   :  { %7258 = vmatprep.subr.bf16.mxu1 %v12476_v27 }
 0x446   :  { %7136 = vmatpush1.bf16.msra.mxu0 %v12471_v53  ;;  %v12504_v53 = vld [vmem:[#allocation13 + $0xa88] ss:$88 sps:$4 sm:$0xff]  }
 0x447   :  { %7259 = vmatpush1.bf16.msra.mxu1 %v12474_v29  ;;  %7137 = vmatprep.subr.bf16.mxu0 %v12479_v30  ;;  %v12509_v29 = vld [vmem:[#allocation13 + $0xb34] ss:$88 sps:$4 sm:$0xff]  }
 0x448   :  { %7260 = vmatprep.subr.bf16.mxu1 %v12482_v31 }
 0x44a   :  { %7138 = vmatpush1.bf16.msra.mxu0 %v12477_v33  ;;  %v12512_v33 = vld [vmem:[#allocation13 + $0xb3c] ss:$88 sps:$4 sm:$0xff]  }
 0x44b   :  { %7261 = vmatpush1.bf16.msra.mxu1 %v12480_v34  ;;  %7139 = vmatprep.subr.bf16.mxu0 %v12485_v35 }
 0x44c   :  { %7262 = vmatprep.subr.bf16.mxu1 %v12488_v36 }
 0x44e   :  { %7140 = vmatpush1.bf16.msra.mxu0 %v12483_v37  ;;  %v12507_v37 = vld [vmem:[#allocation13 + $0xb30] ss:$88 sps:$4 sm:$0xff]  }
 0x44f   :  { %7263 = vmatpush1.bf16.msra.mxu1 %v12486_v40  ;;  %7141 = vmatprep.subr.bf16.mxu0 %v12491_v42 }
 0x450   :  { %v6739_v51 = vpop.f32.mrb[8].mxu0  ;;  %7264 = vmatprep.subr.bf16.mxu1 %v12494_v43  ;;  %v12510_v43 = vld [vmem:[#allocation13 + $0xb38] ss:$88 sps:$4 sm:$0xff]  }
 0x451   :  { %v11402_v54 = vadd.f32 %v6739_v51, %v1886_v44  ;;  %v6862_v55 = vpop.f32.mrb[16].mxu1  ;;  %v6741_v56 = vpop.f32.mrb[9].mxu0  ;;  %v7800_v44 = vrot.slane %v7790_v60, %v13569_v6 }
 0x452   :  { %v11404_v57 = vadd.f32 %v6862_v55, %v1894_v3  ;;  %v11403_v58 = vadd.f32 %v6741_v56, %v1890_v46  ;;  %v6864_v59 = vpop.f32.mrb[17].mxu1  ;;  %v6743_v62 = vpop.f32.mrb[10].mxu0  ;;  %7142 = vmatpush1.bf16.msra.mxu0 %v12489_v47  ;;  %v7807_v3 = vrot.slane %v7791_v21, %v13569_v6  ;;  %v12518_v21 = vld [vmem:[#allocation13 + $0xbec] ss:$88 sps:$4 sm:$0xff]   ;;  %v12524_v56 = vld [vmem:[#allocation13 + $0xc9c] ss:$88 sps:$4 sm:$0xff]  }
 0x453   :  { %v7734_v4 = vmax.f32 %v11402_v54, 0.0  ;;  %v13609_v5 = vadd.f32 %v6864_v59, %v1898_v48  ;;  %v6866_v32 = vpop.f32.mrb[18].mxu1  ;;  %7265 = vmatpush1.bf16.msra.mxu1 %v12492_v49  ;;  %v6744_v7 = vpop.f32.mrb[11].mxu0  ;;  %7143 = vmatprep.subr.bf16.mxu0 %v12497_v50  ;;  %v12515_v48 = vld [vmem:[#allocation13 + $0xbe4] ss:$88 sps:$4 sm:$0xff]  }
 0x454   :  { %v7736_v9 = vmax.f32 %v11404_v57, 0.0  ;;  %v7735_v10 = vmax.f32 %v11403_v58, 0.0  ;;  %v6867_v11 = vpop.f32.mrb[19].mxu1  ;;  %7266 = vmatprep.subr.bf16.mxu1 %v12500_v52  ;;  %v12521_v55 = vld [vmem:[#allocation13 + $0xc94] ss:$88 sps:$4 sm:$0xff]  }
 0x455   :  { %v7737_v13 = vmax.f32 %v13609_v5, 0.0  ;;  %v12519_v57 = vld [vmem:[#allocation13 + $0xc90] ss:$88 sps:$4 sm:$0xff]   ;;  %v12527_v59 = vld [vmem:[#allocation13 + $0xd44] ss:$88 sps:$4 sm:$0xff]  }
 0x456   :  { %v7761_v14 = vcombine.low %v7734_v4, %v7735_v10  ;;  %7144 = vmatpush1.bf16.msra.mxu0 %v12495_v63  ;;  %v7789_v30 = vrot.slane %v7736_v9, %v13569_v6  ;;  %v12522_v58 = vld [vmem:[#allocation13 + $0xc98] ss:$88 sps:$4 sm:$0xff]   ;;  %v12530_v62 = vld [vmem:[#allocation13 + $0xd4c] ss:$88 sps:$4 sm:$0xff]   ;;  %v12536_v32 = vld [vmem:[#allocation13 + $0xdfc] ss:$88 sps:$4 sm:$0xff]  }
 0x457   :  { %v7836_v27 = vcombine.low %v7736_v9, %v7737_v13  ;;  %7267 = vmatpush1.bf16.msra.mxu1 %v12498_v2  ;;  %7145 = vmatprep.subr.bf16.mxu0 %v12503_v8  ;;  %v12525_v63 = vld [vmem:[#allocation13 + $0xd40] ss:$88 sps:$4 sm:$0xff]   ;;  %v12533_v4 = vld [vmem:[#allocation13 + $0xdf4] ss:$88 sps:$4 sm:$0xff]   ;;  %v12531_v7 = vld [vmem:[#allocation13 + $0xdf0] ss:$88 sps:$4 sm:$0xff]  }
 0x458   :  { %v7782_v31 = vrot.slane %v7761_v14, %v13569_v6  ;;  %7268 = vmatprep.subr.bf16.mxu1 %v12506_v12  ;;  %v12528_v2 = vld [vmem:[#allocation13 + $0xd48] ss:$88 sps:$4 sm:$0xff]   ;;  %v12534_v8 = vld [vmem:[#allocation13 + $0xdf8] ss:$88 sps:$4 sm:$0xff]   ;;  %v12539_v9 = vld [vmem:[#allocation13 + $0xea4] ss:$88 sps:$4 sm:$0xff]  }
 0x459   :  { %v7843_v34 = vrot.slane %v7836_v27, %v13569_v6  ;;  %v12542_v10 = vld [vmem:[#allocation13 + $0xeac] ss:$88 sps:$4 sm:$0xff]   ;;  %v12537_v11 = vld [vmem:[#allocation13 + $0xea0] ss:$88 sps:$4 sm:$0xff]   ;;  %v12543_v27 = vld [vmem:[#allocation13 + $0xf50] ss:$88 sps:$4 sm:$0xff]  }
 0x45a   :  { %v7792_v35 = vcombine.low %v7782_v31, %v7789_v30  ;;  %v7793_v36 = vcombine.high %v7782_v31, %v7789_v30  ;;  %7146 = vmatpush1.bf16.msra.mxu0 %v12501_v18  ;;  %v12540_v12 = vld [vmem:[#allocation13 + $0xea8] ss:$88 sps:$4 sm:$0xff]   ;;  %v12545_v14 = vld [vmem:[#allocation13 + $0xf54] ss:$88 sps:$4 sm:$0xff]  }
 0x45b   :  { %v7844_v40 = vcombine.low %v7782_v31, %v7843_v34  ;;  %v7845_v42 = vcombine.high %v7782_v31, %v7843_v34  ;;  %7269 = vmatpush1.bf16.msra.mxu1 %v12504_v53  ;;  %7156 = vmatprep.subr.bf16.mxu0 %v12509_v29  ;;  %v12548_v18 = vld [vmem:[#allocation13 + $0xf5c] ss:$88 sps:$4 sm:$0xff]   ;;  %v12546_v53 = vld [vmem:[#allocation13 + $0xf58] ss:$88 sps:$4 sm:$0xff]   ;;  %v12554_v30 = vld [vmem:[#allocation13 + $0x100c] ss:$88 sps:$4 sm:$0xff]  }
 0x45c   :  { %v7814_v46 = vrot.slane %v7792_v35, %v13569_v6  ;;  %v7821_v47 = vrot.slane %v7793_v36, %v13569_v6  ;;  %7279 = vmatprep.subr.bf16.mxu1 %v12512_v33  ;;  %v12551_v29 = vld [vmem:[#allocation13 + $0x1004] ss:$88 sps:$4 sm:$0xff]   ;;  %v12549_v31 = vld [vmem:[#allocation13 + $0x1000] ss:$88 sps:$4 sm:$0xff]   ;;  %v12557_v34 = vld [vmem:[#allocation13 + $0x10b4] ss:$88 sps:$4 sm:$0xff]  }
 0x45d   :  { %v7852_v50 = vrot.slane %v7844_v40, %v13569_v6  ;;  %v7859_v60 = vrot.slane %v7845_v42, %v13569_v6  ;;  %7148 = vmatmul.mubr.bf16.vlgmr.msra.gmra.mrb[16].mxu0 %v13510_v19  ;;  %v12552_v33 = vld [vmem:[#allocation13 + $0x1008] ss:$88 sps:$4 sm:$0xff]   ;;  %v12560_v35 = vld [vmem:[#allocation13 + $0x10bc] ss:$88 sps:$4 sm:$0xff]   ;;  %v12566_v42 = vld [vmem:[#allocation13 + $0x116c] ss:$88 sps:$4 sm:$0xff]  }
 0x45e   :  { %v7822_v51 = vcombine.low %v7800_v44, %v7814_v46  ;;  %v7823_v15 = vcombine.low %v7807_v3, %v7821_v47  ;;  %7271 = vmatmul.mubr.bf16.vlgmr.msra.gmra.mrb[24].mxu1 %v13510_v19  ;;  %7157 = vmatpush1.bf16.msra.mxu0 %v12507_v37  ;;  %v12555_v36 = vld [vmem:[#allocation13 + $0x10b0] ss:$88 sps:$4 sm:$0xff]   ;;  %v12563_v40 = vld [vmem:[#allocation13 + $0x1164] ss:$88 sps:$4 sm:$0xff]  }
 0x45f   :  { %v13636_v52 = vcombine.low %v7800_v44, %v7852_v50  ;;  %v13638_v54 = vcombine.low %v7807_v3, %v7859_v60  ;;  %7188 = vmatprep.mubr.bf16.mxu0 %v13514_v24  ;;  %7280 = vmatpush1.bf16.msra.mxu1 %v12510_v43  ;;  %v12558_v37 = vld [vmem:[#allocation13 + $0x10b8] ss:$88 sps:$4 sm:$0xff]   ;;  %v12564_v44 = vld [vmem:[#allocation13 + $0x1168] ss:$88 sps:$4 sm:$0xff]   ;;  %v12569_v3 = vld [vmem:[#allocation13 + $0x1214] ss:$88 sps:$4 sm:$0xff]  }
 0x460   :  { %7830 = vst.msk [vmem:[#allocation2] ss:$8 sm:$0xf] %vm13628_vm0, %v7822_v51  ;;  %7831 = vst.msk [vmem:[#allocation2] ss:$8 sm:$0x70] %vm13628_vm0, %v7822_v51  ;;  %7311 = vmatprep.mubr.bf16.mxu1 %v13514_v24  ;;  %7158 = vmatprep.subr.bf16.mxu0 %v12515_v48 }
 0x461   :  { %7833 = vst.msk [vmem:[#allocation2 + $0xe0] ss:$8 sm:$0xf] %vm13628_vm0, %v7823_v15  ;;  %7834 = vst.msk [vmem:[#allocation2 + $0xe0] ss:$8 sm:$0x70] %vm13628_vm0, %v7823_v15  ;;  %7896 = vrot.lane.b32.xlu1 %v13636_v52, %s13268_s11  ;;  %7862 = vrot.lane.b32.xlu0 %v13636_v52, %s13269_s17 }
 0x462   :  { %8451 = vst.msk [vmem:[#allocation2 + $0xab] ss:$8 sm:$0xf] %vm13628_vm0, %v7822_v51  ;;  %8452 = vst.msk [vmem:[#allocation2 + $0xab] ss:$8 sm:$0x70] %vm13628_vm0, %v7822_v51  ;;  %7281 = vmatprep.subr.bf16.mxu1 %v12518_v21  ;;  %7159 = vmatpush1.bf16.msra.mxu0 %v12513_v17 }
 0x463   :  { %8454 = vst.msk [vmem:[#allocation2 + $0x18b] ss:$8 sm:$0xf] %vm13628_vm0, %v7823_v15  ;;  %8455 = vst.msk [vmem:[#allocation2 + $0x18b] ss:$8 sm:$0x70] %vm13628_vm0, %v7823_v15  ;;  %7282 = vmatpush1.bf16.msra.mxu1 %v12516_v22  ;;  %7160 = vmatprep.subr.bf16.mxu0 %v12521_v55 }
 0x464   :  { %8457 = vst.msk [vmem:[#allocation2 + $0xac] ss:$8 sm:$0xf] %vm13628_vm0, %v7822_v51  ;;  %8458 = vst.msk [vmem:[#allocation2 + $0xac] ss:$8 sm:$0x70] %vm13628_vm0, %v7822_v51  ;;  %7283 = vmatprep.subr.bf16.mxu1 %v12524_v56 }
 0x465   :  { %8460 = vst.msk [vmem:[#allocation2 + $0x18c] ss:$8 sm:$0xf] %vm13628_vm0, %v7823_v15  ;;  %8461 = vst.msk [vmem:[#allocation2 + $0x18c] ss:$8 sm:$0x70] %vm13628_vm0, %v7823_v15  ;;  %7913 = vrot.lane.b32.xlu1 %v13636_v52, %s13270_s20  ;;  %7879 = vrot.lane.b32.xlu0 %v13636_v52, %s13271_s21 }
 0x466   :  { %8463 = vst.msk [vmem:[#allocation2 + $0xad] ss:$8 sm:$0xf] %vm13628_vm0, %v7822_v51  ;;  %8464 = vst.msk [vmem:[#allocation2 + $0xad] ss:$8 sm:$0x70] %vm13628_vm0, %v7822_v51  ;;  %7161 = vmatpush1.bf16.msra.mxu0 %v12519_v57 }
 0x467   :  { %8466 = vst.msk [vmem:[#allocation2 + $0x18d] ss:$8 sm:$0xf] %vm13628_vm0, %v7823_v15  ;;  %8467 = vst.msk [vmem:[#allocation2 + $0x18d] ss:$8 sm:$0x70] %vm13628_vm0, %v7823_v15  ;;  %7284 = vmatpush1.bf16.msra.mxu1 %v12522_v58  ;;  %7162 = vmatprep.subr.bf16.mxu0 %v12527_v59 }
 0x468   :  { %8469 = vst.msk [vmem:[#allocation2 + $0xae] ss:$8 sm:$0xf] %vm13628_vm0, %v7822_v51  ;;  %8470 = vst.msk [vmem:[#allocation2 + $0xae] ss:$8 sm:$0x70] %vm13628_vm0, %v7822_v51  ;;  %7285 = vmatprep.subr.bf16.mxu1 %v12530_v62 }
 0x469   :  { %8472 = vst.msk [vmem:[#allocation2 + $0x18e] ss:$8 sm:$0xf] %vm13628_vm0, %v7823_v15  ;;  %8473 = vst.msk [vmem:[#allocation2 + $0x18e] ss:$8 sm:$0x70] %vm13628_vm0, %v7823_v15  ;;  %7947 = vrot.lane.b32.xlu1 %v13636_v52, %s13272_s23  ;;  %7930 = vrot.lane.b32.xlu0 %v13636_v52, %s13273_s5 }
 0x46a   :  { %8475 = vst.msk [vmem:[#allocation2 + $0xaf] ss:$8 sm:$0xf] %vm13628_vm0, %v7822_v51  ;;  %8476 = vst.msk [vmem:[#allocation2 + $0xaf] ss:$8 sm:$0x70] %vm13628_vm0, %v7822_v51  ;;  %7163 = vmatpush1.bf16.msra.mxu0 %v12525_v63 }
 0x46b   :  { %8478 = vst.msk [vmem:[#allocation2 + $0x18f] ss:$8 sm:$0xf] %vm13628_vm0, %v7823_v15  ;;  %8479 = vst.msk [vmem:[#allocation2 + $0x18f] ss:$8 sm:$0x70] %vm13628_vm0, %v7823_v15  ;;  %7286 = vmatpush1.bf16.msra.mxu1 %v12528_v2  ;;  %7164 = vmatprep.subr.bf16.mxu0 %v12533_v4 }
 0x46c   :  { %7287 = vmatprep.subr.bf16.mxu1 %v12536_v32  ;;  %v12561_v43 = vld [vmem:[#allocation13 + $0x1160] ss:$88 sps:$4 sm:$0xff]   ;;  %v12572_v46 = vld [vmem:[#allocation13 + $0x121c] ss:$88 sps:$4 sm:$0xff]   ;;  %v12567_v47 = vld [vmem:[#allocation13 + $0x1210] ss:$88 sps:$4 sm:$0xff]  }
 0x46d   :  { %7981 = vrot.lane.b32.xlu1 %v13636_v52, %s13274_s15  ;;  %7964 = vrot.lane.b32.xlu0 %v13636_v52, %s13275_s24  ;;  %v12570_v48 = vld [vmem:[#allocation13 + $0x1218] ss:$88 sps:$4 sm:$0xff]   ;;  %v12575_v50 = vld [vmem:[#allocation13 + $0x12c4] ss:$88 sps:$4 sm:$0xff]   ;;  %v12576_v15 = vld [vmem:[#allocation13 + $0x12c8] ss:$88 sps:$4 sm:$0xff]  }
 0x46e   :  { %7165 = vmatpush1.bf16.msra.mxu0 %v12531_v7  ;;  %v12578_v60 = vld [vmem:[#allocation13 + $0x12cc] ss:$88 sps:$4 sm:$0xff]   ;;  %v12573_v51 = vld [vmem:[#allocation13 + $0x12c0] ss:$88 sps:$4 sm:$0xff]   ;;  %v12584_v21 = vld [vmem:[#allocation13 + $0x137c] ss:$88 sps:$4 sm:$0xff]  }
 0x46f   :  { %7288 = vmatpush1.bf16.msra.mxu1 %v12534_v8  ;;  %7166 = vmatprep.subr.bf16.mxu0 %v12539_v9  ;;  %v12581_v17 = vld [vmem:[#allocation13 + $0x1374] ss:$88 sps:$4 sm:$0xff]   ;;  %v12579_v52 = vld [vmem:[#allocation13 + $0x1370] ss:$88 sps:$4 sm:$0xff]   ;;  %v12587_v55 = vld [vmem:[#allocation13 + $0x1424] ss:$88 sps:$4 sm:$0xff]  }
 0x470   :  { %7289 = vmatprep.subr.bf16.mxu1 %v12542_v10  ;;  %v12582_v22 = vld [vmem:[#allocation13 + $0x1378] ss:$88 sps:$4 sm:$0xff]   ;;  %v12590_v56 = vld [vmem:[#allocation13 + $0x142c] ss:$88 sps:$4 sm:$0xff]   ;;  %v12588_v58 = vld [vmem:[#allocation13 + $0x1428] ss:$88 sps:$4 sm:$0xff]  }
 0x471   :  { %7881 = vrot.lane.b32.xlu1 %v13638_v54, %s13271_s21  ;;  %7864 = vrot.lane.b32.xlu0 %v13638_v54, %s13269_s17  ;;  %v12585_v57 = vld [vmem:[#allocation13 + $0x1420] ss:$88 sps:$4 sm:$0xff]   ;;  %v12593_v59 = vld [vmem:[#allocation13 + $0x14d4] ss:$88 sps:$4 sm:$0xff]   ;;  %v12591_v63 = vld [vmem:[#allocation13 + $0x14d0] ss:$88 sps:$4 sm:$0xff]  }
 0x472   :  { %7167 = vmatpush1.bf16.msra.mxu0 %v12537_v11  ;;  %v12596_v62 = vld [vmem:[#allocation13 + $0x14dc] ss:$88 sps:$4 sm:$0xff]   ;;  %v12594_v2 = vld [vmem:[#allocation13 + $0x14d8] ss:$88 sps:$4 sm:$0xff]   ;;  %v12602_v32 = vld [vmem:[#allocation13 + $0x158c] ss:$88 sps:$4 sm:$0xff]  }
 0x473   :  { %7290 = vmatpush1.bf16.msra.mxu1 %v12540_v12  ;;  %7168 = vmatprep.subr.bf16.mxu0 %v12545_v14  ;;  %v12599_v4 = vld [vmem:[#allocation13 + $0x1584] ss:$88 sps:$4 sm:$0xff]   ;;  %v12597_v7 = vld [vmem:[#allocation13 + $0x1580] ss:$88 sps:$4 sm:$0xff]   ;;  %v12605_v9 = vld [vmem:[#allocation13 + $0x1634] ss:$88 sps:$4 sm:$0xff]  }
 0x474   :  { %7291 = vmatprep.subr.bf16.mxu1 %v12548_v18  ;;  %v12600_v8 = vld [vmem:[#allocation13 + $0x1588] ss:$88 sps:$4 sm:$0xff]   ;;  %v12608_v10 = vld [vmem:[#allocation13 + $0x163c] ss:$88 sps:$4 sm:$0xff]   ;;  %v12606_v12 = vld [vmem:[#allocation13 + $0x1638] ss:$88 sps:$4 sm:$0xff]  }
 0x475   :  { %v12603_v11 = vld [vmem:[#allocation13 + $0x1630] ss:$88 sps:$4 sm:$0xff]   ;;  %v12611_v14 = vld [vmem:[#allocation13 + $0x16e4] ss:$88 sps:$4 sm:$0xff]  }
 0x476   :  { %7169 = vmatpush1.bf16.msra.mxu0 %v12543_v27  ;;  %v12614_v18 = vld [vmem:[#allocation13 + $0x16ec] ss:$88 sps:$4 sm:$0xff]   ;;  %v12609_v27 = vld [vmem:[#allocation13 + $0x16e0] ss:$88 sps:$4 sm:$0xff]  }
 0x477   :  { %7292 = vmatpush1.bf16.msra.mxu1 %v12546_v53  ;;  %7170 = vmatprep.subr.bf16.mxu0 %v12551_v29  ;;  %v12612_v53 = vld [vmem:[#allocation13 + $0x16e8] ss:$88 sps:$4 sm:$0xff]   ;;  %v12617_v29 = vld [vmem:[#allocation13 + $0x1794] ss:$88 sps:$4 sm:$0xff]  }
 0x478   :  { %7293 = vmatprep.subr.bf16.mxu1 %v12554_v30  ;;  %v12620_v30 = vld [vmem:[#allocation13 + $0x179c] ss:$88 sps:$4 sm:$0xff]  }
 0x47a   :  { %7171 = vmatpush1.bf16.msra.mxu0 %v12549_v31  ;;  %v12615_v31 = vld [vmem:[#allocation13 + $0x1790] ss:$88 sps:$4 sm:$0xff]  }
 0x47b   :  { %7294 = vmatpush1.bf16.msra.mxu1 %v12552_v33  ;;  %7172 = vmatprep.subr.bf16.mxu0 %v12557_v34  ;;  %v12618_v33 = vld [vmem:[#allocation13 + $0x1798] ss:$88 sps:$4 sm:$0xff]   ;;  %v12623_v34 = vld [vmem:[#allocation13 + $0x1844] ss:$88 sps:$4 sm:$0xff]  }
 0x47c   :  { %7295 = vmatprep.subr.bf16.mxu1 %v12560_v35  ;;  %v12626_v35 = vld [vmem:[#allocation13 + $0x184c] ss:$88 sps:$4 sm:$0xff]  }
 0x47e   :  { %7173 = vmatpush1.bf16.msra.mxu0 %v12555_v36  ;;  %v12621_v36 = vld [vmem:[#allocation13 + $0x1840] ss:$88 sps:$4 sm:$0xff]  }
 0x47f   :  { %7296 = vmatpush1.bf16.msra.mxu1 %v12558_v37  ;;  %7174 = vmatprep.subr.bf16.mxu0 %v12563_v40  ;;  %v12624_v37 = vld [vmem:[#allocation13 + $0x1848] ss:$88 sps:$4 sm:$0xff]   ;;  %v12629_v40 = vld [vmem:[#allocation13 + $0x18f4] ss:$88 sps:$4 sm:$0xff]  }
 0x480   :  { %7297 = vmatprep.subr.bf16.mxu1 %v12566_v42  ;;  %v12632_v42 = vld [vmem:[#allocation13 + $0x18fc] ss:$88 sps:$4 sm:$0xff]  }
 0x482   :  { %7175 = vmatpush1.bf16.msra.mxu0 %v12561_v43  ;;  %v12627_v43 = vld [vmem:[#allocation13 + $0x18f0] ss:$88 sps:$4 sm:$0xff]  }
 0x483   :  { %7298 = vmatpush1.bf16.msra.mxu1 %v12564_v44  ;;  %7176 = vmatprep.subr.bf16.mxu0 %v12569_v3  ;;  %v12630_v44 = vld [vmem:[#allocation13 + $0x18f8] ss:$88 sps:$4 sm:$0xff]   ;;  %v12635_v3 = vld [vmem:[#allocation13 + $0x19a4] ss:$88 sps:$4 sm:$0xff]  }
 0x484   :  { %7299 = vmatprep.subr.bf16.mxu1 %v12572_v46  ;;  %v12638_v46 = vld [vmem:[#allocation13 + $0x19ac] ss:$88 sps:$4 sm:$0xff]  }
 0x486   :  { %7177 = vmatpush1.bf16.msra.mxu0 %v12567_v47  ;;  %v12633_v47 = vld [vmem:[#allocation13 + $0x19a0] ss:$88 sps:$4 sm:$0xff]  }
 0x487   :  { %7300 = vmatpush1.bf16.msra.mxu1 %v12570_v48  ;;  %7178 = vmatprep.subr.bf16.mxu0 %v12575_v50  ;;  %v12636_v48 = vld [vmem:[#allocation13 + $0x19a8] ss:$88 sps:$4 sm:$0xff]   ;;  %v12641_v50 = vld [vmem:[#allocation13 + $0x1a54] ss:$88 sps:$4 sm:$0xff]  }
 0x488   :  { %7301 = vmatprep.subr.bf16.mxu1 %v12578_v60  ;;  %v12644_v60 = vld [vmem:[#allocation13 + $0x1a5c] ss:$88 sps:$4 sm:$0xff]  }
 0x48a   :  { %7179 = vmatpush1.bf16.msra.mxu0 %v12573_v51  ;;  %v12639_v51 = vld [vmem:[#allocation13 + $0x1a50] ss:$88 sps:$4 sm:$0xff]  }
 0x48b   :  { %7302 = vmatpush1.bf16.msra.mxu1 %v12576_v15  ;;  %7180 = vmatprep.subr.bf16.mxu0 %v12581_v17  ;;  %v12642_v15 = vld [vmem:[#allocation13 + $0x1a58] ss:$88 sps:$4 sm:$0xff]   ;;  %v12647_v17 = vld [vmem:[#allocation13 + $0x1b04] ss:$88 sps:$4 sm:$0xff]  }
 0x48c   :  { %7303 = vmatprep.subr.bf16.mxu1 %v12584_v21  ;;  %v12650_v21 = vld [vmem:[#allocation13 + $0x1b0c] ss:$88 sps:$4 sm:$0xff]  }
 0x48e   :  { %7181 = vmatpush1.bf16.msra.mxu0 %v12579_v52  ;;  %v12645_v52 = vld [vmem:[#allocation13 + $0x1b00] ss:$88 sps:$4 sm:$0xff]  }
 0x48f   :  { %7304 = vmatpush1.bf16.msra.mxu1 %v12582_v22  ;;  %7182 = vmatprep.subr.bf16.mxu0 %v12587_v55  ;;  %v12648_v22 = vld [vmem:[#allocation13 + $0x1b08] ss:$88 sps:$4 sm:$0xff]   ;;  %v12653_v55 = vld [vmem:[#allocation13 + $0x44] ss:$88 sps:$4 sm:$0xff]  }
 0x490   :  { %7305 = vmatprep.subr.bf16.mxu1 %v12590_v56  ;;  %v12656_v56 = vld [vmem:[#allocation13 + $0x4c] ss:$88 sps:$4 sm:$0xff]  }
 0x492   :  { %7183 = vmatpush1.bf16.msra.mxu0 %v12585_v57  ;;  %v12651_v57 = vld [vmem:[#allocation13 + $0x40] ss:$88 sps:$4 sm:$0xff]  }
 0x493   :  { %7306 = vmatpush1.bf16.msra.mxu1 %v12588_v58  ;;  %7184 = vmatprep.subr.bf16.mxu0 %v12593_v59  ;;  %v12654_v58 = vld [vmem:[#allocation13 + $0x48] ss:$88 sps:$4 sm:$0xff]   ;;  %v12659_v59 = vld [vmem:[#allocation13 + $0xf4] ss:$88 sps:$4 sm:$0xff]  }
 0x494   :  { %7307 = vmatprep.subr.bf16.mxu1 %v12596_v62  ;;  %v12662_v62 = vld [vmem:[#allocation13 + $0xfc] ss:$88 sps:$4 sm:$0xff]  }
 0x496   :  { %7185 = vmatpush1.bf16.msra.mxu0 %v12591_v63  ;;  %v12657_v63 = vld [vmem:[#allocation13 + $0xf0] ss:$88 sps:$4 sm:$0xff]  }
 0x497   :  { %7308 = vmatpush1.bf16.msra.mxu1 %v12594_v2  ;;  %7186 = vmatprep.subr.bf16.mxu0 %v12599_v4  ;;  %v12660_v2 = vld [vmem:[#allocation13 + $0xf8] ss:$88 sps:$4 sm:$0xff]   ;;  %v12665_v4 = vld [vmem:[#allocation13 + $0x1a4] ss:$88 sps:$4 sm:$0xff]  }
 0x498   :  { %7309 = vmatprep.subr.bf16.mxu1 %v12602_v32  ;;  %v12668_v32 = vld [vmem:[#allocation13 + $0x1ac] ss:$88 sps:$4 sm:$0xff]  }
 0x49a   :  { %7187 = vmatpush1.bf16.msra.mxu0 %v12597_v7  ;;  %v12663_v7 = vld [vmem:[#allocation13 + $0x1a0] ss:$88 sps:$4 sm:$0xff]  }
 0x49b   :  { %7310 = vmatpush1.bf16.msra.mxu1 %v12600_v8  ;;  %7197 = vmatprep.subr.bf16.mxu0 %v12605_v9  ;;  %v12666_v8 = vld [vmem:[#allocation13 + $0x1a8] ss:$88 sps:$4 sm:$0xff]   ;;  %v12671_v9 = vld [vmem:[#allocation13 + $0x254] ss:$88 sps:$4 sm:$0xff]  }
 0x49c   :  { %7320 = vmatprep.subr.bf16.mxu1 %v12608_v10  ;;  %v12674_v10 = vld [vmem:[#allocation13 + $0x25c] ss:$88 sps:$4 sm:$0xff]  }
 0x49d   :  { %7189 = vmatmul.mubr.bf16.vlgmr.msra.gmra.mrb[16].mxu0 %v13528_v45 }
 0x49e   :  { %7312 = vmatmul.mubr.bf16.vlgmr.msra.gmra.mrb[24].mxu1 %v13528_v45  ;;  %7198 = vmatpush1.bf16.msra.mxu0 %v12603_v11  ;;  %v12669_v11 = vld [vmem:[#allocation13 + $0x250] ss:$88 sps:$4 sm:$0xff]  }
 0x49f   :  { %7321 = vmatpush1.bf16.msra.mxu1 %v12606_v12  ;;  %7199 = vmatprep.subr.bf16.mxu0 %v12611_v14  ;;  %v12672_v12 = vld [vmem:[#allocation13 + $0x258] ss:$88 sps:$4 sm:$0xff]   ;;  %v12677_v14 = vld [vmem:[#allocation13 + $0x304] ss:$88 sps:$4 sm:$0xff]  }
 0x4a0   :  { %7322 = vmatprep.subr.bf16.mxu1 %v12614_v18  ;;  %7229 = vmatprep.mubr.bf16.mxu0 %v13266_v0  ;;  %v12680_v18 = vld [vmem:[#allocation13 + $0x30c] ss:$88 sps:$4 sm:$0xff]  }
 0x4a1   :  { %7352 = vmatprep.mubr.bf16.mxu1 %v13266_v0 }
 0x4a2   :  { %7200 = vmatpush1.bf16.msra.mxu0 %v12609_v27  ;;  %v12675_v27 = vld [vmem:[#allocation13 + $0x300] ss:$88 sps:$4 sm:$0xff]  }
 0x4a3   :  { %7323 = vmatpush1.bf16.msra.mxu1 %v12612_v53  ;;  %7201 = vmatprep.subr.bf16.mxu0 %v12617_v29  ;;  %v12678_v53 = vld [vmem:[#allocation13 + $0x308] ss:$88 sps:$4 sm:$0xff]   ;;  %v12683_v29 = vld [vmem:[#allocation13 + $0x3b4] ss:$88 sps:$4 sm:$0xff]  }
 0x4a4   :  { %7324 = vmatprep.subr.bf16.mxu1 %v12620_v30  ;;  %v12686_v30 = vld [vmem:[#allocation13 + $0x3bc] ss:$88 sps:$4 sm:$0xff]  }
 0x4a6   :  { %7202 = vmatpush1.bf16.msra.mxu0 %v12615_v31  ;;  %v12681_v31 = vld [vmem:[#allocation13 + $0x3b0] ss:$88 sps:$4 sm:$0xff]  }
 0x4a7   :  { %7325 = vmatpush1.bf16.msra.mxu1 %v12618_v33  ;;  %7203 = vmatprep.subr.bf16.mxu0 %v12623_v34  ;;  %v12684_v33 = vld [vmem:[#allocation13 + $0x3b8] ss:$88 sps:$4 sm:$0xff]   ;;  %v12689_v34 = vld [vmem:[#allocation13 + $0x464] ss:$88 sps:$4 sm:$0xff]  }
 0x4a8   :  { %7326 = vmatprep.subr.bf16.mxu1 %v12626_v35  ;;  %v12692_v35 = vld [vmem:[#allocation13 + $0x46c] ss:$88 sps:$4 sm:$0xff]  }
 0x4aa   :  { %7204 = vmatpush1.bf16.msra.mxu0 %v12621_v36  ;;  %v12687_v36 = vld [vmem:[#allocation13 + $0x460] ss:$88 sps:$4 sm:$0xff]  }
 0x4ab   :  { %7327 = vmatpush1.bf16.msra.mxu1 %v12624_v37  ;;  %7205 = vmatprep.subr.bf16.mxu0 %v12629_v40 }
 0x4ac   :  { %7328 = vmatprep.subr.bf16.mxu1 %v12632_v42  ;;  %v12690_v42 = vld [vmem:[#allocation13 + $0x468] ss:$88 sps:$4 sm:$0xff]  }
 0x4ae   :  { %7206 = vmatpush1.bf16.msra.mxu0 %v12627_v43  ;;  %v12695_v43 = vld [vmem:[#allocation13 + $0x514] ss:$88 sps:$4 sm:$0xff]  }
 0x4af   :  { %7329 = vmatpush1.bf16.msra.mxu1 %v12630_v44  ;;  %7207 = vmatprep.subr.bf16.mxu0 %v12635_v3 }
 0x4b0   :  { %7330 = vmatprep.subr.bf16.mxu1 %v12638_v46  ;;  %v12698_v46 = vld [vmem:[#allocation13 + $0x51c] ss:$88 sps:$4 sm:$0xff]  }
 0x4b2   :  { %7208 = vmatpush1.bf16.msra.mxu0 %v12633_v47 }
 0x4b3   :  { %7331 = vmatpush1.bf16.msra.mxu1 %v12636_v48  ;;  %7209 = vmatprep.subr.bf16.mxu0 %v12641_v50  ;;  %v12693_v50 = vld [vmem:[#allocation13 + $0x510] ss:$88 sps:$4 sm:$0xff]  }
 0x4b4   :  { %7332 = vmatprep.subr.bf16.mxu1 %v12644_v60 }
 0x4b6   :  { %7210 = vmatpush1.bf16.msra.mxu0 %v12639_v51 }
 0x4b7   :  { %7333 = vmatpush1.bf16.msra.mxu1 %v12642_v15  ;;  %7211 = vmatprep.subr.bf16.mxu0 %v12647_v17  ;;  %v12696_v15 = vld [vmem:[#allocation13 + $0x518] ss:$88 sps:$4 sm:$0xff]   ;;  %v12701_v17 = vld [vmem:[#allocation13 + $0x5c4] ss:$88 sps:$4 sm:$0xff]  }
 0x4b8   :  { %7334 = vmatprep.subr.bf16.mxu1 %v12650_v21 }
 0x4ba   :  { %7212 = vmatpush1.bf16.msra.mxu0 %v12645_v52 }
 0x4bb   :  { %7335 = vmatpush1.bf16.msra.mxu1 %v12648_v22  ;;  %7361 = vmatprep.subr.bf16.mxu0 %v12653_v55  ;;  %v12704_v22 = vld [vmem:[#allocation13 + $0x5cc] ss:$88 sps:$4 sm:$0xff]  }
 0x4bc   :  { %7484 = vmatprep.subr.bf16.mxu1 %v12656_v56 }
 0x4bd   :  { %7230 = vmatmul.mubr.bf16.vlgmr.msra.gmra.mrb[16].mxu0 %v13540_v28 }
 0x4be   :  { %7353 = vmatmul.mubr.bf16.vlgmr.msra.gmra.mrb[24].mxu1 %v13540_v28  ;;  %7362 = vmatpush1.bf16.msra.mxu0 %v12651_v57  ;;  %v12699_v57 = vld [vmem:[#allocation13 + $0x5c0] ss:$88 sps:$4 sm:$0xff]  }
 0x4bf   :  { %7393 = vmatprep.mubr.bf16.mxu0 %v13508_v16  ;;  %7485 = vmatpush1.bf16.msra.mxu1 %v12654_v58 }
 0x4c0   :  { %7516 = vmatprep.mubr.bf16.mxu1 %v13508_v16  ;;  %7363 = vmatprep.subr.bf16.mxu0 %v12659_v59 }
 0x4c1   :  { %7486 = vmatprep.subr.bf16.mxu1 %v12662_v62  ;;  %v12702_v62 = vld [vmem:[#allocation13 + $0x5c8] ss:$88 sps:$4 sm:$0xff]  }
 0x4c2   :  { %7364 = vmatpush1.bf16.msra.mxu0 %v12657_v63  ;;  %v12707_v63 = vld [vmem:[#allocation13 + $0x674] ss:$88 sps:$4 sm:$0xff]  }
 0x4c3   :  { %7487 = vmatpush1.bf16.msra.mxu1 %v12660_v2  ;;  %7365 = vmatprep.subr.bf16.mxu0 %v12665_v4 }
 0x4c4   :  { %7488 = vmatprep.subr.bf16.mxu1 %v12668_v32  ;;  %v12710_v32 = vld [vmem:[#allocation13 + $0x67c] ss:$88 sps:$4 sm:$0xff]  }
 0x4c6   :  { %7366 = vmatpush1.bf16.msra.mxu0 %v12663_v7 }
 0x4c7   :  { %7489 = vmatpush1.bf16.msra.mxu1 %v12666_v8  ;;  %7367 = vmatprep.subr.bf16.mxu0 %v12671_v9  ;;  %v12705_v9 = vld [vmem:[#allocation13 + $0x670] ss:$88 sps:$4 sm:$0xff]  }
 0x4c8   :  { %7490 = vmatprep.subr.bf16.mxu1 %v12674_v10 }
 0x4ca   :  { %7368 = vmatpush1.bf16.msra.mxu0 %v12669_v11 }
 0x4cb   :  { %7491 = vmatpush1.bf16.msra.mxu1 %v12672_v12  ;;  %7369 = vmatprep.subr.bf16.mxu0 %v12677_v14  ;;  %v12708_v12 = vld [vmem:[#allocation13 + $0x678] ss:$88 sps:$4 sm:$0xff]   ;;  %v12713_v14 = vld [vmem:[#allocation13 + $0x724] ss:$88 sps:$4 sm:$0xff]  }
 0x4cc   :  { %7492 = vmatprep.subr.bf16.mxu1 %v12680_v18 }
 0x4ce   :  { %7370 = vmatpush1.bf16.msra.mxu0 %v12675_v27 }
 0x4cf   :  { %7493 = vmatpush1.bf16.msra.mxu1 %v12678_v53  ;;  %7371 = vmatprep.subr.bf16.mxu0 %v12683_v29  ;;  %v12716_v53 = vld [vmem:[#allocation13 + $0x72c] ss:$88 sps:$4 sm:$0xff]  }
 0x4d0   :  { %7494 = vmatprep.subr.bf16.mxu1 %v12686_v30 }
 0x4d2   :  { %7372 = vmatpush1.bf16.msra.mxu0 %v12681_v31  ;;  %v12711_v31 = vld [vmem:[#allocation13 + $0x720] ss:$88 sps:$4 sm:$0xff]  }
 0x4d3   :  { %7495 = vmatpush1.bf16.msra.mxu1 %v12684_v33  ;;  %v7897_v37 = vpop.permute.xlu1 %7896  ;;  %v7863_v40 = vpop.permute.xlu0 %7862  ;;  %7373 = vmatprep.subr.bf16.mxu0 %v12689_v34 }
 0x4d4   :  { %v7900_v44 = vrot.slane %v7897_v37, 1  ;;  %v7866_v3 = vrot.slane %v7863_v40, 1  ;;  %7496 = vmatprep.subr.bf16.mxu1 %v12692_v35  ;;  %v12714_v35 = vld [vmem:[#allocation13 + $0x728] ss:$88 sps:$4 sm:$0xff]  }
 0x4d6   :  { %v7903_v47 = vsel %vm7902_vm1, %v7897_v37, %v7900_v44  ;;  %v7869_v48 = vsel %vm7868_vm2, %v7863_v40, %v7866_v3  ;;  %7374 = vmatpush1.bf16.msra.mxu0 %v12687_v36  ;;  %v12719_v36 = vld [vmem:[#allocation13 + $0x7d4] ss:$88 sps:$4 sm:$0xff]   ;;  %v12717_v3 = vld [vmem:[#allocation13 + $0x7d0] ss:$88 sps:$4 sm:$0xff]  }
 0x4d7   :  { %7908 = vst.msk [vmem:[#allocation2 + $0x3] ss:$8 sm:$0xf] %vm13628_vm0, %v7903_v47  ;;  %7909 = vst.msk [vmem:[#allocation2 + $0x3] ss:$8 sm:$0x70] %vm13628_vm0, %v7903_v47  ;;  %7497 = vmatpush1.bf16.msra.mxu1 %v12690_v42  ;;  %v7914_v60 = vpop.permute.xlu1 %7913  ;;  %v7880_v51 = vpop.permute.xlu0 %7879  ;;  %7375 = vmatprep.subr.bf16.mxu0 %v12695_v43 }
 0x4d8   :  { %7874 = vst.msk [vmem:[#allocation2 + $0x1] ss:$8 sm:$0xf] %vm13628_vm0, %v7869_v48  ;;  %7875 = vst.msk [vmem:[#allocation2 + $0x1] ss:$8 sm:$0x70] %vm13628_vm0, %v7869_v48  ;;  %7498 = vmatprep.subr.bf16.mxu1 %v12698_v46 }
 0x4d9   :  { %v7917_v21 = vrot.slane %v7914_v60, 1  ;;  %v7883_v52 = vrot.slane %v7880_v51, 1  ;;  %v12722_v42 = vld [vmem:[#allocation13 + $0x7dc] ss:$88 sps:$4 sm:$0xff]   ;;  %v12720_v46 = vld [vmem:[#allocation13 + $0x7d8] ss:$88 sps:$4 sm:$0xff]  }
 0x4da   :  { %7376 = vmatpush1.bf16.msra.mxu0 %v12693_v50  ;;  %v12725_v47 = vld [vmem:[#allocation13 + $0x884] ss:$88 sps:$4 sm:$0xff]   ;;  %v12723_v50 = vld [vmem:[#allocation13 + $0x880] ss:$88 sps:$4 sm:$0xff]  }
 0x4db   :  { %v7920_v55 = vsel %vm7919_vm3, %v7914_v60, %v7917_v21  ;;  %v7886_v56 = vsel %vm7885_vm4, %v7880_v51, %v7883_v52  ;;  %7499 = vmatpush1.bf16.msra.mxu1 %v12696_v15  ;;  %v7948_v58 = vpop.permute.xlu1 %7947  ;;  %v7931_v59 = vpop.permute.xlu0 %7930  ;;  %7377 = vmatprep.subr.bf16.mxu0 %v12701_v17  ;;  %v12728_v48 = vld [vmem:[#allocation13 + $0x88c] ss:$88 sps:$4 sm:$0xff]   ;;  %v12726_v51 = vld [vmem:[#allocation13 + $0x888] ss:$88 sps:$4 sm:$0xff]   ;;  %v12734_v17 = vld [vmem:[#allocation13 + $0x93c] ss:$88 sps:$4 sm:$0xff]  }
 0x4dc   :  { %7925 = vst.msk [vmem:[#allocation2 + $0x4] ss:$8 sm:$0xf] %vm13628_vm0, %v7920_v55  ;;  %7926 = vst.msk [vmem:[#allocation2 + $0x4] ss:$8 sm:$0x70] %vm13628_vm0, %v7920_v55  ;;  %7500 = vmatprep.subr.bf16.mxu1 %v12704_v22 }
 0x4dd   :  { %7891 = vst.msk [vmem:[#allocation2 + $0x2] ss:$8 sm:$0xf] %vm13628_vm0, %v7886_v56  ;;  %7892 = vst.msk [vmem:[#allocation2 + $0x2] ss:$8 sm:$0x70] %vm13628_vm0, %v7886_v56 }
 0x4de   :  { %v7951_v2 = vrot.slane %v7948_v58, 1  ;;  %v7934_v4 = vrot.slane %v7931_v59, 1  ;;  %7378 = vmatpush1.bf16.msra.mxu0 %v12699_v57  ;;  %v13768_v60 = vld [vmem:[#allocation15 + $0x8] sm:$0xff]  ;;  %v12732_v56 = vld [vmem:[#allocation13 + $0x938] ss:$88 sps:$4 sm:$0xff]  }
 0x4df   :  { %7501 = vmatpush1.bf16.msra.mxu1 %v12702_v62  ;;  %v7982_v10 = vpop.permute.xlu1 %7981  ;;  %v7965_v11 = vpop.permute.xlu0 %7964  ;;  %7379 = vmatprep.subr.bf16.mxu0 %v12707_v63  ;;  %v12731_v15 = vld [vmem:[#allocation13 + $0x934] ss:$88 sps:$4 sm:$0xff]   ;;  %v1902_v21 = vrot.slane %v13768_v60, %v13483_v25  ;;  %v1910_v52 = vrot.slane %v13768_v60, %v13523_v20  ;;  %v1906_v22 = vrot.slane %v13768_v60, %v13486_v26  ;;  %v12729_v55 = vld [vmem:[#allocation13 + $0x930] ss:$88 sps:$4 sm:$0xff]   ;;  %v12737_v57 = vld [vmem:[#allocation13 + $0x9e4] ss:$88 sps:$4 sm:$0xff]  }
 0x4e0   :  { %v7954_v7 = vsel %vm7953_vm5, %v7948_v58, %v7951_v2  ;;  %v7937_v8 = vsel %vm7936_vm6, %v7931_v59, %v7934_v4  ;;  %v7985_v18 = vrot.slane %v7982_v10, 1  ;;  %v7968_v27 = vrot.slane %v7965_v11, 1  ;;  %7502 = vmatprep.subr.bf16.mxu1 %v12710_v32  ;;  %v12740_v59 = vld [vmem:[#allocation13 + $0x9ec] ss:$88 sps:$4 sm:$0xff]  }
 0x4e1   :  { %7959 = vst.msk [vmem:[#allocation2 + $0x6] ss:$8 sm:$0xf] %vm13628_vm0, %v7954_v7  ;;  %7960 = vst.msk [vmem:[#allocation2 + $0x6] ss:$8 sm:$0x70] %vm13628_vm0, %v7954_v7 }
 0x4e2   :  { %7942 = vst.msk [vmem:[#allocation2 + $0x5] ss:$8 sm:$0xf] %vm13628_vm0, %v7937_v8  ;;  %7943 = vst.msk [vmem:[#allocation2 + $0x5] ss:$8 sm:$0x70] %vm13628_vm0, %v7937_v8  ;;  %v7988_v29 = vsel %vm7987_vm7, %v7982_v10, %v7985_v18  ;;  %v7971_v30 = vsel %vm7970_vm8, %v7965_v11, %v7968_v27  ;;  %7380 = vmatpush1.bf16.msra.mxu0 %v12705_v9 }
 0x4e3   :  { %7993 = vst.msk [vmem:[#allocation2 + $0x38] ss:$8 sm:$0xf] %vm13628_vm0, %v7988_v29  ;;  %7994 = vst.msk [vmem:[#allocation2 + $0x38] ss:$8 sm:$0x70] %vm13628_vm0, %v7988_v29  ;;  %7503 = vmatpush1.bf16.msra.mxu1 %v12708_v12  ;;  %v7882_v33 = vpop.permute.xlu1 %7881  ;;  %v7865_v34 = vpop.permute.xlu0 %7864  ;;  %7381 = vmatprep.subr.bf16.mxu0 %v12713_v14 }
 0x4e4   :  { %7976 = vst.msk [vmem:[#allocation2 + $0x7] ss:$8 sm:$0xf] %vm13628_vm0, %v7971_v30  ;;  %7977 = vst.msk [vmem:[#allocation2 + $0x7] ss:$8 sm:$0x70] %vm13628_vm0, %v7971_v30  ;;  %7504 = vmatprep.subr.bf16.mxu1 %v12716_v53 }
 0x4e5   :  { %v7884_v37 = vrot.slane %v7882_v33, 1  ;;  %v7867_v40 = vrot.slane %v7865_v34, 1  ;;  %v12735_v9 = vld [vmem:[#allocation13 + $0x9e0] ss:$88 sps:$4 sm:$0xff]   ;;  %v12743_v18 = vld [vmem:[#allocation13 + $0xa94] ss:$88 sps:$4 sm:$0xff]  }
 0x4e6   :  { %7382 = vmatpush1.bf16.msra.mxu0 %v12711_v31  ;;  %v12738_v10 = vld [vmem:[#allocation13 + $0x9e8] ss:$88 sps:$4 sm:$0xff]   ;;  %v12746_v30 = vld [vmem:[#allocation13 + $0xa9c] ss:$88 sps:$4 sm:$0xff]  }
 0x4e7   :  { %v7887_v43 = vsel %vm7885_vm4, %v7882_v33, %v7884_v37  ;;  %v7870_v44 = vsel %vm7868_vm2, %v7865_v34, %v7867_v40  ;;  %7505 = vmatpush1.bf16.msra.mxu1 %v12714_v35  ;;  %7383 = vmatprep.subr.bf16.mxu0 %v12719_v36  ;;  %v12741_v34 = vld [vmem:[#allocation13 + $0xa90] ss:$88 sps:$4 sm:$0xff]   ;;  %v12749_v37 = vld [vmem:[#allocation13 + $0xb44] ss:$88 sps:$4 sm:$0xff]   ;;  %vm14928_vm2 = vcmask 523264   ;;  %vm14926_vm4 = vcmask 506880  }
 0x4e8   :  { %7894 = vst.msk [vmem:[#allocation2 + $0xe2] ss:$8 sm:$0xf] %vm13628_vm0, %v7887_v43  ;;  %7895 = vst.msk [vmem:[#allocation2 + $0xe2] ss:$8 sm:$0x70] %vm13628_vm0, %v7887_v43  ;;  %7506 = vmatprep.subr.bf16.mxu1 %v12722_v42 }
 0x4e9   :  { %7877 = vst.msk [vmem:[#allocation2 + $0xe1] ss:$8 sm:$0xf] %vm13628_vm0, %v7870_v44  ;;  %7878 = vst.msk [vmem:[#allocation2 + $0xe1] ss:$8 sm:$0x70] %vm13628_vm0, %v7870_v44 }
 0x4ea   :  { %7384 = vmatpush1.bf16.msra.mxu0 %v12717_v3  ;;  %v12744_v36 = vld [vmem:[#allocation13 + $0xa98] ss:$88 sps:$4 sm:$0xff]   ;;  %v12752_v42 = vld [vmem:[#allocation13 + $0xb4c] ss:$88 sps:$4 sm:$0xff]   ;;  %v12750_v44 = vld [vmem:[#allocation13 + $0xb48] ss:$88 sps:$4 sm:$0xff]  }
 0x4eb   :  { %7507 = vmatpush1.bf16.msra.mxu1 %v12720_v46  ;;  %7385 = vmatprep.subr.bf16.mxu0 %v12725_v47  ;;  %v12755_v3 = vld [vmem:[#allocation13 + $0xbf4] ss:$88 sps:$4 sm:$0xff]   ;;  %v12753_v47 = vld [vmem:[#allocation13 + $0xbf0] ss:$88 sps:$4 sm:$0xff]  }
 0x4ec   :  { %7508 = vmatprep.subr.bf16.mxu1 %v12728_v48  ;;  %v12758_v46 = vld [vmem:[#allocation13 + $0xbfc] ss:$88 sps:$4 sm:$0xff]   ;;  %v12756_v48 = vld [vmem:[#allocation13 + $0xbf8] ss:$88 sps:$4 sm:$0xff]  }
 0x4ee   :  { %7386 = vmatpush1.bf16.msra.mxu0 %v12723_v50  ;;  %v12761_v50 = vld [vmem:[#allocation13 + $0xca4] ss:$88 sps:$4 sm:$0xff]  }
 0x4ef   :  { %7509 = vmatpush1.bf16.msra.mxu1 %v12726_v51  ;;  %7387 = vmatprep.subr.bf16.mxu0 %v12731_v15  ;;  %v12764_v51 = vld [vmem:[#allocation13 + $0xcac] ss:$88 sps:$4 sm:$0xff]   ;;  %v12759_v15 = vld [vmem:[#allocation13 + $0xca0] ss:$88 sps:$4 sm:$0xff]  }
 0x4f0   :  { %v6985_v58 = vpop.f32.mrb[12].mxu0  ;;  %7510 = vmatprep.subr.bf16.mxu1 %v12734_v17  ;;  %v12762_v17 = vld [vmem:[#allocation13 + $0xca8] ss:$88 sps:$4 sm:$0xff]  }
 0x4f1   :  { %v11406_v62 = vadd.f32 %v6985_v58, %v1902_v21  ;;  %v7108_v63 = vpop.f32.mrb[20].mxu1  ;;  %v6987_v2 = vpop.f32.mrb[13].mxu0  ;;  %v12767_v21 = vld [vmem:[#allocation13 + $0xd54] ss:$88 sps:$4 sm:$0xff]   ;;  %v12771_v58 = vld [vmem:[#allocation13 + $0xe00] ss:$88 sps:$4 sm:$0xff]  }
 0x4f2   :  { %v11408_v4 = vadd.f32 %v7108_v63, %v1910_v52  ;;  %v11407_v32 = vadd.f32 %v6987_v2, %v1906_v22  ;;  %v13776_v7 = vpop.f32.mrb[21].mxu1  ;;  %v6989_v8 = vpop.f32.mrb[14].mxu0  ;;  %7388 = vmatpush1.bf16.msra.mxu0 %v12729_v55  ;;  %v12770_v52 = vld [vmem:[#allocation13 + $0xd5c] ss:$88 sps:$4 sm:$0xff]   ;;  %v12765_v22 = vld [vmem:[#allocation13 + $0xd50] ss:$88 sps:$4 sm:$0xff]  }
 0x4f3   :  { %v7738_v11 = vmax.f32 %v11406_v62, 0.0  ;;  %v7112_v12 = vpop.f32.mrb[22].mxu1  ;;  %7511 = vmatpush1.bf16.msra.mxu1 %v12732_v56  ;;  %v6990_v14 = vpop.f32.mrb[15].mxu0  ;;  %7389 = vmatprep.subr.bf16.mxu0 %v12737_v57  ;;  %v12768_v55 = vld [vmem:[#allocation13 + $0xd58] ss:$88 sps:$4 sm:$0xff]  }
 0x4f4   :  { %v7740_v27 = vmax.f32 %v11408_v4, 0.0  ;;  %v7739_v53 = vmax.f32 %v11407_v32, 0.0  ;;  %v7113_v29 = vpop.f32.mrb[23].mxu1  ;;  %7512 = vmatprep.subr.bf16.mxu1 %v12740_v59  ;;  %v12773_v56 = vld [vmem:[#allocation13 + $0xe04] ss:$88 sps:$4 sm:$0xff]  }
 0x4f5   :  { %v8005_v31 = vcombine.low %v7737_v13, %v7738_v11  ;;  %v12747_v13 = vld [vmem:[#allocation13 + $0xb40] ss:$88 sps:$4 sm:$0xff]   ;;  %v12776_v57 = vld [vmem:[#allocation13 + $0xe0c] ss:$88 sps:$4 sm:$0xff]   ;;  %v12782_v63 = vld [vmem:[#allocation13 + $0xebc] ss:$88 sps:$4 sm:$0xff]  }
 0x4f6   :  { %v8006_v33 = vcombine.low %v7739_v53, %v7740_v27  ;;  %7390 = vmatpush1.bf16.msra.mxu0 %v12735_v9  ;;  %v12774_v59 = vld [vmem:[#allocation13 + $0xe08] ss:$88 sps:$4 sm:$0xff]   ;;  %v12779_v62 = vld [vmem:[#allocation13 + $0xeb4] ss:$88 sps:$4 sm:$0xff]   ;;  %v12780_v4 = vld [vmem:[#allocation13 + $0xeb8] ss:$88 sps:$4 sm:$0xff]  }
 0x4f7   :  { %v13781_v35 = vrot.slane %v8005_v31, %v13569_v6  ;;  %7513 = vmatpush1.bf16.msra.mxu1 %v12738_v10  ;;  %7391 = vmatprep.subr.bf16.mxu0 %v12743_v18  ;;  %v12777_v2 = vld [vmem:[#allocation13 + $0xeb0] ss:$88 sps:$4 sm:$0xff]   ;;  %v12785_v32 = vld [vmem:[#allocation13 + $0xf64] ss:$88 sps:$4 sm:$0xff]   ;;  %v12783_v9 = vld [vmem:[#allocation13 + $0xf60] ss:$88 sps:$4 sm:$0xff]  }
 0x4f8   :  { %v13784_v40 = vrot.slane %v8006_v33, %v13569_v6  ;;  %7514 = vmatprep.subr.bf16.mxu1 %v12746_v30  ;;  %v12788_v8 = vld [vmem:[#allocation13 + $0xf6c] ss:$88 sps:$4 sm:$0xff]   ;;  %v12786_v10 = vld [vmem:[#allocation13 + $0xf68] ss:$88 sps:$4 sm:$0xff]   ;;  %v12794_v12 = vld [vmem:[#allocation13 + $0x101c] ss:$88 sps:$4 sm:$0xff]  }
 0x4f9   :  { %v12791_v11 = vld [vmem:[#allocation13 + $0x1014] ss:$88 sps:$4 sm:$0xff]   ;;  %v12789_v14 = vld [vmem:[#allocation13 + $0x1010] ss:$88 sps:$4 sm:$0xff]   ;;  %v12797_v27 = vld [vmem:[#allocation13 + $0x10c4] ss:$88 sps:$4 sm:$0xff]  }
 0x4fa   :  { %v8037_v43 = vcombine.low %v13781_v35, %v13784_v40  ;;  %v8038_v5 = vcombine.high %v13781_v35, %v13784_v40  ;;  %7392 = vmatpush1.bf16.msra.mxu0 %v12741_v34  ;;  %v12792_v18 = vld [vmem:[#allocation13 + $0x1018] ss:$88 sps:$4 sm:$0xff]   ;;  %v12800_v53 = vld [vmem:[#allocation13 + $0x10cc] ss:$88 sps:$4 sm:$0xff]   ;;  %v12798_v30 = vld [vmem:[#allocation13 + $0x10c8] ss:$88 sps:$4 sm:$0xff]  }
 0x4fb   :  { %7515 = vmatpush1.bf16.msra.mxu1 %v12744_v36  ;;  %7402 = vmatprep.subr.bf16.mxu0 %v12749_v37  ;;  %v12795_v29 = vld [vmem:[#allocation13 + $0x10c0] ss:$88 sps:$4 sm:$0xff]   ;;  %v12803_v31 = vld [vmem:[#allocation13 + $0x1174] ss:$88 sps:$4 sm:$0xff]   ;;  %v12801_v34 = vld [vmem:[#allocation13 + $0x1170] ss:$88 sps:$4 sm:$0xff]  }
 0x4fc   :  { %7525 = vmatprep.subr.bf16.mxu1 %v12752_v42  ;;  %v12806_v33 = vld [vmem:[#allocation13 + $0x117c] ss:$88 sps:$4 sm:$0xff]   ;;  %v12804_v36 = vld [vmem:[#allocation13 + $0x1178] ss:$88 sps:$4 sm:$0xff]   ;;  %v12812_v42 = vld [vmem:[#allocation13 + $0x122c] ss:$88 sps:$4 sm:$0xff]  }
 0x4fd   :  { %7394 = vmatmul.mubr.bf16.vlgmr.msra.gmra.mrb[20].mxu0 %v13510_v19  ;;  %v12809_v37 = vld [vmem:[#allocation13 + $0x1224] ss:$88 sps:$4 sm:$0xff]   ;;  %v12945_v35 = vld [vmem:[#allocation13 + $0xcb0] ss:$88 sps:$4 sm:$0xff]  }
 0x4fe   :  { %7517 = vmatmul.mubr.bf16.vlgmr.msra.gmra.mrb[28].mxu1 %v13510_v19  ;;  %7403 = vmatpush1.bf16.msra.mxu0 %v12747_v13  ;;  %v12807_v13 = vld [vmem:[#allocation13 + $0x1220] ss:$88 sps:$4 sm:$0xff]   ;;  %v12950_v40 = vld [vmem:[#allocation13 + $0xd64] ss:$88 sps:$4 sm:$0xff]  }
 0x4ff   :  { %7434 = vmatprep.mubr.bf16.mxu0 %v13514_v24  ;;  %7526 = vmatpush1.bf16.msra.mxu1 %v12750_v44  ;;  %v12810_v44 = vld [vmem:[#allocation13 + $0x1228] ss:$88 sps:$4 sm:$0xff]  }
 0x500   :  { %7557 = vmatprep.mubr.bf16.mxu1 %v13514_v24  ;;  %7404 = vmatprep.subr.bf16.mxu0 %v12755_v3  ;;  %v12815_v3 = vld [vmem:[#allocation13 + $0x12d4] ss:$88 sps:$4 sm:$0xff]  }
 0x501   :  { %7527 = vmatprep.subr.bf16.mxu1 %v12758_v46  ;;  %v12818_v46 = vld [vmem:[#allocation13 + $0x12dc] ss:$88 sps:$4 sm:$0xff]  }
 0x502   :  { %7405 = vmatpush1.bf16.msra.mxu0 %v12753_v47  ;;  %v12813_v47 = vld [vmem:[#allocation13 + $0x12d0] ss:$88 sps:$4 sm:$0xff]  }
 0x503   :  { %7528 = vmatpush1.bf16.msra.mxu1 %v12756_v48  ;;  %7406 = vmatprep.subr.bf16.mxu0 %v12761_v50  ;;  %v12816_v48 = vld [vmem:[#allocation13 + $0x12d8] ss:$88 sps:$4 sm:$0xff]   ;;  %v12821_v50 = vld [vmem:[#allocation13 + $0x1384] ss:$88 sps:$4 sm:$0xff]  }
 0x504   :  { %7529 = vmatprep.subr.bf16.mxu1 %v12764_v51  ;;  %v12824_v51 = vld [vmem:[#allocation13 + $0x138c] ss:$88 sps:$4 sm:$0xff]  }
 0x506   :  { %7407 = vmatpush1.bf16.msra.mxu0 %v12759_v15  ;;  %v12819_v15 = vld [vmem:[#allocation13 + $0x1380] ss:$88 sps:$4 sm:$0xff]  }
 0x507   :  { %7530 = vmatpush1.bf16.msra.mxu1 %v12762_v17  ;;  %7408 = vmatprep.subr.bf16.mxu0 %v12767_v21  ;;  %v12822_v17 = vld [vmem:[#allocation13 + $0x1388] ss:$88 sps:$4 sm:$0xff]   ;;  %v12827_v21 = vld [vmem:[#allocation13 + $0x1434] ss:$88 sps:$4 sm:$0xff]  }
 0x508   :  { %7531 = vmatprep.subr.bf16.mxu1 %v12770_v52  ;;  %v12830_v52 = vld [vmem:[#allocation13 + $0x143c] ss:$88 sps:$4 sm:$0xff]  }
 0x50a   :  { %7409 = vmatpush1.bf16.msra.mxu0 %v12765_v22  ;;  %v12825_v22 = vld [vmem:[#allocation13 + $0x1430] ss:$88 sps:$4 sm:$0xff]  }
 0x50b   :  { %7532 = vmatpush1.bf16.msra.mxu1 %v12768_v55  ;;  %7410 = vmatprep.subr.bf16.mxu0 %v12773_v56  ;;  %v12828_v55 = vld [vmem:[#allocation13 + $0x1438] ss:$88 sps:$4 sm:$0xff]   ;;  %v12833_v56 = vld [vmem:[#allocation13 + $0x14e4] ss:$88 sps:$4 sm:$0xff]  }
 0x50c   :  { %7533 = vmatprep.subr.bf16.mxu1 %v12776_v57  ;;  %v12836_v57 = vld [vmem:[#allocation13 + $0x14ec] ss:$88 sps:$4 sm:$0xff]  }
 0x50e   :  { %7411 = vmatpush1.bf16.msra.mxu0 %v12771_v58  ;;  %v12831_v58 = vld [vmem:[#allocation13 + $0x14e0] ss:$88 sps:$4 sm:$0xff]  }
 0x50f   :  { %7534 = vmatpush1.bf16.msra.mxu1 %v12774_v59  ;;  %7412 = vmatprep.subr.bf16.mxu0 %v12779_v62  ;;  %v12834_v59 = vld [vmem:[#allocation13 + $0x14e8] ss:$88 sps:$4 sm:$0xff]   ;;  %v12839_v62 = vld [vmem:[#allocation13 + $0x1594] ss:$88 sps:$4 sm:$0xff]  }
 0x510   :  { %7535 = vmatprep.subr.bf16.mxu1 %v12782_v63  ;;  %v12842_v63 = vld [vmem:[#allocation13 + $0x159c] ss:$88 sps:$4 sm:$0xff]  }
 0x512   :  { %7413 = vmatpush1.bf16.msra.mxu0 %v12777_v2  ;;  %v12837_v2 = vld [vmem:[#allocation13 + $0x1590] ss:$88 sps:$4 sm:$0xff]  }
 0x513   :  { %7536 = vmatpush1.bf16.msra.mxu1 %v12780_v4  ;;  %7414 = vmatprep.subr.bf16.mxu0 %v12785_v32  ;;  %v12840_v4 = vld [vmem:[#allocation13 + $0x1598] ss:$88 sps:$4 sm:$0xff]   ;;  %v12845_v32 = vld [vmem:[#allocation13 + $0x1644] ss:$88 sps:$4 sm:$0xff]  }
 0x514   :  { %7537 = vmatprep.subr.bf16.mxu1 %v12788_v8  ;;  %v12848_v8 = vld [vmem:[#allocation13 + $0x164c] ss:$88 sps:$4 sm:$0xff]  }
 0x516   :  { %7415 = vmatpush1.bf16.msra.mxu0 %v12783_v9  ;;  %v12843_v9 = vld [vmem:[#allocation13 + $0x1640] ss:$88 sps:$4 sm:$0xff]  }
 0x517   :  { %7538 = vmatpush1.bf16.msra.mxu1 %v12786_v10  ;;  %7416 = vmatprep.subr.bf16.mxu0 %v12791_v11  ;;  %v12846_v10 = vld [vmem:[#allocation13 + $0x1648] ss:$88 sps:$4 sm:$0xff]   ;;  %v12851_v11 = vld [vmem:[#allocation13 + $0x16f4] ss:$88 sps:$4 sm:$0xff]  }
 0x518   :  { %7539 = vmatprep.subr.bf16.mxu1 %v12794_v12  ;;  %v12854_v12 = vld [vmem:[#allocation13 + $0x16fc] ss:$88 sps:$4 sm:$0xff]  }
 0x51a   :  { %7417 = vmatpush1.bf16.msra.mxu0 %v12789_v14  ;;  %v12849_v14 = vld [vmem:[#allocation13 + $0x16f0] ss:$88 sps:$4 sm:$0xff]  }
 0x51b   :  { %7540 = vmatpush1.bf16.msra.mxu1 %v12792_v18  ;;  %7418 = vmatprep.subr.bf16.mxu0 %v12797_v27  ;;  %v12852_v18 = vld [vmem:[#allocation13 + $0x16f8] ss:$88 sps:$4 sm:$0xff]   ;;  %v12857_v27 = vld [vmem:[#allocation13 + $0x17a4] ss:$88 sps:$4 sm:$0xff]  }
 0x51c   :  { %7541 = vmatprep.subr.bf16.mxu1 %v12800_v53  ;;  %v12860_v53 = vld [vmem:[#allocation13 + $0x17ac] ss:$88 sps:$4 sm:$0xff]  }
 0x51e   :  { %7419 = vmatpush1.bf16.msra.mxu0 %v12795_v29  ;;  %v12855_v29 = vld [vmem:[#allocation13 + $0x17a0] ss:$88 sps:$4 sm:$0xff]  }
 0x51f   :  { %7542 = vmatpush1.bf16.msra.mxu1 %v12798_v30  ;;  %7420 = vmatprep.subr.bf16.mxu0 %v12803_v31  ;;  %v12858_v30 = vld [vmem:[#allocation13 + $0x17a8] ss:$88 sps:$4 sm:$0xff]   ;;  %v12863_v31 = vld [vmem:[#allocation13 + $0x1854] ss:$88 sps:$4 sm:$0xff]  }
 0x520   :  { %7543 = vmatprep.subr.bf16.mxu1 %v12806_v33  ;;  %v12866_v33 = vld [vmem:[#allocation13 + $0x185c] ss:$88 sps:$4 sm:$0xff]  }
 0x522   :  { %7421 = vmatpush1.bf16.msra.mxu0 %v12801_v34  ;;  %v12861_v34 = vld [vmem:[#allocation13 + $0x1850] ss:$88 sps:$4 sm:$0xff]  }
 0x523   :  { %7544 = vmatpush1.bf16.msra.mxu1 %v12804_v36  ;;  %7422 = vmatprep.subr.bf16.mxu0 %v12809_v37  ;;  %v12864_v36 = vld [vmem:[#allocation13 + $0x1858] ss:$88 sps:$4 sm:$0xff]   ;;  %v12869_v37 = vld [vmem:[#allocation13 + $0x1904] ss:$88 sps:$4 sm:$0xff]  }
 0x524   :  { %7545 = vmatprep.subr.bf16.mxu1 %v12812_v42  ;;  %v12872_v42 = vld [vmem:[#allocation13 + $0x190c] ss:$88 sps:$4 sm:$0xff]  }
 0x526   :  { %7423 = vmatpush1.bf16.msra.mxu0 %v12807_v13  ;;  %v12867_v13 = vld [vmem:[#allocation13 + $0x1900] ss:$88 sps:$4 sm:$0xff]  }
 0x527   :  { %7546 = vmatpush1.bf16.msra.mxu1 %v12810_v44  ;;  %7424 = vmatprep.subr.bf16.mxu0 %v12815_v3  ;;  %v12870_v44 = vld [vmem:[#allocation13 + $0x1908] ss:$88 sps:$4 sm:$0xff]   ;;  %v12875_v3 = vld [vmem:[#allocation13 + $0x19b4] ss:$88 sps:$4 sm:$0xff]  }
 0x528   :  { %7547 = vmatprep.subr.bf16.mxu1 %v12818_v46  ;;  %v12878_v46 = vld [vmem:[#allocation13 + $0x19bc] ss:$88 sps:$4 sm:$0xff]  }
 0x52a   :  { %7425 = vmatpush1.bf16.msra.mxu0 %v12813_v47  ;;  %v12873_v47 = vld [vmem:[#allocation13 + $0x19b0] ss:$88 sps:$4 sm:$0xff]  }
 0x52b   :  { %7548 = vmatpush1.bf16.msra.mxu1 %v12816_v48  ;;  %7426 = vmatprep.subr.bf16.mxu0 %v12821_v50  ;;  %v12876_v48 = vld [vmem:[#allocation13 + $0x19b8] ss:$88 sps:$4 sm:$0xff]   ;;  %v12881_v50 = vld [vmem:[#allocation13 + $0x1a64] ss:$88 sps:$4 sm:$0xff]  }
 0x52c   :  { %7549 = vmatprep.subr.bf16.mxu1 %v12824_v51  ;;  %v12884_v51 = vld [vmem:[#allocation13 + $0x1a6c] ss:$88 sps:$4 sm:$0xff]  }
 0x52e   :  { %7427 = vmatpush1.bf16.msra.mxu0 %v12819_v15  ;;  %v12879_v15 = vld [vmem:[#allocation13 + $0x1a60] ss:$88 sps:$4 sm:$0xff]  }
 0x52f   :  { %7550 = vmatpush1.bf16.msra.mxu1 %v12822_v17  ;;  %7428 = vmatprep.subr.bf16.mxu0 %v12827_v21  ;;  %v12882_v17 = vld [vmem:[#allocation13 + $0x1a68] ss:$88 sps:$4 sm:$0xff]   ;;  %v12887_v21 = vld [vmem:[#allocation13 + $0x1b14] ss:$88 sps:$4 sm:$0xff]  }
 0x530   :  { %7551 = vmatprep.subr.bf16.mxu1 %v12830_v52  ;;  %v12890_v52 = vld [vmem:[#allocation13 + $0x1b1c] ss:$88 sps:$4 sm:$0xff]  }
 0x532   :  { %7429 = vmatpush1.bf16.msra.mxu0 %v12825_v22  ;;  %v12885_v22 = vld [vmem:[#allocation13 + $0x1b10] ss:$88 sps:$4 sm:$0xff]  }
 0x533   :  { %7552 = vmatpush1.bf16.msra.mxu1 %v12828_v55  ;;  %7430 = vmatprep.subr.bf16.mxu0 %v12833_v56  ;;  %v12888_v55 = vld [vmem:[#allocation13 + $0x1b18] ss:$88 sps:$4 sm:$0xff]   ;;  %v12893_v56 = vld [vmem:[#allocation13 + $0x54] ss:$88 sps:$4 sm:$0xff]  }
 0x534   :  { %7553 = vmatprep.subr.bf16.mxu1 %v12836_v57  ;;  %v12891_v57 = vld [vmem:[#allocation13 + $0x50] ss:$88 sps:$4 sm:$0xff]  }
 0x536   :  { %7431 = vmatpush1.bf16.msra.mxu0 %v12831_v58  ;;  %v12896_v58 = vld [vmem:[#allocation13 + $0x104] ss:$88 sps:$4 sm:$0xff]  }
 0x537   :  { %7554 = vmatpush1.bf16.msra.mxu1 %v12834_v59  ;;  %7432 = vmatprep.subr.bf16.mxu0 %v12839_v62  ;;  %v12894_v59 = vld [vmem:[#allocation13 + $0x100] ss:$88 sps:$4 sm:$0xff]   ;;  %v12899_v62 = vld [vmem:[#allocation13 + $0x1b4] ss:$88 sps:$4 sm:$0xff]  }
 0x538   :  { %7555 = vmatprep.subr.bf16.mxu1 %v12842_v63  ;;  %v12897_v63 = vld [vmem:[#allocation13 + $0x1b0] ss:$88 sps:$4 sm:$0xff]  }
 0x53a   :  { %7433 = vmatpush1.bf16.msra.mxu0 %v12837_v2  ;;  %v12902_v2 = vld [vmem:[#allocation13 + $0x264] ss:$88 sps:$4 sm:$0xff]  }
 0x53b   :  { %7556 = vmatpush1.bf16.msra.mxu1 %v12840_v4  ;;  %7443 = vmatprep.subr.bf16.mxu0 %v12845_v32  ;;  %v12900_v4 = vld [vmem:[#allocation13 + $0x260] ss:$88 sps:$4 sm:$0xff]   ;;  %v12905_v32 = vld [vmem:[#allocation13 + $0x314] ss:$88 sps:$4 sm:$0xff]  }
 0x53c   :  { %7566 = vmatprep.subr.bf16.mxu1 %v12848_v8  ;;  %v12903_v8 = vld [vmem:[#allocation13 + $0x310] ss:$88 sps:$4 sm:$0xff]  }
 0x53d   :  { %7435 = vmatmul.mubr.bf16.vlgmr.msra.gmra.mrb[20].mxu0 %v13528_v45 }
 0x53e   :  { %7558 = vmatmul.mubr.bf16.vlgmr.msra.gmra.mrb[28].mxu1 %v13528_v45  ;;  %7444 = vmatpush1.bf16.msra.mxu0 %v12843_v9  ;;  %v12908_v9 = vld [vmem:[#allocation13 + $0x3c4] ss:$88 sps:$4 sm:$0xff]  }
 0x53f   :  { %7567 = vmatpush1.bf16.msra.mxu1 %v12846_v10  ;;  %7445 = vmatprep.subr.bf16.mxu0 %v12851_v11  ;;  %v12906_v10 = vld [vmem:[#allocation13 + $0x3c0] ss:$88 sps:$4 sm:$0xff]   ;;  %v12911_v11 = vld [vmem:[#allocation13 + $0x474] ss:$88 sps:$4 sm:$0xff]  }
 0x540   :  { %7568 = vmatprep.subr.bf16.mxu1 %v12854_v12  ;;  %7475 = vmatprep.mubr.bf16.mxu0 %v13266_v0  ;;  %v12914_v12 = vld [vmem:[#allocation13 + $0x524] ss:$88 sps:$4 sm:$0xff]  }
 0x541   :  { %7598 = vmatprep.mubr.bf16.mxu1 %v13266_v0 }
 0x542   :  { %7446 = vmatpush1.bf16.msra.mxu0 %v12849_v14  ;;  %v12912_v14 = vld [vmem:[#allocation13 + $0x520] ss:$88 sps:$4 sm:$0xff]  }
 0x543   :  { %7569 = vmatpush1.bf16.msra.mxu1 %v12852_v18  ;;  %7447 = vmatprep.subr.bf16.mxu0 %v12857_v27  ;;  %v12917_v18 = vld [vmem:[#allocation13 + $0x5d4] ss:$88 sps:$4 sm:$0xff]   ;;  %v12915_v27 = vld [vmem:[#allocation13 + $0x5d0] ss:$88 sps:$4 sm:$0xff]  }
 0x544   :  { %7570 = vmatprep.subr.bf16.mxu1 %v12860_v53  ;;  %v12920_v53 = vld [vmem:[#allocation13 + $0x684] ss:$88 sps:$4 sm:$0xff]  }
 0x546   :  { %7448 = vmatpush1.bf16.msra.mxu0 %v12855_v29  ;;  %v12918_v29 = vld [vmem:[#allocation13 + $0x680] ss:$88 sps:$4 sm:$0xff]  }
 0x547   :  { %7571 = vmatpush1.bf16.msra.mxu1 %v12858_v30  ;;  %7449 = vmatprep.subr.bf16.mxu0 %v12863_v31  ;;  %v12923_v30 = vld [vmem:[#allocation13 + $0x734] ss:$88 sps:$4 sm:$0xff]   ;;  %v12921_v31 = vld [vmem:[#allocation13 + $0x730] ss:$88 sps:$4 sm:$0xff]  }
 0x548   :  { %7572 = vmatprep.subr.bf16.mxu1 %v12866_v33  ;;  %v12926_v33 = vld [vmem:[#allocation13 + $0x7e4] ss:$88 sps:$4 sm:$0xff]  }
 0x54a   :  { %7450 = vmatpush1.bf16.msra.mxu0 %v12861_v34  ;;  %v12924_v34 = vld [vmem:[#allocation13 + $0x7e0] ss:$88 sps:$4 sm:$0xff]  }
 0x54b   :  { %7573 = vmatpush1.bf16.msra.mxu1 %v12864_v36  ;;  %7451 = vmatprep.subr.bf16.mxu0 %v12869_v37  ;;  %v12929_v36 = vld [vmem:[#allocation13 + $0x894] ss:$88 sps:$4 sm:$0xff]   ;;  %v12927_v37 = vld [vmem:[#allocation13 + $0x890] ss:$88 sps:$4 sm:$0xff]  }
 0x54c   :  { %7574 = vmatprep.subr.bf16.mxu1 %v12872_v42  ;;  %v1914_v42 = vrot.slane %v13768_v60, %v13498_v61 }
 0x54e   :  { %7452 = vmatpush1.bf16.msra.mxu0 %v12867_v13  ;;  %v12932_v13 = vld [vmem:[#allocation13 + $0x944] ss:$88 sps:$4 sm:$0xff]  }
 0x54f   :  { %7575 = vmatpush1.bf16.msra.mxu1 %v12870_v44  ;;  %7453 = vmatprep.subr.bf16.mxu0 %v12875_v3  ;;  %v1918_v44 = vrot.slane %v13768_v60, %v13535_v1  ;;  %v1926_v3 = vrot.slane %v13768_v60, %v13594_v38 }
 0x550   :  { %7576 = vmatprep.subr.bf16.mxu1 %v12878_v46  ;;  %v1922_v46 = vrot.slane %v13768_v60, %v13597_v39 }
 0x552   :  { %7454 = vmatpush1.bf16.msra.mxu0 %v12873_v47  ;;  %v12930_v47 = vld [vmem:[#allocation13 + $0x940] ss:$88 sps:$4 sm:$0xff]  }
 0x553   :  { %7577 = vmatpush1.bf16.msra.mxu1 %v12876_v48  ;;  %7455 = vmatprep.subr.bf16.mxu0 %v12881_v50  ;;  %v11409_v48 = vadd.f32 %v13776_v7, %v1914_v42  ;;  %v1930_v50 = vrot.slane %v13768_v60, %v1897_v41 }
 0x554   :  { %7578 = vmatprep.subr.bf16.mxu1 %v12884_v51  ;;  %v12935_v51 = vld [vmem:[#allocation13 + $0x9f4] ss:$88 sps:$4 sm:$0xff]  }
 0x556   :  { %7456 = vmatpush1.bf16.msra.mxu0 %v12879_v15 }
 0x557   :  { %7579 = vmatpush1.bf16.msra.mxu1 %v12882_v17  ;;  %7457 = vmatprep.subr.bf16.mxu0 %v12887_v21 }
 0x558   :  { %7580 = vmatprep.subr.bf16.mxu1 %v12890_v52 }
 0x55a   :  { %7458 = vmatpush1.bf16.msra.mxu0 %v12885_v22 }
 0x55b   :  { %7581 = vmatpush1.bf16.msra.mxu1 %v12888_v55  ;;  %7607 = vmatprep.subr.bf16.mxu0 %v12893_v56 }
 0x55d   :  { %7476 = vmatmul.mubr.bf16.vlgmr.msra.gmra.mrb[20].mxu0 %v13540_v28 }
 0x55e   :  { %7599 = vmatmul.mubr.bf16.vlgmr.msra.gmra.mrb[28].mxu1 %v13540_v28  ;;  %7608 = vmatpush1.bf16.msra.mxu0 %v12891_v57 }
 0x55f   :  { %7639 = vmatprep.mubr.bf16.mxu0 %v13508_v16  ;;  %7609 = vmatprep.subr.bf16.mxu0 %v12896_v58  ;;  %v12909_v16 = vld [vmem:[#allocation13 + $0x470] ss:$88 sps:$4 sm:$0xff]  }
 0x560   :  { %v12933_v58 = vld [vmem:[#allocation13 + $0x9f0] ss:$88 sps:$4 sm:$0xff]  }
 0x562   :  { %7610 = vmatpush1.bf16.msra.mxu0 %v12894_v59  ;;  %v7741_v59 = vmax.f32 %v11409_v48, 0.0  ;;  %v12962_v48 = vld [vmem:[#allocation13 + $0x1024] ss:$88 sps:$4 sm:$0xff]  }
 0x563   :  { %7611 = vmatprep.subr.bf16.mxu0 %v12899_v62 }
 0x566   :  { %7612 = vmatpush1.bf16.msra.mxu0 %v12897_v63 }
 0x567   :  { %7613 = vmatprep.subr.bf16.mxu0 %v12902_v2 }
 0x56a   :  { %7614 = vmatpush1.bf16.msra.mxu0 %v12900_v4  ;;  %v12938_v4 = vld [vmem:[#allocation13 + $0xaa4] ss:$88 sps:$4 sm:$0xff]  }
 0x56b   :  { %7615 = vmatprep.subr.bf16.mxu0 %v12905_v32 }
 0x56e   :  { %7616 = vmatpush1.bf16.msra.mxu0 %v12903_v8 }
 0x56f   :  { %7617 = vmatprep.subr.bf16.mxu0 %v12908_v9 }
 0x572   :  { %7618 = vmatpush1.bf16.msra.mxu0 %v12906_v10 }
 0x573   :  { %7619 = vmatprep.subr.bf16.mxu0 %v12911_v11  ;;  %v12936_v11 = vld [vmem:[#allocation13 + $0xaa0] ss:$88 sps:$4 sm:$0xff]  }
 0x576   :  { %7620 = vmatpush1.bf16.msra.mxu0 %v12909_v16 }
 0x577   :  { %7621 = vmatprep.subr.bf16.mxu0 %v12914_v12 }
 0x57a   :  { %7622 = vmatpush1.bf16.msra.mxu0 %v12912_v14  ;;  %v12941_v14 = vld [vmem:[#allocation13 + $0xb54] ss:$88 sps:$4 sm:$0xff]  }
 0x57b   :  { %7623 = vmatprep.subr.bf16.mxu0 %v12917_v18 }
 0x57e   :  { %7624 = vmatpush1.bf16.msra.mxu0 %v12915_v27 }
 0x57f   :  { %7625 = vmatprep.subr.bf16.mxu0 %v12920_v53 }
 0x582   :  { %7626 = vmatpush1.bf16.msra.mxu0 %v12918_v29  ;;  %v12939_v29 = vld [vmem:[#allocation13 + $0xb50] ss:$88 sps:$4 sm:$0xff]  }
 0x583   :  { %7627 = vmatprep.subr.bf16.mxu0 %v12923_v30  ;;  %v12944_v30 = vld [vmem:[#allocation13 + $0xc04] ss:$88 sps:$4 sm:$0xff]  }
 0x586   :  { %7628 = vmatpush1.bf16.msra.mxu0 %v12921_v31  ;;  %v8047_v31 = vrot.slane %v8037_v43, %v13569_v6  ;;  %v12947_v43 = vld [vmem:[#allocation13 + $0xcb4] ss:$88 sps:$4 sm:$0xff]  }
 0x587   :  { %7629 = vmatprep.subr.bf16.mxu0 %v12926_v33  ;;  %v8054_v33 = vrot.slane %v8038_v5, %v13569_v6  ;;  %v12951_v5 = vld [vmem:[#allocation13 + $0xe10] ss:$88 sps:$4 sm:$0xff]  }
 0x58a   :  { %7630 = vmatpush1.bf16.msra.mxu0 %v12924_v34 }
 0x58b   :  { %7631 = vmatprep.subr.bf16.mxu0 %v12929_v36 }
 0x58e   :  { %7632 = vmatpush1.bf16.msra.mxu0 %v12927_v37 }
 0x58f   :  { %7633 = vmatprep.subr.bf16.mxu0 %v12932_v13  ;;  %v12942_v13 = vld [vmem:[#allocation13 + $0xc00] ss:$88 sps:$4 sm:$0xff]  }
 0x590   :  { %v7231_v15 = vpop.f32.mrb[16].mxu0 }
 0x591   :  { %v11410_v17 = vadd.f32 %v7231_v15, %v1918_v44  ;;  %v7354_v21 = vpop.f32.mrb[24].mxu1  ;;  %v7233_v52 = vpop.f32.mrb[17].mxu0  ;;  %v12956_v44 = vld [vmem:[#allocation13 + $0xec4] ss:$88 sps:$4 sm:$0xff]   ;;  %v12963_v15 = vld [vmem:[#allocation13 + $0x10d0] ss:$88 sps:$4 sm:$0xff]  }
 0x592   :  { %v11412_v22 = vadd.f32 %v7354_v21, %v1926_v3  ;;  %v11411_v55 = vadd.f32 %v7233_v52, %v1922_v46  ;;  %v7356_v56 = vpop.f32.mrb[25].mxu1  ;;  %v7235_v57 = vpop.f32.mrb[18].mxu0  ;;  %7634 = vmatpush1.bf16.msra.mxu0 %v12930_v47  ;;  %v12954_v3 = vld [vmem:[#allocation13 + $0xec0] ss:$88 sps:$4 sm:$0xff]   ;;  %v12959_v46 = vld [vmem:[#allocation13 + $0xf74] ss:$88 sps:$4 sm:$0xff]  }
 0x593   :  { %v7742_v62 = vmax.f32 %v11410_v17, 0.0  ;;  %v11413_v63 = vadd.f32 %v7356_v56, %v1930_v50  ;;  %v7358_v7 = vpop.f32.mrb[26].mxu1  ;;  %v7236_v2 = vpop.f32.mrb[19].mxu0  ;;  %7635 = vmatprep.subr.bf16.mxu0 %v12935_v51  ;;  %v12957_v47 = vld [vmem:[#allocation13 + $0xf70] ss:$88 sps:$4 sm:$0xff]  }
 0x594   :  { %v7744_v41 = vmax.f32 %v11412_v22, 0.0  ;;  %v7743_v60 = vmax.f32 %v11411_v55, 0.0  ;;  %v7359_v32 = vpop.f32.mrb[27].mxu1  ;;  %v12960_v50 = vld [vmem:[#allocation13 + $0x1020] ss:$88 sps:$4 sm:$0xff]  }
 0x595   :  { %v8007_v8 = vcombine.low %v7741_v59, %v7742_v62  ;;  %v7745_v9 = vmax.f32 %v11413_v63, 0.0  ;;  %v12965_v51 = vld [vmem:[#allocation13 + $0x10d4] ss:$88 sps:$4 sm:$0xff]   ;;  %v12968_v17 = vld [vmem:[#allocation13 + $0x1184] ss:$88 sps:$4 sm:$0xff]  }
 0x596   :  { %v8008_v10 = vcombine.low %v7743_v60, %v7744_v41  ;;  %7636 = vmatpush1.bf16.msra.mxu0 %v12933_v58  ;;  %v12966_v21 = vld [vmem:[#allocation13 + $0x1180] ss:$88 sps:$4 sm:$0xff]   ;;  %v12971_v52 = vld [vmem:[#allocation13 + $0x1234] ss:$88 sps:$4 sm:$0xff]   ;;  %v12969_v22 = vld [vmem:[#allocation13 + $0x1230] ss:$88 sps:$4 sm:$0xff]  }
 0x597   :  { %v8029_v16 = vrot.slane %v8007_v8, %v13569_v6  ;;  %v13814_v12 = vcombine.low %v7744_v41, %v7745_v9  ;;  %7637 = vmatprep.subr.bf16.mxu0 %v12938_v4  ;;  %v12974_v55 = vld [vmem:[#allocation13 + $0x12e4] ss:$88 sps:$4 sm:$0xff]   ;;  %v12972_v56 = vld [vmem:[#allocation13 + $0x12e0] ss:$88 sps:$4 sm:$0xff]   ;;  %v12977_v57 = vld [vmem:[#allocation13 + $0x1394] ss:$88 sps:$4 sm:$0xff]  }
 0x598   :  { %v8036_v18 = vrot.slane %v8008_v10, %v13569_v6  ;;  %v12975_v58 = vld [vmem:[#allocation13 + $0x1390] ss:$88 sps:$4 sm:$0xff]   ;;  %v12980_v59 = vld [vmem:[#allocation13 + $0x1444] ss:$88 sps:$4 sm:$0xff]   ;;  %v12978_v62 = vld [vmem:[#allocation13 + $0x1440] ss:$88 sps:$4 sm:$0xff]  }
 0x599   :  { %v12983_v63 = vld [vmem:[#allocation13 + $0x14f4] ss:$88 sps:$4 sm:$0xff]   ;;  %v12981_v7 = vld [vmem:[#allocation13 + $0x14f0] ss:$88 sps:$4 sm:$0xff]   ;;  %v12986_v2 = vld [vmem:[#allocation13 + $0x15a4] ss:$88 sps:$4 sm:$0xff]  }
 0x59a   :  { %v8039_v27 = vcombine.low %v8029_v16, %v8036_v18  ;;  %v8040_v53 = vcombine.high %v8029_v16, %v8036_v18  ;;  %7638 = vmatpush1.bf16.msra.mxu0 %v12936_v11  ;;  %v12984_v4 = vld [vmem:[#allocation13 + $0x15a0] ss:$88 sps:$4 sm:$0xff]   ;;  %v12989_v41 = vld [vmem:[#allocation13 + $0x1654] ss:$88 sps:$4 sm:$0xff]   ;;  %v12987_v60 = vld [vmem:[#allocation13 + $0x1650] ss:$88 sps:$4 sm:$0xff]  }
 0x59b   :  { %7648 = vmatprep.subr.bf16.mxu0 %v12941_v14  ;;  %v12992_v32 = vld [vmem:[#allocation13 + $0x1704] ss:$88 sps:$4 sm:$0xff]   ;;  %v12990_v8 = vld [vmem:[#allocation13 + $0x1700] ss:$88 sps:$4 sm:$0xff]   ;;  %v12995_v9 = vld [vmem:[#allocation13 + $0x17b4] ss:$88 sps:$4 sm:$0xff]  }
 0x59c   :  { %v8061_v34 = vrot.slane %v8039_v27, %v13569_v6  ;;  %v8068_v36 = vrot.slane %v8040_v53, %v13569_v6  ;;  %v12993_v10 = vld [vmem:[#allocation13 + $0x17b0] ss:$88 sps:$4 sm:$0xff]   ;;  %v12998_v11 = vld [vmem:[#allocation13 + $0x1864] ss:$88 sps:$4 sm:$0xff]   ;;  %v12996_v16 = vld [vmem:[#allocation13 + $0x1860] ss:$88 sps:$4 sm:$0xff]  }
 0x59d   :  { %7640 = vmatmul.mubr.bf16.vlgmr.msra.gmra.mrb[24].mxu0 %v13510_v19  ;;  %v12948_v19 = vld [vmem:[#allocation13 + $0xd60] ss:$88 sps:$4 sm:$0xff]   ;;  %v13001_v14 = vld [vmem:[#allocation13 + $0x1914] ss:$88 sps:$4 sm:$0xff]   ;;  %v12999_v18 = vld [vmem:[#allocation13 + $0x1910] ss:$88 sps:$4 sm:$0xff]  }
 0x59e   :  { %v8069_v37 = vcombine.low %v8047_v31, %v8061_v34  ;;  %v13828_v42 = vcombine.low %v8054_v33, %v8068_v36  ;;  %7649 = vmatpush1.bf16.msra.mxu0 %v12939_v29  ;;  %7680 = vmatprep.mubr.bf16.mxu0 %v13514_v24  ;;  %v12953_v24 = vld [vmem:[#allocation13 + $0xe14] ss:$88 sps:$4 sm:$0xff]   ;;  %v13004_v27 = vld [vmem:[#allocation13 + $0x19c4] ss:$88 sps:$4 sm:$0xff]  }
 0x59f   :  { %7650 = vmatprep.subr.bf16.mxu0 %v12944_v30  ;;  %v13007_v53 = vld [vmem:[#allocation13 + $0x1a74] ss:$88 sps:$4 sm:$0xff]   ;;  %v13010_v29 = vld [vmem:[#allocation13 + $0x1b24] ss:$88 sps:$4 sm:$0xff]   ;;  %v13008_v30 = vld [vmem:[#allocation13 + $0x1b20] ss:$88 sps:$4 sm:$0xff]  }
 0x5a0   :  { %8088 = vrot.lane.b32.xlu1 %v8069_v37, %s13276_s25  ;;  %8071 = vrot.lane.b32.xlu0 %v8069_v37, %s13277_s0 }
 0x5a2   :  { %7651 = vmatpush1.bf16.msra.mxu0 %v12942_v13 }
 0x5a3   :  { %7652 = vmatprep.subr.bf16.mxu0 %v12947_v43 }
 0x5a4   :  { %8122 = vrot.lane.b32.xlu1 %v8069_v37, %s13278_s29  ;;  %8105 = vrot.lane.b32.xlu0 %v8069_v37, %s13279_s3 }
 0x5a6   :  { %7653 = vmatpush1.bf16.msra.mxu0 %v12945_v35 }
 0x5a7   :  { %7654 = vmatprep.subr.bf16.mxu0 %v12950_v40 }
 0x5a8   :  { %8156 = vrot.lane.b32.xlu1 %v8069_v37, %s13280_s4  ;;  %8139 = vrot.lane.b32.xlu0 %v8069_v37, %s13281_s19 }
 0x5aa   :  { %7655 = vmatpush1.bf16.msra.mxu0 %v12948_v19 }
 0x5ab   :  { %7656 = vmatprep.subr.bf16.mxu0 %v12953_v24 }
 0x5ac   :  { %8190 = vrot.lane.b32.xlu1 %v8069_v37, %s13282_s26  ;;  %8173 = vrot.lane.b32.xlu0 %v8069_v37, %s13283_s27 }
 0x5ae   :  { %7657 = vmatpush1.bf16.msra.mxu0 %v12951_v5 }
 0x5af   :  { %7658 = vmatprep.subr.bf16.mxu0 %v12956_v44 }
 0x5b0   :  { %8207 = vrot.lane.b32.xlu0 %v8069_v37, %s13284_s1 }
 0x5b2   :  { %7659 = vmatpush1.bf16.msra.mxu0 %v12954_v3 }
 0x5b3   :  { %7660 = vmatprep.subr.bf16.mxu0 %v12959_v46 }
 0x5b6   :  { %7661 = vmatpush1.bf16.msra.mxu0 %v12957_v47 }
 0x5b7   :  { %7662 = vmatprep.subr.bf16.mxu0 %v12962_v48 }
 0x5ba   :  { %7663 = vmatpush1.bf16.msra.mxu0 %v12960_v50 }
 0x5bb   :  { %7664 = vmatprep.subr.bf16.mxu0 %v12965_v51 }
 0x5be   :  { %7665 = vmatpush1.bf16.msra.mxu0 %v12963_v15 }
 0x5bf   :  { %7666 = vmatprep.subr.bf16.mxu0 %v12968_v17 }
 0x5c2   :  { %7667 = vmatpush1.bf16.msra.mxu0 %v12966_v21 }
 0x5c3   :  { %7668 = vmatprep.subr.bf16.mxu0 %v12971_v52 }
 0x5c6   :  { %7669 = vmatpush1.bf16.msra.mxu0 %v12969_v22 }
 0x5c7   :  { %7670 = vmatprep.subr.bf16.mxu0 %v12974_v55 }
 0x5ca   :  { %7671 = vmatpush1.bf16.msra.mxu0 %v12972_v56 }
 0x5cb   :  { %7672 = vmatprep.subr.bf16.mxu0 %v12977_v57  ;;  %v8485_v57 = vld [vmem:[#allocation2 + $0x8] sm:$0xff] }
 0x5ce   :  { %7673 = vmatpush1.bf16.msra.mxu0 %v12975_v58 }
 0x5cf   :  { %7674 = vmatprep.subr.bf16.mxu0 %v12980_v59  ;;  %v8484_v59 = vld [vmem:[#allocation2] sm:$0xff] }
 0x5d2   :  { %7675 = vmatpush1.bf16.msra.mxu0 %v12978_v62 }
 0x5d3   :  { %7676 = vmatprep.subr.bf16.mxu0 %v12983_v63 }
 0x5d6   :  { %7677 = vmatpush1.bf16.msra.mxu0 %v12981_v7 }
 0x5d7   :  { %7678 = vmatprep.subr.bf16.mxu0 %v12986_v2  ;;  %v1863_v2 = vld [vmem:[#allocation15 + $0x10] sm:$0x3f] }
 0x5da   :  { %7679 = vmatpush1.bf16.msra.mxu0 %v12984_v4  ;;  %v1934_v4 = vrot.slane %v1863_v2, %v13483_v25 }
 0x5db   :  { %7689 = vmatprep.subr.bf16.mxu0 %v12989_v41  ;;  %v1942_v41 = vrot.slane %v1863_v2, %v13523_v20 }
 0x5dd   :  { %7681 = vmatmul.mubr.bf16.vlgmr.msra.gmra.mrb[24].mxu0 %v13528_v45  ;;  %v13002_v45 = vld [vmem:[#allocation13 + $0x19c0] ss:$88 sps:$4 sm:$0xff]  }
 0x5de   :  { %7690 = vmatpush1.bf16.msra.mxu0 %v12987_v60  ;;  %7721 = vmatprep.mubr.bf16.mxu0 %v13266_v0  ;;  %v13005_v0 = vld [vmem:[#allocation13 + $0x1a70] ss:$88 sps:$4 sm:$0xff]   ;;  %v1938_v60 = vrot.slane %v1863_v2, %v13486_v26 }
 0x5df   :  { %7691 = vmatprep.subr.bf16.mxu0 %v12992_v32  ;;  %v1946_v32 = vrot.slane %v1863_v2, %v13498_v61 }
 0x5e2   :  { %7692 = vmatpush1.bf16.msra.mxu0 %v12990_v8 }
 0x5e3   :  { %7693 = vmatprep.subr.bf16.mxu0 %v12995_v9 }
 0x5e6   :  { %7694 = vmatpush1.bf16.msra.mxu0 %v12993_v10 }
 0x5e7   :  { %7695 = vmatprep.subr.bf16.mxu0 %v12998_v11 }
 0x5ea   :  { %7696 = vmatpush1.bf16.msra.mxu0 %v12996_v16 }
 0x5eb   :  { %7697 = vmatprep.subr.bf16.mxu0 %v13001_v14 }
 0x5ee   :  { %7698 = vmatpush1.bf16.msra.mxu0 %v12999_v18 }
 0x5ef   :  { %7699 = vmatprep.subr.bf16.mxu0 %v13004_v27 }
 0x5f2   :  { %7700 = vmatpush1.bf16.msra.mxu0 %v13002_v45 }
 0x5f3   :  { %7701 = vmatprep.subr.bf16.mxu0 %v13007_v53 }
 0x5f6   :  { %7702 = vmatpush1.bf16.msra.mxu0 %v13005_v0 }
 0x5f7   :  { %7703 = vmatprep.subr.bf16.mxu0 %v13010_v29 }
 0x5fa   :  { %7704 = vmatpush1.bf16.msra.mxu0 %v13008_v30 }
 0x5fd   :  { %7722 = vmatmul.mubr.bf16.vlgmr.msra.gmra.mrb[24].mxu0 %v13540_v28 }
 0x612   :  { %v8089_v31 = vpop.permute.xlu1 %8088  ;;  %v8072_v33 = vpop.permute.xlu0 %8071 }
 0x613   :  { %v8092_v34 = vrot.slane %v8089_v31, 1  ;;  %v8075_v36 = vrot.slane %v8072_v33, 1 }
 0x615   :  { %v8095_v37 = vsel %vm8094_vm9, %v8089_v31, %v8092_v34  ;;  %v8078_v13 = vsel %vm8077_vm10, %v8072_v33, %v8075_v36 }
 0x616   :  { %8100 = vst.msk [vmem:[#allocation2 + $0x3a] ss:$8 sm:$0xf] %vm13628_vm0, %v8095_v37  ;;  %8101 = vst.msk [vmem:[#allocation2 + $0x3a] ss:$8 sm:$0x70] %vm13628_vm0, %v8095_v37  ;;  %v8123_v28 = vpop.permute.xlu1 %8122  ;;  %v8106_v43 = vpop.permute.xlu0 %8105 }
 0x617   :  { %8083 = vst.msk [vmem:[#allocation2 + $0x39] ss:$8 sm:$0xf] %vm13628_vm0, %v8078_v13  ;;  %8084 = vst.msk [vmem:[#allocation2 + $0x39] ss:$8 sm:$0x70] %vm13628_vm0, %v8078_v13  ;;  %v8241_v13 = vrot.slane %v13814_v12, %v13569_v6 }
 0x618   :  { %v8126_v35 = vrot.slane %v8123_v28, 1  ;;  %v8109_v40 = vrot.slane %v8106_v43, 1 }
 0x61a   :  { %v8129_v19 = vsel %vm8128_vm11, %v8123_v28, %v8126_v35  ;;  %v8112_v24 = vsel %vm8111_vm12, %v8106_v43, %v8109_v40  ;;  %v8157_v5 = vpop.permute.xlu1 %8156  ;;  %v8140_v44 = vpop.permute.xlu0 %8139  ;;  %v1950_v40 = vrot.slane %v1863_v2, %v13535_v1 }
 0x61b   :  { %8134 = vst.msk [vmem:[#allocation2 + $0x3c] ss:$8 sm:$0xf] %vm13628_vm0, %v8129_v19  ;;  %8135 = vst.msk [vmem:[#allocation2 + $0x3c] ss:$8 sm:$0x70] %vm13628_vm0, %v8129_v19  ;;  %v1954_v19 = vrot.slane %v1863_v2, %v13597_v39 }
 0x61c   :  { %8117 = vst.msk [vmem:[#allocation2 + $0x3b] ss:$8 sm:$0xf] %vm13628_vm0, %v8112_v24  ;;  %8118 = vst.msk [vmem:[#allocation2 + $0x3b] ss:$8 sm:$0x70] %vm13628_vm0, %v8112_v24 }
 0x61d   :  { %v8160_v3 = vrot.slane %v8157_v5, 1  ;;  %v8143_v46 = vrot.slane %v8140_v44, 1 }
 0x61e   :  { %v8191_v50 = vpop.permute.xlu1 %8190  ;;  %v8174_v51 = vpop.permute.xlu0 %8173 }
 0x61f   :  { %v8163_v47 = vsel %vm14929_vm13, %v8157_v5, %v8160_v3  ;;  %v8146_v48 = vsel %vm8145_vm14, %v8140_v44, %v8143_v46  ;;  %v8194_v15 = vrot.slane %v8191_v50, 1  ;;  %v8177_v17 = vrot.slane %v8174_v51, 1 }
 0x620   :  { %8168 = vst.msk [vmem:[#allocation2 + $0x3e] ss:$8 sm:$0xf] %vm13628_vm0, %v8163_v47  ;;  %8169 = vst.msk [vmem:[#allocation2 + $0x3e] ss:$8 sm:$0x70] %vm13628_vm0, %v8163_v47 }
 0x621   :  { %8151 = vst.msk [vmem:[#allocation2 + $0x3d] ss:$8 sm:$0xf] %vm13628_vm0, %v8146_v48  ;;  %8152 = vst.msk [vmem:[#allocation2 + $0x3d] ss:$8 sm:$0x70] %vm13628_vm0, %v8146_v48  ;;  %v8197_v21 = vsel %vm14927_vm15, %v8191_v50, %v8194_v15  ;;  %v8180_v52 = vsel %vm14928_vm2, %v8174_v51, %v8177_v17 }
 0x622   :  { %8202 = vst.msk [vmem:[#allocation2 + $0x70] ss:$8 sm:$0xf] %vm13628_vm0, %v8197_v21  ;;  %8203 = vst.msk [vmem:[#allocation2 + $0x70] ss:$8 sm:$0x70] %vm13628_vm0, %v8197_v21  ;;  %v8208_v22 = vpop.permute.xlu0 %8207 }
 0x623   :  { %8185 = vst.msk [vmem:[#allocation2 + $0x3f] ss:$8 sm:$0xf] %vm13628_vm0, %v8180_v52  ;;  %8186 = vst.msk [vmem:[#allocation2 + $0x3f] ss:$8 sm:$0x70] %vm13628_vm0, %v8180_v52 }
 0x624   :  { %v8211_v55 = vrot.slane %v8208_v22, 1  ;;  %vm14930_vm15 = vcmask 973824   ;;  %vm14933_vm2 = vcmask 965632   ;;  %vm14932_vm13 = vcmask 736256  }
 0x626   :  { %v8214_v56 = vsel %vm14926_vm4, %v8208_v22, %v8211_v55  ;;  %vm14931_vm4 = vcmask 982016  }
 0x627   :  { %8219 = vst.msk [vmem:[#allocation2 + $0x71] ss:$8 sm:$0xf] %vm13628_vm0, %v8214_v56  ;;  %8220 = vst.msk [vmem:[#allocation2 + $0x71] ss:$8 sm:$0x70] %vm13628_vm0, %v8214_v56 }
 0x62a   :  { %v8492_v58 = vld [vmem:[#allocation2 + $0x40] sm:$0xff]  ;;  %v8491_v62 = vld [vmem:[#allocation2 + $0x38] sm:$0xff] }
 0x62b   :  { %v11330_v63 = vpack.c.bf16 %v8492_v58, %v8485_v57  ;;  %v11332_v7 = vpack.c.bf16 %v8491_v62, %v8484_v59 }
 0x62d   :  { %11331 = vmatprep.subr.bf16.mxu0 %v11330_v63  ;;  %11394 = vmatprep.subr.bf16.mxu1 %v11330_v63 }
 0x62e   :  { %11333 = vmatpush1.bf16.msra.mxu0 %v11332_v7  ;;  %11396 = vmatpush1.bf16.msra.mxu1 %v11332_v7 }
 0x630   :  { %v7477_v8 = vpop.f32.mrb[20].mxu0 }
 0x631   :  { %v11414_v9 = vadd.f32 %v7477_v8, %v1934_v4  ;;  %v7600_v10 = vpop.f32.mrb[28].mxu1  ;;  %v7479_v11 = vpop.f32.mrb[21].mxu0 }
 0x632   :  { %v11416_v16 = vadd.f32 %v7600_v10, %v1942_v41  ;;  %v11415_v14 = vadd.f32 %v7479_v11, %v1938_v60  ;;  %v7602_v18 = vpop.f32.mrb[29].mxu1  ;;  %v7481_v27 = vpop.f32.mrb[22].mxu0 }
 0x633   :  { %v7746_v45 = vmax.f32 %v11414_v9, 0.0  ;;  %v11417_v53 = vadd.f32 %v7602_v18, %v1946_v32  ;;  %v7604_v0 = vpop.f32.mrb[30].mxu1  ;;  %v7482_v29 = vpop.f32.mrb[23].mxu0 }
 0x634   :  { %v7748_v30 = vmax.f32 %v11416_v16, 0.0  ;;  %v7747_v31 = vmax.f32 %v11415_v14, 0.0  ;;  %v7605_v33 = vpop.f32.mrb[31].mxu1 }
 0x635   :  { %v7749_v34 = vmax.f32 %v11417_v53, 0.0 }
 0x636   :  { %v8232_v36 = vcombine.low %v7746_v45, %v7747_v31 }
 0x637   :  { %v8233_v37 = vcombine.low %v7748_v30, %v7749_v34 }
 0x638   :  { %v8248_v28 = vrot.slane %v8232_v36, %v13569_v6 }
 0x639   :  { %v8255_v15 = vrot.slane %v8233_v37, %v13569_v6 }
 0x63a   :  { %v8263_v43 = vcombine.low %v8241_v13, %v8248_v28  ;;  %v8264_v35 = vcombine.high %v8241_v13, %v8248_v28 }
 0x63c   :  { %v8273_v52 = vrot.slane %v8263_v43, %v13569_v6  ;;  %v8280_v22 = vrot.slane %v8264_v35, %v13569_v6 }
 0x6d0   :  { %v7723_v24 = vpop.f32.mrb[24].mxu0 }
 0x6d1   :  { %v11418_v5 = vadd.f32 %v7723_v24, %v1950_v40  ;;  %v7725_v44 = vpop.f32.mrb[25].mxu0 }
 0x6d2   :  { %v11419_v3 = vadd.f32 %v7725_v44, %v1954_v19  ;;  %v7727_v46 = vpop.f32.mrb[26].mxu0 }
 0x6d3   :  { %v7750_v47 = vmax.f32 %v11418_v5, 0.0  ;;  %v7728_v48 = vpop.f32.mrb[27].mxu0 }
 0x6d4   :  { %v7751_v50 = vmax.f32 %v11419_v3, 0.0  ;;  %v8494_v48 = vld [vmem:[#allocation2 + $0x50] sm:$0xff] }
 0x6d6   :  { %v8234_v51 = vcombine.low %v7750_v47, %v7751_v50 }
 0x6d8   :  { %v8262_v12 = vrot.slane %v8234_v51, %v13569_v6 }
 0x6da   :  { %v8265_v17 = vcombine.low %v8255_v15, %v8262_v12  ;;  %v8266_v21 = vcombine.high %v8255_v15, %v8262_v12 }
 0x6dc   :  { %v8287_v55 = vrot.slane %v8265_v17, %v13569_v6  ;;  %v8294_v56 = vrot.slane %v8266_v21, %v13569_v6  ;;  %v13293_v6 = vmov 0.0  }
 0x6dd   :  { %8601 = vmatprep.mubr.f32.mxu1 %v13293_v6  ;;  %8589 = vmatprep.mubr.f32.mxu0 %v13293_v6 }
 0x6de   :  { %v8295_v57 = vcombine.low %v8273_v52, %v8287_v55  ;;  %v8296_v58 = vcombine.low %v8280_v22, %v8294_v56 }
 0x6e0   :  { %8297 = vrot.lane.b32.xlu1 %v8295_v57, %s13285_s28  ;;  %8314 = vrot.lane.b32.xlu0 %v8295_v57, %s13286_s30 }
 0x6e4   :  { %8331 = vrot.lane.b32.xlu1 %v8295_v57, %s13287_s16  ;;  %8348 = vrot.lane.b32.xlu0 %v8295_v57, %s13288_s7 }
 0x6e8   :  { %8365 = vrot.lane.b32.xlu1 %v8295_v57, %s13289_s13  ;;  %8382 = vrot.lane.b32.xlu0 %v8295_v57, %s13259_s18 }
 0x6ec   :  { %8399 = vrot.lane.b32.xlu1 %v8295_v57, %s13290_s14  ;;  %8416 = vrot.lane.b32.xlu0 %v8295_v57, %s13291_s2 }
 0x6f0   :  { %8433 = vrot.lane.b32.xlu1 %v8295_v57, %s13292_s6  ;;  %7898 = vrot.lane.b32.xlu0 %v13638_v54, %s13268_s11 }
 0x6f4   :  { %7915 = vrot.lane.b32.xlu1 %v13638_v54, %s13270_s20  ;;  %7932 = vrot.lane.b32.xlu0 %v13638_v54, %s13273_s5 }
 0x6f8   :  { %7949 = vrot.lane.b32.xlu1 %v13638_v54, %s13272_s23  ;;  %7966 = vrot.lane.b32.xlu0 %v13638_v54, %s13275_s24 }
 0x6fc   :  { %7983 = vrot.lane.b32.xlu1 %v13638_v54, %s13274_s15  ;;  %8073 = vrot.lane.b32.xlu0 %v13828_v42, %s13277_s0 }
 0x700   :  { %8090 = vrot.lane.b32.xlu1 %v13828_v42, %s13276_s25  ;;  %8107 = vrot.lane.b32.xlu0 %v13828_v42, %s13279_s3 }
 0x704   :  { %8124 = vrot.lane.b32.xlu1 %v13828_v42, %s13278_s29  ;;  %8141 = vrot.lane.b32.xlu0 %v13828_v42, %s13281_s19 }
 0x708   :  { %8158 = vrot.lane.b32.xlu1 %v13828_v42, %s13280_s4  ;;  %8175 = vrot.lane.b32.xlu0 %v13828_v42, %s13283_s27 }
 0x70c   :  { %8192 = vrot.lane.b32.xlu1 %v13828_v42, %s13282_s26  ;;  %8209 = vrot.lane.b32.xlu0 %v13828_v42, %s13284_s1 }
 0x710   :  { %8299 = vrot.lane.b32.xlu1 %v8296_v58, %s13285_s28  ;;  %8316 = vrot.lane.b32.xlu0 %v8296_v58, %s13286_s30 }
 0x714   :  { %8333 = vrot.lane.b32.xlu1 %v8296_v58, %s13287_s16  ;;  %8350 = vrot.lane.b32.xlu0 %v8296_v58, %s13288_s7 }
 0x718   :  { %8367 = vrot.lane.b32.xlu1 %v8296_v58, %s13289_s13  ;;  %8384 = vrot.lane.b32.xlu0 %v8296_v58, %s13259_s18 }
 0x71c   :  { %8401 = vrot.lane.b32.xlu1 %v8296_v58, %s13290_s14  ;;  %8418 = vrot.lane.b32.xlu0 %v8296_v58, %s13291_s2 }
 0x720   :  { %8435 = vrot.lane.b32.xlu1 %v8296_v58, %s13292_s6  ;;  %v8487_v58 = vld [vmem:[#allocation2 + $0x18] sm:$0xff] }
 0x752   :  { %v8298_v54 = vpop.permute.xlu1 %8297  ;;  %v8315_v42 = vpop.permute.xlu0 %8314 }
 0x753   :  { %v8301_v59 = vrot.slane %v8298_v54, 1  ;;  %v8318_v62 = vrot.slane %v8315_v42, 1 }
 0x755   :  { %v8304_v63 = vsel %vm14931_vm4, %v8298_v54, %v8301_v59  ;;  %v8321_v7 = vsel %vm14930_vm15, %v8315_v42, %v8318_v62  ;;  %vm8371_vm15 = vcmask 728064   ;;  %vm14934_vm4 = vcmask 719872   ;;  %v8493_v42 = vld [vmem:[#allocation2 + $0x48] sm:$0xff] }
 0x756   :  { %8309 = vst.msk [vmem:[#allocation2 + $0x72] ss:$8 sm:$0xf] %vm13628_vm0, %v8304_v63  ;;  %8310 = vst.msk [vmem:[#allocation2 + $0x72] ss:$8 sm:$0x70] %vm13628_vm0, %v8304_v63  ;;  %v8332_v2 = vpop.permute.xlu1 %8331  ;;  %v8349_v4 = vpop.permute.xlu0 %8348  ;;  %v11338_v54 = vpack.c.bf16 %v8494_v48, %v8487_v58 }
 0x757   :  { %8326 = vst.msk [vmem:[#allocation2 + $0x73] ss:$8 sm:$0xf] %vm13628_vm0, %v8321_v7  ;;  %8327 = vst.msk [vmem:[#allocation2 + $0x73] ss:$8 sm:$0x70] %vm13628_vm0, %v8321_v7 }
 0x758   :  { %v8335_v41 = vrot.slane %v8332_v2, 1  ;;  %v8352_v60 = vrot.slane %v8349_v4, 1  ;;  %v14021_v63 = vld [vmem:[#allocation16 + $0x10] sm:$0xff] }
 0x75a   :  { %v8338_v32 = vsel %vm14933_vm2, %v8332_v2, %v8335_v41  ;;  %v8355_v8 = vsel %vm14932_vm13, %v8349_v4, %v8352_v60  ;;  %v8366_v9 = vpop.permute.xlu1 %8365  ;;  %v8383_v10 = vpop.permute.xlu0 %8382  ;;  %vm8405_vm13 = vcmask 490496   ;;  %vm8422_vm2 = vcmask 482304   ;;  %v14023_v2 = vld [vmem:[#allocation16] sm:$0xff]  ;;  %v8486_v60 = vld [vmem:[#allocation2 + $0x10] sm:$0xff] }
 0x75b   :  { %8343 = vst.msk [vmem:[#allocation2 + $0x74] ss:$8 sm:$0xf] %vm13628_vm0, %v8338_v32  ;;  %8344 = vst.msk [vmem:[#allocation2 + $0x74] ss:$8 sm:$0x70] %vm13628_vm0, %v8338_v32 }
 0x75c   :  { %8360 = vst.msk [vmem:[#allocation2 + $0x75] ss:$8 sm:$0xf] %vm13628_vm0, %v8355_v8  ;;  %8361 = vst.msk [vmem:[#allocation2 + $0x75] ss:$8 sm:$0x70] %vm13628_vm0, %v8355_v8 }
 0x75d   :  { %v8369_v11 = vrot.slane %v8366_v9, 1  ;;  %v8386_v16 = vrot.slane %v8383_v10, 1 }
 0x75e   :  { %v8400_v27 = vpop.permute.xlu1 %8399  ;;  %v8417_v45 = vpop.permute.xlu0 %8416 }
 0x75f   :  { %v8372_v14 = vsel %vm8371_vm15, %v8366_v9, %v8369_v11  ;;  %v8389_v18 = vsel %vm14934_vm4, %v8383_v10, %v8386_v16  ;;  %v8403_v53 = vrot.slane %v8400_v27, 1  ;;  %v8420_v0 = vrot.slane %v8417_v45, 1 }
 0x760   :  { %8377 = vst.msk [vmem:[#allocation2 + $0x76] ss:$8 sm:$0xf] %vm13628_vm0, %v8372_v14  ;;  %8378 = vst.msk [vmem:[#allocation2 + $0x76] ss:$8 sm:$0x70] %vm13628_vm0, %v8372_v14  ;;  %v11340_v9 = vpack.c.bf16 %v8493_v42, %v8486_v60 }
 0x761   :  { %8394 = vst.msk [vmem:[#allocation2 + $0x77] ss:$8 sm:$0xf] %vm13628_vm0, %v8389_v18  ;;  %8395 = vst.msk [vmem:[#allocation2 + $0x77] ss:$8 sm:$0x70] %vm13628_vm0, %v8389_v18  ;;  %v8406_v29 = vsel %vm8405_vm13, %v8400_v27, %v8403_v53  ;;  %v8423_v30 = vsel %vm8422_vm2, %v8417_v45, %v8420_v0 }
 0x762   :  { %8411 = vst.msk [vmem:[#allocation2 + $0xa8] ss:$8 sm:$0xf] %vm13628_vm0, %v8406_v29  ;;  %8412 = vst.msk [vmem:[#allocation2 + $0xa8] ss:$8 sm:$0x70] %vm13628_vm0, %v8406_v29  ;;  %v8434_v31 = vpop.permute.xlu1 %8433  ;;  %v7899_v33 = vpop.permute.xlu0 %7898 }
 0x763   :  { %8428 = vst.msk [vmem:[#allocation2 + $0xa9] ss:$8 sm:$0xf] %vm13628_vm0, %v8423_v30  ;;  %8429 = vst.msk [vmem:[#allocation2 + $0xa9] ss:$8 sm:$0x70] %vm13628_vm0, %v8423_v30 }
 0x764   :  { %vm8439_vm4 = vcmask 474112   ;;  %v8437_v34 = vrot.slane %v8434_v31, 1  ;;  %v7901_v36 = vrot.slane %v7899_v33, 1  ;;  %v14040_v27 = vld [vmem:[#allocation16 + $0x18] sm:$0xff]  ;;  %v8496_v45 = vld [vmem:[#allocation2 + $0x60] sm:$0xff]  ;;  %v14042_v53 = vld [vmem:[#allocation16 + $0x8] sm:$0xff] }
 0x766   :  { %v8440_v37 = vsel %vm8439_vm4, %v8434_v31, %v8437_v34  ;;  %v7904_v13 = vsel %vm7902_vm1, %v7899_v33, %v7901_v36  ;;  %v7916_v28 = vpop.permute.xlu1 %7915  ;;  %v7933_v43 = vpop.permute.xlu0 %7932  ;;  %vm8512_vm1 = vcmask 261120   ;;  %v8489_v36 = vld [vmem:[#allocation2 + $0x28] sm:$0xff] }
 0x767   :  { %8445 = vst.msk [vmem:[#allocation2 + $0xaa] ss:$8 sm:$0xf] %vm13628_vm0, %v8440_v37  ;;  %8446 = vst.msk [vmem:[#allocation2 + $0xaa] ss:$8 sm:$0x70] %vm13628_vm0, %v8440_v37  ;;  %v11346_v37 = vpack.c.bf16 %v8496_v45, %v8489_v36 }
 0x768   :  { %7911 = vst.msk [vmem:[#allocation2 + $0xe3] ss:$8 sm:$0xf] %vm13628_vm0, %v7904_v13  ;;  %7912 = vst.msk [vmem:[#allocation2 + $0xe3] ss:$8 sm:$0x70] %vm13628_vm0, %v7904_v13 }
 0x769   :  { %v7918_v35 = vrot.slane %v7916_v28, 1  ;;  %v7935_v40 = vrot.slane %v7933_v43, 1  ;;  %v8499_v47 = vld [vmem:[#allocation2 + $0x78] sm:$0xff]  ;;  %v8498_v12 = vld [vmem:[#allocation2 + $0x70] sm:$0xff]  ;;  %v8501_v10 = vld [vmem:[#allocation2 + $0x88] sm:$0xff] }
 0x76a   :  { %v7950_v5 = vpop.permute.xlu1 %7949  ;;  %v7967_v44 = vpop.permute.xlu0 %7966  ;;  %v8500_v30 = vld [vmem:[#allocation2 + $0x80] sm:$0xff]  ;;  %v8495_v13 = vld [vmem:[#allocation2 + $0x58] sm:$0xff] }
 0x76b   :  { %v7921_v19 = vsel %vm7919_vm3, %v7916_v28, %v7918_v35  ;;  %v7938_v24 = vsel %vm7936_vm6, %v7933_v43, %v7935_v40  ;;  %v7952_v3 = vrot.slane %v7950_v5, 1  ;;  %v7969_v46 = vrot.slane %v7967_v44, 1 }
 0x76c   :  { %7928 = vst.msk [vmem:[#allocation2 + $0xe4] ss:$8 sm:$0xf] %vm13628_vm0, %v7921_v19  ;;  %7929 = vst.msk [vmem:[#allocation2 + $0xe4] ss:$8 sm:$0x70] %vm13628_vm0, %v7921_v19 }
 0x76d   :  { %7945 = vst.msk [vmem:[#allocation2 + $0xe5] ss:$8 sm:$0xf] %vm13628_vm0, %v7938_v24  ;;  %7946 = vst.msk [vmem:[#allocation2 + $0xe5] ss:$8 sm:$0x70] %vm13628_vm0, %v7938_v24  ;;  %v7955_v50 = vsel %vm7953_vm5, %v7950_v5, %v7952_v3  ;;  %v7972_v51 = vsel %vm7970_vm8, %v7967_v44, %v7969_v46 }
 0x76e   :  { %v8506_v15 = vld [vmem:[#allocation2 + $0xb0] sm:$0xff]  ;;  %v8505_v17 = vld [vmem:[#allocation2 + $0xa8] sm:$0xff]  ;;  %7962 = vst.msk [vmem:[#allocation2 + $0xe6] ss:$8 sm:$0xf] %vm13628_vm0, %v7955_v50  ;;  %v7984_v21 = vpop.permute.xlu1 %7983  ;;  %v8074_v52 = vpop.permute.xlu0 %8073  ;;  %v8508_v7 = vld [vmem:[#allocation2 + $0xc0] sm:$0xff] }
 0x76f   :  { %7963 = vst.msk [vmem:[#allocation2 + $0xe6] ss:$8 sm:$0x70] %vm13628_vm0, %v7955_v50  ;;  %7979 = vst.msk [vmem:[#allocation2 + $0xe7] ss:$8 sm:$0xf] %vm13628_vm0, %v7972_v51  ;;  %v11334_v22 = vpack.c.bf16 %v8506_v15, %v8499_v47  ;;  %v11336_v55 = vpack.c.bf16 %v8505_v17, %v8498_v12  ;;  %v11342_v11 = vpack.c.bf16 %v8508_v7, %v8501_v10 }
 0x770   :  { %7980 = vst.msk [vmem:[#allocation2 + $0xe7] ss:$8 sm:$0x70] %vm13628_vm0, %v7972_v51  ;;  %v7986_v56 = vrot.slane %v7984_v21, 1  ;;  %v8076_v57 = vrot.slane %v8074_v52, 1  ;;  %v8507_v16 = vld [vmem:[#allocation2 + $0xb8] sm:$0xff] }
 0x771   :  { %11335 = vmatprep.subr.bf16.mxu0 %v11334_v22  ;;  %11395 = vmatprep.subr.bf16.mxu1 %v11334_v22  ;;  %v11344_v34 = vpack.c.bf16 %v8507_v16, %v8500_v30  ;;  %v8510_v35 = vld [vmem:[#allocation2 + $0xd0] sm:$0xff]  ;;  %v8488_v24 = vld [vmem:[#allocation2 + $0x20] sm:$0xff]  ;;  %v8503_v46 = vld [vmem:[#allocation2 + $0x98] sm:$0xff]  ;;  %vm14965_vm3 = vcmask 752640   ;;  %vm14966_vm5 = vcmask 523264   ;;  %vm14967_vm6 = vcmask 515072  }
 0x772   :  { %v7989_v59 = vsel %vm7987_vm7, %v7984_v21, %v7986_v56  ;;  %v8079_v62 = vsel %vm8077_vm10, %v8074_v52, %v8076_v57  ;;  %11337 = vmatpush1.bf16.msra.mxu0 %v11336_v55  ;;  %11397 = vmatpush1.bf16.msra.mxu1 %v11336_v55  ;;  %v8091_v4 = vpop.permute.xlu1 %8090  ;;  %v8108_v41 = vpop.permute.xlu0 %8107  ;;  %v11348_v3 = vpack.c.bf16 %v8495_v13, %v8488_v24  ;;  %v8509_v48 = vld [vmem:[#allocation2 + $0xc8] sm:$0xff]  ;;  %v8502_v21 = vld [vmem:[#allocation2 + $0x90] sm:$0xff]  ;;  %vm14968_vm7 = vcmask 506880   ;;  %v8511_v16 = vld [vmem:[#allocation2 + $0xd8] sm:$0xff] }
 0x773   :  { %7996 = vst.msk [vmem:[#allocation2 + $0x118] ss:$8 sm:$0xf] %vm13628_vm0, %v7989_v59  ;;  %7997 = vst.msk [vmem:[#allocation2 + $0x118] ss:$8 sm:$0x70] %vm13628_vm0, %v7989_v59  ;;  %11339 = vmatprep.subr.bf16.mxu1 %v11338_v54  ;;  %v11350_v47 = vpack.c.bf16 %v8510_v35, %v8503_v46  ;;  %v11352_v55 = vpack.c.bf16 %v8509_v48, %v8502_v21 }
 0x774   :  { %8086 = vst.msk [vmem:[#allocation2 + $0x119] ss:$8 sm:$0xf] %vm13628_vm0, %v8079_v62  ;;  %8087 = vst.msk [vmem:[#allocation2 + $0x119] ss:$8 sm:$0x70] %vm13628_vm0, %v8079_v62 }
 0x775   :  { %v8093_v32 = vrot.slane %v8091_v4, 1  ;;  %v8110_v8 = vrot.slane %v8108_v41, 1  ;;  %11234 = vmatmul.mubr.msk.f32.vlgmr.msra.gmra.mrb[32].mxu1 %vm8512_vm1, %v14021_v63  ;;  %11232 = vmatmul.mubr.msk.f32.vlgmr.msra.gmra.mrb[28].mxu0 %vm8512_vm1, %v14023_v2  ;;  %v8497_v15 = vld [vmem:[#allocation2 + $0x68] sm:$0xff]  ;;  %v8490_v56 = vld [vmem:[#allocation2 + $0x30] sm:$0xff]  ;;  %vm14969_vm8 = vcmask 982016   ;;  %vm14971_vm10 = vcmask 965632  }
 0x776   :  { %11341 = vmatpush1.bf16.msra.mxu1 %v11340_v9  ;;  %8607 = vmatprep.mubr.f32.mxu1 %v13293_v6  ;;  %v8125_v0 = vpop.permute.xlu1 %8124  ;;  %v8142_v29 = vpop.permute.xlu0 %8141  ;;  %v11354_v57 = vpack.c.bf16 %v8497_v15, %v8490_v56  ;;  %v8910_v46 = vld [vmem:[#allocation2 + $0xe0] sm:$0xff]  ;;  %v8913_v21 = vld [vmem:[#allocation2 + $0xf8] sm:$0xff]  ;;  %v8912_v56 = vld [vmem:[#allocation2 + $0xf0] sm:$0xff] }
 0x777   :  { %v8096_v14 = vsel %vm8094_vm9, %v8091_v4, %v8093_v32  ;;  %v8113_v18 = vsel %vm8111_vm12, %v8108_v41, %v8110_v8  ;;  %11343 = vmatprep.subr.bf16.mxu1 %v11342_v11  ;;  %8595 = vmatprep.mubr.f32.mxu0 %v13293_v6  ;;  %v8127_v31 = vrot.slane %v8125_v0, 1  ;;  %v8144_v33 = vrot.slane %v8142_v29, 1 }
 0x778   :  { %8103 = vst.msk [vmem:[#allocation2 + $0x11a] ss:$8 sm:$0xf] %vm13628_vm0, %v8096_v14  ;;  %8104 = vst.msk [vmem:[#allocation2 + $0x11a] ss:$8 sm:$0x70] %vm13628_vm0, %v8096_v14 }
 0x779   :  { %8120 = vst.msk [vmem:[#allocation2 + $0x11b] ss:$8 sm:$0xf] %vm13628_vm0, %v8113_v18  ;;  %8121 = vst.msk [vmem:[#allocation2 + $0x11b] ss:$8 sm:$0x70] %vm13628_vm0, %v8113_v18  ;;  %11235 = vmatmul.mubr.msk.f32.gmra.mrb[34].mxu1 %vm8512_vm1, %v14040_v27  ;;  %11233 = vmatmul.mubr.msk.f32.gmra.mrb[30].mxu0 %vm8512_vm1, %v14042_v53  ;;  %v8130_v28 = vsel %vm8128_vm11, %v8125_v0, %v8127_v31  ;;  %v8147_v43 = vsel %vm8145_vm14, %v8142_v29, %v8144_v33 }
 0x77a   :  { %11345 = vmatpush1.bf16.msra.mxu1 %v11344_v34  ;;  %8678 = vmatprep.mubr.f32.mxu1 %v13293_v6  ;;  %8137 = vst.msk [vmem:[#allocation2 + $0x11c] ss:$8 sm:$0xf] %vm13628_vm0, %v8130_v28  ;;  %8138 = vst.msk [vmem:[#allocation2 + $0x11c] ss:$8 sm:$0x70] %vm13628_vm0, %v8130_v28  ;;  %v8159_v40 = vpop.permute.xlu1 %8158  ;;  %v8176_v19 = vpop.permute.xlu0 %8175 }
 0x77b   :  { %8154 = vst.msk [vmem:[#allocation2 + $0x11d] ss:$8 sm:$0xf] %vm13628_vm0, %v8147_v43  ;;  %8155 = vst.msk [vmem:[#allocation2 + $0x11d] ss:$8 sm:$0x70] %vm13628_vm0, %v8147_v43  ;;  %11347 = vmatprep.subr.bf16.mxu1 %v11346_v37 }
 0x77c   :  { %v8161_v5 = vrot.slane %v8159_v40, 1  ;;  %v8178_v44 = vrot.slane %v8176_v19, 1  ;;  %vm14970_vm9 = vcmask 973824   ;;  %vm14972_vm11 = vcmask 736256   ;;  %v8504_v29 = vld [vmem:[#allocation2 + $0xa0] sm:$0xff]  ;;  %v8911_v43 = vld [vmem:[#allocation2 + $0xe8] sm:$0xff] }
 0x77d   :  { %11236 = vmatmul.mubr.msk.f32.vlgmr.msra.gmra.mrb[36].mxu1 %vm8512_vm1, %v14023_v2  ;;  %v11358_v30 = vpack.c.bf16 %v8511_v16, %v8504_v29  ;;  %vm14973_vm12 = vcmask 719872   ;;  %vm10222_vm14 = vcmask 1045509  }
 0x77e   :  { %v8164_v50 = vsel %vm14965_vm3, %v8159_v40, %v8161_v5  ;;  %v8181_v51 = vsel %vm14966_vm5, %v8176_v19, %v8178_v44  ;;  %11349 = vmatpush1.bf16.msra.mxu1 %v11348_v3  ;;  %8684 = vmatprep.mubr.f32.mxu1 %v13293_v6  ;;  %v8193_v12 = vpop.permute.xlu1 %8192  ;;  %v8210_v17 = vpop.permute.xlu0 %8209 }
 0x77f   :  { %8171 = vst.msk [vmem:[#allocation2 + $0x11e] ss:$8 sm:$0xf] %vm13628_vm0, %v8164_v50  ;;  %8172 = vst.msk [vmem:[#allocation2 + $0x11e] ss:$8 sm:$0x70] %vm13628_vm0, %v8164_v50  ;;  %11351 = vmatprep.subr.bf16.mxu1 %v11350_v47 }
 0x780   :  { %8188 = vst.msk [vmem:[#allocation2 + $0x11f] ss:$8 sm:$0xf] %vm13628_vm0, %v8181_v51  ;;  %8189 = vst.msk [vmem:[#allocation2 + $0x11f] ss:$8 sm:$0x70] %vm13628_vm0, %v8181_v51 }
 0x781   :  { %v8195_v52 = vrot.slane %v8193_v12, 1  ;;  %v8212_v22 = vrot.slane %v8210_v17, 1  ;;  %11237 = vmatmul.mubr.msk.f32.gmra.mrb[38].mxu1 %vm8512_vm1, %v14042_v53 }
 0x782   :  { %11353 = vmatpush1.bf16.msra.mxu1 %v11352_v55  ;;  %8690 = vmatprep.mubr.f32.mxu1 %v13293_v6  ;;  %v8300_v42 = vpop.permute.xlu1 %8299  ;;  %v8317_v59 = vpop.permute.xlu0 %8316 }
 0x783   :  { %v8198_v58 = vsel %vm14967_vm6, %v8193_v12, %v8195_v52  ;;  %v8215_v54 = vsel %vm14968_vm7, %v8210_v17, %v8212_v22  ;;  %11355 = vmatprep.subr.bf16.mxu1 %v11354_v57  ;;  %v8302_v62 = vrot.slane %v8300_v42, 1  ;;  %v8319_v7 = vrot.slane %v8317_v59, 1 }
 0x784   :  { %8205 = vst.msk [vmem:[#allocation2 + $0x150] ss:$8 sm:$0xf] %vm13628_vm0, %v8198_v58  ;;  %8206 = vst.msk [vmem:[#allocation2 + $0x150] ss:$8 sm:$0x70] %vm13628_vm0, %v8198_v58 }
 0x785   :  { %8222 = vst.msk [vmem:[#allocation2 + $0x151] ss:$8 sm:$0xf] %vm13628_vm0, %v8215_v54  ;;  %8223 = vst.msk [vmem:[#allocation2 + $0x151] ss:$8 sm:$0x70] %vm13628_vm0, %v8215_v54  ;;  %11238 = vmatmul.mubr.msk.f32.gmra.mrb[40].mxu1 %vm8512_vm1, %v14021_v63  ;;  %v8305_v4 = vsel %vm14969_vm8, %v8300_v42, %v8302_v62  ;;  %v8322_v41 = vsel %vm14970_vm9, %v8317_v59, %v8319_v7 }
 0x786   :  { %8696 = vmatprep.mubr.f32.mxu1 %v13293_v6  ;;  %8312 = vst.msk [vmem:[#allocation2 + $0x152] ss:$8 sm:$0xf] %vm13628_vm0, %v8305_v4  ;;  %8313 = vst.msk [vmem:[#allocation2 + $0x152] ss:$8 sm:$0x70] %vm13628_vm0, %v8305_v4  ;;  %v8334_v60 = vpop.permute.xlu1 %8333  ;;  %v8351_v32 = vpop.permute.xlu0 %8350 }
 0x787   :  { %8329 = vst.msk [vmem:[#allocation2 + $0x153] ss:$8 sm:$0xf] %vm13628_vm0, %v8322_v41  ;;  %8330 = vst.msk [vmem:[#allocation2 + $0x153] ss:$8 sm:$0x70] %vm13628_vm0, %v8322_v41 }
 0x788   :  { %v8336_v8 = vrot.slane %v8334_v60, 1  ;;  %v8353_v9 = vrot.slane %v8351_v32, 1  ;;  %v8918_v34 = vld [vmem:[#allocation2 + $0x120] sm:$0xff]  ;;  %v8917_v3 = vld [vmem:[#allocation2 + $0x118] sm:$0xff]  ;;  %v8920_v50 = vld [vmem:[#allocation2 + $0x130] sm:$0xff] }
 0x789   :  { %11239 = vmatmul.mubr.msk.f32.gmra.mrb[42].mxu1 %vm8512_vm1, %v14040_v27  ;;  %v11362_v35 = vpack.c.bf16 %v8918_v34, %v8911_v43  ;;  %v11364_v47 = vpack.c.bf16 %v8917_v3, %v8910_v46  ;;  %v11370_v52 = vpack.c.bf16 %v8920_v50, %v8913_v21  ;;  %v8919_v22 = vld [vmem:[#allocation2 + $0x128] sm:$0xff]  ;;  %v8922_v59 = vld [vmem:[#allocation2 + $0x140] sm:$0xff] }
 0x78a   :  { %v8339_v10 = vsel %vm14971_vm10, %v8334_v60, %v8336_v8  ;;  %v8356_v11 = vsel %vm14972_vm11, %v8351_v32, %v8353_v9  ;;  %8767 = vmatprep.mubr.f32.mxu1 %v13293_v6  ;;  %v8368_v14 = vpop.permute.xlu1 %8367  ;;  %v8385_v18 = vpop.permute.xlu0 %8384  ;;  %v8915_v4 = vld [vmem:[#allocation2 + $0x108] sm:$0xff]  ;;  %v8921_v60 = vld [vmem:[#allocation2 + $0x138] sm:$0xff]  ;;  %v8914_v8 = vld [vmem:[#allocation2 + $0x100] sm:$0xff] }
 0x78b   :  { %8346 = vst.msk [vmem:[#allocation2 + $0x154] ss:$8 sm:$0xf] %vm13628_vm0, %v8339_v10  ;;  %8347 = vst.msk [vmem:[#allocation2 + $0x154] ss:$8 sm:$0x70] %vm13628_vm0, %v8339_v10  ;;  %v11378_v41 = vpack.c.bf16 %v8922_v59, %v8915_v4  ;;  %v11380_v9 = vpack.c.bf16 %v8921_v60, %v8914_v8 }
 0x78c   :  { %8363 = vst.msk [vmem:[#allocation2 + $0x155] ss:$8 sm:$0xf] %vm13628_vm0, %v8356_v11  ;;  %8364 = vst.msk [vmem:[#allocation2 + $0x155] ss:$8 sm:$0x70] %vm13628_vm0, %v8356_v11 }
 0x78d   :  { %v8370_v45 = vrot.slane %v8368_v14, 1  ;;  %v8387_v0 = vrot.slane %v8385_v18, 1  ;;  %11240 = vmatmul.mubr.msk.f32.vlgmr.msra.gmra.mrb[44].mxu1 %vm8512_vm1, %v14023_v2  ;;  %v14208_v34 = vld [vmem:[#allocation18] sm:$0xff] }
 0x78e   :  { %11357 = vmatpush3.bf16.msra.mxu1 %v11354_v57  ;;  %8773 = vmatprep.mubr.f32.mxu1 %v13293_v6  ;;  %v8402_v36 = vpop.permute.xlu1 %8401  ;;  %v8419_v37 = vpop.permute.xlu0 %8418  ;;  %v11372_v57 = vpack.c.bf16 %v8919_v22, %v8912_v56  ;;  %v14240_v3 = vrot.slane %v14208_v34, %v13523_v20  ;;  %v14244_v46 = vrot.slane %v14208_v34, %v13498_v61 }
 0x78f   :  { %v8373_v31 = vsel %vm8371_vm15, %v8368_v14, %v8370_v45  ;;  %v8390_v33 = vsel %vm14973_vm12, %v8385_v18, %v8387_v0  ;;  %11359 = vmatprep.subr.bf16.mxu1 %v11358_v30  ;;  %v8404_v13 = vrot.slane %v8402_v36, 1  ;;  %v8421_v28 = vrot.slane %v8419_v37, 1  ;;  %v8923_v14 = vld [vmem:[#allocation2 + $0x148] sm:$0xff]  ;;  %v8916_v0 = vld [vmem:[#allocation2 + $0x110] sm:$0xff] }
 0x790   :  { %8380 = vst.msk [vmem:[#allocation2 + $0x156] ss:$8 sm:$0xf] %vm13628_vm0, %v8373_v31  ;;  %8381 = vst.msk [vmem:[#allocation2 + $0x156] ss:$8 sm:$0x70] %vm13628_vm0, %v8373_v31  ;;  %v11386_v29 = vpack.c.bf16 %v8923_v14, %v8916_v0 }
 0x791   :  { %8397 = vst.msk [vmem:[#allocation2 + $0x157] ss:$8 sm:$0xf] %vm13628_vm0, %v8390_v33  ;;  %8398 = vst.msk [vmem:[#allocation2 + $0x157] ss:$8 sm:$0x70] %vm13628_vm0, %v8390_v33  ;;  %11241 = vmatmul.mubr.msk.f32.gmra.mrb[46].mxu1 %vm8512_vm1, %v14042_v53  ;;  %v8407_v40 = vsel %vm8405_vm13, %v8402_v36, %v8404_v13  ;;  %v8424_v19 = vsel %vm8422_vm2, %v8419_v37, %v8421_v28  ;;  %v14216_v36 = vrot.slane %v14208_v34, %v13486_v26 }
 0x792   :  { %11361 = vmatpush3.bf16.msra.mxu1 %v11358_v30  ;;  %8779 = vmatprep.mubr.f32.mxu1 %v13293_v6  ;;  %8414 = vst.msk [vmem:[#allocation2 + $0x188] ss:$8 sm:$0xf] %vm13628_vm0, %v8407_v40  ;;  %8415 = vst.msk [vmem:[#allocation2 + $0x188] ss:$8 sm:$0x70] %vm13628_vm0, %v8407_v40  ;;  %v8436_v24 = vpop.permute.xlu1 %8435 }
 0x793   :  { %8431 = vst.msk [vmem:[#allocation2 + $0x189] ss:$8 sm:$0xf] %vm13628_vm0, %v8424_v19  ;;  %8432 = vst.msk [vmem:[#allocation2 + $0x189] ss:$8 sm:$0x70] %vm13628_vm0, %v8424_v19  ;;  %11363 = vmatprep.subr.bf16.mxu1 %v11362_v35 }
 0x794   :  { %v8438_v5 = vrot.slane %v8436_v24, 1  ;;  %vm10220_vm13 = vcmask 1043459   ;;  %vm10224_vm15 = vcmask 1047559  }
 0x795   :  { %11242 = vmatmul.mubr.msk.f32.gmra.mrb[48].mxu1 %vm8512_vm1, %v14021_v63 }
 0x796   :  { %v8441_v44 = vsel %vm8439_vm4, %v8436_v24, %v8438_v5  ;;  %8785 = vmatprep.mubr.f32.mxu1 %v13293_v6 }
 0x797   :  { %8448 = vst.msk [vmem:[#allocation2 + $0x18a] ss:$8 sm:$0xf] %vm13628_vm0, %v8441_v44  ;;  %8449 = vst.msk [vmem:[#allocation2 + $0x18a] ss:$8 sm:$0x70] %vm13628_vm0, %v8441_v44 }
 0x798   :  { %v8925_v48 = vld [vmem:[#allocation2 + $0x158] sm:$0xff]  ;;  %v8924_v51 = vld [vmem:[#allocation2 + $0x150] sm:$0xff]  ;;  %v8927_v58 = vld [vmem:[#allocation2 + $0x168] sm:$0xff]  ;;  %vm10218_vm0 = vcmask 1041409  }
 0x799   :  { %11243 = vmatmul.mubr.msk.f32.gmra.mrb[50].mxu1 %vm8512_vm1, %v14040_v27  ;;  %v8926_v62 = vld [vmem:[#allocation2 + $0x160] sm:$0xff]  ;;  %v8929_v10 = vld [vmem:[#allocation2 + $0x178] sm:$0xff]  ;;  %v8928_v18 = vld [vmem:[#allocation2 + $0x170] sm:$0xff] }
 0x79a   :  { %11310 = vmatprep.mubr.msk.f32.mxu1 %vm8512_vm1, %v14023_v2  ;;  %v8930_v31 = vld [vmem:[#allocation2 + $0x180] sm:$0xff] }
 0x79d   :  { %11311 = vmatmul.mubr.msk.f32.vlgmr.msra.gmra.mrb[52].mxu1 %vm8512_vm1, %v14042_v53 }
 0x79e   :  { %11365 = vmatpush1.bf16.msra.mxu1 %v11364_v47  ;;  %11313 = vmatprep.mubr.msk.f32.mxu1 %vm8512_vm1, %v14021_v63  ;;  %v8932_v49 = vld [vmem:[#allocation2 + $0x190] sm:$0xff]  ;;  %v8931_v15 = vld [vmem:[#allocation2 + $0x188] sm:$0xff]  ;;  %v8934_v55 = vld [vmem:[#allocation2 + $0x1a0] sm:$0xff] }
 0x79f   :  { %v11366_v12 = vpack.c.bf16 %v8932_v49, %v8925_v48  ;;  %v11368_v17 = vpack.c.bf16 %v8931_v15, %v8924_v51  ;;  %v11374_v54 = vpack.c.bf16 %v8934_v55, %v8927_v58  ;;  %v8933_v42 = vld [vmem:[#allocation2 + $0x198] sm:$0xff]  ;;  %v8936_v32 = vld [vmem:[#allocation2 + $0x1b0] sm:$0xff]  ;;  %v8935_v16 = vld [vmem:[#allocation2 + $0x1a8] sm:$0xff] }
 0x7a0   :  { %v11376_v7 = vpack.c.bf16 %v8933_v42, %v8926_v62  ;;  %v11382_v11 = vpack.c.bf16 %v8936_v32, %v8929_v10  ;;  %v11384_v45 = vpack.c.bf16 %v8935_v16, %v8928_v18  ;;  %v8937_v30 = vld [vmem:[#allocation2 + $0x1b8] sm:$0xff] }
 0x7a1   :  { %11314 = vmatmul.mubr.msk.f32.gmra.mrb[54].mxu1 %vm8512_vm1, %v14040_v27  ;;  %11367 = vmatprep.subr.bf16.mxu1 %v11366_v12  ;;  %v11390_v33 = vpack.c.bf16 %v8937_v30, %v8930_v31 }
 0x7a2   :  { %11369 = vmatpush1.bf16.msra.mxu1 %v11368_v17  ;;  %9014 = vmatprep.mubr.f32.mxu1 %v13293_v6 }
 0x7a3   :  { %11371 = vmatprep.subr.bf16.mxu1 %v11370_v52 }
 0x7a5   :  { %11248 = vmatmul.mubr.msk.f32.vlgmr.msra.gmra.mrb[56].mxu1 %vm8512_vm1, %v14023_v2 }
 0x7a6   :  { %11373 = vmatpush1.bf16.msra.mxu1 %v11372_v57  ;;  %9020 = vmatprep.mubr.f32.mxu1 %v13293_v6 }
 0x7a7   :  { %11375 = vmatprep.subr.bf16.mxu1 %v11374_v54 }
 0x7a9   :  { %11249 = vmatmul.mubr.msk.f32.gmra.mrb[58].mxu1 %vm8512_vm1, %v14042_v53 }
 0x7aa   :  { %11377 = vmatpush1.bf16.msra.mxu1 %v11376_v7  ;;  %9026 = vmatprep.mubr.f32.mxu1 %v13293_v6 }
 0x7ab   :  { %11379 = vmatprep.subr.bf16.mxu1 %v11378_v41 }
 0x7ad   :  { %11250 = vmatmul.mubr.msk.f32.gmra.mrb[60].mxu1 %vm8512_vm1, %v14021_v63 }
 0x7ae   :  { %9032 = vmatprep.mubr.f32.mxu1 %v13293_v6 }
 0x7b1   :  { %11251 = vmatmul.mubr.msk.f32.gmra.mrb[62].mxu1 %vm8512_vm1, %v14040_v27 }
 0x7b2   :  { %9103 = vmatprep.mubr.f32.mxu1 %v13293_v6 }
 0x7b5   :  { %11252 = vmatmul.mubr.msk.f32.vlgmr.msra.gmra.mrb[64].mxu1 %vm8512_vm1, %v14023_v2 }
 0x7b6   :  { %11381 = vmatpush1.bf16.msra.mxu1 %v11380_v9  ;;  %9109 = vmatprep.mubr.f32.mxu1 %v13293_v6 }
 0x7b7   :  { %11383 = vmatprep.subr.bf16.mxu1 %v11382_v11 }
 0x7b9   :  { %11253 = vmatmul.mubr.msk.f32.gmra.mrb[66].mxu1 %vm8512_vm1, %v14042_v53 }
 0x7ba   :  { %11385 = vmatpush1.bf16.msra.mxu1 %v11384_v45  ;;  %9115 = vmatprep.mubr.f32.mxu1 %v13293_v6 }
 0x7bb   :  { %11387 = vmatprep.subr.bf16.mxu1 %v11386_v29 }
 0x7bd   :  { %11254 = vmatmul.mubr.msk.f32.gmra.mrb[68].mxu1 %vm8512_vm1, %v14021_v63 }
 0x7be   :  { %9121 = vmatprep.mubr.f32.mxu1 %v13293_v6 }
 0x7c1   :  { %11255 = vmatmul.mubr.msk.f32.gmra.mrb[70].mxu1 %vm8512_vm1, %v14040_v27 }
 0x7c2   :  { %9192 = vmatprep.mubr.f32.mxu1 %v13293_v6 }
 0x7c5   :  { %11256 = vmatmul.mubr.msk.f32.vlgmr.msra.gmra.mrb[72].mxu1 %vm8512_vm1, %v14023_v2 }
 0x7c6   :  { %11389 = vmatpush3.bf16.msra.mxu1 %v11386_v29  ;;  %9198 = vmatprep.mubr.f32.mxu1 %v13293_v6 }
 0x7c7   :  { %11391 = vmatprep.subr.bf16.mxu1 %v11390_v33 }
 0x7c9   :  { %11257 = vmatmul.mubr.msk.f32.gmra.mrb[74].mxu1 %vm8512_vm1, %v14042_v53 }
 0x7ca   :  { %11393 = vmatpush3.bf16.msra.mxu1 %v11390_v33  ;;  %9204 = vmatprep.mubr.f32.mxu1 %v13293_v6 }
 0x7cd   :  { %11258 = vmatmul.mubr.msk.f32.gmra.mrb[76].mxu1 %vm8512_vm1, %v14021_v63 }
 0x7ce   :  { %9210 = vmatprep.mubr.f32.mxu1 %v13293_v6  ;;  %v14212_v6 = vrot.slane %v14208_v34, %v13483_v25 }
 0x7d1   :  { %11259 = vmatmul.mubr.msk.f32.gmra.mrb[78].mxu1 %vm8512_vm1, %v14040_v27 }
 0x7d2   :  { %11324 = vmatprep.mubr.msk.f32.mxu1 %vm8512_vm1, %v14023_v2 }
 0x7d5   :  { %11325 = vmatmul.mubr.msk.f32.vlgmr.msra.gmra.mrb[80].mxu1 %vm8512_vm1, %v14042_v53 }
 0x7d6   :  { %11327 = vmatprep.mubr.msk.f32.mxu1 %vm8512_vm1, %v14021_v63 }
 0x7d9   :  { %11328 = vmatmul.mubr.msk.f32.gmra.mrb[82].mxu1 %vm8512_vm1, %v14040_v27 }
 0x848   :  { %v14218_v2 = vpop.f32.mrb[32].mxu1  ;;  %v14220_v37 = vpop.f32.mrb[28].mxu0 }
 0x849   :  { %14974 = vst [vmem:[#allocation26_spill] sm:$0xff] %v14218_v2  ;;  %v9438_v63 = vmul.f32 %v14212_v6, %v14218_v2  ;;  %v14224_v53 = vpop.f32.mrb[33].mxu1  ;;  %v9424_v27 = vmul.f32 %v14212_v6, %v14220_v37  ;;  %v14228_v13 = vpop.f32.mrb[29].mxu0 }
 0x84a   :  { %14975 = vst [vmem:[#allocation27_spill] sm:$0xff] %v14224_v53  ;;  %v9439_v25 = vmul.f32 %v14216_v36, %v14224_v53  ;;  %v9425_v26 = vmul.f32 %v14216_v36, %v14228_v13 }
 0x84b   :  { %v9554_v28 = vmul.f32 %v9438_v63, %v9438_v63  ;;  %v9540_v43 = vmul.f32 %v9424_v27, %v9424_v27 }
 0x84c   :  { %v9510_v35 = vadd.f32 %v9439_v25, %v9438_v63  ;;  %v9555_v40 = vmul.f32 %v9439_v25, %v9439_v25  ;;  %v14234_v19 = vpop.f32.mrb[34].mxu1  ;;  %v9480_v24 = vadd.f32 %v9425_v26, %v9424_v27  ;;  %v9541_v5 = vmul.f32 %v9425_v26, %v9425_v26  ;;  %v14236_v44 = vpop.f32.mrb[30].mxu0 }
 0x84d   :  { %v9445_v47 = vmul.f32 %v14212_v6, %v14234_v19  ;;  %v14248_v48 = vpop.f32.mrb[35].mxu1  ;;  %v9431_v50 = vmul.f32 %v14212_v6, %v14236_v44  ;;  %v14252_v49 = vpop.f32.mrb[31].mxu0 }
 0x84e   :  { %v9626_v51 = vadd.f32 %v9555_v40, %v9554_v28  ;;  %v9446_v15 = vmul.f32 %v14216_v36, %v14248_v48  ;;  %v9596_v20 = vadd.f32 %v9541_v5, %v9540_v43  ;;  %v9432_v12 = vmul.f32 %v14216_v36, %v14252_v49 }
 0x84f   :  { %v9561_v61 = vmul.f32 %v9445_v47, %v9445_v47  ;;  %v9547_v17 = vmul.f32 %v9431_v50, %v9431_v50  ;;  %v14286_v43 = vrot.slane %v14208_v34, %v13535_v1 }
 0x850   :  { %v9525_v21 = vadd.f32 %v9446_v15, %v9445_v47  ;;  %v9562_v52 = vmul.f32 %v9446_v15, %v9446_v15  ;;  %v14258_v22 = vpop.f32.mrb[36].mxu1  ;;  %v9495_v55 = vadd.f32 %v9432_v12, %v9431_v50  ;;  %v9548_v56 = vmul.f32 %v9432_v12, %v9432_v12 }
 0x851   :  { %v9426_v57 = vmul.f32 %v14240_v3, %v14258_v22  ;;  %v14262_v58 = vpop.f32.mrb[37].mxu1  ;;  %v14294_v50 = vrot.slane %v14208_v34, %v13597_v39 }
 0x852   :  { %v9641_v54 = vadd.f32 %v9562_v52, %v9561_v61  ;;  %v9427_v42 = vmul.f32 %v14244_v46, %v14262_v58  ;;  %v9611_v59 = vadd.f32 %v9548_v56, %v9547_v17 }
 0x853   :  { %v9481_v62 = vadd.f32 %v9480_v24, %v9426_v57  ;;  %v9542_v7 = vmul.f32 %v9426_v57, %v9426_v57 }
 0x854   :  { %v9543_v4 = vmul.f32 %v9427_v42, %v9427_v42  ;;  %v14266_v41 = vpop.f32.mrb[38].mxu1 }
 0x855   :  { %v9597_v60 = vadd.f32 %v9596_v20, %v9542_v7  ;;  %v9482_v32 = vadd.f32 %v9481_v62, %v9427_v42  ;;  %v9433_v8 = vmul.f32 %v14240_v3, %v14266_v41  ;;  %v14270_v9 = vpop.f32.mrb[39].mxu1 }
 0x856   :  { %v9434_v10 = vmul.f32 %v14244_v46, %v14270_v9 }
 0x857   :  { %v9598_v11 = vadd.f32 %v9597_v60, %v9543_v4  ;;  %v9496_v16 = vadd.f32 %v9495_v55, %v9433_v8  ;;  %v9549_v14 = vmul.f32 %v9433_v8, %v9433_v8 }
 0x858   :  { %v9550_v18 = vmul.f32 %v9434_v10, %v9434_v10  ;;  %v14274_v45 = vpop.f32.mrb[40].mxu1 }
 0x859   :  { %14976 = vst [vmem:[#allocation28_spill] sm:$0xff] %v14274_v45  ;;  %v9612_v0 = vadd.f32 %v9611_v59, %v9549_v14  ;;  %v9497_v29 = vadd.f32 %v9496_v16, %v9434_v10  ;;  %v9440_v30 = vmul.f32 %v14240_v3, %v14274_v45  ;;  %v14278_v31 = vpop.f32.mrb[41].mxu1 }
 0x85a   :  { %14977 = vst [vmem:[#allocation29_spill] sm:$0xff] %v14278_v31  ;;  %v9441_v33 = vmul.f32 %v14244_v46, %v14278_v31 }
 0x85b   :  { %v9613_v63 = vadd.f32 %v9612_v0, %v9550_v18  ;;  %v9511_v27 = vadd.f32 %v9510_v35, %v9440_v30  ;;  %v9556_v25 = vmul.f32 %v9440_v30, %v9440_v30 }
 0x85c   :  { %v9557_v26 = vmul.f32 %v9441_v33, %v9441_v33  ;;  %v14282_v28 = vpop.f32.mrb[42].mxu1 }
 0x85d   :  { %v9627_v40 = vadd.f32 %v9626_v51, %v9556_v25  ;;  %v9512_v24 = vadd.f32 %v9511_v27, %v9441_v33  ;;  %v9447_v5 = vmul.f32 %v14240_v3, %v14282_v28  ;;  %v14290_v47 = vpop.f32.mrb[43].mxu1 }
 0x85e   :  { %v9448_v35 = vmul.f32 %v14244_v46, %v14290_v47 }
 0x85f   :  { %v9628_v15 = vadd.f32 %v9627_v40, %v9557_v26  ;;  %v9526_v20 = vadd.f32 %v9525_v21, %v9447_v5  ;;  %v9563_v12 = vmul.f32 %v9447_v5, %v9447_v5 }
 0x860   :  { %v9564_v61 = vmul.f32 %v9448_v35, %v9448_v35  ;;  %v14298_v1 = vpop.f32.mrb[44].mxu1 }
 0x861   :  { %v9642_v51 = vadd.f32 %v9641_v54, %v9563_v12  ;;  %v9527_v17 = vadd.f32 %v9526_v20, %v9448_v35  ;;  %v9428_v52 = vmul.f32 %v14286_v43, %v14298_v1  ;;  %v14302_v55 = vpop.f32.mrb[45].mxu1 }
 0x862   :  { %v9429_v39 = vmul.f32 %v14294_v50, %v14302_v55 }
 0x863   :  { %v9643_v56 = vadd.f32 %v9642_v51, %v9564_v61  ;;  %v9483_v57 = vadd.f32 %v9482_v32, %v9428_v52  ;;  %v9544_v42 = vmul.f32 %v9428_v52, %v9428_v52 }
 0x864   :  { %v9545_v59 = vmul.f32 %v9429_v39, %v9429_v39  ;;  %v14306_v62 = vpop.f32.mrb[46].mxu1 }
 0x865   :  { %v9599_v21 = vadd.f32 %v9598_v11, %v9544_v42  ;;  %v9484_v7 = vadd.f32 %v9483_v57, %v9429_v39  ;;  %v9435_v54 = vmul.f32 %v14286_v43, %v14306_v62  ;;  %v14310_v4 = vpop.f32.mrb[47].mxu1 }
 0x866   :  { %v9436_v60 = vmul.f32 %v14294_v50, %v14310_v4 }
 0x867   :  { %v9600_v8 = vadd.f32 %v9599_v21, %v9545_v59  ;;  %v9498_v10 = vadd.f32 %v9497_v29, %v9435_v54  ;;  %v9551_v16 = vmul.f32 %v9435_v54, %v9435_v54  ;;  %v14326_v29 = vrot.slane %v14208_v34, %v13594_v38 }
 0x868   :  { %v9552_v14 = vmul.f32 %v9436_v60, %v9436_v60  ;;  %v14314_v18 = vpop.f32.mrb[48].mxu1 }
 0x869   :  { %14978 = vst [vmem:[#allocation30_spill] sm:$0xff] %v14314_v18  ;;  %v9614_v32 = vadd.f32 %v9613_v63, %v9551_v16  ;;  %v9499_v0 = vadd.f32 %v9498_v10, %v9436_v60  ;;  %v9442_v11 = vmul.f32 %v14286_v43, %v14314_v18  ;;  %v14318_v30 = vpop.f32.mrb[49].mxu1 }
 0x86a   :  { %14979 = vst [vmem:[#allocation31_spill] sm:$0xff] %v14318_v30  ;;  %v9443_v33 = vmul.f32 %v14294_v50, %v14318_v30 }
 0x86b   :  { %v9615_v27 = vadd.f32 %v9614_v32, %v9552_v14  ;;  %v9513_v25 = vadd.f32 %v9512_v24, %v9442_v11  ;;  %v9558_v26 = vmul.f32 %v9442_v11, %v9442_v11 }
 0x86c   :  { %v9559_v40 = vmul.f32 %v9443_v33, %v9443_v33  ;;  %v14322_v5 = vpop.f32.mrb[50].mxu1 }
 0x86d   :  { %v9629_v63 = vadd.f32 %v9628_v15, %v9558_v26  ;;  %v9514_v35 = vadd.f32 %v9513_v25, %v9443_v33  ;;  %v9449_v20 = vmul.f32 %v14286_v43, %v14322_v5  ;;  %v14330_v12 = vpop.f32.mrb[51].mxu1 }
 0x86e   :  { %v9450_v61 = vmul.f32 %v14294_v50, %v14330_v12 }
 0x86f   :  { %v9630_v51 = vadd.f32 %v9629_v63, %v9559_v40  ;;  %v9528_v24 = vadd.f32 %v9527_v17, %v9449_v20  ;;  %v9565_v52 = vmul.f32 %v9449_v20, %v9449_v20 }
 0x870   :  { %v9566_v39 = vmul.f32 %v9450_v61, %v9450_v61  ;;  %v14334_v57 = vpop.f32.mrb[52].mxu1 }
 0x871   :  { %v9644_v42 = vadd.f32 %v9643_v56, %v9565_v52  ;;  %v9529_v59 = vadd.f32 %v9528_v24, %v9450_v61  ;;  %v9437_v38 = vmul.f32 %v14334_v57, %v14326_v29  ;;  %v14338_v34 = vpop.f32.mrb[53].mxu1 }
 0x872   :  { %v9430_v15 = vmul.f32 %v14326_v29, %v14338_v34 }
 0x873   :  { %v9645_v21 = vadd.f32 %v9644_v42, %v9566_v39  ;;  %v9500_v54 = vadd.f32 %v9499_v0, %v9437_v38  ;;  %v9553_v60 = vmul.f32 %v9437_v38, %v9437_v38 }
 0x874   :  { %v9485_v10 = vadd.f32 %v9484_v7, %v9430_v15  ;;  %v9546_v16 = vmul.f32 %v9430_v15, %v9430_v15  ;;  %v14342_v17 = vpop.f32.mrb[54].mxu1 }
 0x875   :  { %v9616_v14 = vadd.f32 %v9615_v27, %v9553_v60  ;;  %v9451_v56 = vmul.f32 %v14342_v17, %v14326_v29  ;;  %v14346_v32 = vpop.f32.mrb[55].mxu1 }
 0x876   :  { %14980 = vst [vmem:[#allocation32_spill] sm:$0xff] %v14346_v32  ;;  %v9601_v11 = vadd.f32 %v9600_v8, %v9546_v16  ;;  %v9444_v33 = vmul.f32 %v14326_v29, %v14346_v32 }
 0x877   :  { %v9530_v25 = vadd.f32 %v9529_v59, %v9451_v56  ;;  %v9567_v26 = vmul.f32 %v9451_v56, %v9451_v56 }
 0x878   :  { %v9515_v40 = vadd.f32 %v9514_v35, %v9444_v33  ;;  %v9560_v63 = vmul.f32 %v9444_v33, %v9444_v33  ;;  %v14350_v0 = vpop.f32.mrb[56].mxu1 }
 0x879   :  { %v9646_v7 = vadd.f32 %v9645_v21, %v9567_v26  ;;  %v9452_v20 = vmul.f32 %v14212_v6, %v14350_v0  ;;  %v14354_v27 = vpop.f32.mrb[57].mxu1 }
 0x87a   :  { %v9631_v61 = vadd.f32 %v9630_v51, %v9560_v63  ;;  %v9453_v24 = vmul.f32 %v14216_v36, %v14354_v27 }
 0x87b   :  { %v9486_v8 = vadd.f32 %v9485_v10, %v9452_v20  ;;  %v9568_v52 = vmul.f32 %v9452_v20, %v9452_v20 }
 0x87c   :  { %v9569_v39 = vmul.f32 %v9453_v24, %v9453_v24  ;;  %v14358_v42 = vpop.f32.mrb[58].mxu1 }
 0x87d   :  { %v9602_v59 = vadd.f32 %v9601_v11, %v9568_v52  ;;  %v9487_v35 = vadd.f32 %v9486_v8, %v9453_v24  ;;  %v9459_v38 = vmul.f32 %v14212_v6, %v14358_v42  ;;  %v14362_v15 = vpop.f32.mrb[59].mxu1 }
 0x87e   :  { %v9460_v21 = vmul.f32 %v14216_v36, %v14362_v15 }
 0x87f   :  { %v9603_v60 = vadd.f32 %v9602_v59, %v9569_v39  ;;  %v9501_v51 = vadd.f32 %v9500_v54, %v9459_v38  ;;  %v9575_v16 = vmul.f32 %v9459_v38, %v9459_v38 }
 0x880   :  { %v9576_v56 = vmul.f32 %v9460_v21, %v9460_v21  ;;  %v14366_v33 = vpop.f32.mrb[60].mxu1 }
 0x881   :  { %14981 = vst [vmem:[#allocation33_spill] sm:$0xff] %v14366_v33  ;;  %v9617_v10 = vadd.f32 %v9616_v14, %v9575_v16  ;;  %v9502_v26 = vadd.f32 %v9501_v51, %v9460_v21  ;;  %v9466_v11 = vmul.f32 %v14212_v6, %v14366_v33  ;;  %v14370_v63 = vpop.f32.mrb[61].mxu1 }
 0x882   :  { %14982 = vst [vmem:[#allocation34_spill] sm:$0xff] %v14370_v63  ;;  %v9467_v20 = vmul.f32 %v14216_v36, %v14370_v63 }
 0x883   :  { %v9618_v24 = vadd.f32 %v9617_v10, %v9576_v56  ;;  %v9516_v8 = vadd.f32 %v9515_v40, %v9466_v11  ;;  %v9582_v52 = vmul.f32 %v9466_v11, %v9466_v11 }
 0x884   :  { %v9583_v32 = vmul.f32 %v9467_v20, %v9467_v20  ;;  %v14374_v39 = vpop.f32.mrb[62].mxu1 }
 0x885   :  { %v9632_v54 = vadd.f32 %v9631_v61, %v9582_v52  ;;  %v9517_v59 = vadd.f32 %v9516_v8, %v9467_v20  ;;  %v9473_v14 = vmul.f32 %v14212_v6, %v14374_v39  ;;  %v14378_v38 = vpop.f32.mrb[63].mxu1 }
 0x886   :  { %v9474_v21 = vmul.f32 %v14216_v36, %v14378_v38 }
 0x887   :  { %v9633_v51 = vadd.f32 %v9632_v54, %v9583_v32  ;;  %v9531_v16 = vadd.f32 %v9530_v25, %v9473_v14  ;;  %v9589_v33 = vmul.f32 %v9473_v14, %v9473_v14 }
 0x888   :  { %v9590_v63 = vmul.f32 %v9474_v21, %v9474_v21  ;;  %v14382_v56 = vpop.f32.mrb[64].mxu1 }
 0x889   :  { %v9647_v40 = vadd.f32 %v9646_v7, %v9589_v33  ;;  %v9532_v10 = vadd.f32 %v9531_v16, %v9474_v21  ;;  %v9454_v61 = vmul.f32 %v14240_v3, %v14382_v56  ;;  %v14386_v11 = vpop.f32.mrb[65].mxu1 }
 0x88a   :  { %v9455_v6 = vmul.f32 %v14244_v46, %v14386_v11 }
 0x88b   :  { %v9648_v20 = vadd.f32 %v9647_v40, %v9590_v63  ;;  %v9488_v8 = vadd.f32 %v9487_v35, %v9454_v61  ;;  %v9570_v52 = vmul.f32 %v9454_v61, %v9454_v61 }
 0x88c   :  { %v9571_v36 = vmul.f32 %v9455_v6, %v9455_v6  ;;  %v14390_v32 = vpop.f32.mrb[66].mxu1 }
 0x88d   :  { %v9604_v25 = vadd.f32 %v9603_v60, %v9570_v52  ;;  %v9489_v54 = vadd.f32 %v9488_v8, %v9455_v6  ;;  %v9461_v7 = vmul.f32 %v14240_v3, %v14390_v32  ;;  %v14394_v33 = vpop.f32.mrb[67].mxu1 }
 0x88e   :  { %v9462_v14 = vmul.f32 %v14244_v46, %v14394_v33 }
 0x88f   :  { %v9605_v21 = vadd.f32 %v9604_v25, %v9571_v36  ;;  %v9503_v16 = vadd.f32 %v9502_v26, %v9461_v7  ;;  %v9577_v30 = vmul.f32 %v9461_v7, %v9461_v7 }
 0x890   :  { %v9578_v18 = vmul.f32 %v9462_v14, %v9462_v14  ;;  %v14398_v63 = vpop.f32.mrb[68].mxu1 }
 0x891   :  { %14983 = vst [vmem:[#allocation35_spill] sm:$0xff] %v14398_v63  ;;  %v9619_v35 = vadd.f32 %v9618_v24, %v9577_v30  ;;  %v9504_v40 = vadd.f32 %v9503_v16, %v9462_v14  ;;  %v9468_v60 = vmul.f32 %v14240_v3, %v14398_v63  ;;  %v14402_v61 = vpop.f32.mrb[69].mxu1 }
 0x892   :  { %14984 = vst [vmem:[#allocation36_spill] sm:$0xff] %v14402_v61  ;;  %v9469_v6 = vmul.f32 %v14244_v46, %v14402_v61 }
 0x893   :  { %v9620_v8 = vadd.f32 %v9619_v35, %v9578_v18  ;;  %v9518_v52 = vadd.f32 %v9517_v59, %v9468_v60  ;;  %v9584_v31 = vmul.f32 %v9468_v60, %v9468_v60 }
 0x894   :  { %v9585_v45 = vmul.f32 %v9469_v6, %v9469_v6  ;;  %v14406_v36 = vpop.f32.mrb[70].mxu1 }
 0x895   :  { %14985 = vst [vmem:[#allocation37_spill] sm:$0xff] %v14406_v36  ;;  %v9634_v26 = vadd.f32 %v9633_v51, %v9584_v31  ;;  %v9519_v25 = vadd.f32 %v9518_v52, %v9469_v6  ;;  %v9475_v30 = vmul.f32 %v14240_v3, %v14406_v36  ;;  %v14410_v24 = vpop.f32.mrb[71].mxu1 }
 0x896   :  { %14986 = vst [vmem:[#allocation38_spill] sm:$0xff] %v14410_v24  ;;  %v9476_v7 = vmul.f32 %v14244_v46, %v14410_v24 }
 0x897   :  { %v9635_v14 = vadd.f32 %v9634_v26, %v9585_v45  ;;  %v9533_v16 = vadd.f32 %v9532_v10, %v9475_v30  ;;  %v9591_v63 = vmul.f32 %v9475_v30, %v9475_v30 }
 0x898   :  { %v9592_v61 = vmul.f32 %v9476_v7, %v9476_v7  ;;  %v14414_v18 = vpop.f32.mrb[72].mxu1 }
 0x899   :  { %v9649_v59 = vadd.f32 %v9648_v20, %v9591_v63  ;;  %v9534_v35 = vadd.f32 %v9533_v16, %v9476_v7  ;;  %v9456_v31 = vmul.f32 %v14286_v43, %v14414_v18  ;;  %v14418_v51 = vpop.f32.mrb[73].mxu1 }
 0x89a   :  { %v9457_v3 = vmul.f32 %v14294_v50, %v14418_v51 }
 0x89b   :  { %v9650_v60 = vadd.f32 %v9649_v59, %v9592_v61  ;;  %v9490_v6 = vadd.f32 %v9489_v54, %v9456_v31  ;;  %v9572_v52 = vmul.f32 %v9456_v31, %v9456_v31 }
 0x89c   :  { %v9573_v46 = vmul.f32 %v9457_v3, %v9457_v3  ;;  %v14422_v45 = vpop.f32.mrb[74].mxu1 }
 0x89d   :  { %v9463_v10 = vmul.f32 %v14286_v43, %v14422_v45  ;;  %v14426_v26 = vpop.f32.mrb[75].mxu1  ;;  %v9491_v20 = vadd.f32 %v9490_v6, %v9457_v3  ;;  %v9606_v63 = vadd.f32 %v9605_v21, %v9572_v52 }
 0x89e   :  { %v9464_v30 = vmul.f32 %v14294_v50, %v14426_v26 }
 0x89f   :  { %v9505_v7 = vadd.f32 %v9504_v40, %v9463_v10  ;;  %v9579_v16 = vmul.f32 %v9463_v10, %v9463_v10  ;;  %v9607_v53 = vadd.f32 %v9606_v63, %v9573_v46 }
 0x8a0   :  { %v9580_v2 = vmul.f32 %v9464_v30, %v9464_v30  ;;  %v14430_v61 = vpop.f32.mrb[76].mxu1 }
 0x8a1   :  { %14987 = vst [vmem:[#allocation39_spill] sm:$0xff] %v14430_v61  ;;  %v9470_v54 = vmul.f32 %v14286_v43, %v14430_v61  ;;  %v14434_v59 = vpop.f32.mrb[77].mxu1  ;;  %v9506_v31 = vadd.f32 %v9505_v7, %v9464_v30  ;;  %v9621_v24 = vadd.f32 %v9620_v8, %v9579_v16 }
 0x8a2   :  { %14988 = vst [vmem:[#allocation40_spill] sm:$0xff] %v14434_v59  ;;  %v9471_v3 = vmul.f32 %v14294_v50, %v14434_v59 }
 0x8a3   :  { %v9520_v21 = vadd.f32 %v9519_v25, %v9470_v54  ;;  %v9586_v6 = vmul.f32 %v9470_v54, %v9470_v54  ;;  %v9622_v52 = vadd.f32 %v9621_v24, %v9580_v2 }
 0x8a4   :  { %v9587_v36 = vmul.f32 %v9471_v3, %v9471_v3  ;;  %v14438_v40 = vpop.f32.mrb[78].mxu1 }
 0x8a5   :  { %v9477_v46 = vmul.f32 %v14286_v43, %v14438_v40  ;;  %v14442_v10 = vpop.f32.mrb[79].mxu1  ;;  %v9636_v63 = vadd.f32 %v9635_v14, %v9586_v6  ;;  %v9521_v61 = vadd.f32 %v9520_v21, %v9471_v3 }
 0x8a6   :  { %14989 = vst [vmem:[#allocation41_spill] sm:$0xff] %v14442_v10  ;;  %v9478_v30 = vmul.f32 %v14294_v50, %v14442_v10 }
 0x8a7   :  { %v9535_v8 = vadd.f32 %v9534_v35, %v9477_v46  ;;  %v9593_v7 = vmul.f32 %v9477_v46, %v9477_v46  ;;  %v9637_v16 = vadd.f32 %v9636_v63, %v9587_v36 }
 0x8a8   :  { %v9594_v59 = vmul.f32 %v9478_v30, %v9478_v30  ;;  %v14446_v25 = vpop.f32.mrb[80].mxu1 }
 0x8a9   :  { %v9465_v2 = vmul.f32 %v14446_v25, %v14326_v29  ;;  %v14450_v24 = vpop.f32.mrb[81].mxu1  ;;  %v9536_v54 = vadd.f32 %v9535_v8, %v9478_v30  ;;  %v9651_v43 = vadd.f32 %v9650_v60, %v9593_v7 }
 0x8aa   :  { %v9458_v14 = vmul.f32 %v14326_v29, %v14450_v24 }
 0x8ab   :  { %v9507_v3 = vadd.f32 %v9506_v31, %v9465_v2  ;;  %v9581_v21 = vmul.f32 %v9465_v2, %v9465_v2  ;;  %v9652_v6 = vadd.f32 %v9651_v43, %v9594_v59 }
 0x8ac   :  { %v14454_v50 = vpop.f32.mrb[82].mxu1  ;;  %v9492_v35 = vadd.f32 %v9491_v20, %v9458_v14  ;;  %v9574_v36 = vmul.f32 %v9458_v14, %v9458_v14 }
 0x8ad   :  { %v9479_v46 = vmul.f32 %v14454_v50, %v14326_v29  ;;  %v14458_v63 = vpop.f32.mrb[83].mxu1  ;;  %9508 = vadd.xlane.f32.xlu1 %v9507_v3  ;;  %v9623_v10 = vadd.f32 %v9622_v52, %v9581_v21  ;;  %v9913_v52 = vld [vmem:[%s14923_s10] sm:$0xff] }
 0x8ae   :  { %14990 = vst [vmem:[#allocation42_spill] sm:$0xff] %v14458_v63  ;;  %v9472_v60 = vmul.f32 %v14326_v29, %v14458_v63  ;;  %9493 = vadd.xlane.f32.xlu0 %v9492_v35  ;;  %v9608_v30 = vadd.f32 %v9607_v53, %v9574_v36 }
 0x8af   :  { %v9537_v8 = vadd.f32 %v9536_v54, %v9479_v46  ;;  %v9595_v31 = vmul.f32 %v9479_v46, %v9479_v46 }
 0x8b0   :  { %v9588_v7 = vmul.f32 %v9472_v60, %v9472_v60  ;;  %v9522_v59 = vadd.f32 %v9521_v61, %v9472_v60 }
 0x8b1   :  { %9624 = vadd.xlane.f32.xlu1 %v9623_v10  ;;  %v9653_v2 = vadd.f32 %v9652_v6, %v9595_v31 }
 0x8b2   :  { %9609 = vadd.xlane.f32.xlu0 %v9608_v30  ;;  %v9638_v20 = vadd.f32 %v9637_v16, %v9588_v7 }
 0x8b5   :  { %9639 = vadd.xlane.f32.xlu1 %v9638_v20 }
 0x8b6   :  { %9538 = vadd.xlane.f32.xlu0 %v9537_v8 }
 0x8ba   :  { %9523 = vadd.xlane.f32.xlu0 %v9522_v59 }
 0x8be   :  { %9654 = vadd.xlane.f32.xlu0 %v9653_v2 }
 0x8c6   :  { %9919 = vperm.xlu1 %11554, %v9913_v52  }
 0x93a   :  { %v9509_v29 = vpop.xlane.xlu1 %9508 }
 0x93b   :  { %v9658_v43 = vmul.f32 0.0006377551, %v9509_v29  ;;  %v9494_v53 = vpop.xlane.xlu0 %9493 }
 0x93c   :  { %v9657_v54 = vmul.f32 0.0006377551, %v9494_v53 }
 0x93d   :  { %v9666_v3 = vmul.f32 %v9658_v43, %v9658_v43 }
 0x93e   :  { %v9625_v14 = vpop.xlane.xlu1 %9624  ;;  %v9665_v21 = vmul.f32 %v9657_v54, %v9657_v54 }
 0x93f   :  { %v9662_v61 = vmul.f32 0.0006377551, %v9625_v14  ;;  %v9610_v10 = vpop.xlane.xlu0 %9609 }
 0x940   :  { %v9661_v6 = vmul.f32 0.0006377551, %v9610_v10 }
 0x941   :  { %v9670_v16 = vsub.f32 %v9662_v61, %v9666_v3  ;;  %v9678_v61 = vld [vmem:[%s14921_s8 + $0x8] sm:$0xff] }
 0x942   :  { %v9669_v35 = vsub.f32 %v9661_v6, %v9665_v21  ;;  %v9640_v31 = vpop.xlane.xlu1 %9639  ;;  %v9677_v6 = vld [vmem:[%s14921_s8] sm:$0xff] }
 0x943   :  { %v9674_v36 = vmax.f32 %v9670_v16, 0.0  ;;  %v9539_v46 = vpop.xlane.xlu0 %9538  ;;  %v9663_v20 = vmul.f32 0.0006377551, %v9640_v31  ;;  %v9915_v31 = vld [vmem:[%s14923_s10 + $0x10] sm:$0xff] }
 0x944   :  { %v9673_v60 = vmax.f32 %v9669_v35, 0.0  ;;  %v9660_v59 = vmul.f32 0.0006377551, %v9539_v46 }
 0x945   :  { %v9682_v30 = vadd.f32 1e-05, %v9674_v36 }
 0x946   :  { %v9681_v8 = vadd.f32 1e-05, %v9673_v60  ;;  %v9668_v53 = vmul.f32 %v9660_v59, %v9660_v59 }
 0x947   :  { %13011 = vrsqrt.f32 %v9682_v30  ;;  %v9524_v7 = vpop.xlane.xlu0 %9523 }
 0x948   :  { %13013 = vrsqrt.f32 %v9681_v8  ;;  %v9659_v2 = vmul.f32 0.0006377551, %v9524_v7  ;;  %v9694_v8 = vld [vmem:[%s14922_s9 + $0x8] sm:$0xff] }
 0x94a   :  { %v9667_v52 = vmul.f32 %v9659_v2, %v9659_v2 }
 0x94b   :  { %v9655_v29 = vpop.xlane.xlu0 %9654 }
 0x94c   :  { %v9671_v14 = vsub.f32 %v9663_v20, %v9667_v52  ;;  %v9664_v63 = vmul.f32 0.0006377551, %v9655_v29  ;;  %v9680_v20 = vld [vmem:[%s14921_s8 + $0x18] sm:$0xff] }
 0x94e   :  { %v9675_v10 = vmax.f32 %v9671_v14, 0.0  ;;  %v9672_v3 = vsub.f32 %v9664_v63, %v9668_v53 }
 0x950   :  { %v9676_v21 = vmax.f32 %v9672_v3, 0.0  ;;  %v9683_v36 = vadd.f32 1e-05, %v9675_v10  ;;  %v9693_v3 = vld [vmem:[%s14922_s9] sm:$0xff] }
 0x951   :  { %v13012_v16 = vpop.eup %13011 }
 0x952   :  { %v13014_v35 = vpop.eup %13013  ;;  %v9684_v46 = vadd.f32 1e-05, %v9676_v21  ;;  %v9690_v60 = vmul.f32 %v13012_v16, %v9678_v61 }
 0x953   :  { %v9689_v30 = vmul.f32 %v13014_v35, %v9677_v6  ;;  %v9696_v6 = vld [vmem:[%s14922_s9 + $0x18] sm:$0xff] }
 0x954   :  { %13015 = vrsqrt.f32 %v9684_v46  ;;  %9712 = vperm.xlu0 %11553, %v9690_v60   ;;  %v9698_v63 = vmul.f32 %v9690_v60, %v9658_v43  ;;  %v9679_v43 = vld [vmem:[%s14921_s8 + $0x10] sm:$0xff]  ;;  %v9914_v46 = vld [vmem:[%s14923_s10 + $0x8] sm:$0xff]  ;;  %v13294_v60 = vmov 1983009808  }
 0x955   :  { %9707 = vperm.xlu1 %11554, %v9689_v30   ;;  %13017 = vrsqrt.f32 %v9683_v36  ;;  %v9697_v10 = vmul.f32 %v9689_v30, %v9657_v54  ;;  %v9695_v36 = vld [vmem:[%s14922_s9 + $0x10] sm:$0xff]  ;;  %v14498_v30 = vpop.permute.xlu1 %9919  ;;  %s13295_s9 = smov [#allocation19]  }
 0x956   :  { %v9702_v7 = vsub.f32 %v9694_v8, %v9698_v63  ;;  %14991 = vst [vmem:[#allocation43_spill] sm:$0xff] %v14498_v30 }
 0x957   :  { %v9701_v61 = vsub.f32 %v9693_v3, %v9697_v10 }
 0x958   :  { %9929 = vperm.xlu0 %11553, %v9915_v31  }
 0x959   :  { %9788 = vperm.xlu1 %11554, %v9702_v7  }
 0x95e   :  { %v13016_v52 = vpop.eup %13015 }
 0x95f   :  { %v9692_v29 = vmul.f32 %v13016_v52, %v9680_v20  ;;  %v13018_v53 = vpop.eup %13017 }
 0x960   :  { %v9691_v14 = vmul.f32 %v13018_v53, %v9679_v43 }
 0x961   :  { %9722 = vperm.xlu1 %11554, %v9692_v29   ;;  %v9700_v21 = vmul.f32 %v9692_v29, %v9660_v59  ;;  %v9916_v59 = vld [vmem:[%s14923_s10 + $0x18] sm:$0xff]  ;;  %s10243_s10 = sshll.u32 %s13295_s9, 4  ;;  %s10244_s10 = int_to_ptr.vmem [resolvable:$true] %s10243_s10 }
 0x962   :  { %v9699_v16 = vmul.f32 %v9691_v14, %v9659_v2  ;;  %v10150_v2 = vunpack.c.l.s4 %v13294_v60  ;;  %s13217_s13 = scalar_lea.vmem %s10244_s10, 224  ;;  %p13222_p3 = scmp.lt.s32.totalorder %s10244_s10, %s10244_s10 }
 0x963   :  { %v9704_v35 = vsub.f32 %v9696_v6, %v9700_v21  ;;  %p13218_p2 = scmp.ne.s32.totalorder %s10244_s10, %s13217_s13  ;;  %p13223_p4 = scmp.lt.s32.totalorder %s13217_s13, %s13217_s13 }
 0x964   :  { %v9703_v54 = vsub.f32 %v9695_v36, %v9699_v16  ;;  %v10151_v8 = vunpack.c.0.s8 %v10150_v2 }
 0x965   :  { %9717 = vperm.xlu1 %11554, %v9691_v14   ;;  %p13224_p5 = por %p13223_p4, %p13222_p3 }
 0x966   :  { %v14501_v31 = vsub.s32 %v10151_v8, %v13480_v23 }
 0x967   :  { %p13225_p6 = pnand %p13224_p5, %p13218_p2 }
 0x968   :  { %14992 = vst [vmem:[#allocation44_spill] sm:$0xff] %v14501_v31  ;;  %v15013_v31 = vld [vmem:[#allocation35_spill] sm:$0xff] }
 0x969   :  { %9783 = vperm.xlu1 %11554, %v9701_v61  }
 0x96d   :  { %9798 = vperm.xlu1 %11554, %v9704_v35  }
 0x971   :  { %9793 = vperm.xlu1 %11554, %v9703_v54   ;;  %v15011_v54 = vld [vmem:[#allocation33_spill] sm:$0xff] }
 0x975   :  { %9924 = vperm.xlu1 %11554, %v9914_v46   ;;  %v15010_v46 = vld [vmem:[#allocation32_spill] sm:$0xff] }
 0x979   :  { %9934 = vperm.xlu1 %11554, %v9916_v59  }
 0x9d3   :  { %v9713_v63 = vpop.permute.xlu0 %9712 }
 0x9d4   :  { %v9708_v7 = vpop.permute.xlu1 %9707  ;;  %v9732_v20 = vmul.f32 %v9713_v63, %v14236_v44  ;;  %v9733_v52 = vmul.f32 %v9713_v63, %v14252_v49  ;;  %v9734_v29 = vmul.f32 %v9713_v63, %v14266_v41  ;;  %v9735_v53 = vmul.f32 %v9713_v63, %v14270_v9 }
 0x9d5   :  { %v14508_v43 = vmul.f32 %v9708_v7, %v14220_v37  ;;  %v14511_v14 = vmul.f32 %v9708_v7, %v14228_v13  ;;  %v14514_v10 = vmul.f32 %v9708_v7, %v14258_v22  ;;  %v14517_v23 = vmul.f32 %v9708_v7, %v14262_v58 }
 0x9d6   :  { %v14520_v44 = vmul.f32 %v9708_v7, %v14298_v1  ;;  %v14523_v49 = vmul.f32 %v9708_v7, %v14302_v55  ;;  %v14526_v41 = vmul.f32 %v9708_v7, %v14338_v34  ;;  %v9736_v37 = vmul.f32 %v9713_v63, %v14306_v62 }
 0x9d7   :  { %v9737_v13 = vmul.f32 %v9713_v63, %v14310_v4  ;;  %v9738_v9 = vmul.f32 %v14334_v57, %v9713_v63  ;;  %v14532_v22 = vmul.f32 %v9708_v7, %v14350_v0  ;;  %v14535_v58 = vmul.f32 %v9708_v7, %v14354_v27 }
 0x9d8   :  { %v9789_v1 = vpop.permute.xlu1 %9788  ;;  %v14538_v3 = vmul.f32 %v9708_v7, %v14382_v56  ;;  %v14541_v55 = vmul.f32 %v9708_v7, %v14386_v11  ;;  %v14544_v34 = vmul.f32 %v9708_v7, %v14414_v18  ;;  %v14547_v62 = vmul.f32 %v9708_v7, %v14418_v51 }
 0x9d9   :  { %v14550_v4 = vmul.f32 %v9708_v7, %v14450_v24  ;;  %v9760_v57 = vmul.f32 %v9713_v63, %v14358_v42  ;;  %v9761_v0 = vmul.f32 %v9713_v63, %v14362_v15  ;;  %v9762_v27 = vmul.f32 %v9713_v63, %v14390_v32 }
 0x9da   :  { %v9763_v56 = vmul.f32 %v9713_v63, %v14394_v33  ;;  %v9764_v11 = vmul.f32 %v9713_v63, %v14422_v45  ;;  %v9765_v61 = vmul.f32 %v9713_v63, %v14426_v26  ;;  %v9766_v18 = vmul.f32 %v14446_v25, %v9713_v63 }
 0x9db   :  { %v14559_v21 = vadd.f32 %v9789_v1, %v9732_v20  ;;  %v14561_v51 = vadd.f32 %v9789_v1, %v9733_v52  ;;  %v14563_v24 = vadd.f32 %v9789_v1, %v9734_v29  ;;  %v14565_v6 = vadd.f32 %v9789_v1, %v9735_v53 }
 0x9dc   :  { %v14567_v42 = vadd.f32 %v9789_v1, %v9736_v37  ;;  %v14569_v15 = vadd.f32 %v9789_v1, %v9737_v13  ;;  %v14571_v32 = vadd.f32 %v9789_v1, %v9738_v9  ;;  %v14573_v33 = vadd.f32 %v9789_v1, %v9760_v57 }
 0x9dd   :  { %v14575_v45 = vadd.f32 %v9789_v1, %v9761_v0  ;;  %v14577_v26 = vadd.f32 %v9789_v1, %v9762_v27  ;;  %v14579_v25 = vadd.f32 %v9789_v1, %v9763_v56  ;;  %v14581_v16 = vadd.f32 %v9789_v1, %v9764_v11  ;;  %v15001_v11 = vld [vmem:[#allocation37_spill] sm:$0xff] }
 0x9de   :  { %14993 = vst [vmem:[#allocation45_spill] sm:$0xff] %v14571_v32  ;;  %14994 = vst [vmem:[#allocation46_spill] sm:$0xff] %v14573_v33  ;;  %v14583_v35 = vadd.f32 %v9789_v1, %v9765_v61  ;;  %v14585_v36 = vadd.f32 %v9789_v1, %v9766_v18  ;;  %v15002_v18 = vld [vmem:[#allocation38_spill] sm:$0xff] }
 0x9df   :  { %14995 = vst [vmem:[#allocation47_spill] sm:$0xff] %v14575_v45  ;;  %14996 = vst [vmem:[#allocation48_spill] sm:$0xff] %v14577_v26 }
 0x9e0   :  { %14997 = vst [vmem:[#allocation49_spill] sm:$0xff] %v14579_v25  ;;  %14998 = vst [vmem:[#allocation50_spill] sm:$0xff] %v14581_v16  ;;  %v9723_v63 = vpop.permute.xlu1 %9722  ;;  %v15014_v16 = vld [vmem:[#allocation36_spill] sm:$0xff]  ;;  %v15015_v25 = vld [vmem:[#allocation39_spill] sm:$0xff] }
 0x9e1   :  { %14999 = vst [vmem:[#allocation51_spill] sm:$0xff] %v14583_v35  ;;  %15000 = vst [vmem:[#allocation52_spill] sm:$0xff] %v14585_v36  ;;  %v9746_v53 = vmul.f32 %v9723_v63, %v14234_v19  ;;  %v9747_v37 = vmul.f32 %v9723_v63, %v14248_v48  ;;  %v9748_v13 = vmul.f32 %v9723_v63, %v14282_v28  ;;  %v15003_v28 = vld [vmem:[#allocation41_spill] sm:$0xff] }
 0x9e2   :  { %v9749_v9 = vmul.f32 %v9723_v63, %v14290_v47  ;;  %v9750_v1 = vmul.f32 %v9723_v63, %v14322_v5  ;;  %v9751_v57 = vmul.f32 %v9723_v63, %v14330_v12  ;;  %v9752_v0 = vmul.f32 %v14342_v17, %v9723_v63  ;;  %v15004_v17 = vld [vmem:[#allocation26_spill] sm:$0xff] }
 0x9e3   :  { %v9774_v27 = vmul.f32 %v9723_v63, %v14374_v39  ;;  %v9775_v56 = vmul.f32 %v9723_v63, %v14378_v38  ;;  %v9776_v61 = vmul.f32 %v9723_v63, %v15001_v11  ;;  %v9777_v19 = vmul.f32 %v9723_v63, %v15002_v18  ;;  %v15005_v39 = vld [vmem:[#allocation27_spill] sm:$0xff]  ;;  %v15006_v38 = vld [vmem:[#allocation28_spill] sm:$0xff]  ;;  %v15007_v11 = vld [vmem:[#allocation29_spill] sm:$0xff] }
 0x9e4   :  { %v9778_v48 = vmul.f32 %v9723_v63, %v14438_v40  ;;  %v9718_v29 = vpop.permute.xlu1 %9717  ;;  %v9779_v52 = vmul.f32 %v9723_v63, %v15003_v28  ;;  %v9780_v47 = vmul.f32 %v14454_v50, %v9723_v63  ;;  %v15008_v18 = vld [vmem:[#allocation30_spill] sm:$0xff]  ;;  %v15009_v40 = vld [vmem:[#allocation31_spill] sm:$0xff] }
 0x9e5   :  { %v9739_v20 = vmul.f32 %v9718_v29, %v15004_v17  ;;  %v9740_v7 = vmul.f32 %v9718_v29, %v15005_v39  ;;  %v9741_v8 = vmul.f32 %v9718_v29, %v15006_v38  ;;  %v9742_v2 = vmul.f32 %v9718_v29, %v15007_v11  ;;  %v15012_v63 = vld [vmem:[#allocation34_spill] sm:$0xff]  ;;  %v15016_v38 = vld [vmem:[#allocation40_spill] sm:$0xff] }
 0x9e6   :  { %v9743_v60 = vmul.f32 %v9718_v29, %v15008_v18  ;;  %v9744_v59 = vmul.f32 %v9718_v29, %v15009_v40  ;;  %v9745_v28 = vmul.f32 %v9718_v29, %v15010_v46  ;;  %v9767_v50 = vmul.f32 %v9718_v29, %v15011_v54  ;;  %v15017_v11 = vld [vmem:[#allocation42_spill] sm:$0xff] }
 0x9e7   :  { %v9768_v5 = vmul.f32 %v9718_v29, %v15012_v63  ;;  %v9769_v12 = vmul.f32 %v9718_v29, %v15013_v31  ;;  %v9770_v17 = vmul.f32 %v9718_v29, %v15014_v16  ;;  %v9771_v39 = vmul.f32 %v9718_v29, %v15015_v25 }
 0x9e8   :  { %v9784_v26 = vpop.permute.xlu1 %9783  ;;  %v9772_v45 = vmul.f32 %v9718_v29, %v15016_v38  ;;  %v9773_v33 = vmul.f32 %v9718_v29, %v15017_v11 }
 0x9e9   :  { %v14630_v46 = vadd.f32 %v9784_v26, %v14508_v43  ;;  %v14633_v54 = vadd.f32 %v9784_v26, %v14511_v14  ;;  %v14636_v31 = vadd.f32 %v9784_v26, %v14514_v10  ;;  %v14639_v25 = vadd.f32 %v9784_v26, %v14517_v23 }
 0x9ea   :  { %v14642_v16 = vadd.f32 %v9784_v26, %v14520_v44  ;;  %v14645_v29 = vadd.f32 %v9784_v26, %v14523_v49  ;;  %v14648_v63 = vadd.f32 %v9784_v26, %v14526_v41  ;;  %v14651_v43 = vadd.f32 %v9784_v26, %v14532_v22 }
 0x9eb   :  { %v14654_v14 = vadd.f32 %v9784_v26, %v14535_v58  ;;  %v14657_v10 = vadd.f32 %v9784_v26, %v14538_v3  ;;  %v14660_v23 = vadd.f32 %v9784_v26, %v14541_v55  ;;  %v14663_v44 = vadd.f32 %v9784_v26, %v14544_v34 }
 0x9ec   :  { %v9799_v49 = vpop.permute.xlu1 %9798  ;;  %v14666_v38 = vadd.f32 %v9784_v26, %v14547_v62  ;;  %v14669_v41 = vadd.f32 %v9784_v26, %v14550_v4 }
 0x9ed   :  { %v14673_v11 = vadd.f32 %v9799_v49, %v9746_v53  ;;  %v14675_v3 = vadd.f32 %v9799_v49, %v9747_v37  ;;  %v14677_v55 = vadd.f32 %v9799_v49, %v9748_v13  ;;  %v14679_v40 = vadd.f32 %v9799_v49, %v9749_v9 }
 0x9ee   :  { %v14681_v34 = vadd.f32 %v9799_v49, %v9750_v1  ;;  %v14683_v18 = vadd.f32 %v9799_v49, %v9751_v57  ;;  %v14685_v62 = vadd.f32 %v9799_v49, %v9752_v0  ;;  %v14687_v4 = vadd.f32 %v9799_v49, %v9774_v27 }
 0x9ef   :  { %v14689_v26 = vadd.f32 %v9799_v49, %v9775_v56  ;;  %v14691_v22 = vadd.f32 %v9799_v49, %v9776_v61  ;;  %v14693_v53 = vadd.f32 %v9799_v49, %v9777_v19  ;;  %v14695_v37 = vadd.f32 %v9799_v49, %v9778_v48 }
 0x9f0   :  { %v9794_v13 = vpop.permute.xlu1 %9793  ;;  %v14697_v58 = vadd.f32 %v9799_v49, %v9779_v52  ;;  %v14699_v9 = vadd.f32 %v9799_v49, %v9780_v47  ;;  %v9859_v1 = vmax.f32 %v14636_v31, 0.0  ;;  %v9860_v57 = vmax.f32 %v14639_v25, 0.0 }
 0x9f1   :  { %v14703_v0 = vadd.f32 %v9794_v13, %v9739_v20  ;;  %v14705_v27 = vadd.f32 %v9794_v13, %v9740_v7  ;;  %v14707_v56 = vadd.f32 %v9794_v13, %v9741_v8  ;;  %v14709_v61 = vadd.f32 %v9794_v13, %v9742_v2 }
 0x9f2   :  { %v14711_v19 = vadd.f32 %v9794_v13, %v9743_v60  ;;  %v14713_v48 = vadd.f32 %v9794_v13, %v9744_v59  ;;  %v14715_v52 = vadd.f32 %v9794_v13, %v9745_v28  ;;  %v14717_v47 = vadd.f32 %v9794_v13, %v9767_v50 }
 0x9f3   :  { %v14719_v49 = vadd.f32 %v9794_v13, %v9768_v5  ;;  %v14721_v31 = vadd.f32 %v9794_v13, %v9769_v12  ;;  %v14723_v20 = vadd.f32 %v9794_v13, %v9770_v17  ;;  %v14725_v7 = vadd.f32 %v9794_v13, %v9771_v39 }
 0x9f4   :  { %v14727_v8 = vadd.f32 %v9794_v13, %v9772_v45  ;;  %v14729_v2 = vadd.f32 %v9794_v13, %v9773_v33  ;;  %v9861_v60 = vmax.f32 %v14642_v16, 0.0  ;;  %v9862_v59 = vmax.f32 %v14645_v29, 0.0 }
 0x9f5   :  { %v9863_v28 = vmax.f32 %v14648_v63, 0.0  ;;  %v9871_v50 = vmax.f32 %v14703_v0, 0.0  ;;  %v9872_v5 = vmax.f32 %v14705_v27, 0.0  ;;  %v9873_v12 = vmax.f32 %v14707_v56, 0.0 }
 0x9f6   :  { %v9874_v17 = vmax.f32 %v14709_v61, 0.0  ;;  %v9875_v39 = vmax.f32 %v14711_v19, 0.0  ;;  %v9876_v45 = vmax.f32 %v14713_v48, 0.0  ;;  %v9877_v33 = vmax.f32 %v14715_v52, 0.0  ;;  %v9925_v48 = vpop.permute.xlu1 %9924 }
 0x9f7   :  { %v9878_v25 = vmax.f32 %v14673_v11, 0.0  ;;  %v9879_v16 = vmax.f32 %v14675_v3, 0.0  ;;  %v9880_v29 = vmax.f32 %v14677_v55, 0.0  ;;  %v9881_v63 = vmax.f32 %v14679_v40, 0.0 }
 0x9f8   :  { %v9882_v13 = vmax.f32 %v14681_v34, 0.0  ;;  %v9883_v0 = vmax.f32 %v14683_v18, 0.0  ;;  %v9884_v27 = vmax.f32 %v14685_v62, 0.0  ;;  %v9885_v56 = vmax.f32 %v14651_v43, 0.0 }
 0x9f9   :  { %v9886_v61 = vmax.f32 %v14654_v14, 0.0  ;;  %v9887_v19 = vmax.f32 %v14657_v10, 0.0  ;;  %v9888_v11 = vmax.f32 %v14660_v23, 0.0  ;;  %v9889_v3 = vmax.f32 %v14663_v44, 0.0 }
 0x9fa   :  { %v9890_v55 = vmax.f32 %v14666_v38, 0.0  ;;  %v9891_v40 = vmax.f32 %v14669_v41, 0.0  ;;  %v9899_v34 = vmax.f32 %v14717_v47, 0.0  ;;  %v9900_v18 = vmax.f32 %v14719_v49, 0.0  ;;  %v9935_v36 = vpop.permute.xlu1 %9934 }
 0x9fb   :  { %v9901_v62 = vmax.f32 %v14721_v31, 0.0  ;;  %v9902_v43 = vmax.f32 %v14723_v20, 0.0  ;;  %v9903_v14 = vmax.f32 %v14725_v7, 0.0  ;;  %v9904_v10 = vmax.f32 %v14727_v8, 0.0 }
 0x9fc   :  { %v9905_v23 = vmax.f32 %v14729_v2, 0.0  ;;  %v9906_v44 = vmax.f32 %v14687_v4, 0.0  ;;  %v9907_v38 = vmax.f32 %v14689_v26, 0.0  ;;  %v9908_v41 = vmax.f32 %v14691_v22, 0.0 }
 0x9fd   :  { %v9909_v52 = vmax.f32 %v14693_v53, 0.0  ;;  %v9910_v47 = vmax.f32 %v14695_v37, 0.0  ;;  %v9911_v49 = vmax.f32 %v14697_v58, 0.0  ;;  %v9912_v31 = vmax.f32 %v14699_v9, 0.0 }
 0x9fe   :  { %v15018_v20 = vmax.f32 %v14630_v46, 0.0  ;;  %v15019_v8 = vmax.f32 %v14633_v54, 0.0  ;;  %v9939_v26 = vmul.f32 %v14498_v30, %v9859_v1  ;;  %v9940_v22 = vmul.f32 %v14498_v30, %v9860_v57  ;;  %v9930_v46 = vpop.permute.xlu0 %9929 }
 0x9ff   :  { %v9941_v53 = vmul.f32 %v14498_v30, %v9861_v60  ;;  %v9942_v37 = vmul.f32 %v14498_v30, %v9862_v59  ;;  %v9943_v58 = vmul.f32 %v14498_v30, %v9863_v28  ;;  %v15020_v9 = vmax.f32 %v14559_v21, 0.0 }
 0xa00   :  { %v9937_v7 = vmul.f32 %v14498_v30, %v15018_v20  ;;  %v9938_v4 = vmul.f32 %v14498_v30, %v15019_v8  ;;  %v15021_v20 = vmax.f32 %v14561_v51, 0.0  ;;  %v15022_v8 = vmax.f32 %v14563_v24, 0.0  ;;  %v15026_v30 = vld [vmem:[#allocation45_spill] sm:$0xff] }
 0xa01   :  { %v9944_v2 = vmul.f32 %v9925_v48, %v15020_v9  ;;  %v15023_v1 = vmax.f32 %v14565_v6, 0.0  ;;  %v15024_v60 = vmax.f32 %v14567_v42, 0.0  ;;  %v15025_v59 = vmax.f32 %v14569_v15, 0.0 }
 0xa02   :  { %v9945_v54 = vmul.f32 %v9925_v48, %v15021_v20  ;;  %v9946_v35 = vmul.f32 %v9925_v48, %v15022_v8  ;;  %v15027_v21 = vmax.f32 %v15026_v30, 0.0  ;;  %v9951_v51 = vmul.f32 %v9930_v46, %v9871_v50 }
 0xa03   :  { %v9947_v57 = vmul.f32 %v9925_v48, %v15023_v1  ;;  %v9948_v32 = vmul.f32 %v9925_v48, %v15024_v60  ;;  %v9949_v28 = vmul.f32 %v9925_v48, %v15025_v59  ;;  %v9952_v20 = vmul.f32 %v9930_v46, %v9872_v5 }
 0xa04   :  { %v9950_v9 = vmul.f32 %v9925_v48, %v15027_v21  ;;  %v9953_v24 = vmul.f32 %v9930_v46, %v9873_v12  ;;  %v9954_v8 = vmul.f32 %v9930_v46, %v9874_v17  ;;  %v9955_v6 = vmul.f32 %v9930_v46, %v9875_v39  ;;  %v15028_v12 = vld [vmem:[#allocation43_spill] sm:$0xff] }
 0xa05   :  { %v9956_v1 = vmul.f32 %v9930_v46, %v9876_v45  ;;  %v9957_v42 = vmul.f32 %v9930_v46, %v9877_v33  ;;  %v9958_v60 = vmul.f32 %v9935_v36, %v9878_v25  ;;  %v9959_v15 = vmul.f32 %v9935_v36, %v9879_v16 }
 0xa06   :  { %v9960_v59 = vmul.f32 %v9935_v36, %v9880_v29  ;;  %v9961_v30 = vmul.f32 %v9935_v36, %v9881_v63  ;;  %v9962_v21 = vmul.f32 %v9935_v36, %v9882_v13  ;;  %v9963_v50 = vmul.f32 %v9935_v36, %v9883_v0  ;;  %v15035_v63 = vld [vmem:[#allocation46_spill] sm:$0xff] }
 0xa07   :  { %v9964_v5 = vmul.f32 %v9935_v36, %v9884_v27  ;;  %v9965_v17 = vmul.f32 %v15028_v12, %v9885_v56  ;;  %v14796_v39 = vmul.f32 %v15028_v12, %v9886_v61  ;;  %v14799_v45 = vmul.f32 %v15028_v12, %v9887_v19  ;;  %v15037_v27 = vld [vmem:[#allocation47_spill] sm:$0xff]  ;;  %v15039_v19 = vld [vmem:[#allocation48_spill] sm:$0xff] }
 0xa08   :  { %v14802_v33 = vmul.f32 %v15028_v12, %v9888_v11  ;;  %v14805_v25 = vmul.f32 %v15028_v12, %v9889_v3  ;;  %v14808_v16 = vmul.f32 %v15028_v12, %v9890_v55  ;;  %v14811_v29 = vmul.f32 %v15028_v12, %v9891_v40  ;;  %v15043_v55 = vld [vmem:[#allocation50_spill] sm:$0xff]  ;;  %v15045_v40 = vld [vmem:[#allocation51_spill] sm:$0xff] }
 0xa09   :  { %15029 = vst [vmem:[#allocation37_spill] sm:$0xff] %v14796_v39  ;;  %15030 = vst [vmem:[#allocation38_spill] sm:$0xff] %v14799_v45  ;;  %v15036_v13 = vmax.f32 %v15035_v63, 0.0  ;;  %v15038_v56 = vmax.f32 %v15037_v27, 0.0  ;;  %v15040_v45 = vmax.f32 %v15039_v19, 0.0  ;;  %v15046_v12 = vmax.f32 %v15045_v40, 0.0 }
 0xa0a   :  { %15031 = vst [vmem:[#allocation41_spill] sm:$0xff] %v14802_v33  ;;  %15032 = vst [vmem:[#allocation26_spill] sm:$0xff] %v14805_v25  ;;  %v15041_v33 = vld [vmem:[#allocation49_spill] sm:$0xff]  ;;  %v14839_v19 = vmul.f32 %v9930_v46, %v9900_v18  ;;  %v9986_v40 = vmul.f32 %v9935_v36, %v9906_v44  ;;  %v14859_v18 = vmul.f32 %v9935_v36, %v9911_v49 }
 0xa0b   :  { %15033 = vst [vmem:[#allocation27_spill] sm:$0xff] %v14808_v16  ;;  %15034 = vst [vmem:[#allocation28_spill] sm:$0xff] %v14811_v29  ;;  %v9972_v0 = vmul.f32 %v9925_v48, %v15036_v13  ;;  %v14817_v61 = vmul.f32 %v9925_v48, %v15038_v56  ;;  %v14821_v11 = vmul.f32 %v9925_v48, %v15040_v45  ;;  %v15042_v3 = vmax.f32 %v15041_v33, 0.0  ;;  %v15048_v13 = vld [vmem:[#allocation52_spill] sm:$0xff] }
 0xa0c   :  { %v15044_v16 = vmax.f32 %v15043_v55, 0.0  ;;  %v14833_v63 = vmul.f32 %v9925_v48, %v15046_v12  ;;  %v15049_v27 = vmax.f32 %v15048_v13, 0.0  ;;  %v9979_v29 = vmul.f32 %v9930_v46, %v9899_v34  ;;  %15054 = vst [vmem:[#allocation34_spill] sm:$0xff] %v14859_v18 }
 0xa0d   :  { %v14825_v25 = vmul.f32 %v9925_v48, %v15042_v3  ;;  %v14841_v45 = vmul.f32 %v9930_v46, %v9901_v62  ;;  %v14843_v33 = vmul.f32 %v9930_v46, %v9902_v43  ;;  %v14845_v3 = vmul.f32 %v9930_v46, %v9903_v14 }
 0xa0e   :  { %v14829_v39 = vmul.f32 %v9925_v48, %v15044_v16  ;;  %15047 = vst [vmem:[#allocation29_spill] sm:$0xff] %v14833_v63  ;;  %v14837_v56 = vmul.f32 %v9925_v48, %v15049_v27  ;;  %v14847_v55 = vmul.f32 %v9930_v46, %v9904_v10  ;;  %v14849_v16 = vmul.f32 %v9930_v46, %v9905_v23 }
 0xa0f   :  { %v14851_v12 = vmul.f32 %v9935_v36, %v9907_v38  ;;  %v14853_v63 = vmul.f32 %v9935_v36, %v9908_v41  ;;  %v14855_v48 = vmul.f32 %v9935_v36, %v9909_v52  ;;  %v14857_v34 = vmul.f32 %v9935_v36, %v9910_v47 }
 0xa10   :  { %v14861_v62 = vmul.f32 %v9935_v36, %v9912_v31  ;;  %v9993_v43 = vadd.f32 %v9944_v2, %v9937_v7  ;;  %v10002_v14 = vadd.f32 %v9945_v54, %v9938_v4  ;;  %v10011_v13 = vadd.f32 %v9946_v35, %v9939_v26 }
 0xa11   :  { %15050 = vst [vmem:[#allocation30_spill] sm:$0xff] %v14851_v12  ;;  %15051 = vst [vmem:[#allocation31_spill] sm:$0xff] %v14853_v63  ;;  %v10020_v10 = vadd.f32 %v9947_v57, %v9940_v22  ;;  %v10029_v27 = vadd.f32 %v9948_v32, %v9941_v53  ;;  %v10038_v23 = vadd.f32 %v9949_v28, %v9942_v37 }
 0xa12   :  { %15052 = vst [vmem:[#allocation32_spill] sm:$0xff] %v14855_v48  ;;  %15053 = vst [vmem:[#allocation33_spill] sm:$0xff] %v14857_v34  ;;  %v10047_v46 = vadd.f32 %v9950_v9, %v9943_v58  ;;  %v10056_v44 = vadd.f32 %v9972_v0, %v9965_v17  ;;  %v9994_v38 = vadd.f32 %v9993_v43, %v9951_v51 }
 0xa13   :  { %v10003_v12 = vadd.f32 %v10002_v14, %v9952_v20  ;;  %v10012_v41 = vadd.f32 %v10011_v13, %v9953_v24  ;;  %v10021_v63 = vadd.f32 %v10020_v10, %v9954_v8  ;;  %v10030_v52 = vadd.f32 %v10029_v27, %v9955_v6 }
 0xa14   :  { %v10039_v48 = vadd.f32 %v10038_v23, %v9956_v1  ;;  %v10048_v47 = vadd.f32 %v10047_v46, %v9957_v42  ;;  %v10057_v34 = vadd.f32 %v10056_v44, %v9979_v29  ;;  %v9995_v49 = vadd.f32 %v9994_v38, %v9958_v60 }
 0xa15   :  { %v10004_v18 = vadd.f32 %v10003_v12, %v9959_v15  ;;  %v10013_v36 = vadd.f32 %v10012_v41, %v9960_v59  ;;  %v10022_v31 = vadd.f32 %v10021_v63, %v9961_v30  ;;  %v10031_v7 = vadd.f32 %v10030_v52, %v9962_v21 }
 0xa16   :  { %v10040_v4 = vadd.f32 %v10039_v48, %v9963_v50  ;;  %v10049_v35 = vadd.f32 %v10048_v47, %v9964_v5  ;;  %v10058_v26 = vadd.f32 %v10057_v34, %v9986_v40  ;;  %v9996_v32 = vrot.slane %v9995_v49, 4 }
 0xa17   :  { %v10005_v22 = vrot.slane %v10004_v18, 4  ;;  %v10014_v53 = vrot.slane %v10013_v36, 4  ;;  %v10023_v37 = vrot.slane %v10022_v31, 4  ;;  %v10032_v58 = vrot.slane %v10031_v7, 4 }
 0xa18   :  { %v10041_v2 = vrot.slane %v10040_v4, 4  ;;  %v10050_v54 = vrot.slane %v10049_v35, 4  ;;  %v10059_v57 = vrot.slane %v10058_v26, 4  ;;  %v9997_v28 = vadd.f32 %v9996_v32, %v9995_v49  ;;  %v15057_v32 = vld [vmem:[#allocation41_spill] sm:$0xff] }
 0xa19   :  { %v10006_v9 = vadd.f32 %v10005_v22, %v10004_v18  ;;  %v10015_v51 = vadd.f32 %v10014_v53, %v10013_v36  ;;  %v10024_v20 = vadd.f32 %v10023_v37, %v10022_v31  ;;  %v10033_v24 = vadd.f32 %v10032_v58, %v10031_v7  ;;  %v15055_v7 = vld [vmem:[#allocation37_spill] sm:$0xff]  ;;  %v15058_v53 = vld [vmem:[#allocation26_spill] sm:$0xff]  ;;  %v15059_v58 = vld [vmem:[#allocation27_spill] sm:$0xff] }
 0xa1a   :  { %v10042_v8 = vadd.f32 %v10041_v2, %v10040_v4  ;;  %v10051_v6 = vadd.f32 %v10050_v54, %v10049_v35  ;;  %v10060_v1 = vadd.f32 %v10059_v57, %v10058_v26  ;;  %v9998_v42 = vrot.slane %v9997_v28, 2  ;;  %v15056_v35 = vld [vmem:[#allocation38_spill] sm:$0xff]  ;;  %v15060_v2 = vld [vmem:[#allocation29_spill] sm:$0xff]  ;;  %v15061_v57 = vld [vmem:[#allocation28_spill] sm:$0xff] }
 0xa1b   :  { %v10007_v60 = vrot.slane %v10006_v9, 2  ;;  %v10016_v15 = vrot.slane %v10015_v51, 2  ;;  %v10025_v59 = vrot.slane %v10024_v20, 2  ;;  %v10034_v30 = vrot.slane %v10033_v24, 2 }
 0xa1c   :  { %v10043_v21 = vrot.slane %v10042_v8, 2  ;;  %v10052_v50 = vrot.slane %v10051_v6, 2  ;;  %v10061_v5 = vrot.slane %v10060_v1, 2  ;;  %v9999_v17 = vadd.f32 %v9998_v42, %v9997_v28 }
 0xa1d   :  { %v10008_v29 = vadd.f32 %v10007_v60, %v10006_v9  ;;  %v10017_v0 = vadd.f32 %v10016_v15, %v10015_v51  ;;  %v10026_v63 = vadd.f32 %v10025_v59, %v10024_v20  ;;  %v10035_v40 = vadd.f32 %v10034_v30, %v10033_v24  ;;  %v15063_v60 = vld [vmem:[#allocation31_spill] sm:$0xff]  ;;  %v15064_v15 = vld [vmem:[#allocation32_spill] sm:$0xff]  ;;  %v15065_v30 = vld [vmem:[#allocation33_spill] sm:$0xff] }
 0xa1e   :  { %v10044_v12 = vadd.f32 %v10043_v21, %v10042_v8  ;;  %v10053_v48 = vadd.f32 %v10052_v50, %v10051_v6  ;;  %v10062_v34 = vadd.f32 %v10061_v5, %v10060_v1  ;;  %v10000_v18 = vrot.slane %v9999_v17, 1  ;;  %v15062_v1 = vld [vmem:[#allocation30_spill] sm:$0xff] }
 0xa1f   :  { %v10009_v43 = vrot.slane %v10008_v29, 1  ;;  %v10018_v14 = vrot.slane %v10017_v0, 1  ;;  %v10027_v13 = vrot.slane %v10026_v63, 1  ;;  %v10036_v10 = vrot.slane %v10035_v40, 1  ;;  %v15066_v21 = vld [vmem:[#allocation34_spill] sm:$0xff] }
 0xa20   :  { %v10045_v27 = vrot.slane %v10044_v12, 1  ;;  %v10054_v23 = vrot.slane %v10053_v48, 1  ;;  %v10063_v46 = vrot.slane %v10062_v34, 1  ;;  %v10001_v44 = vadd.f32 %v10000_v18, %v9999_v17 }
 0xa21   :  { %v10010_v38 = vadd.f32 %v10009_v43, %v10008_v29  ;;  %v10019_v41 = vadd.f32 %v10018_v14, %v10017_v0  ;;  %v10028_v52 = vadd.f32 %v10027_v13, %v10026_v63  ;;  %v10037_v47 = vadd.f32 %v10036_v10, %v10035_v40 }
 0xa22   :  { %v10046_v49 = vadd.f32 %v10045_v27, %v10044_v12  ;;  %v14863_v36 = vadd.f32 %v10054_v23, %v10053_v48  ;;  %v14865_v31 = vadd.f32 %v10063_v46, %v10062_v34  ;;  %v10065_v4 = vadd.f32 %v14817_v61, %v15055_v7 }
 0xa23   :  { %v10074_v26 = vadd.f32 %v14821_v11, %v15056_v35  ;;  %v10083_v22 = vadd.f32 %v14825_v25, %v15057_v32  ;;  %v10092_v37 = vadd.f32 %v14829_v39, %v15058_v53  ;;  %v10101_v54 = vadd.f32 %v15060_v2, %v15059_v58 }
 0xa24   :  { %v10110_v28 = vadd.f32 %v14837_v56, %v15061_v57  ;;  %v10119_v9 = vmax.f32 %v10001_v44, 0.0  ;;  %v10120_v51 = vmax.f32 %v10010_v38, 0.0  ;;  %v10066_v20 = vadd.f32 %v10065_v4, %v14839_v19 }
 0xa25   :  { %v10075_v61 = vadd.f32 %v10074_v26, %v14841_v45  ;;  %v10084_v11 = vadd.f32 %v10083_v22, %v14843_v33  ;;  %v10093_v24 = vadd.f32 %v10092_v37, %v14845_v3  ;;  %v10102_v25 = vadd.f32 %v10101_v54, %v14847_v55 }
 0xa26   :  { %v10111_v39 = vadd.f32 %v10110_v28, %v14849_v16  ;;  %v10121_v8 = vmax.f32 %v10019_v41, 0.0  ;;  %v10122_v6 = vmax.f32 %v10028_v52, 0.0  ;;  %v10067_v42 = vadd.f32 %v10066_v20, %v15062_v1  ;;  %v15067_v41 = vld [vmem:[#allocation44_spill] sm:$0xff] }
 0xa27   :  { %v10076_v56 = vadd.f32 %v10075_v61, %v15063_v60  ;;  %v10085_v59 = vadd.f32 %v10084_v11, %v15064_v15  ;;  %v10094_v19 = vadd.f32 %v10093_v24, %v15065_v30  ;;  %v10103_v45 = vadd.f32 %v10102_v25, %v15066_v21 }
 0xa28   :  { %v10112_v33 = vadd.f32 %v10111_v39, %v14861_v62  ;;  %v10123_v50 = vmax.f32 %v10037_v47, 0.0  ;;  %v10124_v3 = vmax.f32 %v10046_v49, 0.0  ;;  %v10068_v5 = vrot.slane %v10067_v42, 4 }
 0xa29   :  { %v10077_v55 = vrot.slane %v10076_v56, 4  ;;  %v10086_v17 = vrot.slane %v10085_v59, 4  ;;  %v10095_v16 = vrot.slane %v10094_v19, 4  ;;  %v10104_v29 = vrot.slane %v10103_v45, 4 }
 0xa2a   :  { %v10113_v0 = vrot.slane %v10112_v33, 4  ;;  %v10125_v63 = vmax.f32 %v14863_v36, 0.0  ;;  %v10126_v40 = vmax.f32 %v14865_v31, 0.0  ;;  %v10069_v12 = vadd.f32 %v10068_v5, %v10067_v42 }
 0xa2b   :  { %v10078_v48 = vadd.f32 %v10077_v55, %v10076_v56  ;;  %v10087_v34 = vadd.f32 %v10086_v17, %v10085_v59  ;;  %v10096_v18 = vadd.f32 %v10095_v16, %v10094_v19  ;;  %v10105_v43 = vadd.f32 %v10104_v29, %v10103_v45 }
 0xa2c   :  { %v10114_v14 = vadd.f32 %v10113_v0, %v10112_v33  ;;  %v10147_v13 = vcombine.low %v10119_v9, %v10120_v51  ;;  %v10148_v62 = vcombine.low %v10121_v8, %v10122_v6  ;;  %v10070_v10 = vrot.slane %v10069_v12, 2 }
 0xa2d   :  { %v10079_v27 = vrot.slane %v10078_v48, 2  ;;  %v10088_v23 = vrot.slane %v10087_v34, 2  ;;  %v10097_v46 = vrot.slane %v10096_v18, 2  ;;  %v10106_v44 = vrot.slane %v10105_v43, 2 }
 0xa2e   :  { %v10115_v38 = vrot.slane %v10114_v14, 2  ;;  %v10155_v52 = vrot.slane %v10147_v13, %v15067_v41  ;;  %v10162_v47 = vrot.slane %v10148_v62, %v15067_v41  ;;  %v10071_v49 = vadd.f32 %v10070_v10, %v10069_v12 }
 0xa2f   :  { %v10080_v36 = vadd.f32 %v10079_v27, %v10078_v48  ;;  %v10089_v31 = vadd.f32 %v10088_v23, %v10087_v34  ;;  %v10098_v7 = vadd.f32 %v10097_v46, %v10096_v18  ;;  %v10107_v4 = vadd.f32 %v10106_v44, %v10105_v43 }
 0xa30   :  { %v10116_v35 = vadd.f32 %v10115_v38, %v10114_v14  ;;  %v10163_v26 = vcombine.low %v10155_v52, %v10162_v47  ;;  %v10164_v32 = vcombine.low %v10123_v50, %v10124_v3  ;;  %v10072_v22 = vrot.slane %v10071_v49, 1 }
 0xa31   :  { %v10081_v53 = vrot.slane %v10080_v36, 1  ;;  %v10090_v37 = vrot.slane %v10089_v31, 1  ;;  %v10099_v58 = vrot.slane %v10098_v7, 1  ;;  %v10108_v2 = vrot.slane %v10107_v4, 1 }
 0xa32   :  { %v10117_v54 = vrot.slane %v10116_v35, 1  ;;  %v10171_v57 = vrot.slane %v10164_v32, %v15067_v41  ;;  %v10178_v28 = vrot.slane %v10125_v63, %v15067_v41  ;;  %v10073_v9 = vadd.f32 %v10072_v22, %v10071_v49 }
 0xa33   :  { %v10082_v51 = vadd.f32 %v10081_v53, %v10080_v36  ;;  %v10091_v20 = vadd.f32 %v10090_v37, %v10089_v31  ;;  %v10100_v61 = vadd.f32 %v10099_v58, %v10098_v7  ;;  %v10109_v11 = vadd.f32 %v10108_v2, %v10107_v4 }
 0xa34   :  { %v10118_v24 = vadd.f32 %v10117_v54, %v10116_v35  ;;  %v10179_v25 = vcombine.low %v10171_v57, %v10178_v28  ;;  %v10127_v39 = vmax.f32 %v10073_v9, 0.0 }
 0xa35   :  { %v10128_v8 = vmax.f32 %v10082_v51, 0.0  ;;  %v10129_v6 = vmax.f32 %v10091_v20, 0.0  ;;  %v10130_v1 = vmax.f32 %v10100_v61, 0.0  ;;  %v10131_v42 = vmax.f32 %v10109_v11, 0.0 }
 0xa36   :  { %v10132_v60 = vmax.f32 %v10118_v24, 0.0  ;;  %v10180_v56 = vcombine.low %v10126_v40, %v10127_v39 }
 0xa37   :  { %v10181_v15 = vcombine.low %v10128_v8, %v10129_v6  ;;  %v10197_v59 = vcombine.low %v10130_v1, %v10131_v42 }
 0xa38   :  { %v10188_v30 = vrot.slane %v10180_v56, %v15067_v41  ;;  %v10211_v45 = vrot.slane %v10132_v60, %v15067_v41 }
 0xa39   :  { %v10195_v19 = vrot.slane %v10181_v15, %v15067_v41  ;;  %v10204_v21 = vrot.slane %v10197_v59, %v15067_v41 }
 0xa3b   :  { %v10196_v33 = vcombine.low %v10188_v30, %v10195_v19  ;;  %v10212_v50 = vcombine.low %v10204_v21, %v10211_v45 }
 0xa3d   :  { %v10217_v3 = vrot.slane %v10196_v33, 7  ;;  %v10228_v5 = vrot.slane %v10212_v50, 7 }
 0xa3f   :  { %v10219_v55 = vsel %vm10218_vm0, %v10217_v3, %v10163_v26  ;;  %v10229_v16 = vsel %vm10218_vm0, %v10228_v5, %v10179_v25 }
 0xa40   :  { %v10221_v17 = vsel %vm10220_vm13, %v10217_v3, %v10219_v55  ;;  %v10230_v0 = vsel %vm10220_vm13, %v10228_v5, %v10229_v16 }
 0xa41   :  { %v10223_v29 = vsel %vm10222_vm14, %v10217_v3, %v10221_v17  ;;  %v10231_v40 = vsel %vm10222_vm14, %v10228_v5, %v10230_v0 }
 0xa42   :  { %v10225_v63 = vsel %vm10224_vm15, %v10217_v3, %v10223_v29  ;;  %v10232_v12 = vsel %vm10224_vm15, %v10228_v5, %v10231_v40 }
 0xa43   :  { %10235 = vst [vmem:[#allocation19] sm:$0xff] %v10225_v63  ;;  %10236 = vst [vmem:[#allocation19 + $0x8] sm:$0x3f] %v10232_v12 }
 0xa44   :  { %13228 = shalt.err (!%p13225_p6)
}
 0xa45   :  { %s13229_s6 = scalar_lea.hbm %s14925_s12, 224 }
 0xa46   :  { %p13230_p7 = scmp.ne.s32.totalorder %s14925_s12, %s13229_s6  ;;  %p13233_p8 = scmp.lt.u32.totalorder %s13229_s6, %s14925_s12 }
 0xa48   :  { %p13235_p9 = pnand %p13233_p8, %p13230_p7 }
 0xa4a   :  { %13238 = shalt.err (!%p13235_p9)
}
 0xa4b   :  { %10246 = dma.vmem_to_hbm [thread:$0]  %s10244_s10, 224, %s14925_s12, [#allocation6]  }
 0xa4c   :  { %13249 = dma.done.wait [#allocation6], 224  }
 0xa4d   :  { %13250 = vsyncadd [#allocation6], 4294967072 }
 0xa4e   :  { %10250 = vsyncpa [#allocation5], 1 }
 0xa4f   :  { %10251 = vsyncpa [#allocation8], 1 }
 0xa50   :  { %10252 = vsyncpa [#allocation11], 1 }
 0xa51   :  { %10253 = vsyncpa [#allocation14], 1 }
 0xa52   :  { %10254 = vsyncpa [#allocation17], 1 }
 0xa53   :  { %10255 = vsyncpa [#allocation6], 1 }

</bundles_post_ra>
